<compile_context>
chip_gen: v7x
topology: tpu7x:2x2x1
jax: 0.10.0
libtpu: 0.0.40
codegen_flags: <defaults>
</compile_context>

<pallas_src>
import numpy as np
import jax
import jax.numpy as jnp
from jax.experimental import pallas as pl
from jax.experimental.pallas import tpu as pltpu

# ----- configuration (EmbededNeRF defaults) -----
INPUT_CH_PTS = 3
INPUT_CH_VIEW = 3
N_FREQ = 10                                          # sinusoidal n_frequencies
SH_DEGREE = 4                                        # spherical degree -> 16 coeffs
D = 8
W = 256
W_HALF = W // 2                                      # 128
PTS_IN = INPUT_CH_PTS + INPUT_CH_PTS * 2 * N_FREQ    # 63
PTS_IN_PAD = 64                                      # lane-friendly padded width
VIEW_IN = SH_DEGREE ** 2                             # 16


def _pick_tile_n(n):
    """Pick the points-per-grid-step tile.

    Larger tiles amortize the ~0.35us per-grid-step overhead (review: at 512 that is ~35% of
    wall on v6e/v7x). Keep at least 2 tiles so the "parallel" grid axis splits across both
    v7x TensorCores.
    """
    for t in (2048, 1024, 512):
        if n >= 2 * t:
            return t
    return 512


# ---------------------------------------------------------------------------
# Embedders (plain-JAX glue: pure elementwise feature construction, f32 math)
# ---------------------------------------------------------------------------
def sinusoidal_embed(x):
    # [..., 3] -> [..., 63]; order: [x, sin(2^0 x), cos(2^0 x), ..., sin(2^9 x), cos(2^9 x)]
    outs = [x]
    for k in range(N_FREQ):
        f = np.float32(2.0 ** k)
        outs.append(jnp.sin(f * x))
        outs.append(jnp.cos(f * x))
    return jnp.concatenate(outs, axis=-1)


def spherical_harmonics_embed(d):
    # real SH basis, bands l=0..3 -> 16 features; d assumed unit-norm [..., 3]
    x, y, z = d[..., 0], d[..., 1], d[..., 2]
    xx, yy, zz = x * x, y * y, z * z
    xy, yz, xz = x * y, y * z, x * z
    sh = [
        0.28209479177387814 * jnp.ones_like(x),
        -0.48860251190291987 * y,
        0.48860251190291987 * z,
        -0.48860251190291987 * x,
        1.0925484305920792 * xy,
        -1.0925484305920792 * yz,
        0.31539156525252005 * (2.0 * zz - xx - yy),
        -1.0925484305920792 * xz,
        0.5462742152960396 * (xx - yy),
        -0.5900435899266435 * y * (3.0 * xx - yy),
        2.890611442640554 * xy * z,
        -0.4570457994644658 * y * (4.0 * zz - xx - yy),
        0.3731763325901154 * z * (2.0 * zz - 3.0 * xx - 3.0 * yy),
        -0.4570457994644658 * x * (4.0 * zz - xx - yy),
        1.445305721320277 * z * (xx - yy),
        -0.5900435899266435 * x * (xx - 3.0 * yy),
    ]
    return jnp.stack(sh, axis=-1)


# ---------------------------------------------------------------------------
# Pure-JAX reference MLP (f32, unfused weights) — source of truth for the test
# ---------------------------------------------------------------------------
def _mlp_compute(xe, ve, params, dot):
    (w0, b0, w1, b1, w2, b2, w3, b3,
     w4x, w4h, b4, w5, b5, w6, b6, w7, b7,
     w8, b8, wsig, bsig, r0h, r0v, br0, r1, br1, r2, br2) = params

    relu = lambda t: jnp.maximum(t, 0.0)

    h = relu(dot(xe, w0) + b0)
    h = relu(dot(h, w1) + b1)
    h = relu(dot(h, w2) + b2)
    h = relu(dot(h, w3) + b3)
    # skip layer 4: input = concat([pts_embed, h], -1); implemented as split matmul
    h = relu(dot(xe, w4x) + dot(h, w4h) + b4)
    h = relu(dot(h, w5) + b5)
    h = relu(dot(h, w6) + b6)
    h = relu(dot(h, w7) + b7)
    h = dot(h, w8) + b8                      # pts_blocks output layer, output_activation='none'

    sigma = dot(h, wsig) + bsig              # sigma_activation='none'

    # rgb head: input = concat([h, view_embed], -1); implemented as split matmul
    r = relu(dot(h, r0h) + dot(ve, r0v) + br0)
    r = relu(dot(r, r1) + br1)
    rgb = jax.nn.sigmoid(dot(r, r2) + br2)   # rgb_activation='sigmoid'
    return rgb, sigma


# ---------------------------------------------------------------------------
# Pallas kernel: full MLP for one tile of points (bf16 matmuls, f32 accumulate,
# bf16 inter-layer activations)
# ---------------------------------------------------------------------------
def _nerf_mlp_kernel(xe_ref,      # (T, 64)       bf16 : padded positional embedding
                     ve_ref,      # (T, 16)       bf16 : SH view embedding
                     w_in_ref,    # (2, 64, 256)  bf16 : [w0, w4x] (zero-padded 64th row)
                     w_hid_ref,   # (8, 256, 256) bf16 : [w1,w2,w3,w4h,w5,w6,w7,w8]
                     b_hid_ref,   # (9, 256)      f32  : [b0..b8]
                     w_r0_ref,    # (256, 129)    bf16 : [r0h | wsig]
                     b_r0_ref,    # (1, 129)      f32  : [br0 | bsig]
                     w_r0v_ref,   # (16, 128)     bf16
                     w_r1_ref,    # (128, 128)    bf16
                     b_r1_ref,    # (1, 128)      f32
                     w_r2_ref,    # (128, 3)      bf16
                     b_r2_ref,    # (1, 3)        f32
                     out_ref):    # (TILE_N, 4)   f32  : [rgb | sigma]
    bf16 = jnp.bfloat16
    f32 = jnp.float32

    def mm(a_bf16, w_bf16):
        # bf16 x bf16 operands, f32 accumulation -> native MXU mode
        return jnp.dot(a_bf16, w_bf16, preferred_element_type=f32)

    def act(acc_f32, bias_f32):
        # bias-add + ReLU on the f32 accumulator (v5e-friendly), single cast to bf16 so the
        # next matmul reads a bf16 activation (half the VMEM ld/st, no per-dot cast pass).
        return jnp.maximum(acc_f32 + bias_f32, 0.0).astype(bf16)

    xe = xe_ref[...]                       # (T, 64) bf16
    ve = ve_ref[...]                       # (T, 16) bf16
    b_hid = b_hid_ref[...]                 # (9, 256) f32

    # pts_blocks (D=8 hidden layers, skip at layer 4, linear output layer)
    h = act(mm(xe, w_in_ref[0]), b_hid[0:1, :])
    h = act(mm(h, w_hid_ref[0]), b_hid[1:2, :])
    h = act(mm(h, w_hid_ref[1]), b_hid[2:3, :])
    h = act(mm(h, w_hid_ref[2]), b_hid[3:4, :])
    # skip layer: two dots kept adjacent & summed directly (accumulates in the MXU result
    # buffer on v7x, no extra f32 round trip)
    h = act(mm(xe, w_in_ref[1]) + mm(h, w_hid_ref[3]), b_hid[4:5, :])
    h = act(mm(h, w_hid_ref[4]), b_hid[5:6, :])
    h = act(mm(h, w_hid_ref[5]), b_hid[6:7, :])
    h = act(mm(h, w_hid_ref[6]), b_hid[7:8, :])
    h = (mm(h, w_hid_ref[7]) + b_hid[8:9, :]).astype(bf16)   # output layer, no activation

    # fused [rgb-layer-0 | sigma] matmul
    t = mm(h, w_r0_ref[...]) + b_r0_ref[...]        # (T, 129) f32
    sigma = t[:, W_HALF:W_HALF + 1]                 # (T, 1) = h @ wsig + bsig
    r = jnp.maximum(t[:, :W_HALF] + mm(ve, w_r0v_ref[...]), 0.0).astype(bf16)
    r = jnp.maximum(mm(r, w_r1_ref[...]) + b_r1_ref[...], 0.0).astype(bf16)
    rgb = jax.nn.sigmoid(mm(r, w_r2_ref[...]) + b_r2_ref[...])            # (T, 3) f32

    out_ref[:, 0:3] = rgb.astype(out_ref.dtype)
    out_ref[:, 3:4] = sigma.astype(out_ref.dtype)


# ---------------------------------------------------------------------------
# Parameter init (deterministic, synthetic) — 28 f32 arrays (reference layout)
# ---------------------------------------------------------------------------
def make_params(key):
    keys = list(jax.random.split(key, 64))
    kit = iter(keys)

    def wmat(fi, fo, fan=None):
        fan = fi if fan is None else fan
        return jax.random.normal(next(kit), (fi, fo), jnp.float32) * np.float32(1.0 / np.sqrt(fan))

    def bvec(fo):
        return 0.01 * jax.random.normal(next(kit), (1, fo), jnp.float32)

    p = []
    p += [wmat(PTS_IN, W), bvec(W)]                         # pts layer 0
    for _ in range(3):                                      # pts layers 1..3
        p += [wmat(W, W), bvec(W)]
    fan = PTS_IN + W                                        # pts skip layer 4 (split weight)
    p += [wmat(PTS_IN, W, fan), wmat(W, W, fan), bvec(W)]
    for _ in range(3):                                      # pts layers 5..7
        p += [wmat(W, W), bvec(W)]
    p += [wmat(W, W), bvec(W)]                              # pts output layer (no act)
    p += [wmat(W, 1), bvec(1)]                              # sigma head
    fan = W + VIEW_IN                                       # rgb layer 0 (split weight)
    p += [wmat(W, W_HALF, fan), wmat(VIEW_IN, W_HALF, fan), bvec(W_HALF)]
    p += [wmat(W_HALF, W_HALF), bvec(W_HALF)]               # rgb layer 1
    p += [wmat(W_HALF, 3), bvec(3)]                         # rgb output layer (sigmoid)
    return p                                                # 28 arrays


def pack_kernel_params(params):
    """Pack the 28 reference arrays into 10 kernel slabs (weights bf16, biases f32)."""
    (w0, b0, w1, b1, w2, b2, w3, b3,
     w4x, w4h, b4, w5, b5, w6, b6, w7, b7,
     w8, b8, wsig, bsig, r0h, r0v, br0, r1, br1, r2, br2) = params
    bf16 = jnp.bfloat16
    pad = PTS_IN_PAD - PTS_IN
    w0p = jnp.pad(w0, ((0, pad), (0, 0)))                                   # zero 64th row
    w4xp = jnp.pad(w4x, ((0, pad), (0, 0)))
    w_in = jnp.stack([w0p, w4xp], axis=0).astype(bf16)                      # (2, 64, 256)
    w_hid = jnp.stack([w1, w2, w3, w4h, w5, w6, w7, w8], axis=0).astype(bf16)  # (8, 256, 256)
    b_hid = jnp.concatenate([b0, b1, b2, b3, b4, b5, b6, b7, b8], axis=0)   # (9, 256) f32
    w_r0 = jnp.concatenate([r0h, wsig], axis=1).astype(bf16)                # (256, 129)
    b_r0 = jnp.concatenate([br0, bsig], axis=1)                             # (1, 129) f32
    return (w_in, w_hid, b_hid, w_r0, b_r0,
            r0v.astype(bf16), r1.astype(bf16), br1, r2.astype(bf16), br2)


def _weight_spec(arr):
    nd = arr.ndim
    # Grid-invariant block (index_map always (0,..,0)) -> DMA'd once, VMEM-resident.
    return pl.BlockSpec(arr.shape, lambda i: (0,) * nd)


# ---------------------------------------------------------------------------
# Wrapper: embeddings in JAX (f32 math, bf16 streamed), MLP in Pallas
# ---------------------------------------------------------------------------
def embeded_nerf_forward(x, v, params, *, tile_n=None):
    n = x.shape[0]
    tile_n = _pick_tile_n(n) if tile_n is None else tile_n

    # sin/cos of high frequencies must be computed in f32; stream the result as bf16 (matches
    # the matmul operand precision and halves the embedding-pass HBM round trip).
    xe = sinusoidal_embed(x)                                                # (N, 63) f32
    xe = jnp.pad(xe, ((0, 0), (0, PTS_IN_PAD - PTS_IN))).astype(jnp.bfloat16)   # (N, 64) bf16
    ve = spherical_harmonics_embed(v).astype(jnp.bfloat16)                  # (N, 16) bf16

    pad = (-n) % tile_n
    if pad:
        xe = jnp.pad(xe, ((0, pad), (0, 0)))
        ve = jnp.pad(ve, ((0, pad), (0, 0)))
    n_pad = n + pad

    kparams = pack_kernel_params(params)

    grid = (n_pad // tile_n,)
    in_specs = [
        pl.BlockSpec((tile_n, PTS_IN_PAD), lambda i: (i, 0)),
        pl.BlockSpec((tile_n, VIEW_IN), lambda i: (i, 0)),
    ] + [_weight_spec(p) for p in kparams]
    out_specs = pl.BlockSpec((tile_n, 4), lambda i: (i, 0))
    out_shape = jax.ShapeDtypeStruct((n_pad, 4), jnp.float32)

    macs_per_point = (PTS_IN_PAD * W + 3 * W * W + (PTS_IN_PAD * W + W * W) + 3 * W * W + W * W
                      + W * (W_HALF + 1) + VIEW_IN * W_HALF + W_HALF * W_HALF + W_HALF * 3)
    weight_bytes = sum(int(np.prod(p.shape)) * p.dtype.itemsize for p in kparams)
    cost = pl.CostEstimate(
        flops=int(2 * macs_per_point * n_pad),
        transcendentals=int(3 * n_pad),
        bytes_accessed=int(n_pad * ((PTS_IN_PAD + VIEW_IN) * 2 + 4 * 4) + weight_bytes),
    )

    out = pl.pallas_call(
        _nerf_mlp_kernel,
        out_shape=out_shape,
        grid_spec=pltpu.PrefetchScalarGridSpec(
            num_scalar_prefetch=0,
            grid=grid,
            in_specs=in_specs,
            out_specs=out_specs,
        ),
        compiler_params=pltpu.CompilerParams(
            dimension_semantics=("parallel",),
            # explicit limit so big tiles don't trip v5e's 16 MiB default scoped-VMEM limit
            vmem_limit_bytes=32 * 1024 * 1024,
        ),
        cost_estimate=cost,
    )(xe, ve, *kparams)

    # matches torch: dict(radiances=rgb, sigma=sigma.squeeze(-1))
    return dict(radiances=out[:n, 0:3], sigma=out[:n, 3])


def reference_forward(x, v, params):
    xe = sinusoidal_embed(x)
    ve = spherical_harmonics_embed(v)
    dot = lambda a, b: jnp.dot(a, b, precision=jax.lax.Precision.HIGHEST)
    rgb, sigma = _mlp_compute(xe, ve, tuple(params), dot)
    return rgb, sigma[..., 0]


# TODO(synk): AABBSpace.normalize_coords / geo & appear embeddings are no-ops with the default
# config (input_normalized=True, n_geo_embedding=n_appear_embedding=0) and are not implemented.

if __name__ == "__main__":
    key = jax.random.PRNGKey(0)
    kx, kv, kp = jax.random.split(key, 3)

    N = 1024                                                # -> 2 tiles of 512 points
    x = jax.random.uniform(kx, (N, 3), jnp.float32, minval=-1.0, maxval=1.0)   # normalized coords
    v = jax.random.normal(kv, (N, 3), jnp.float32)
    v = v / jnp.linalg.norm(v, axis=-1, keepdims=True)      # unit view directions

    params = make_params(kp)

    forward = jax.jit(embeded_nerf_forward)
    out = forward(x, v, params)
    jax.block_until_ready(out)

    assert out["radiances"].shape == (N, 3)
    assert out["sigma"].shape == (N,)

    # Kernel uses bf16 matmul operands / activations (f32 accumulate); reference is full f32
    # -> loose tolerance.
    ref_rgb, ref_sigma = reference_forward(x, v, params)
    np.testing.assert_allclose(np.asarray(out["radiances"]), np.asarray(ref_rgb),
                               rtol=5e-2, atol=5e-2)
    np.testing.assert_allclose(np.asarray(out["sigma"]), np.asarray(ref_sigma),
                               rtol=5e-2, atol=5e-2)

    print("KERNEL_OK")
</pallas_src>

<mosaic_0001>
module attributes {stable_mosaic.version = 11 : i64} {
  func.func @_nerf_mlp_kernel(%arg0: i32, %arg1: memref<512x64xbf16, #tpu.memory_space<vmem>>, %arg2: memref<512x16xbf16, #tpu.memory_space<vmem>>, %arg3: memref<2x64x256xbf16, #tpu.memory_space<vmem>>, %arg4: memref<8x256x256xbf16, #tpu.memory_space<vmem>>, %arg5: memref<9x256xf32, #tpu.memory_space<vmem>>, %arg6: memref<256x129xbf16, #tpu.memory_space<vmem>>, %arg7: memref<1x129xf32, #tpu.memory_space<vmem>>, %arg8: memref<16x128xbf16, #tpu.memory_space<vmem>>, %arg9: memref<128x128xbf16, #tpu.memory_space<vmem>>, %arg10: memref<1x128xf32, #tpu.memory_space<vmem>>, %arg11: memref<128x3xbf16, #tpu.memory_space<vmem>>, %arg12: memref<1x3xf32, #tpu.memory_space<vmem>>, %arg13: memref<512x4xf32, #tpu.memory_space<vmem>>) attributes {dimension_semantics = [#tpu.dimension_semantics<parallel>], iteration_bounds = array<i64: 2>, scalar_prefetch = 0 : i64, scratch_operands = 0 : i64, tpu.core_type = #tpu.core_type<tc>, window_params = [{transform_indices = @transform_0, window_bounds = array<i64: 512, 64>}, {transform_indices = @transform_1, window_bounds = array<i64: 512, 16>}, {pipeline_mode = #tpu.pipeline_mode<synchronous>, transform_indices = @transform_2, window_bounds = array<i64: 2, 64, 256>}, {pipeline_mode = #tpu.pipeline_mode<synchronous>, transform_indices = @transform_3, window_bounds = array<i64: 8, 256, 256>}, {pipeline_mode = #tpu.pipeline_mode<synchronous>, transform_indices = @transform_4, window_bounds = array<i64: 9, 256>}, {pipeline_mode = #tpu.pipeline_mode<synchronous>, transform_indices = @transform_5, window_bounds = array<i64: 256, 129>}, {pipeline_mode = #tpu.pipeline_mode<synchronous>, transform_indices = @transform_6, window_bounds = array<i64: 1, 129>}, {pipeline_mode = #tpu.pipeline_mode<synchronous>, transform_indices = @transform_7, window_bounds = array<i64: 16, 128>}, {pipeline_mode = #tpu.pipeline_mode<synchronous>, transform_indices = @transform_8, window_bounds = array<i64: 128, 128>}, {pipeline_mode = #tpu.pipeline_mode<synchronous>, transform_indices = @transform_9, window_bounds = array<i64: 1, 128>}, {pipeline_mode = #tpu.pipeline_mode<synchronous>, transform_indices = @transform_10, window_bounds = array<i64: 128, 3>}, {pipeline_mode = #tpu.pipeline_mode<synchronous>, transform_indices = @transform_11, window_bounds = array<i64: 1, 3>}, {transform_indices = @transform_12, window_bounds = array<i64: 512, 4>}]} {
    %c0 = arith.constant 0 : index
    %c0_0 = arith.constant 0 : index
    %0 = vector.load %arg1[%c0, %c0_0] : memref<512x64xbf16, #tpu.memory_space<vmem>>, vector<512x64xbf16>
    %c0_1 = arith.constant 0 : index
    %c0_2 = arith.constant 0 : index
    %1 = vector.load %arg2[%c0_1, %c0_2] : memref<512x16xbf16, #tpu.memory_space<vmem>>, vector<512x16xbf16>
    %c0_3 = arith.constant 0 : index
    %c0_4 = arith.constant 0 : index
    %2 = vector.load %arg5[%c0_3, %c0_4] : memref<9x256xf32, #tpu.memory_space<vmem>>, vector<9x256xf32>
    %c0_5 = arith.constant 0 : index
    %c0_6 = arith.constant 0 : index
    %c0_7 = arith.constant 0 : index
    %3 = vector.load %arg3[%c0_5, %c0_6, %c0_7] : memref<2x64x256xbf16, #tpu.memory_space<vmem>>, vector<1x64x256xbf16>
    %4 = vector.shape_cast %3 : vector<1x64x256xbf16> to vector<64x256xbf16>
    %cst = arith.constant dense<0.000000e+00> : vector<512x256xf32>
    %5 = tpu.matmul %0, %4, %cst {dimension_numbers = #tpu.dot_dimension_numbers<[1], [0], [0], [1], [0, 0, 1, 1], [], []>} : vector<512x64xbf16>, vector<64x256xbf16>, vector<512x256xf32> -> vector<512x256xf32>
    %6 = vector.extract_strided_slice %2 {offsets = [0, 0], sizes = [1, 256], strides = [1, 1]} : vector<9x256xf32> to vector<1x256xf32>
    %7 = vector.broadcast %6 : vector<1x256xf32> to vector<512x256xf32>
    %8 = arith.addf %5, %7 : vector<512x256xf32>
    %cst_8 = arith.constant 0.000000e+00 : f32
    %9 = vector.broadcast %cst_8 : f32 to vector<512x256xf32>
    %10 = arith.maximumf %8, %9 : vector<512x256xf32>
    %11 = arith.truncf %10 : vector<512x256xf32> to vector<512x256xbf16>
    %c0_9 = arith.constant 0 : index
    %c0_10 = arith.constant 0 : index
    %c0_11 = arith.constant 0 : index
    %12 = vector.load %arg4[%c0_9, %c0_10, %c0_11] : memref<8x256x256xbf16, #tpu.memory_space<vmem>>, vector<1x256x256xbf16>
    %13 = vector.shape_cast %12 : vector<1x256x256xbf16> to vector<256x256xbf16>
    %cst_12 = arith.constant dense<0.000000e+00> : vector<512x256xf32>
    %14 = tpu.matmul %11, %13, %cst_12 {dimension_numbers = #tpu.dot_dimension_numbers<[1], [0], [0], [1], [0, 0, 1, 1], [], []>} : vector<512x256xbf16>, vector<256x256xbf16>, vector<512x256xf32> -> vector<512x256xf32>
    %15 = vector.extract_strided_slice %2 {offsets = [1, 0], sizes = [1, 256], strides = [1, 1]} : vector<9x256xf32> to vector<1x256xf32>
    %16 = vector.broadcast %15 : vector<1x256xf32> to vector<512x256xf32>
    %17 = arith.addf %14, %16 : vector<512x256xf32>
    %cst_13 = arith.constant 0.000000e+00 : f32
    %18 = vector.broadcast %cst_13 : f32 to vector<512x256xf32>
    %19 = arith.maximumf %17, %18 : vector<512x256xf32>
    %20 = arith.truncf %19 : vector<512x256xf32> to vector<512x256xbf16>
    %c1 = arith.constant 1 : index
    %c0_14 = arith.constant 0 : index
    %c0_15 = arith.constant 0 : index
    %21 = vector.load %arg4[%c1, %c0_14, %c0_15] : memref<8x256x256xbf16, #tpu.memory_space<vmem>>, vector<1x256x256xbf16>
    %22 = vector.shape_cast %21 : vector<1x256x256xbf16> to vector<256x256xbf16>
    %cst_16 = arith.constant dense<0.000000e+00> : vector<512x256xf32>
    %23 = tpu.matmul %20, %22, %cst_16 {dimension_numbers = #tpu.dot_dimension_numbers<[1], [0], [0], [1], [0, 0, 1, 1], [], []>} : vector<512x256xbf16>, vector<256x256xbf16>, vector<512x256xf32> -> vector<512x256xf32>
    %24 = vector.extract_strided_slice %2 {offsets = [2, 0], sizes = [1, 256], strides = [1, 1]} : vector<9x256xf32> to vector<1x256xf32>
    %25 = vector.broadcast %24 : vector<1x256xf32> to vector<512x256xf32>
    %26 = arith.addf %23, %25 : vector<512x256xf32>
    %cst_17 = arith.constant 0.000000e+00 : f32
    %27 = vector.broadcast %cst_17 : f32 to vector<512x256xf32>
    %28 = arith.maximumf %26, %27 : vector<512x256xf32>
    %29 = arith.truncf %28 : vector<512x256xf32> to vector<512x256xbf16>
    %c2 = arith.constant 2 : index
    %c0_18 = arith.constant 0 : index
    %c0_19 = arith.constant 0 : index
    %30 = vector.load %arg4[%c2, %c0_18, %c0_19] : memref<8x256x256xbf16, #tpu.memory_space<vmem>>, vector<1x256x256xbf16>
    %31 = vector.shape_cast %30 : vector<1x256x256xbf16> to vector<256x256xbf16>
    %cst_20 = arith.constant dense<0.000000e+00> : vector<512x256xf32>
    %32 = tpu.matmul %29, %31, %cst_20 {dimension_numbers = #tpu.dot_dimension_numbers<[1], [0], [0], [1], [0, 0, 1, 1], [], []>} : vector<512x256xbf16>, vector<256x256xbf16>, vector<512x256xf32> -> vector<512x256xf32>
    %33 = vector.extract_strided_slice %2 {offsets = [3, 0], sizes = [1, 256], strides = [1, 1]} : vector<9x256xf32> to vector<1x256xf32>
    %34 = vector.broadcast %33 : vector<1x256xf32> to vector<512x256xf32>
    %35 = arith.addf %32, %34 : vector<512x256xf32>
    %cst_21 = arith.constant 0.000000e+00 : f32
    %36 = vector.broadcast %cst_21 : f32 to vector<512x256xf32>
    %37 = arith.maximumf %35, %36 : vector<512x256xf32>
    %38 = arith.truncf %37 : vector<512x256xf32> to vector<512x256xbf16>
    %c1_22 = arith.constant 1 : index
    %c0_23 = arith.constant 0 : index
    %c0_24 = arith.constant 0 : index
    %39 = vector.load %arg3[%c1_22, %c0_23, %c0_24] : memref<2x64x256xbf16, #tpu.memory_space<vmem>>, vector<1x64x256xbf16>
    %40 = vector.shape_cast %39 : vector<1x64x256xbf16> to vector<64x256xbf16>
    %cst_25 = arith.constant dense<0.000000e+00> : vector<512x256xf32>
    %41 = tpu.matmul %0, %40, %cst_25 {dimension_numbers = #tpu.dot_dimension_numbers<[1], [0], [0], [1], [0, 0, 1, 1], [], []>} : vector<512x64xbf16>, vector<64x256xbf16>, vector<512x256xf32> -> vector<512x256xf32>
    %c3 = arith.constant 3 : index
    %c0_26 = arith.constant 0 : index
    %c0_27 = arith.constant 0 : index
    %42 = vector.load %arg4[%c3, %c0_26, %c0_27] : memref<8x256x256xbf16, #tpu.memory_space<vmem>>, vector<1x256x256xbf16>
    %43 = vector.shape_cast %42 : vector<1x256x256xbf16> to vector<256x256xbf16>
    %cst_28 = arith.constant dense<0.000000e+00> : vector<512x256xf32>
    %44 = tpu.matmul %38, %43, %cst_28 {dimension_numbers = #tpu.dot_dimension_numbers<[1], [0], [0], [1], [0, 0, 1, 1], [], []>} : vector<512x256xbf16>, vector<256x256xbf16>, vector<512x256xf32> -> vector<512x256xf32>
    %45 = arith.addf %41, %44 : vector<512x256xf32>
    %46 = vector.extract_strided_slice %2 {offsets = [4, 0], sizes = [1, 256], strides = [1, 1]} : vector<9x256xf32> to vector<1x256xf32>
    %47 = vector.broadcast %46 : vector<1x256xf32> to vector<512x256xf32>
    %48 = arith.addf %45, %47 : vector<512x256xf32>
    %cst_29 = arith.constant 0.000000e+00 : f32
    %49 = vector.broadcast %cst_29 : f32 to vector<512x256xf32>
    %50 = arith.maximumf %48, %49 : vector<512x256xf32>
    %51 = arith.truncf %50 : vector<512x256xf32> to vector<512x256xbf16>
    %c4 = arith.constant 4 : index
    %c0_30 = arith.constant 0 : index
    %c0_31 = arith.constant 0 : index
    %52 = vector.load %arg4[%c4, %c0_30, %c0_31] : memref<8x256x256xbf16, #tpu.memory_space<vmem>>, vector<1x256x256xbf16>
    %53 = vector.shape_cast %52 : vector<1x256x256xbf16> to vector<256x256xbf16>
    %cst_32 = arith.constant dense<0.000000e+00> : vector<512x256xf32>
    %54 = tpu.matmul %51, %53, %cst_32 {dimension_numbers = #tpu.dot_dimension_numbers<[1], [0], [0], [1], [0, 0, 1, 1], [], []>} : vector<512x256xbf16>, vector<256x256xbf16>, vector<512x256xf32> -> vector<512x256xf32>
    %55 = vector.extract_strided_slice %2 {offsets = [5, 0], sizes = [1, 256], strides = [1, 1]} : vector<9x256xf32> to vector<1x256xf32>
    %56 = vector.broadcast %55 : vector<1x256xf32> to vector<512x256xf32>
    %57 = arith.addf %54, %56 : vector<512x256xf32>
    %cst_33 = arith.constant 0.000000e+00 : f32
    %58 = vector.broadcast %cst_33 : f32 to vector<512x256xf32>
    %59 = arith.maximumf %57, %58 : vector<512x256xf32>
    %60 = arith.truncf %59 : vector<512x256xf32> to vector<512x256xbf16>
    %c5 = arith.constant 5 : index
    %c0_34 = arith.constant 0 : index
    %c0_35 = arith.constant 0 : index
    %61 = vector.load %arg4[%c5, %c0_34, %c0_35] : memref<8x256x256xbf16, #tpu.memory_space<vmem>>, vector<1x256x256xbf16>
    %62 = vector.shape_cast %61 : vector<1x256x256xbf16> to vector<256x256xbf16>
    %cst_36 = arith.constant dense<0.000000e+00> : vector<512x256xf32>
    %63 = tpu.matmul %60, %62, %cst_36 {dimension_numbers = #tpu.dot_dimension_numbers<[1], [0], [0], [1], [0, 0, 1, 1], [], []>} : vector<512x256xbf16>, vector<256x256xbf16>, vector<512x256xf32> -> vector<512x256xf32>
    %64 = vector.extract_strided_slice %2 {offsets = [6, 0], sizes = [1, 256], strides = [1, 1]} : vector<9x256xf32> to vector<1x256xf32>
    %65 = vector.broadcast %64 : vector<1x256xf32> to vector<512x256xf32>
    %66 = arith.addf %63, %65 : vector<512x256xf32>
    %cst_37 = arith.constant 0.000000e+00 : f32
    %67 = vector.broadcast %cst_37 : f32 to vector<512x256xf32>
    %68 = arith.maximumf %66, %67 : vector<512x256xf32>
    %69 = arith.truncf %68 : vector<512x256xf32> to vector<512x256xbf16>
    %c6 = arith.constant 6 : index
    %c0_38 = arith.constant 0 : index
    %c0_39 = arith.constant 0 : index
    %70 = vector.load %arg4[%c6, %c0_38, %c0_39] : memref<8x256x256xbf16, #tpu.memory_space<vmem>>, vector<1x256x256xbf16>
    %71 = vector.shape_cast %70 : vector<1x256x256xbf16> to vector<256x256xbf16>
    %cst_40 = arith.constant dense<0.000000e+00> : vector<512x256xf32>
    %72 = tpu.matmul %69, %71, %cst_40 {dimension_numbers = #tpu.dot_dimension_numbers<[1], [0], [0], [1], [0, 0, 1, 1], [], []>} : vector<512x256xbf16>, vector<256x256xbf16>, vector<512x256xf32> -> vector<512x256xf32>
    %73 = vector.extract_strided_slice %2 {offsets = [7, 0], sizes = [1, 256], strides = [1, 1]} : vector<9x256xf32> to vector<1x256xf32>
    %74 = vector.broadcast %73 : vector<1x256xf32> to vector<512x256xf32>
    %75 = arith.addf %72, %74 : vector<512x256xf32>
    %cst_41 = arith.constant 0.000000e+00 : f32
    %76 = vector.broadcast %cst_41 : f32 to vector<512x256xf32>
    %77 = arith.maximumf %75, %76 : vector<512x256xf32>
    %78 = arith.truncf %77 : vector<512x256xf32> to vector<512x256xbf16>
    %c7 = arith.constant 7 : index
    %c0_42 = arith.constant 0 : index
    %c0_43 = arith.constant 0 : index
    %79 = vector.load %arg4[%c7, %c0_42, %c0_43] : memref<8x256x256xbf16, #tpu.memory_space<vmem>>, vector<1x256x256xbf16>
    %80 = vector.shape_cast %79 : vector<1x256x256xbf16> to vector<256x256xbf16>
    %cst_44 = arith.constant dense<0.000000e+00> : vector<512x256xf32>
    %81 = tpu.matmul %78, %80, %cst_44 {dimension_numbers = #tpu.dot_dimension_numbers<[1], [0], [0], [1], [0, 0, 1, 1], [], []>} : vector<512x256xbf16>, vector<256x256xbf16>, vector<512x256xf32> -> vector<512x256xf32>
    %82 = vector.extract_strided_slice %2 {offsets = [8, 0], sizes = [1, 256], strides = [1, 1]} : vector<9x256xf32> to vector<1x256xf32>
    %83 = vector.broadcast %82 : vector<1x256xf32> to vector<512x256xf32>
    %84 = arith.addf %81, %83 : vector<512x256xf32>
    %85 = arith.truncf %84 : vector<512x256xf32> to vector<512x256xbf16>
    %c0_45 = arith.constant 0 : index
    %c0_46 = arith.constant 0 : index
    %86 = vector.load %arg6[%c0_45, %c0_46] : memref<256x129xbf16, #tpu.memory_space<vmem>>, vector<256x129xbf16>
    %cst_47 = arith.constant dense<0.000000e+00> : vector<512x129xf32>
    %87 = tpu.matmul %85, %86, %cst_47 {dimension_numbers = #tpu.dot_dimension_numbers<[1], [0], [0], [1], [0, 0, 1, 1], [], []>} : vector<512x256xbf16>, vector<256x129xbf16>, vector<512x129xf32> -> vector<512x129xf32>
    %c0_48 = arith.constant 0 : index
    %c0_49 = arith.constant 0 : index
    %88 = vector.load %arg7[%c0_48, %c0_49] : memref<1x129xf32, #tpu.memory_space<vmem>>, vector<1x129xf32>
    %89 = vector.broadcast %88 : vector<1x129xf32> to vector<512x129xf32>
    %90 = arith.addf %87, %89 : vector<512x129xf32>
    %91 = vector.extract_strided_slice %90 {offsets = [0, 128], sizes = [512, 1], strides = [1, 1]} : vector<512x129xf32> to vector<512x1xf32>
    %92 = vector.extract_strided_slice %90 {offsets = [0, 0], sizes = [512, 128], strides = [1, 1]} : vector<512x129xf32> to vector<512x128xf32>
    %c0_50 = arith.constant 0 : index
    %c0_51 = arith.constant 0 : index
    %93 = vector.load %arg8[%c0_50, %c0_51] : memref<16x128xbf16, #tpu.memory_space<vmem>>, vector<16x128xbf16>
    %cst_52 = arith.constant dense<0.000000e+00> : vector<512x128xf32>
    %94 = tpu.matmul %1, %93, %cst_52 {dimension_numbers = #tpu.dot_dimension_numbers<[1], [0], [0], [1], [0, 0, 1, 1], [], []>} : vector<512x16xbf16>, vector<16x128xbf16>, vector<512x128xf32> -> vector<512x128xf32>
    %95 = arith.addf %92, %94 : vector<512x128xf32>
    %cst_53 = arith.constant 0.000000e+00 : f32
    %96 = vector.broadcast %cst_53 : f32 to vector<512x128xf32>
    %97 = arith.maximumf %95, %96 : vector<512x128xf32>
    %98 = arith.truncf %97 : vector<512x128xf32> to vector<512x128xbf16>
    %c0_54 = arith.constant 0 : index
    %c0_55 = arith.constant 0 : index
    %99 = vector.load %arg9[%c0_54, %c0_55] : memref<128x128xbf16, #tpu.memory_space<vmem>>, vector<128x128xbf16>
    %cst_56 = arith.constant dense<0.000000e+00> : vector<512x128xf32>
    %100 = tpu.matmul %98, %99, %cst_56 {dimension_numbers = #tpu.dot_dimension_numbers<[1], [0], [0], [1], [0, 0, 1, 1], [], []>} : vector<512x128xbf16>, vector<128x128xbf16>, vector<512x128xf32> -> vector<512x128xf32>
    %c0_57 = arith.constant 0 : index
    %c0_58 = arith.constant 0 : index
    %101 = vector.load %arg10[%c0_57, %c0_58] : memref<1x128xf32, #tpu.memory_space<vmem>>, vector<1x128xf32>
    %102 = vector.broadcast %101 : vector<1x128xf32> to vector<512x128xf32>
    %103 = arith.addf %100, %102 : vector<512x128xf32>
    %cst_59 = arith.constant 0.000000e+00 : f32
    %104 = vector.broadcast %cst_59 : f32 to vector<512x128xf32>
    %105 = arith.maximumf %103, %104 : vector<512x128xf32>
    %106 = arith.truncf %105 : vector<512x128xf32> to vector<512x128xbf16>
    %c0_60 = arith.constant 0 : index
    %c0_61 = arith.constant 0 : index
    %107 = vector.load %arg11[%c0_60, %c0_61] : memref<128x3xbf16, #tpu.memory_space<vmem>>, vector<128x3xbf16>
    %cst_62 = arith.constant dense<0.000000e+00> : vector<512x3xf32>
    %108 = tpu.matmul %106, %107, %cst_62 {dimension_numbers = #tpu.dot_dimension_numbers<[1], [0], [0], [1], [0, 0, 1, 1], [], []>} : vector<512x128xbf16>, vector<128x3xbf16>, vector<512x3xf32> -> vector<512x3xf32>
    %c0_63 = arith.constant 0 : index
    %c0_64 = arith.constant 0 : index
    %109 = vector.load %arg12[%c0_63, %c0_64] : memref<1x3xf32, #tpu.memory_space<vmem>>, vector<1x3xf32>
    %110 = vector.broadcast %109 : vector<1x3xf32> to vector<512x3xf32>
    %111 = arith.addf %108, %110 : vector<512x3xf32>
    %112 = arith.negf %111 : vector<512x3xf32>
    %113 = math.exp %112 : vector<512x3xf32>
    %cst_65 = arith.constant 1.000000e+00 : f32
    %114 = vector.broadcast %cst_65 : f32 to vector<512x3xf32>
    %115 = arith.addf %114, %113 : vector<512x3xf32>
    %116 = arith.divf %114, %115 : vector<512x3xf32>
    %c0_66 = arith.constant 0 : index
    %c0_67 = arith.constant 0 : index
    %117 = vector.load %arg13[%c0_66, %c0_67] : memref<512x4xf32, #tpu.memory_space<vmem>>, vector<512x3xf32>
    tpu.vector_store %arg13[%c0_66, %c0_67], %116 {strides = array<i32>} : memref<512x4xf32, #tpu.memory_space<vmem>>, vector<512x3xf32>,
    %c0_68 = arith.constant 0 : index
    %c3_69 = arith.constant 3 : index
    %118 = vector.load %arg13[%c0_68, %c3_69] : memref<512x4xf32, #tpu.memory_space<vmem>>, vector<512x1xf32>
    tpu.vector_store %arg13[%c0_68, %c3_69], %91 {strides = array<i32>} : memref<512x4xf32, #tpu.memory_space<vmem>>, vector<512x1xf32>,
    return
  }
  func.func @transform_0(%arg0: i32) -> (i32, i32) {
    %c0_i32 = arith.constant 0 : i32
    %c0_i32_0 = arith.constant 0 : i32
    return %arg0, %c0_i32 : i32, i32
  }
  func.func @transform_1(%arg0: i32) -> (i32, i32) {
    %c0_i32 = arith.constant 0 : i32
    %c0_i32_0 = arith.constant 0 : i32
    return %arg0, %c0_i32 : i32, i32
  }
  func.func @transform_2(%arg0: i32) -> (i32, i32, i32) {
    %c0_i32 = arith.constant 0 : i32
    %c0_i32_0 = arith.constant 0 : i32
    %c0_i32_1 = arith.constant 0 : i32
    %c0_i32_2 = arith.constant 0 : i32
    return %c0_i32, %c0_i32_0, %c0_i32_1 : i32, i32, i32
  }
  func.func @transform_3(%arg0: i32) -> (i32, i32, i32) {
    %c0_i32 = arith.constant 0 : i32
    %c0_i32_0 = arith.constant 0 : i32
    %c0_i32_1 = arith.constant 0 : i32
    %c0_i32_2 = arith.constant 0 : i32
    return %c0_i32, %c0_i32_0, %c0_i32_1 : i32, i32, i32
  }
  func.func @transform_4(%arg0: i32) -> (i32, i32) {
    %c0_i32 = arith.constant 0 : i32
    %c0_i32_0 = arith.constant 0 : i32
    %c0_i32_1 = arith.constant 0 : i32
    return %c0_i32, %c0_i32_0 : i32, i32
  }
  func.func @transform_5(%arg0: i32) -> (i32, i32) {
    %c0_i32 = arith.constant 0 : i32
    %c0_i32_0 = arith.constant 0 : i32
    %c0_i32_1 = arith.constant 0 : i32
    return %c0_i32, %c0_i32_0 : i32, i32
  }
  func.func @transform_6(%arg0: i32) -> (i32, i32) {
    %c0_i32 = arith.constant 0 : i32
    %c0_i32_0 = arith.constant 0 : i32
    %c0_i32_1 = arith.constant 0 : i32
    return %c0_i32, %c0_i32_0 : i32, i32
  }
  func.func @transform_7(%arg0: i32) -> (i32, i32) {
    %c0_i32 = arith.constant 0 : i32
    %c0_i32_0 = arith.constant 0 : i32
    %c0_i32_1 = arith.constant 0 : i32
    return %c0_i32, %c0_i32_0 : i32, i32
  }
  func.func @transform_8(%arg0: i32) -> (i32, i32) {
    %c0_i32 = arith.constant 0 : i32
    %c0_i32_0 = arith.constant 0 : i32
    %c0_i32_1 = arith.constant 0 : i32
    return %c0_i32, %c0_i32_0 : i32, i32
  }
  func.func @transform_9(%arg0: i32) -> (i32, i32) {
    %c0_i32 = arith.constant 0 : i32
    %c0_i32_0 = arith.constant 0 : i32
    %c0_i32_1 = arith.constant 0 : i32
    return %c0_i32, %c0_i32_0 : i32, i32
  }
  func.func @transform_10(%arg0: i32) -> (i32, i32) {
    %c0_i32 = arith.constant 0 : i32
    %c0_i32_0 = arith.constant 0 : i32
    %c0_i32_1 = arith.constant 0 : i32
    return %c0_i32, %c0_i32_0 : i32, i32
  }
  func.func @transform_11(%arg0: i32) -> (i32, i32) {
    %c0_i32 = arith.constant 0 : i32
    %c0_i32_0 = arith.constant 0 : i32
    %c0_i32_1 = arith.constant 0 : i32
    return %c0_i32, %c0_i32_0 : i32, i32
  }
  func.func @transform_12(%arg0: i32) -> (i32, i32) {
    %c0_i32 = arith.constant 0 : i32
    %c0_i32_0 = arith.constant 0 : i32
    return %arg0, %c0_i32 : i32, i32
  }
}

</mosaic_0001>

<bundles_post_ra>
// kernel: embeded_nerf_forward.1
= control target key start
LH: loop header
LB: loop body
LE: loop exit
PB: predicated region body
PF: predicated region fallthrough
CT: control target
= control target key end

     0   :  { %s12920_s21 = smov 0   ;;  %s16417_s0 = inlined_call_operand.vmem [shape: bf16[1024,64], index: 0, kind: input, shape index: {}]   ;;  %s16418_s1 = inlined_call_operand.vmem [shape: bf16[1024,16], index: 1, kind: input, shape index: {}]   ;;  %s16419_s2 = inlined_call_operand.vmem [shape: bf16[2,64,256], index: 2, kind: input, shape index: {}]   ;;  %s16420_s3 = inlined_call_operand.vmem [shape: bf16[8,256,256], index: 3, kind: input, shape index: {}]   ;;  %s16421_s4 = inlined_call_operand.vmem [shape: f32[9,256], index: 4, kind: input, shape index: {}]   ;;  %s16422_s5 = inlined_call_operand.vmem [shape: bf16[256,129], index: 5, kind: input, shape index: {}]   ;;  %s16423_s6 = inlined_call_operand.vmem [shape: f32[1,129], index: 6, kind: input, shape index: {}]   ;;  %s16424_s7 = inlined_call_operand.vmem [shape: bf16[16,128], index: 7, kind: input, shape index: {}]   ;;  %s16425_s8 = inlined_call_operand.vmem [shape: bf16[128,128], index: 8, kind: input, shape index: {}]   ;;  %s16426_s9 = inlined_call_operand.vmem [shape: f32[1,128], index: 9, kind: input, shape index: {}]   ;;  %s16427_s10 = inlined_call_operand.vmem [shape: bf16[128,3], index: 10, kind: input, shape index: {}]   ;;  %s16428_s11 = inlined_call_operand.vmem [shape: f32[1,3], index: 11, kind: input, shape index: {}]   ;;  %s16429_s12 = inlined_call_operand.vmem [shape: f32[1024,4], index: 12, kind: output, shape index: {}]  }
   0x1 LB: > { %s10724_s22 = sadd.s32 4294967295, %s12851_s21   ;;  %p10728_p0 = scmp.ge.s32.totalorder %s12851_s21, 1  ;;  %s12851_s21 = sphi %s12920_s21, %s22_s21  }
   0x2   : > { %p374_p1 = scmp.lt.s32.totalorder %s12851_s21, 3 }
   0x4   : > { %p375_p2 = pnand %p10728_p0, %p374_p1 }
   0x5   : > { %v12003_v0 = vld [vmem:[%s16419_s2 + $0x4] ss:$8 sps:$4 sm:$0xff] (!%p375_p2)   ;;  %s10729_s25 = sshll.u32 (!%p375_p2), %s10724_s22, 6  ;;  %v12005_v1 = vld [vmem:[%s16419_s2] ss:$8 sps:$4 sm:$0xff] (!%p375_p2)   ;;  %v12853_v2 = vmov (!%p375_p2), 0  }
   0x6   : > { %378 = sbr.rel (%p375_p2) target bundleno = 3251 (0xcb3), region = 68  ;;  %917 = vmatprep.mubr.bf16.mxu0 (!%p375_p2), %v12853_v2  ;;  %p422_p3 = scmp.lt.s32.totalorder (!%p375_p2), %s10729_s25, 127  ;;  %1157 = vmatprep.mubr.bf16.mxu1 (!%p375_p2), %v12853_v2  ;;  %v12006_v3 = vld [vmem:[%s16419_s2 + $0x14] ss:$8 sps:$4 sm:$0xff] (!%p375_p2)   ;;  %v12008_v4 = vld [vmem:[%s16419_s2 + $0x10] ss:$8 sps:$4 sm:$0xff] (!%p375_p2)  }
   0x7   : > { %885 = vmatprep.subr.bf16.mxu0 (!%p375_p2), %v12003_v0  ;;  %11857 = vmatprep.subr.bf16.mxu1 (!%p375_p2), %v12003_v0  ;;  %v12009_v5 = vld [vmem:[%s16419_s2 + $0x24] ss:$8 sps:$4 sm:$0xff] (!%p375_p2)   ;;  %v12011_v6 = vld [vmem:[%s16419_s2 + $0x20] ss:$8 sps:$4 sm:$0xff] (!%p375_p2)   ;;  %v12012_v7 = vld [vmem:[%s16419_s2 + $0x34] ss:$8 sps:$4 sm:$0xff] (!%p375_p2)  }
   0x8   : > { %886 = vmatpush1.bf16.msra.mxu0 (!%p375_p2), %v12005_v1  ;;  %11861 = vmatpush1.bf16.msra.mxu1 (!%p375_p2), %v12005_v1  ;;  %v12014_v8 = vld [vmem:[%s16419_s2 + $0x30] ss:$8 sps:$4 sm:$0xff] (!%p375_p2)   ;;  %vm788_vm0 = vcmask (!%p375_p2), 523264   ;;  %v12036_v14 = vld [vmem:[%s16420_s3] ss:$8 sps:$4 sm:$0xff] (!%p375_p2)   ;;  %vm8524_vm1 = vcmask (!%p375_p2), 130048  }
   0x9   : > { %887 = vmatprep.subr.bf16.mxu0 (!%p375_p2), %v12006_v3  ;;  %11858 = vmatprep.subr.bf16.mxu1 (!%p375_p2), %v12006_v3  ;;  %v12038_v15 = vld [vmem:[%s16420_s3 + $0x4] ss:$8 sps:$4 sm:$0xff] (!%p375_p2)   ;;  %v12040_v17 = vld [vmem:[%s16420_s3 + $0x10] ss:$8 sps:$4 sm:$0xff] (!%p375_p2)   ;;  %v12042_v18 = vld [vmem:[%s16420_s3 + $0x14] ss:$8 sps:$4 sm:$0xff] (!%p375_p2)  }
   0xa   : > { %v12044_v20 = vld [vmem:[%s16420_s3 + $0x20] ss:$8 sps:$4 sm:$0xff] (!%p375_p2)   ;;  %v12046_v21 = vld [vmem:[%s16420_s3 + $0x24] ss:$8 sps:$4 sm:$0xff] (!%p375_p2)   ;;  %v12048_v23 = vld [vmem:[%s16420_s3 + $0x30] ss:$8 sps:$4 sm:$0xff] (!%p375_p2)  }
   0xb   : > { %v12050_v24 = vld [vmem:[%s16420_s3 + $0x34] ss:$8 sps:$4 sm:$0xff] (!%p375_p2)   ;;  %v12052_v26 = vld [vmem:[%s16420_s3 + $0x40] ss:$8 sps:$4 sm:$0xff] (!%p375_p2)   ;;  %v12054_v27 = vld [vmem:[%s16420_s3 + $0x44] ss:$8 sps:$4 sm:$0xff] (!%p375_p2)  }
   0xc   : > { %888 = vmatpush1.bf16.msra.mxu0 (!%p375_p2), %v12008_v4  ;;  %11862 = vmatpush1.bf16.msra.mxu1 (!%p375_p2), %v12008_v4  ;;  %v12056_v29 = vld [vmem:[%s16420_s3 + $0x50] ss:$8 sps:$4 sm:$0xff] (!%p375_p2)   ;;  %v12058_v30 = vld [vmem:[%s16420_s3 + $0x54] ss:$8 sps:$4 sm:$0xff] (!%p375_p2)   ;;  %v12060_v32 = vld [vmem:[%s16420_s3 + $0x60] ss:$8 sps:$4 sm:$0xff] (!%p375_p2)  }
   0xd   : > { %s16431_s25 = smov (!%p422_p3, %s10729_s25), 127  ;;  %889 = vmatprep.subr.bf16.mxu0 %v12009_v5  ;;  %11859 = vmatprep.subr.bf16.mxu1 %v12009_v5  ;;  %v12062_v33 = vld [vmem:[%s16420_s3 + $0x64] ss:$8 sps:$4 sm:$0xff]   ;;  %v12064_v35 = vld [vmem:[%s16420_s3 + $0x70] ss:$8 sps:$4 sm:$0xff]   ;;  %s12854_s13 = smov 3  }
   0xe   : > { %s10730_s16 = sshll.u32 %s16431_s25, 2  ;;  %v12066_v36 = vld [vmem:[%s16420_s3 + $0x74] ss:$8 sps:$4 sm:$0xff]   ;;  %v12070_v38 = vld [vmem:[%s16420_s3 + $0x84] ss:$8 sps:$4 sm:$0xff]   ;;  %vm10270_vm2 = vcmask 23552  }
   0xf   : > { %s12953_s19 = scalar_lea.vmem %s16417_s0, %s10730_s16  ;;  %v12068_v39 = vld [vmem:[%s16420_s3 + $0x80] ss:$8 sps:$4 sm:$0xff]   ;;  %v12073_v41 = vld [vmem:[%s16420_s3 + $0x94] ss:$8 sps:$4 sm:$0xff]   ;;  %v12071_v42 = vld [vmem:[%s16420_s3 + $0x90] ss:$8 sps:$4 sm:$0xff]   ;;  %s15356_s23 = scalar_lea.vmem %s16418_s1, %s10730_s16 }
  0x10   : > { %890 = vmatpush1.bf16.msra.mxu0 %v12011_v6  ;;  %11863 = vmatpush1.bf16.msra.mxu1 %v12011_v6  ;;  %v12015_v9 = vld [vmem:[%s12953_s19] sm:$0xff]   ;;  %v12016_v10 = vld [vmem:[%s12953_s19 + $0x8] sm:$0xff]   ;;  %v12017_v11 = vld [vmem:[%s12953_s19 + $0x10] sm:$0xff]   ;;  %s10734_s16 = sshll.u32 %s16431_s25, 3  ;;  %vm10591_vm3 = vcmask 31768  }
  0x11   : > { %891 = vmatprep.subr.bf16.mxu0 %v12012_v7  ;;  %11860 = vmatprep.subr.bf16.mxu1 %v12012_v7  ;;  %v12018_v12 = vld [vmem:[%s12953_s19 + $0x18] sm:$0xff]   ;;  %v12035_v13 = vld [vmem:[%s12953_s19 + $0xc0] sm:$0xff]   ;;  %v12043_v19 = vld [vmem:[%s12953_s19 + $0xc8] sm:$0xff]   ;;  %s16100_s27 = scalar_lea.vmem %s16429_s12, %s10734_s16 }
  0x12   : > { %v12019_v16 = vld [vmem:[%s12953_s19 + $0x20] sm:$0xff]   ;;  %v12020_v22 = vld [vmem:[%s12953_s19 + $0x28] sm:$0xff]   ;;  %v12051_v25 = vld [vmem:[%s12953_s19 + $0xd0] sm:$0xff]  }
  0x13   : > { %v12021_v28 = vld [vmem:[%s12953_s19 + $0x30] sm:$0xff]   ;;  %v12059_v31 = vld [vmem:[%s12953_s19 + $0xd8] sm:$0xff]   ;;  %v12067_v37 = vld [vmem:[%s12953_s19 + $0xe0] sm:$0xff]  }
  0x14   : > { %892 = vmatpush1.bf16.msra.mxu0 %v12014_v8  ;;  %11864 = vmatpush1.bf16.msra.mxu1 %v12014_v8  ;;  %v12022_v34 = vld [vmem:[%s12953_s19 + $0x38] sm:$0xff]   ;;  %v12023_v40 = vld [vmem:[%s12953_s19 + $0x40] sm:$0xff]   ;;  %v12074_v43 = vld [vmem:[%s12953_s19 + $0xe8] sm:$0xff]  }
  0x15   : > { %1630 = vmatprep.subr.bf16.mxu1 %v12038_v15  ;;  %v12077_v44 = vld [vmem:[%s16420_s3 + $0xa4] ss:$8 sps:$4 sm:$0xff]   ;;  %v12075_v45 = vld [vmem:[%s16420_s3 + $0xa0] ss:$8 sps:$4 sm:$0xff]   ;;  %v12080_v47 = vld [vmem:[%s16420_s3 + $0xb4] ss:$8 sps:$4 sm:$0xff]  }
  0x16   : > { %v12024_v46 = vld [vmem:[%s12953_s19 + $0x48] sm:$0xff]   ;;  %v12081_v48 = vld [vmem:[%s12953_s19 + $0xf0] sm:$0xff]   ;;  %v12088_v55 = vld [vmem:[%s12953_s19 + $0xf8] sm:$0xff]  }
  0x17   : > { %10775 = vmatmul.mubr.msk.bf16.vlgmr.msra.gmra.mrb[0].mxu0 %vm788_vm0, %v12015_v9  ;;  %10799 = vmatmul.mubr.msk.bf16.vlgmr.msra.gmra.mrb[0].mxu1 %vm788_vm0, %v12035_v13  ;;  %v12078_v49 = vld [vmem:[%s16420_s3 + $0xb0] ss:$8 sps:$4 sm:$0xff]   ;;  %v12084_v50 = vld [vmem:[%s16420_s3 + $0xc4] ss:$8 sps:$4 sm:$0xff]   ;;  %v12082_v51 = vld [vmem:[%s16420_s3 + $0xc0] ss:$8 sps:$4 sm:$0xff]  }
  0x18   : > { %927 = vmatprep.mubr.bf16.mxu0 %v12853_v2  ;;  %1631 = vmatpush1.bf16.msra.mxu1 %v12036_v14  ;;  %v12025_v52 = vld [vmem:[%s12953_s19 + $0x50] sm:$0xff]   ;;  %v12026_v56 = vld [vmem:[%s12953_s19 + $0x58] sm:$0xff]   ;;  %v12091_v57 = vld [vmem:[%s16420_s3 + $0xe4] ss:$8 sps:$4 sm:$0xff]  }
  0x19   : > { %1167 = vmatprep.mubr.bf16.mxu1 %v12853_v2  ;;  %1632 = vmatprep.subr.bf16.mxu1 %v12042_v18  ;;  %v12087_v53 = vld [vmem:[%s16420_s3 + $0xd4] ss:$8 sps:$4 sm:$0xff]   ;;  %v12085_v54 = vld [vmem:[%s16420_s3 + $0xd0] ss:$8 sps:$4 sm:$0xff]   ;;  %v12089_v58 = vld [vmem:[%s16420_s3 + $0xe0] ss:$8 sps:$4 sm:$0xff]  }
  0x1a   : > { %v12094_v59 = vld [vmem:[%s16420_s3 + $0xf4] ss:$8 sps:$4 sm:$0xff]   ;;  %v12092_v60 = vld [vmem:[%s16420_s3 + $0xf0] ss:$8 sps:$4 sm:$0xff]   ;;  %v12027_v61 = vld [vmem:[%s12953_s19 + $0x60] sm:$0xff]  }
  0x1b   : > { %v12028_v62 = vld [vmem:[%s12953_s19 + $0x68] sm:$0xff]   ;;  %v12029_v63 = vld [vmem:[%s12953_s19 + $0x70] sm:$0xff]   ;;  %v12030_v0 = vld [vmem:[%s12953_s19 + $0x78] sm:$0xff]  }
  0x1c   : > { %1633 = vmatpush1.bf16.msra.mxu1 %v12040_v17  ;;  %v12031_v1 = vld [vmem:[%s12953_s19 + $0x80] sm:$0xff]   ;;  %v12032_v5 = vld [vmem:[%s12953_s19 + $0x88] sm:$0xff]   ;;  %v12098_v6 = vld [vmem:[%s16420_s3 + $0x110] ss:$8 sps:$4 sm:$0xff]  }
  0x1d   : > { %1634 = vmatprep.subr.bf16.mxu1 %v12046_v21  ;;  %v12095_v3 = vld [vmem:[%s16420_s3 + $0x100] ss:$8 sps:$4 sm:$0xff]   ;;  %v12097_v4 = vld [vmem:[%s16420_s3 + $0x104] ss:$8 sps:$4 sm:$0xff]   ;;  %v12100_v7 = vld [vmem:[%s16420_s3 + $0x114] ss:$8 sps:$4 sm:$0xff]  }
  0x1e   : > { %2376 = vmatprep.subr.bf16.mxu0 %v12097_v4  ;;  %v12033_v8 = vld [vmem:[%s12953_s19 + $0x90] sm:$0xff]   ;;  %v12034_v9 = vld [vmem:[%s12953_s19 + $0x98] sm:$0xff]   ;;  %v12047_v15 = vld [vmem:[%s12953_s19 + $0xa8] sm:$0xff]  }
  0x1f   : > { %10776 = vmatmul.mubr.msk.bf16.gmra.mrb[4].mxu0 %vm788_vm0, %v12016_v10  ;;  %10800 = vmatmul.mubr.msk.bf16.gmra.mrb[4].mxu1 %vm788_vm0, %v12043_v19  ;;  %v12101_v10 = vld [vmem:[%s16420_s3 + $0x120] ss:$8 sps:$4 sm:$0xff]   ;;  %v12104_v13 = vld [vmem:[%s16420_s3 + $0x130] ss:$8 sps:$4 sm:$0xff]   ;;  %v12106_v14 = vld [vmem:[%s16420_s3 + $0x134] ss:$8 sps:$4 sm:$0xff]  }
  0x20   : > { %937 = vmatprep.mubr.bf16.mxu0 %v12853_v2  ;;  %1177 = vmatprep.mubr.bf16.mxu1 %v12853_v2  ;;  %v12107_v17 = vld [vmem:[%s16420_s3 + $0x140] ss:$8 sps:$4 sm:$0xff]   ;;  %v12109_v18 = vld [vmem:[%s16420_s3 + $0x144] ss:$8 sps:$4 sm:$0xff]   ;;  %v12063_v19 = vld [vmem:[%s12953_s19 + $0xb8] sm:$0xff]  }
  0x21   : > { %1635 = vmatpush1.bf16.msra.mxu1 %v12044_v20  ;;  %2377 = vmatpush1.bf16.msra.mxu0 %v12095_v3  ;;  %v12110_v20 = vld [vmem:[%s16420_s3 + $0x150] ss:$8 sps:$4 sm:$0xff]   ;;  %v12112_v21 = vld [vmem:[%s16420_s3 + $0x154] ss:$8 sps:$4 sm:$0xff]  }
  0x22   : > { %1636 = vmatprep.subr.bf16.mxu1 %v12050_v24  ;;  %2378 = vmatprep.subr.bf16.mxu0 %v12100_v7  ;;  %v12115_v24 = vld [vmem:[%s16420_s3 + $0x164] ss:$8 sps:$4 sm:$0xff]  }
  0x25   : > { %1637 = vmatpush1.bf16.msra.mxu1 %v12048_v23  ;;  %2379 = vmatpush1.bf16.msra.mxu0 %v12098_v6  ;;  %v12113_v23 = vld [vmem:[%s16420_s3 + $0x160] ss:$8 sps:$4 sm:$0xff]  }
  0x26   : > { %1638 = vmatprep.subr.bf16.mxu1 %v12054_v27  ;;  %v568_v27 = vld [vmem:[%s16421_s4] sm:$0xff] }
  0x27   : > { %10777 = vmatmul.mubr.msk.bf16.gmra.mrb[8].mxu0 %vm788_vm0, %v12017_v11  ;;  %10801 = vmatmul.mubr.msk.bf16.gmra.mrb[8].mxu1 %vm788_vm0, %v12051_v25  ;;  %v12103_v11 = vld [vmem:[%s16420_s3 + $0x124] ss:$8 sps:$4 sm:$0xff]  }
  0x28   : > { %947 = vmatprep.mubr.bf16.mxu0 %v12853_v2  ;;  %1187 = vmatprep.mubr.bf16.mxu1 %v12853_v2 }
  0x29   : > { %1639 = vmatpush1.bf16.msra.mxu1 %v12052_v26  ;;  %2380 = vmatprep.subr.bf16.mxu0 %v12103_v11 }
  0x2a   : > { %1640 = vmatprep.subr.bf16.mxu1 %v12058_v30  ;;  %2381 = vmatpush1.bf16.msra.mxu0 %v12101_v10  ;;  %v12118_v30 = vld [vmem:[%s16420_s3 + $0x174] ss:$8 sps:$4 sm:$0xff]  }
  0x2b   : > { %2382 = vmatprep.subr.bf16.mxu0 %v12106_v14 }
  0x2d   : > { %1641 = vmatpush1.bf16.msra.mxu1 %v12056_v29  ;;  %v12116_v29 = vld [vmem:[%s16420_s3 + $0x170] ss:$8 sps:$4 sm:$0xff]  }
  0x2e   : > { %1642 = vmatprep.subr.bf16.mxu1 %v12062_v33  ;;  %2383 = vmatpush1.bf16.msra.mxu0 %v12104_v13 }
  0x2f   : > { %10778 = vmatmul.mubr.msk.bf16.gmra.mrb[12].mxu0 %vm788_vm0, %v12018_v12  ;;  %10802 = vmatmul.mubr.msk.bf16.gmra.mrb[12].mxu1 %vm788_vm0, %v12059_v31  ;;  %v12039_v12 = vld [vmem:[%s12953_s19 + $0xa0] sm:$0xff]  }
  0x30   : > { %957 = vmatprep.mubr.bf16.mxu0 %v12853_v2  ;;  %1197 = vmatprep.mubr.bf16.mxu1 %v12853_v2 }
  0x31   : > { %1643 = vmatpush1.bf16.msra.mxu1 %v12060_v32  ;;  %2384 = vmatprep.subr.bf16.mxu0 %v12109_v18 }
  0x32   : > { %1644 = vmatprep.subr.bf16.mxu1 %v12066_v36  ;;  %2385 = vmatpush1.bf16.msra.mxu0 %v12107_v17 }
  0x33   : > { %2386 = vmatprep.subr.bf16.mxu0 %v12112_v21 }
  0x35   : > { %1645 = vmatpush1.bf16.msra.mxu1 %v12064_v35 }
  0x36   : > { %1646 = vmatprep.subr.bf16.mxu1 %v12070_v38  ;;  %2387 = vmatpush1.bf16.msra.mxu0 %v12110_v20 }
  0x37   : > { %10779 = vmatmul.mubr.msk.bf16.gmra.mrb[16].mxu0 %vm788_vm0, %v12019_v16  ;;  %10803 = vmatmul.mubr.msk.bf16.gmra.mrb[16].mxu1 %vm788_vm0, %v12067_v37  ;;  %v12055_v16 = vld [vmem:[%s12953_s19 + $0xb0] sm:$0xff]  }
  0x38   : > { %967 = vmatprep.mubr.bf16.mxu0 %v12853_v2  ;;  %1207 = vmatprep.mubr.bf16.mxu1 %v12853_v2 }
  0x39   : > { %1647 = vmatpush1.bf16.msra.mxu1 %v12068_v39  ;;  %2388 = vmatprep.subr.bf16.mxu0 %v12115_v24 }
  0x3a   : > { %1648 = vmatprep.subr.bf16.mxu1 %v12073_v41  ;;  %2389 = vmatpush1.bf16.msra.mxu0 %v12113_v23 }
  0x3b   : > { %2390 = vmatprep.subr.bf16.mxu0 %v12118_v30 }
  0x3d   : > { %1649 = vmatpush1.bf16.msra.mxu1 %v12071_v42 }
  0x3e   : > { %1650 = vmatprep.subr.bf16.mxu1 %v12077_v44  ;;  %2391 = vmatpush1.bf16.msra.mxu0 %v12116_v29 }
  0x3f   : > { %10780 = vmatmul.mubr.msk.bf16.gmra.mrb[20].mxu0 %vm788_vm0, %v12020_v22  ;;  %10804 = vmatmul.mubr.msk.bf16.gmra.mrb[20].mxu1 %vm788_vm0, %v12074_v43  ;;  %v580_v22 = vlaneseq }
  0x40   : > { %977 = vmatprep.mubr.bf16.mxu0 %v12853_v2  ;;  %1217 = vmatprep.mubr.bf16.mxu1 %v12853_v2 }
  0x41   : > { %1651 = vmatpush1.bf16.msra.mxu1 %v12075_v45  ;;  %v13196_v25 = vshrl.u32 %v580_v22, 7 }
  0x42   : > { %1652 = vmatprep.subr.bf16.mxu1 %v12080_v47 }
  0x43   : > { %v13199_v26 = vsub.s32 0, %v13196_v25 }
  0x45   : > { %1653 = vmatpush1.bf16.msra.mxu1 %v12078_v49  ;;  %v13214_v31 = vrot.slane %v568_v27, %v13199_v26 }
  0x46   : > { %1654 = vmatprep.subr.bf16.mxu1 %v12084_v50  ;;  %v12119_v50 = vld [vmem:[%s16420_s3 + $0x180] ss:$8 sps:$4 sm:$0xff]  }
  0x47   : > { %10781 = vmatmul.mubr.msk.bf16.gmra.mrb[24].mxu0 %vm788_vm0, %v12021_v28  ;;  %10805 = vmatmul.mubr.msk.bf16.gmra.mrb[24].mxu1 %vm788_vm0, %v12081_v48  ;;  %v569_v28 = vld [vmem:[%s16421_s4 + $0x8] sm:$0xff] }
  0x48   : > { %987 = vmatprep.mubr.bf16.mxu0 %v12853_v2  ;;  %1227 = vmatprep.mubr.bf16.mxu1 %v12853_v2  ;;  %v13217_v32 = vrot.slane %v569_v28, %v13199_v26 }
  0x49   : > { %1655 = vmatpush1.bf16.msra.mxu1 %v12082_v51  ;;  %v12121_v51 = vld [vmem:[%s16420_s3 + $0x184] ss:$8 sps:$4 sm:$0xff]  }
  0x4a   : > { %1656 = vmatprep.subr.bf16.mxu1 %v12087_v53  ;;  %2392 = vmatprep.subr.bf16.mxu0 %v12121_v51 }
  0x4b   : > { %2393 = vmatpush1.bf16.msra.mxu0 %v12119_v50  ;;  %v12127_v50 = vld [vmem:[%s16420_s3 + $0x1a4] ss:$8 sps:$4 sm:$0xff]  }
  0x4d   : > { %1657 = vmatpush1.bf16.msra.mxu1 %v12085_v54 }
  0x4e   : > { %1658 = vmatprep.subr.bf16.mxu1 %v12091_v57 }
  0x4f   : > { %10782 = vmatmul.mubr.msk.bf16.gmra.mrb[28].mxu0 %vm788_vm0, %v12022_v34  ;;  %10806 = vmatmul.mubr.msk.bf16.gmra.mrb[28].mxu1 %vm788_vm0, %v12088_v55 }
  0x50   : > { %997 = vmatprep.mubr.bf16.mxu0 %v12853_v2 }
  0x51   : > { %1659 = vmatpush1.bf16.msra.mxu1 %v12089_v58 }
  0x52   : > { %1660 = vmatprep.subr.bf16.mxu1 %v12094_v59 }
  0x55   : > { %1661 = vmatpush1.bf16.msra.mxu1 %v12092_v60 }
  0x57   : > { %10783 = vmatmul.mubr.msk.bf16.gmra.mrb[32].mxu0 %vm788_vm0, %v12023_v40 }
  0x58   : > { %1007 = vmatprep.mubr.bf16.mxu0 %v12853_v2 }
  0x5f   : > { %10784 = vmatmul.mubr.msk.bf16.gmra.mrb[36].mxu0 %vm788_vm0, %v12024_v46 }
  0x60   : > { %1017 = vmatprep.mubr.bf16.mxu0 %v12853_v2 }
  0x67   : > { %10785 = vmatmul.mubr.msk.bf16.gmra.mrb[40].mxu0 %vm788_vm0, %v12025_v52 }
  0x68   : > { %1027 = vmatprep.mubr.bf16.mxu0 %v12853_v2 }
  0x6f   : > { %10786 = vmatmul.mubr.msk.bf16.gmra.mrb[44].mxu0 %vm788_vm0, %v12026_v56 }
  0x70   : > { %1037 = vmatprep.mubr.bf16.mxu0 %v12853_v2 }
  0x77   : > { %10787 = vmatmul.mubr.msk.bf16.gmra.mrb[48].mxu0 %vm788_vm0, %v12027_v61 }
  0x78   : > { %1047 = vmatprep.mubr.bf16.mxu0 %v12853_v2 }
  0x7f   : > { %10788 = vmatmul.mubr.msk.bf16.gmra.mrb[52].mxu0 %vm788_vm0, %v12028_v62 }
  0x80   : > { %1057 = vmatprep.mubr.bf16.mxu0 %v12853_v2 }
  0x87   : > { %10789 = vmatmul.mubr.msk.bf16.gmra.mrb[56].mxu0 %vm788_vm0, %v12029_v63 }
  0x88   : > { %1067 = vmatprep.mubr.bf16.mxu0 %v12853_v2 }
  0x8f   : > { %10790 = vmatmul.mubr.msk.bf16.gmra.mrb[60].mxu0 %vm788_vm0, %v12030_v0 }
  0x90   : > { %1077 = vmatprep.mubr.bf16.mxu0 %v12853_v2 }
  0x97   : > { %10791 = vmatmul.mubr.msk.bf16.gmra.mrb[64].mxu0 %vm788_vm0, %v12031_v1 }
  0x98   : > { %1087 = vmatprep.mubr.bf16.mxu0 %v12853_v2 }
  0x9f   : > { %10792 = vmatmul.mubr.msk.bf16.gmra.mrb[68].mxu0 %vm788_vm0, %v12032_v5 }
  0xa0   : > { %1097 = vmatprep.mubr.bf16.mxu0 %v12853_v2 }
  0xa7   : > { %10793 = vmatmul.mubr.msk.bf16.gmra.mrb[72].mxu0 %vm788_vm0, %v12033_v8  ;;  %v12122_v8 = vld [vmem:[%s16420_s3 + $0x190] ss:$8 sps:$4 sm:$0xff]  }
  0xa8   : > { %1107 = vmatprep.mubr.bf16.mxu0 %v12853_v2 }
  0xaf   : > { %10794 = vmatmul.mubr.msk.bf16.gmra.mrb[76].mxu0 %vm788_vm0, %v12034_v9  ;;  %v12124_v9 = vld [vmem:[%s16420_s3 + $0x194] ss:$8 sps:$4 sm:$0xff]  }
  0xb0   : > { %1117 = vmatprep.mubr.bf16.mxu0 %v12853_v2  ;;  %2394 = vmatprep.subr.bf16.mxu0 %v12124_v9 }
  0xb1   : > { %2395 = vmatpush1.bf16.msra.mxu0 %v12122_v8 }
  0xb2   : > { %2396 = vmatprep.subr.bf16.mxu0 %v12127_v50 }
  0xb7   : > { %10795 = vmatmul.mubr.msk.bf16.gmra.mrb[80].mxu0 %vm788_vm0, %v12039_v12 }
  0xb8   : > { %1127 = vmatprep.mubr.bf16.mxu0 %v12853_v2 }
  0xbf   : > { %10796 = vmatmul.mubr.msk.bf16.gmra.mrb[84].mxu0 %vm788_vm0, %v12047_v15 }
  0xc0   : > { %1137 = vmatprep.mubr.bf16.mxu0 %v12853_v2 }
  0xc7   : > { %10797 = vmatmul.mubr.msk.bf16.gmra.mrb[88].mxu0 %vm788_vm0, %v12055_v16 }
  0xc8   : > { %1147 = vmatprep.mubr.bf16.mxu0 %v12853_v2 }
  0xcf   : > { %10798 = vmatmul.mubr.msk.bf16.gmra.mrb[92].mxu0 %vm788_vm0, %v12063_v19 }
  0xea   : > { %v919_v33 = vpop.f32.mrb[0].mxu0  ;;  %v1159_v23 = vpop.f32.mrb[0].mxu1 }
  0xeb   : > { %v920_v34 = vadd.f32 %v919_v33, %v13214_v31  ;;  %v921_v35 = vpop.f32.mrb[1].mxu0  ;;  %v1160_v27 = vadd.f32 %v1159_v23, %v13214_v31  ;;  %v1161_v28 = vpop.f32.mrb[1].mxu1 }
  0xec   : > { %v922_v36 = vadd.f32 %v921_v35, %v13217_v32  ;;  %v923_v37 = vpop.f32.mrb[2].mxu0  ;;  %v1162_v33 = vadd.f32 %v1161_v28, %v13217_v32  ;;  %v12128_v28 = vld [vmem:[%s16420_s3 + $0x1b0] ss:$8 sps:$4 sm:$0xff]  }
  0xed   : > { %v924_v38 = vadd.f32 %v923_v37, %v13214_v31  ;;  %v925_v39 = vpop.f32.mrb[3].mxu0  ;;  %v1238_v41 = vmax.f32 %v920_v34, 0.0  ;;  %v1163_v34 = vpop.f32.mrb[2].mxu1 }
  0xee   : > { %v926_v40 = vadd.f32 %v925_v39, %v13217_v32  ;;  %v1239_v43 = vmax.f32 %v922_v36, 0.0  ;;  %v1164_v37 = vadd.f32 %v1163_v34, %v13214_v31 }
  0xef   : > { %v1240_v42 = vmax.f32 %v924_v38, 0.0  ;;  %v1165_v38 = vpop.f32.mrb[3].mxu1 }
  0xf0   : > { %v1241_v44 = vmax.f32 %v926_v40, 0.0  ;;  %v1334_v40 = vmax.f32 %v1160_v27, 0.0 }
  0xf1   : > { %v1366_v45 = vpack.c.bf16 %v1240_v42, %v1238_v41  ;;  %v1335_v41 = vmax.f32 %v1162_v33, 0.0  ;;  %v1166_v42 = vadd.f32 %v1165_v38, %v13217_v32 }
  0xf2   : > { %v929_v46 = vpop.f32.mrb[4].mxu0  ;;  %v1367_v47 = vpack.c.bf16 %v1241_v44, %v1239_v43 }
  0xf3   : > { %v930_v48 = vadd.f32 %v929_v46, %v13214_v31  ;;  %v931_v49 = vpop.f32.mrb[5].mxu0 }
  0xf4   : > { %v932_v52 = vadd.f32 %v931_v49, %v13217_v32  ;;  %v933_v53 = vpop.f32.mrb[6].mxu0  ;;  %1662 = vmatprep.mubr.bf16.mxu1 %v1367_v47  ;;  %v12125_v49 = vld [vmem:[%s16420_s3 + $0x1a0] ss:$8 sps:$4 sm:$0xff]  }
  0xf5   : > { %v934_v54 = vadd.f32 %v933_v53, %v13214_v31  ;;  %v935_v55 = vpop.f32.mrb[7].mxu0  ;;  %1663 = vmatmul.mubr.bf16.vlgmr.msra.gmra.mrb[32].mxu1 %v1366_v45  ;;  %v1242_v57 = vmax.f32 %v930_v48, 0.0  ;;  %v1336_v45 = vmax.f32 %v1164_v37, 0.0  ;;  %v1337_v48 = vmax.f32 %v1166_v42, 0.0  ;;  %2397 = vmatpush1.bf16.msra.mxu0 %v12125_v49 }
  0xf6   : > { %v936_v56 = vadd.f32 %v935_v55, %v13217_v32  ;;  %v1243_v59 = vmax.f32 %v932_v52, 0.0  ;;  %v1169_v55 = vpop.f32.mrb[4].mxu1 }
  0xf7   : > { %v1244_v58 = vmax.f32 %v934_v54, 0.0 }
  0xf8   : > { %v1245_v60 = vmax.f32 %v936_v56, 0.0  ;;  %v13260_v56 = vpack.c.bf16 %v1337_v48, %v1335_v41 }
  0xf9   : > { %v1368_v61 = vpack.c.bf16 %v1244_v58, %v1242_v57  ;;  %v13262_v57 = vpack.c.bf16 %v1336_v45, %v1334_v40 }
  0xfa   : > { %v939_v62 = vpop.f32.mrb[8].mxu0  ;;  %v1369_v63 = vpack.c.bf16 %v1245_v60, %v1243_v59  ;;  %v1170_v59 = vadd.f32 %v1169_v55, %v13214_v31  ;;  %v1171_v60 = vpop.f32.mrb[5].mxu1 }
  0xfb   : > { %v940_v0 = vadd.f32 %v939_v62, %v13214_v31  ;;  %v941_v1 = vpop.f32.mrb[9].mxu0 }
  0xfc   : > { %v942_v3 = vadd.f32 %v941_v1, %v13217_v32  ;;  %v943_v4 = vpop.f32.mrb[10].mxu0  ;;  %1672 = vmatprep.mubr.bf16.mxu1 %v1369_v63  ;;  %v1172_v63 = vadd.f32 %v1171_v60, %v13217_v32 }
  0xfd   : > { %v944_v5 = vadd.f32 %v943_v4, %v13214_v31  ;;  %v945_v6 = vpop.f32.mrb[11].mxu0  ;;  %1673 = vmatmul.mubr.bf16.gmra.mrb[36].mxu1 %v1368_v61  ;;  %v1246_v10 = vmax.f32 %v940_v0, 0.0  ;;  %v1173_v0 = vpop.f32.mrb[6].mxu1 }
  0xfe   : > { %v946_v7 = vadd.f32 %v945_v6, %v13217_v32  ;;  %v1247_v12 = vmax.f32 %v942_v3, 0.0  ;;  %v1174_v4 = vadd.f32 %v1173_v0, %v13214_v31  ;;  %v1339_v8 = vmax.f32 %v1172_v63, 0.0 }
  0xff   : > { %v1248_v11 = vmax.f32 %v944_v5, 0.0  ;;  %v1175_v5 = vpop.f32.mrb[7].mxu1 }
 0x100   : > { %v1249_v13 = vmax.f32 %v946_v7, 0.0  ;;  %v1338_v7 = vmax.f32 %v1170_v59, 0.0  ;;  %v1176_v9 = vadd.f32 %v1175_v5, %v13217_v32 }
 0x101   : > { %v1370_v14 = vpack.c.bf16 %v1248_v11, %v1246_v10 }
 0x102   : > { %v949_v15 = vpop.f32.mrb[12].mxu0  ;;  %v1371_v16 = vpack.c.bf16 %v1249_v13, %v1247_v12  ;;  %v1340_v12 = vmax.f32 %v1174_v4, 0.0 }
 0x103   : > { %v950_v17 = vadd.f32 %v949_v15, %v13214_v31  ;;  %v951_v18 = vpop.f32.mrb[13].mxu0  ;;  %v1341_v15 = vmax.f32 %v1176_v9, 0.0 }
 0x104   : > { %v952_v19 = vadd.f32 %v951_v18, %v13217_v32  ;;  %v953_v20 = vpop.f32.mrb[14].mxu0  ;;  %1682 = vmatprep.mubr.bf16.mxu1 %v1371_v16 }
 0x105   : > { %v954_v21 = vadd.f32 %v953_v20, %v13214_v31  ;;  %v955_v22 = vpop.f32.mrb[15].mxu0  ;;  %1683 = vmatmul.mubr.bf16.gmra.mrb[40].mxu1 %v1370_v14  ;;  %v1250_v29 = vmax.f32 %v950_v17, 0.0  ;;  %v1179_v20 = vpop.f32.mrb[8].mxu1 }
 0x106   : > { %v956_v24 = vadd.f32 %v955_v22, %v13217_v32  ;;  %v1251_v35 = vmax.f32 %v952_v19, 0.0  ;;  %v13274_v22 = vpack.c.bf16 %v1340_v12, %v1338_v7  ;;  %v1181_v27 = vpop.f32.mrb[9].mxu1 }
 0x107   : > { %v1252_v30 = vmax.f32 %v954_v21, 0.0  ;;  %v13272_v21 = vpack.c.bf16 %v1341_v15, %v1339_v8  ;;  %v1182_v34 = vadd.f32 %v1181_v27, %v13217_v32 }
 0x108   : > { %v1253_v36 = vmax.f32 %v956_v24, 0.0  ;;  %v1180_v24 = vadd.f32 %v1179_v20, %v13214_v31 }
 0x109   : > { %v1372_v39 = vpack.c.bf16 %v1252_v30, %v1250_v29  ;;  %v12130_v29 = vld [vmem:[%s16420_s3 + $0x1b4] ss:$8 sps:$4 sm:$0xff]   ;;  %v1343_v42 = vmax.f32 %v1182_v34, 0.0 }
 0x10a   : > { %v959_v43 = vpop.f32.mrb[16].mxu0  ;;  %v1373_v44 = vpack.c.bf16 %v1253_v36, %v1251_v35  ;;  %v1183_v35 = vpop.f32.mrb[10].mxu1  ;;  %2398 = vmatprep.subr.bf16.mxu0 %v12130_v29  ;;  %v1342_v41 = vmax.f32 %v1180_v24, 0.0 }
 0x10b   : > { %v960_v46 = vadd.f32 %v959_v43, %v13214_v31  ;;  %v961_v47 = vpop.f32.mrb[17].mxu0  ;;  %v1184_v38 = vadd.f32 %v1183_v35, %v13214_v31  ;;  %2399 = vmatpush1.bf16.msra.mxu0 %v12128_v28 }
 0x10c   : > { %v962_v51 = vadd.f32 %v961_v47, %v13217_v32  ;;  %v963_v52 = vpop.f32.mrb[18].mxu0  ;;  %1692 = vmatprep.mubr.bf16.mxu1 %v1373_v44 }
 0x10d   : > { %v964_v53 = vadd.f32 %v963_v52, %v13214_v31  ;;  %v965_v54 = vpop.f32.mrb[19].mxu0  ;;  %1693 = vmatmul.mubr.bf16.gmra.mrb[44].mxu1 %v1372_v39  ;;  %v1254_v61 = vmax.f32 %v960_v46, 0.0  ;;  %v1185_v39 = vpop.f32.mrb[11].mxu1  ;;  %v1344_v46 = vmax.f32 %v1184_v38, 0.0 }
 0x10e   : > { %v966_v58 = vadd.f32 %v965_v54, %v13217_v32  ;;  %v1255_v1 = vmax.f32 %v962_v51, 0.0  ;;  %v1186_v43 = vadd.f32 %v1185_v39, %v13217_v32  ;;  %v1189_v54 = vpop.f32.mrb[12].mxu1 }
 0x10f   : > { %v1256_v62 = vmax.f32 %v964_v53, 0.0  ;;  %v1190_v60 = vadd.f32 %v1189_v54, %v13214_v31 }
 0x110   : > { %v1257_v3 = vmax.f32 %v966_v58, 0.0  ;;  %v1345_v49 = vmax.f32 %v1186_v43, 0.0  ;;  %v13292_v58 = vpack.c.bf16 %v1344_v46, %v1342_v41 }
 0x111   : > { %v1374_v6 = vpack.c.bf16 %v1256_v62, %v1254_v61  ;;  %v1191_v61 = vpop.f32.mrb[13].mxu1  ;;  %v1346_v8 = vmax.f32 %v1190_v60, 0.0 }
 0x112   : > { %v969_v10 = vpop.f32.mrb[20].mxu0  ;;  %v1375_v11 = vpack.c.bf16 %v1257_v3, %v1255_v1  ;;  %v13290_v55 = vpack.c.bf16 %v1345_v49, %v1343_v42  ;;  %v1192_v0 = vadd.f32 %v1191_v61, %v13217_v32  ;;  %v1193_v1 = vpop.f32.mrb[14].mxu1 }
 0x113   : > { %v970_v13 = vadd.f32 %v969_v10, %v13214_v31  ;;  %v971_v14 = vpop.f32.mrb[21].mxu0  ;;  %v1194_v5 = vadd.f32 %v1193_v1, %v13214_v31 }
 0x114   : > { %v972_v16 = vadd.f32 %v971_v14, %v13217_v32  ;;  %v973_v17 = vpop.f32.mrb[22].mxu0  ;;  %1702 = vmatprep.mubr.bf16.mxu1 %v1375_v11  ;;  %v1347_v9 = vmax.f32 %v1192_v0, 0.0 }
 0x115   : > { %v974_v18 = vadd.f32 %v973_v17, %v13214_v31  ;;  %v975_v19 = vpop.f32.mrb[23].mxu0  ;;  %1703 = vmatmul.mubr.bf16.gmra.mrb[48].mxu1 %v1374_v6  ;;  %v1258_v30 = vmax.f32 %v970_v13, 0.0  ;;  %v1195_v6 = vpop.f32.mrb[15].mxu1  ;;  %v1348_v13 = vmax.f32 %v1194_v5, 0.0  ;;  %v12131_v17 = vld [vmem:[%s16420_s3 + $0x1c0] ss:$8 sps:$4 sm:$0xff]  }
 0x116   : > { %v976_v23 = vadd.f32 %v975_v19, %v13217_v32  ;;  %v1259_v36 = vmax.f32 %v972_v16, 0.0  ;;  %v1196_v10 = vadd.f32 %v1195_v6, %v13217_v32  ;;  %v1199_v27 = vpop.f32.mrb[16].mxu1  ;;  %v12136_v5 = vld [vmem:[%s16420_s3 + $0x1d4] ss:$8 sps:$4 sm:$0xff]  }
 0x117   : > { %v1260_v33 = vmax.f32 %v974_v18, 0.0  ;;  %v12133_v18 = vld [vmem:[%s16420_s3 + $0x1c4] ss:$8 sps:$4 sm:$0xff]   ;;  %v13310_v29 = vpack.c.bf16 %v1348_v13, %v1346_v8  ;;  %v1201_v34 = vpop.f32.mrb[17].mxu1 }
 0x118   : > { %v1261_v37 = vmax.f32 %v976_v23, 0.0  ;;  %v1349_v16 = vmax.f32 %v1196_v10, 0.0  ;;  %2400 = vmatprep.subr.bf16.mxu0 %v12133_v18  ;;  %v1203_v38 = vpop.f32.mrb[18].mxu1 }
 0x119   : > { %v1376_v40 = vpack.c.bf16 %v1260_v33, %v1258_v30  ;;  %2401 = vmatpush1.bf16.msra.mxu0 %v12131_v17  ;;  %v1200_v33 = vadd.f32 %v1199_v27, %v13214_v31  ;;  %v1204_v41 = vadd.f32 %v1203_v38, %v13214_v31  ;;  %v1205_v42 = vpop.f32.mrb[19].mxu1 }
 0x11a   : > { %v979_v44 = vpop.f32.mrb[24].mxu0  ;;  %v1377_v45 = vpack.c.bf16 %v1261_v37, %v1259_v36  ;;  %v13308_v28 = vpack.c.bf16 %v1349_v16, %v1347_v9  ;;  %v1202_v37 = vadd.f32 %v1201_v34, %v13217_v32  ;;  %2402 = vmatprep.subr.bf16.mxu0 %v12136_v5  ;;  %v12139_v16 = vld [vmem:[%s16420_s3 + $0x204] ss:$8 sps:$4 sm:$0xff]  }
 0x11b   : > { %v980_v47 = vadd.f32 %v979_v44, %v13214_v31  ;;  %v981_v48 = vpop.f32.mrb[25].mxu0  ;;  %v1352_v49 = vmax.f32 %v1204_v41, 0.0  ;;  %3122 = vmatprep.subr.bf16.mxu1 %v12139_v16  ;;  %v12145_v16 = vld [vmem:[%s16420_s3 + $0x214] ss:$8 sps:$4 sm:$0xff]  }
 0x11c   : > { %v982_v50 = vadd.f32 %v981_v48, %v13217_v32  ;;  %v983_v51 = vpop.f32.mrb[26].mxu0  ;;  %1712 = vmatprep.mubr.bf16.mxu1 %v1377_v45  ;;  %v1351_v44 = vmax.f32 %v1202_v37, 0.0  ;;  %v1206_v45 = vadd.f32 %v1205_v42, %v13217_v32  ;;  %v1350_v48 = vmax.f32 %v1200_v33, 0.0 }
 0x11d   : > { %v984_v52 = vadd.f32 %v983_v51, %v13214_v31  ;;  %v985_v53 = vpop.f32.mrb[27].mxu0  ;;  %1713 = vmatmul.mubr.bf16.gmra.mrb[52].mxu1 %v1376_v40  ;;  %v1262_v62 = vmax.f32 %v980_v47, 0.0 }
 0x11e   : > { %v986_v59 = vadd.f32 %v985_v53, %v13217_v32  ;;  %v1263_v3 = vmax.f32 %v982_v50, 0.0 }
 0x11f   : > { %v1264_v63 = vmax.f32 %v984_v52, 0.0  ;;  %v1353_v52 = vmax.f32 %v1206_v45, 0.0  ;;  %v12140_v45 = vld [vmem:[%s16420_s3 + $0x1e0] ss:$8 sps:$4 sm:$0xff]  }
 0x120   : > { %v1265_v4 = vmax.f32 %v986_v59, 0.0  ;;  %v1209_v59 = vpop.f32.mrb[20].mxu1 }
 0x121   : > { %v1378_v7 = vpack.c.bf16 %v1264_v63, %v1262_v62  ;;  %v1211_v62 = vpop.f32.mrb[21].mxu1  ;;  %v13320_v63 = vpack.c.bf16 %v1353_v52, %v1351_v44  ;;  %v1210_v1 = vadd.f32 %v1209_v59, %v13214_v31 }
 0x122   : > { %v989_v11 = vpop.f32.mrb[28].mxu0  ;;  %v1379_v12 = vpack.c.bf16 %v1265_v4, %v1263_v3  ;;  %v1212_v3 = vadd.f32 %v1211_v62, %v13217_v32  ;;  %v12134_v4 = vld [vmem:[%s16420_s3 + $0x1d0] ss:$8 sps:$4 sm:$0xff]   ;;  %v1213_v6 = vpop.f32.mrb[22].mxu1 }
 0x123   : > { %v990_v14 = vadd.f32 %v989_v11, %v13214_v31  ;;  %v991_v15 = vpop.f32.mrb[29].mxu0  ;;  %v1214_v10 = vadd.f32 %v1213_v6, %v13214_v31  ;;  %v1215_v11 = vpop.f32.mrb[23].mxu1  ;;  %2403 = vmatpush1.bf16.msra.mxu0 %v12134_v4 }
 0x124   : > { %v992_v19 = vadd.f32 %v991_v15, %v13217_v32  ;;  %v993_v20 = vpop.f32.mrb[30].mxu0  ;;  %1722 = vmatprep.mubr.bf16.mxu1 %v1379_v12  ;;  %v12137_v12 = vld [vmem:[%s16420_s3 + $0x200] ss:$8 sps:$4 sm:$0xff]   ;;  %v1216_v15 = vadd.f32 %v1215_v11, %v13217_v32  ;;  %v1355_v18 = vmax.f32 %v1212_v3, 0.0 }
 0x125   : > { %v994_v23 = vadd.f32 %v993_v20, %v13214_v31  ;;  %v995_v24 = vpop.f32.mrb[31].mxu0  ;;  %1723 = vmatmul.mubr.bf16.gmra.mrb[56].mxu1 %v1378_v7  ;;  %v1266_v35 = vmax.f32 %v990_v14, 0.0  ;;  %v13331_v7 = vpack.c.bf16 %v1352_v49, %v1350_v48 }
 0x126   : > { %v996_v30 = vadd.f32 %v995_v24, %v13217_v32  ;;  %v1267_v39 = vmax.f32 %v992_v19, 0.0  ;;  %v1356_v24 = vmax.f32 %v1214_v10, 0.0  ;;  %v1357_v27 = vmax.f32 %v1216_v15, 0.0  ;;  %3123 = vmatpush1.bf16.msra.mxu1 %v12137_v12  ;;  %v12143_v15 = vld [vmem:[%s16420_s3 + $0x210] ss:$8 sps:$4 sm:$0xff]  }
 0x127   : > { %v1268_v36 = vmax.f32 %v994_v23, 0.0  ;;  %v1354_v23 = vmax.f32 %v1210_v1, 0.0  ;;  %3124 = vmatprep.subr.bf16.mxu1 %v12145_v16 }
 0x128   : > { %v1269_v40 = vmax.f32 %v996_v30, 0.0  ;;  %v13345_v41 = vpack.c.bf16 %v1357_v27, %v1355_v18 }
 0x129   : > { %v1380_v43 = vpack.c.bf16 %v1268_v36, %v1266_v35  ;;  %v1219_v36 = vpop.f32.mrb[24].mxu1 }
 0x12a   : > { %v999_v46 = vpop.f32.mrb[32].mxu0  ;;  %v1381_v47 = vpack.c.bf16 %v1269_v40, %v1267_v39  ;;  %v1220_v39 = vadd.f32 %v1219_v36, %v13214_v31  ;;  %v1221_v40 = vpop.f32.mrb[25].mxu1  ;;  %3125 = vmatpush1.bf16.msra.mxu1 %v12143_v15 }
 0x12b   : > { %v1000_v50 = vadd.f32 %v999_v46, %v13214_v31  ;;  %v1001_v51 = vpop.f32.mrb[33].mxu0  ;;  %v1223_v44 = vpop.f32.mrb[26].mxu1  ;;  %v12142_v46 = vld [vmem:[%s16420_s3 + $0x1e4] ss:$8 sps:$4 sm:$0xff]  }
 0x12c   : > { %v1002_v53 = vadd.f32 %v1001_v51, %v13217_v32  ;;  %v1003_v54 = vpop.f32.mrb[34].mxu0  ;;  %1732 = vmatprep.mubr.bf16.mxu1 %v1381_v47  ;;  %v13355_v47 = vpack.c.bf16 %v1356_v24, %v1354_v23  ;;  %v1225_v51 = vpop.f32.mrb[27].mxu1  ;;  %2404 = vmatprep.subr.bf16.mxu0 %v12142_v46 }
 0x12d   : > { %v1004_v60 = vadd.f32 %v1003_v54, %v13214_v31  ;;  %v1005_v61 = vpop.f32.mrb[35].mxu0  ;;  %1733 = vmatmul.mubr.bf16.gmra.mrb[60].mxu1 %v1380_v43  ;;  %v1270_v8 = vmax.f32 %v1000_v50, 0.0  ;;  %v1222_v43 = vadd.f32 %v1221_v40, %v13217_v32  ;;  %v1224_v50 = vadd.f32 %v1223_v44, %v13214_v31  ;;  %2405 = vmatpush1.bf16.msra.mxu0 %v12140_v45 }
 0x12e   : > { %v1006_v0 = vadd.f32 %v1005_v61, %v13217_v32  ;;  %v1271_v13 = vmax.f32 %v1002_v53, 0.0  ;;  %v1226_v54 = vadd.f32 %v1225_v51, %v13217_v32 }
 0x12f   : > { %v1272_v9 = vmax.f32 %v1004_v60, 0.0  ;;  %v1358_v60 = vmax.f32 %v1220_v39, 0.0  ;;  %v1359_v61 = vmax.f32 %v1222_v43, 0.0  ;;  %v1360_v62 = vmax.f32 %v1224_v50, 0.0 }
 0x130   : > { %v1273_v14 = vmax.f32 %v1006_v0, 0.0  ;;  %v1361_v3 = vmax.f32 %v1226_v54, 0.0  ;;  %v12148_v54 = vld [vmem:[%s16420_s3 + $0x1f4] ss:$8 sps:$4 sm:$0xff]  }
 0x131   : > { %v1382_v17 = vpack.c.bf16 %v1272_v9, %v1270_v8  ;;  %v13364_v12 = vpack.c.bf16 %v1360_v62, %v1358_v60  ;;  %2406 = vmatprep.subr.bf16.mxu0 %v12148_v54 }
 0x132   : > { %v1009_v19 = vpop.f32.mrb[36].mxu0  ;;  %v1383_v20 = vpack.c.bf16 %v1273_v14, %v1271_v13  ;;  %v13362_v11 = vpack.c.bf16 %v1361_v3, %v1359_v61  ;;  %v1229_v14 = vpop.f32.mrb[28].mxu1 }
 0x133   : > { %v1010_v30 = vadd.f32 %v1009_v19, %v13214_v31  ;;  %v1011_v33 = vpop.f32.mrb[37].mxu0  ;;  %v1230_v19 = vadd.f32 %v1229_v14, %v13214_v31 }
 0x134   : > { %v1012_v34 = vadd.f32 %v1011_v33, %v13217_v32  ;;  %v1013_v35 = vpop.f32.mrb[38].mxu0  ;;  %1742 = vmatprep.mubr.bf16.mxu1 %v1383_v20  ;;  %v1231_v20 = vpop.f32.mrb[29].mxu1 }
 0x135   : > { %v1014_v37 = vadd.f32 %v1013_v35, %v13214_v31  ;;  %v1015_v38 = vpop.f32.mrb[39].mxu0  ;;  %1743 = vmatmul.mubr.bf16.gmra.mrb[64].mxu1 %v1382_v17  ;;  %v1274_v48 = vmax.f32 %v1010_v30, 0.0  ;;  %v1232_v27 = vadd.f32 %v1231_v20, %v13217_v32  ;;  %v1233_v30 = vpop.f32.mrb[30].mxu1 }
 0x136   : > { %v1016_v42 = vadd.f32 %v1015_v38, %v13217_v32  ;;  %v1275_v52 = vmax.f32 %v1012_v34, 0.0  ;;  %v1362_v34 = vmax.f32 %v1230_v19, 0.0  ;;  %v1234_v35 = vadd.f32 %v1233_v30, %v13214_v31  ;;  %v1235_v36 = vpop.f32.mrb[31].mxu1  ;;  %v12149_v30 = vld [vmem:[%s16420_s3 + $0x220] ss:$8 sps:$4 sm:$0xff]  }
 0x137   : > { %v1276_v49 = vmax.f32 %v1014_v37, 0.0  ;;  %v1363_v39 = vmax.f32 %v1232_v27, 0.0  ;;  %v1236_v40 = vadd.f32 %v1235_v36, %v13217_v32 }
 0x138   : > { %v1277_v53 = vmax.f32 %v1016_v42, 0.0  ;;  %v1364_v44 = vmax.f32 %v1234_v35, 0.0 }
 0x139   : > { %v1384_v59 = vpack.c.bf16 %v1276_v49, %v1274_v48  ;;  %v1365_v48 = vmax.f32 %v1236_v40, 0.0 }
 0x13a   : > { %v1019_v0 = vpop.f32.mrb[40].mxu0  ;;  %v1385_v1 = vpack.c.bf16 %v1277_v53, %v1275_v52  ;;  %v13380_v51 = vpack.c.bf16 %v1364_v44, %v1362_v34  ;;  %v12146_v53 = vld [vmem:[%s16420_s3 + $0x1f0] ss:$8 sps:$4 sm:$0xff]  }
 0x13b   : > { %v1020_v4 = vadd.f32 %v1019_v0, %v13214_v31  ;;  %v1021_v5 = vpop.f32.mrb[41].mxu0  ;;  %2407 = vmatpush1.bf16.msra.mxu0 %v12146_v53 }
 0x13c   : > { %v1022_v6 = vadd.f32 %v1021_v5, %v13217_v32  ;;  %v1023_v8 = vpop.f32.mrb[42].mxu0  ;;  %1752 = vmatprep.mubr.bf16.mxu1 %v1385_v1 }
 0x13d   : > { %v1024_v9 = vadd.f32 %v1023_v8, %v13214_v31  ;;  %v1025_v10 = vpop.f32.mrb[43].mxu0  ;;  %1753 = vmatmul.mubr.bf16.gmra.mrb[68].mxu1 %v1384_v59  ;;  %v1278_v17 = vmax.f32 %v1020_v4, 0.0  ;;  %v13389_v59 = vpack.c.bf16 %v1365_v48, %v1363_v39 }
 0x13e   : > { %v1026_v13 = vadd.f32 %v1025_v10, %v13217_v32  ;;  %v1279_v23 = vmax.f32 %v1022_v6, 0.0 }
 0x13f   : > { %v1280_v18 = vmax.f32 %v1024_v9, 0.0 }
 0x140   : > { %v1281_v24 = vmax.f32 %v1026_v13, 0.0 }
 0x141   : > { %v1386_v33 = vpack.c.bf16 %v1280_v18, %v1278_v17 }
 0x142   : > { %v1029_v37 = vpop.f32.mrb[44].mxu0  ;;  %v1387_v38 = vpack.c.bf16 %v1281_v24, %v1279_v23 }
 0x143   : > { %v1030_v42 = vadd.f32 %v1029_v37, %v13214_v31  ;;  %v1031_v43 = vpop.f32.mrb[45].mxu0 }
 0x144   : > { %v1032_v45 = vadd.f32 %v1031_v43, %v13217_v32  ;;  %v1033_v46 = vpop.f32.mrb[46].mxu0  ;;  %1762 = vmatprep.mubr.bf16.mxu1 %v1387_v38 }
 0x145   : > { %v1034_v49 = vadd.f32 %v1033_v46, %v13214_v31  ;;  %v1035_v50 = vpop.f32.mrb[47].mxu0  ;;  %1763 = vmatmul.mubr.bf16.gmra.mrb[72].mxu1 %v1386_v33  ;;  %v1282_v60 = vmax.f32 %v1030_v42, 0.0  ;;  %v12151_v33 = vld [vmem:[%s16420_s3 + $0x224] ss:$8 sps:$4 sm:$0xff]  }
 0x146   : > { %v1036_v52 = vadd.f32 %v1035_v50, %v13217_v32  ;;  %v1283_v62 = vmax.f32 %v1032_v45, 0.0  ;;  %3126 = vmatprep.subr.bf16.mxu1 %v12151_v33 }
 0x147   : > { %v1284_v61 = vmax.f32 %v1034_v49, 0.0  ;;  %3127 = vmatpush1.bf16.msra.mxu1 %v12149_v30 }
 0x148   : > { %v1285_v0 = vmax.f32 %v1036_v52, 0.0 }
 0x149   : > { %v1388_v1 = vpack.c.bf16 %v1284_v61, %v1282_v60 }
 0x14a   : > { %v1039_v3 = vpop.f32.mrb[48].mxu0  ;;  %v1389_v4 = vpack.c.bf16 %v1285_v0, %v1283_v62 }
 0x14b   : > { %v1040_v5 = vadd.f32 %v1039_v3, %v13214_v31  ;;  %v1041_v6 = vpop.f32.mrb[49].mxu0 }
 0x14c   : > { %v1042_v8 = vadd.f32 %v1041_v6, %v13217_v32  ;;  %v1043_v9 = vpop.f32.mrb[50].mxu0  ;;  %1772 = vmatprep.mubr.bf16.mxu1 %v1389_v4 }
 0x14d   : > { %v1044_v10 = vadd.f32 %v1043_v9, %v13214_v31  ;;  %v1045_v13 = vpop.f32.mrb[51].mxu0  ;;  %1773 = vmatmul.mubr.bf16.gmra.mrb[76].mxu1 %v1388_v1  ;;  %v1286_v15 = vmax.f32 %v1040_v5, 0.0  ;;  %v12152_v9 = vld [vmem:[%s16420_s3 + $0x230] ss:$8 sps:$4 sm:$0xff]  }
 0x14e   : > { %v1046_v14 = vadd.f32 %v1045_v13, %v13217_v32  ;;  %v1287_v17 = vmax.f32 %v1042_v8, 0.0 }
 0x14f   : > { %v1288_v16 = vmax.f32 %v1044_v10, 0.0  ;;  %v12154_v10 = vld [vmem:[%s16420_s3 + $0x234] ss:$8 sps:$4 sm:$0xff]  }
 0x150   : > { %v1289_v18 = vmax.f32 %v1046_v14, 0.0  ;;  %3128 = vmatprep.subr.bf16.mxu1 %v12154_v10 }
 0x151   : > { %v1390_v19 = vpack.c.bf16 %v1288_v16, %v1286_v15  ;;  %3129 = vmatpush1.bf16.msra.mxu1 %v12152_v9 }
 0x152   : > { %v1049_v20 = vpop.f32.mrb[52].mxu0  ;;  %v1391_v23 = vpack.c.bf16 %v1289_v18, %v1287_v17 }
 0x153   : > { %v1050_v24 = vadd.f32 %v1049_v20, %v13214_v31  ;;  %v1051_v27 = vpop.f32.mrb[53].mxu0 }
 0x154   : > { %v1052_v34 = vadd.f32 %v1051_v27, %v13217_v32  ;;  %v1053_v35 = vpop.f32.mrb[54].mxu0  ;;  %1782 = vmatprep.mubr.bf16.mxu1 %v1391_v23 }
 0x155   : > { %v1054_v36 = vadd.f32 %v1053_v35, %v13214_v31  ;;  %v1055_v37 = vpop.f32.mrb[55].mxu0  ;;  %1783 = vmatmul.mubr.bf16.gmra.mrb[80].mxu1 %v1390_v19  ;;  %v1290_v39 = vmax.f32 %v1050_v24, 0.0 }
 0x156   : > { %v1056_v38 = vadd.f32 %v1055_v37, %v13217_v32  ;;  %v1291_v42 = vmax.f32 %v1052_v34, 0.0 }
 0x157   : > { %v1292_v40 = vmax.f32 %v1054_v36, 0.0 }
 0x158   : > { %v1293_v43 = vmax.f32 %v1056_v38, 0.0 }
 0x159   : > { %v1392_v44 = vpack.c.bf16 %v1292_v40, %v1290_v39 }
 0x15a   : > { %v1059_v45 = vpop.f32.mrb[56].mxu0  ;;  %v1393_v46 = vpack.c.bf16 %v1293_v43, %v1291_v42 }
 0x15b   : > { %v1060_v48 = vadd.f32 %v1059_v45, %v13214_v31  ;;  %v1061_v49 = vpop.f32.mrb[57].mxu0 }
 0x15c   : > { %v1062_v50 = vadd.f32 %v1061_v49, %v13217_v32  ;;  %v1063_v52 = vpop.f32.mrb[58].mxu0  ;;  %1792 = vmatprep.mubr.bf16.mxu1 %v1393_v46 }
 0x15d   : > { %v1064_v53 = vadd.f32 %v1063_v52, %v13214_v31  ;;  %v1065_v54 = vpop.f32.mrb[59].mxu0  ;;  %1793 = vmatmul.mubr.bf16.gmra.mrb[84].mxu1 %v1392_v44  ;;  %v1294_v61 = vmax.f32 %v1060_v48, 0.0  ;;  %v12155_v52 = vld [vmem:[%s16420_s3 + $0x240] ss:$8 sps:$4 sm:$0xff]  }
 0x15e   : > { %v1066_v60 = vadd.f32 %v1065_v54, %v13217_v32  ;;  %v1295_v0 = vmax.f32 %v1062_v50, 0.0 }
 0x15f   : > { %v1296_v62 = vmax.f32 %v1064_v53, 0.0  ;;  %v12157_v53 = vld [vmem:[%s16420_s3 + $0x244] ss:$8 sps:$4 sm:$0xff]  }
 0x160   : > { %v1297_v1 = vmax.f32 %v1066_v60, 0.0  ;;  %3130 = vmatprep.subr.bf16.mxu1 %v12157_v53 }
 0x161   : > { %v1394_v3 = vpack.c.bf16 %v1296_v62, %v1294_v61  ;;  %3131 = vmatpush1.bf16.msra.mxu1 %v12155_v52 }
 0x162   : > { %v1069_v4 = vpop.f32.mrb[60].mxu0  ;;  %v1395_v5 = vpack.c.bf16 %v1297_v1, %v1295_v0 }
 0x163   : > { %v1070_v6 = vadd.f32 %v1069_v4, %v13214_v31  ;;  %v1071_v8 = vpop.f32.mrb[61].mxu0 }
 0x164   : > { %v1072_v13 = vadd.f32 %v1071_v8, %v13217_v32  ;;  %v1073_v14 = vpop.f32.mrb[62].mxu0  ;;  %1802 = vmatprep.mubr.bf16.mxu1 %v1395_v5 }
 0x165   : > { %v1074_v15 = vadd.f32 %v1073_v14, %v13214_v31  ;;  %v1075_v16 = vpop.f32.mrb[63].mxu0  ;;  %1803 = vmatmul.mubr.bf16.gmra.mrb[88].mxu1 %v1394_v3  ;;  %v1298_v18 = vmax.f32 %v1070_v6, 0.0 }
 0x166   : > { %v1076_v17 = vadd.f32 %v1075_v16, %v13217_v32  ;;  %v1299_v20 = vmax.f32 %v1072_v13, 0.0 }
 0x167   : > { %v1300_v19 = vmax.f32 %v1074_v15, 0.0 }
 0x168   : > { %v1301_v23 = vmax.f32 %v1076_v17, 0.0 }
 0x169   : > { %v1396_v24 = vpack.c.bf16 %v1300_v19, %v1298_v18 }
 0x16a   : > { %v1079_v27 = vpop.f32.mrb[64].mxu0  ;;  %v1397_v30 = vpack.c.bf16 %v1301_v23, %v1299_v20 }
 0x16b   : > { %v1080_v33 = vadd.f32 %v1079_v27, %v13214_v31  ;;  %v1081_v34 = vpop.f32.mrb[65].mxu0 }
 0x16c   : > { %v1082_v35 = vadd.f32 %v1081_v34, %v13217_v32  ;;  %v1083_v36 = vpop.f32.mrb[66].mxu0  ;;  %1812 = vmatprep.mubr.bf16.mxu1 %v1397_v30 }
 0x16d   : > { %v1084_v37 = vadd.f32 %v1083_v36, %v13214_v31  ;;  %v1085_v38 = vpop.f32.mrb[67].mxu0  ;;  %1813 = vmatmul.mubr.bf16.gmra.mrb[92].mxu1 %v1396_v24  ;;  %v1302_v40 = vmax.f32 %v1080_v33, 0.0  ;;  %v12158_v36 = vld [vmem:[%s16420_s3 + $0x250] ss:$8 sps:$4 sm:$0xff]  }
 0x16e   : > { %v1086_v39 = vadd.f32 %v1085_v38, %v13217_v32  ;;  %v1303_v43 = vmax.f32 %v1082_v35, 0.0 }
 0x16f   : > { %v1304_v42 = vmax.f32 %v1084_v37, 0.0  ;;  %v12160_v37 = vld [vmem:[%s16420_s3 + $0x254] ss:$8 sps:$4 sm:$0xff]  }
 0x170   : > { %v1305_v44 = vmax.f32 %v1086_v39, 0.0  ;;  %3132 = vmatprep.subr.bf16.mxu1 %v12160_v37 }
 0x171   : > { %v1398_v45 = vpack.c.bf16 %v1304_v42, %v1302_v40  ;;  %3133 = vmatpush1.bf16.msra.mxu1 %v12158_v36 }
 0x172   : > { %v1089_v46 = vpop.f32.mrb[68].mxu0  ;;  %v1399_v48 = vpack.c.bf16 %v1305_v44, %v1303_v43 }
 0x173   : > { %v1090_v49 = vadd.f32 %v1089_v46, %v13214_v31  ;;  %v1091_v50 = vpop.f32.mrb[69].mxu0 }
 0x174   : > { %v1092_v54 = vadd.f32 %v1091_v50, %v13217_v32  ;;  %v1093_v60 = vpop.f32.mrb[70].mxu0  ;;  %1822 = vmatprep.mubr.bf16.mxu1 %v1399_v48 }
 0x175   : > { %v1094_v61 = vadd.f32 %v1093_v60, %v13214_v31  ;;  %v1095_v62 = vpop.f32.mrb[71].mxu0  ;;  %1823 = vmatmul.mubr.bf16.gmra.mrb[96].mxu1 %v1398_v45  ;;  %v1306_v1 = vmax.f32 %v1090_v49, 0.0 }
 0x176   : > { %v1096_v0 = vadd.f32 %v1095_v62, %v13217_v32  ;;  %v1307_v4 = vmax.f32 %v1092_v54, 0.0 }
 0x177   : > { %v1308_v3 = vmax.f32 %v1094_v61, 0.0 }
 0x178   : > { %v1309_v5 = vmax.f32 %v1096_v0, 0.0 }
 0x179   : > { %v1400_v6 = vpack.c.bf16 %v1308_v3, %v1306_v1 }
 0x17a   : > { %v1099_v8 = vpop.f32.mrb[72].mxu0  ;;  %v1401_v9 = vpack.c.bf16 %v1309_v5, %v1307_v4 }
 0x17b   : > { %v1100_v10 = vadd.f32 %v1099_v8, %v13214_v31  ;;  %v1101_v13 = vpop.f32.mrb[73].mxu0 }
 0x17c   : > { %v1102_v14 = vadd.f32 %v1101_v13, %v13217_v32  ;;  %v1103_v15 = vpop.f32.mrb[74].mxu0  ;;  %1832 = vmatprep.mubr.bf16.mxu1 %v1401_v9 }
 0x17d   : > { %v1104_v16 = vadd.f32 %v1103_v15, %v13214_v31  ;;  %v1105_v17 = vpop.f32.mrb[75].mxu0  ;;  %1833 = vmatmul.mubr.bf16.gmra.mrb[100].mxu1 %v1400_v6  ;;  %v1310_v19 = vmax.f32 %v1100_v10, 0.0  ;;  %v12161_v15 = vld [vmem:[%s16420_s3 + $0x260] ss:$8 sps:$4 sm:$0xff]  }
 0x17e   : > { %v1106_v18 = vadd.f32 %v1105_v17, %v13217_v32  ;;  %v1311_v23 = vmax.f32 %v1102_v14, 0.0 }
 0x17f   : > { %v1312_v20 = vmax.f32 %v1104_v16, 0.0  ;;  %v12163_v16 = vld [vmem:[%s16420_s3 + $0x264] ss:$8 sps:$4 sm:$0xff]  }
 0x180   : > { %v1313_v24 = vmax.f32 %v1106_v18, 0.0  ;;  %3134 = vmatprep.subr.bf16.mxu1 %v12163_v16  ;;  %v12172_v16 = vld [vmem:[%s16420_s3 + $0x294] ss:$8 sps:$4 sm:$0xff]  }
 0x181   : > { %v1402_v27 = vpack.c.bf16 %v1312_v20, %v1310_v19  ;;  %3135 = vmatpush1.bf16.msra.mxu1 %v12161_v15  ;;  %v12169_v15 = vld [vmem:[%s16420_s3 + $0x284] ss:$8 sps:$4 sm:$0xff]  }
 0x182   : > { %v1109_v30 = vpop.f32.mrb[76].mxu0  ;;  %v1403_v33 = vpack.c.bf16 %v1313_v24, %v1311_v23 }
 0x183   : > { %v1110_v34 = vadd.f32 %v1109_v30, %v13214_v31  ;;  %v1111_v35 = vpop.f32.mrb[77].mxu0 }
 0x184   : > { %v1112_v38 = vadd.f32 %v1111_v35, %v13217_v32  ;;  %v1113_v39 = vpop.f32.mrb[78].mxu0  ;;  %1842 = vmatprep.mubr.bf16.mxu1 %v1403_v33 }
 0x185   : > { %v1114_v40 = vadd.f32 %v1113_v39, %v13214_v31  ;;  %v1115_v42 = vpop.f32.mrb[79].mxu0  ;;  %1843 = vmatmul.mubr.bf16.gmra.mrb[104].mxu1 %v1402_v27  ;;  %v1314_v44 = vmax.f32 %v1110_v34, 0.0 }
 0x186   : > { %v1116_v43 = vadd.f32 %v1115_v42, %v13217_v32  ;;  %v1315_v46 = vmax.f32 %v1112_v38, 0.0 }
 0x187   : > { %v1316_v45 = vmax.f32 %v1114_v40, 0.0 }
 0x188   : > { %v1317_v48 = vmax.f32 %v1116_v43, 0.0 }
 0x189   : > { %v1404_v49 = vpack.c.bf16 %v1316_v45, %v1314_v44 }
 0x18a   : > { %v1119_v50 = vpop.f32.mrb[80].mxu0  ;;  %v1405_v52 = vpack.c.bf16 %v1317_v48, %v1315_v46 }
 0x18b   : > { %v1120_v53 = vadd.f32 %v1119_v50, %v13214_v31  ;;  %v1121_v54 = vpop.f32.mrb[81].mxu0 }
 0x18c   : > { %v1122_v60 = vadd.f32 %v1121_v54, %v13217_v32  ;;  %v1123_v61 = vpop.f32.mrb[82].mxu0  ;;  %1852 = vmatprep.mubr.bf16.mxu1 %v1405_v52 }
 0x18d   : > { %v1124_v62 = vadd.f32 %v1123_v61, %v13214_v31  ;;  %v1125_v0 = vpop.f32.mrb[83].mxu0  ;;  %1853 = vmatmul.mubr.bf16.gmra.mrb[108].mxu1 %v1404_v49  ;;  %v1318_v3 = vmax.f32 %v1120_v53, 0.0  ;;  %v12164_v61 = vld [vmem:[%s16420_s3 + $0x270] ss:$8 sps:$4 sm:$0xff]  }
 0x18e   : > { %v1126_v1 = vadd.f32 %v1125_v0, %v13217_v32  ;;  %v1319_v5 = vmax.f32 %v1122_v60, 0.0 }
 0x18f   : > { %v1320_v4 = vmax.f32 %v1124_v62, 0.0  ;;  %v12166_v62 = vld [vmem:[%s16420_s3 + $0x274] ss:$8 sps:$4 sm:$0xff]  }
 0x190   : > { %v1321_v6 = vmax.f32 %v1126_v1, 0.0  ;;  %3136 = vmatprep.subr.bf16.mxu1 %v12166_v62 }
 0x191   : > { %v1406_v8 = vpack.c.bf16 %v1320_v4, %v1318_v3  ;;  %3137 = vmatpush1.bf16.msra.mxu1 %v12164_v61 }
 0x192   : > { %v1129_v9 = vpop.f32.mrb[84].mxu0  ;;  %v1407_v10 = vpack.c.bf16 %v1321_v6, %v1319_v5  ;;  %3138 = vmatprep.subr.bf16.mxu1 %v12169_v15 }
 0x193   : > { %v1130_v13 = vadd.f32 %v1129_v9, %v13214_v31  ;;  %v1131_v14 = vpop.f32.mrb[85].mxu0 }
 0x194   : > { %v1132_v17 = vadd.f32 %v1131_v14, %v13217_v32  ;;  %v1133_v18 = vpop.f32.mrb[86].mxu0  ;;  %1862 = vmatprep.mubr.bf16.mxu1 %v1407_v10 }
 0x195   : > { %v1134_v19 = vadd.f32 %v1133_v18, %v13214_v31  ;;  %v1135_v20 = vpop.f32.mrb[87].mxu0  ;;  %1863 = vmatmul.mubr.bf16.gmra.mrb[112].mxu1 %v1406_v8  ;;  %v1322_v24 = vmax.f32 %v1130_v13, 0.0 }
 0x196   : > { %v1136_v23 = vadd.f32 %v1135_v20, %v13217_v32  ;;  %v1323_v30 = vmax.f32 %v1132_v17, 0.0 }
 0x197   : > { %v1324_v27 = vmax.f32 %v1134_v19, 0.0 }
 0x198   : > { %v1325_v33 = vmax.f32 %v1136_v23, 0.0 }
 0x199   : > { %v1408_v34 = vpack.c.bf16 %v1324_v27, %v1322_v24 }
 0x19a   : > { %v1139_v35 = vpop.f32.mrb[88].mxu0  ;;  %v1409_v36 = vpack.c.bf16 %v1325_v33, %v1323_v30 }
 0x19b   : > { %v1140_v37 = vadd.f32 %v1139_v35, %v13214_v31  ;;  %v1141_v38 = vpop.f32.mrb[89].mxu0 }
 0x19c   : > { %v1142_v39 = vadd.f32 %v1141_v38, %v13217_v32  ;;  %v1143_v40 = vpop.f32.mrb[90].mxu0  ;;  %1872 = vmatprep.mubr.bf16.mxu1 %v1409_v36 }
 0x19d   : > { %v1144_v42 = vadd.f32 %v1143_v40, %v13214_v31  ;;  %v1145_v43 = vpop.f32.mrb[91].mxu0  ;;  %1873 = vmatmul.mubr.bf16.gmra.mrb[116].mxu1 %v1408_v34  ;;  %v1326_v45 = vmax.f32 %v1140_v37, 0.0 }
 0x19e   : > { %v1146_v44 = vadd.f32 %v1145_v43, %v13217_v32  ;;  %v1327_v48 = vmax.f32 %v1142_v39, 0.0 }
 0x19f   : > { %v1328_v46 = vmax.f32 %v1144_v42, 0.0 }
 0x1a0   : > { %v1329_v49 = vmax.f32 %v1146_v44, 0.0 }
 0x1a1   : > { %v1410_v50 = vpack.c.bf16 %v1328_v46, %v1326_v45 }
 0x1a2   : > { %v1149_v52 = vpop.f32.mrb[92].mxu0  ;;  %v1411_v53 = vpack.c.bf16 %v1329_v49, %v1327_v48 }
 0x1a3   : > { %v1150_v54 = vadd.f32 %v1149_v52, %v13214_v31  ;;  %v1151_v60 = vpop.f32.mrb[93].mxu0 }
 0x1a4   : > { %v1152_v0 = vadd.f32 %v1151_v60, %v13217_v32  ;;  %v1153_v1 = vpop.f32.mrb[94].mxu0  ;;  %1882 = vmatprep.mubr.bf16.mxu1 %v1411_v53 }
 0x1a5   : > { %v1154_v3 = vadd.f32 %v1153_v1, %v13214_v31  ;;  %v1155_v4 = vpop.f32.mrb[95].mxu0  ;;  %1883 = vmatmul.mubr.bf16.gmra.mrb[120].mxu1 %v1410_v50  ;;  %v1330_v6 = vmax.f32 %v1150_v54, 0.0  ;;  %v12167_v31 = vld [vmem:[%s16420_s3 + $0x280] ss:$8 sps:$4 sm:$0xff]  }
 0x1a6   : > { %v1156_v5 = vadd.f32 %v1155_v4, %v13217_v32  ;;  %v1331_v9 = vmax.f32 %v1152_v0, 0.0  ;;  %3139 = vmatpush1.bf16.msra.mxu1 %v12167_v31  ;;  %v13487_v32 = vsub.s32 1, %v13196_v25 }
 0x1a7   : > { %v1332_v8 = vmax.f32 %v1154_v3, 0.0  ;;  %3140 = vmatprep.subr.bf16.mxu1 %v12172_v16 }
 0x1a8   : > { %v1333_v10 = vmax.f32 %v1156_v5, 0.0 }
 0x1a9   : > { %v1412_v13 = vpack.c.bf16 %v1332_v8, %v1330_v6 }
 0x1aa   : > { %v1413_v14 = vpack.c.bf16 %v1333_v10, %v1331_v9 }
 0x1ac   : > { %1892 = vmatprep.mubr.bf16.mxu1 %v1413_v14 }
 0x1ad   : > { %1893 = vmatmul.mubr.bf16.gmra.mrb[124].mxu1 %v1412_v13 }
 0x1ae   : > { %1902 = vmatprep.mubr.bf16.mxu1 %v13260_v56  ;;  %v12170_v56 = vld [vmem:[%s16420_s3 + $0x290] ss:$8 sps:$4 sm:$0xff]  }
 0x1af   : > { %3141 = vmatpush1.bf16.msra.mxu1 %v12170_v56 }
 0x1b5   : > { %1903 = vmatmul.mubr.bf16.gmra.mrb[128].mxu1 %v13262_v57  ;;  %v12796_v57 = vld [vmem:[%s16421_s4] sm:$0xff] }
 0x1b6   : > { %1912 = vmatprep.mubr.bf16.mxu1 %v13272_v21  ;;  %v13500_v21 = vrot.slane %v12796_v57, %v13487_v32 }
 0x1bd   : > { %1913 = vmatmul.mubr.bf16.gmra.mrb[132].mxu1 %v13274_v22  ;;  %v12797_v22 = vld [vmem:[%s16421_s4 + $0x8] sm:$0xff] }
 0x1be   : > { %1922 = vmatprep.mubr.bf16.mxu1 %v13290_v55  ;;  %v13507_v55 = vrot.slane %v12797_v22, %v13487_v32 }
 0x1c5   : > { %1923 = vmatmul.mubr.bf16.gmra.mrb[136].mxu1 %v13292_v58 }
 0x1c6   : > { %1932 = vmatprep.mubr.bf16.mxu1 %v13308_v28 }
 0x1c8   : > { %v1664_v17 = vpop.f32.mrb[32].mxu1 }
 0x1c9   : > { %v1665_v58 = vadd.f32 %v1664_v17, %v13500_v21  ;;  %v1666_v18 = vpop.f32.mrb[33].mxu1 }
 0x1ca   : > { %v1667_v19 = vadd.f32 %v1666_v18, %v13507_v55  ;;  %v1668_v20 = vpop.f32.mrb[34].mxu1 }
 0x1cb   : > { %v1669_v23 = vadd.f32 %v1668_v20, %v13500_v21  ;;  %v1670_v24 = vpop.f32.mrb[35].mxu1  ;;  %v1983_v27 = vmax.f32 %v1665_v58, 0.0 }
 0x1cc   : > { %v1671_v28 = vadd.f32 %v1670_v24, %v13507_v55  ;;  %v1984_v33 = vmax.f32 %v1667_v19, 0.0 }
 0x1cd   : > { %v1985_v30 = vmax.f32 %v1669_v23, 0.0  ;;  %1933 = vmatmul.mubr.bf16.gmra.mrb[140].mxu1 %v13310_v29  ;;  %v12173_v29 = vld [vmem:[%s16420_s3 + $0x2a0] ss:$8 sps:$4 sm:$0xff]  }
 0x1ce   : > { %v1986_v34 = vmax.f32 %v1671_v28, 0.0  ;;  %1942 = vmatprep.mubr.bf16.mxu1 %v13320_v63  ;;  %v12175_v63 = vld [vmem:[%s16420_s3 + $0x2a4] ss:$8 sps:$4 sm:$0xff]  }
 0x1cf   : > { %v2111_v35 = vpack.c.bf16 %v1985_v30, %v1983_v27  ;;  %3142 = vmatprep.subr.bf16.mxu1 %v12175_v63 }
 0x1d0   : > { %v1674_v36 = vpop.f32.mrb[36].mxu1  ;;  %v2112_v37 = vpack.c.bf16 %v1986_v34, %v1984_v33  ;;  %3143 = vmatpush1.bf16.msra.mxu1 %v12173_v29 }
 0x1d1   : > { %v1675_v38 = vadd.f32 %v1674_v36, %v13500_v21  ;;  %v1676_v39 = vpop.f32.mrb[37].mxu1 }
 0x1d2   : > { %v1677_v40 = vadd.f32 %v1676_v39, %v13507_v55  ;;  %v1678_v42 = vpop.f32.mrb[38].mxu1  ;;  %2408 = vmatprep.mubr.bf16.mxu0 %v2112_v37 }
 0x1d3   : > { %v1679_v43 = vadd.f32 %v1678_v42, %v13500_v21  ;;  %v1680_v44 = vpop.f32.mrb[39].mxu1  ;;  %2409 = vmatmul.mubr.bf16.vlgmr.msra.gmra.mrb[96].mxu0 %v2111_v35  ;;  %v1987_v46 = vmax.f32 %v1675_v38, 0.0 }
 0x1d4   : > { %v1681_v45 = vadd.f32 %v1680_v44, %v13507_v55  ;;  %v1988_v49 = vmax.f32 %v1677_v40, 0.0 }
 0x1d5   : > { %v1989_v48 = vmax.f32 %v1679_v43, 0.0  ;;  %1943 = vmatmul.mubr.bf16.gmra.mrb[144].mxu1 %v13331_v7 }
 0x1d6   : > { %v1990_v50 = vmax.f32 %v1681_v45, 0.0  ;;  %1952 = vmatprep.mubr.bf16.mxu1 %v13345_v41 }
 0x1d7   : > { %v2113_v52 = vpack.c.bf16 %v1989_v48, %v1987_v46  ;;  %v12181_v46 = vld [vmem:[%s16420_s3 + $0x2c4] ss:$8 sps:$4 sm:$0xff]  }
 0x1d8   : > { %v1684_v53 = vpop.f32.mrb[40].mxu1  ;;  %v2114_v54 = vpack.c.bf16 %v1990_v50, %v1988_v49 }
 0x1d9   : > { %v1685_v60 = vadd.f32 %v1684_v53, %v13500_v21  ;;  %v1686_v61 = vpop.f32.mrb[41].mxu1 }
 0x1da   : > { %v1687_v62 = vadd.f32 %v1686_v61, %v13507_v55  ;;  %v1688_v0 = vpop.f32.mrb[42].mxu1  ;;  %2418 = vmatprep.mubr.bf16.mxu0 %v2114_v54 }
 0x1db   : > { %v1689_v1 = vadd.f32 %v1688_v0, %v13500_v21  ;;  %v1690_v3 = vpop.f32.mrb[43].mxu1  ;;  %2419 = vmatmul.mubr.bf16.gmra.mrb[100].mxu0 %v2113_v52  ;;  %v1991_v4 = vmax.f32 %v1685_v60, 0.0 }
 0x1dc   : > { %v1691_v7 = vadd.f32 %v1690_v3, %v13507_v55  ;;  %v1992_v41 = vmax.f32 %v1687_v62, 0.0 }
 0x1dd   : > { %v1993_v5 = vmax.f32 %v1689_v1, 0.0  ;;  %1953 = vmatmul.mubr.bf16.gmra.mrb[148].mxu1 %v13355_v47  ;;  %v12176_v47 = vld [vmem:[%s16420_s3 + $0x2b0] ss:$8 sps:$4 sm:$0xff]  }
 0x1de   : > { %v1994_v6 = vmax.f32 %v1691_v7, 0.0  ;;  %1962 = vmatprep.mubr.bf16.mxu1 %v13362_v11  ;;  %v12178_v11 = vld [vmem:[%s16420_s3 + $0x2b4] ss:$8 sps:$4 sm:$0xff]  }
 0x1df   : > { %v2115_v8 = vpack.c.bf16 %v1993_v5, %v1991_v4  ;;  %3144 = vmatprep.subr.bf16.mxu1 %v12178_v11 }
 0x1e0   : > { %v1694_v9 = vpop.f32.mrb[44].mxu1  ;;  %v2116_v10 = vpack.c.bf16 %v1994_v6, %v1992_v41  ;;  %3145 = vmatpush1.bf16.msra.mxu1 %v12176_v47 }
 0x1e1   : > { %v1695_v13 = vadd.f32 %v1694_v9, %v13500_v21  ;;  %v1696_v14 = vpop.f32.mrb[45].mxu1  ;;  %3146 = vmatprep.subr.bf16.mxu1 %v12181_v46 }
 0x1e2   : > { %v1697_v31 = vadd.f32 %v1696_v14, %v13507_v55  ;;  %v1698_v15 = vpop.f32.mrb[46].mxu1  ;;  %2428 = vmatprep.mubr.bf16.mxu0 %v2116_v10 }
 0x1e3   : > { %v1699_v56 = vadd.f32 %v1698_v15, %v13500_v21  ;;  %v1700_v16 = vpop.f32.mrb[47].mxu1  ;;  %2429 = vmatmul.mubr.bf16.gmra.mrb[104].mxu0 %v2115_v8  ;;  %v1995_v22 = vmax.f32 %v1695_v13, 0.0 }
 0x1e4   : > { %v1701_v57 = vadd.f32 %v1700_v16, %v13507_v55  ;;  %v1996_v58 = vmax.f32 %v1697_v31, 0.0 }
 0x1e5   : > { %v1997_v17 = vmax.f32 %v1699_v56, 0.0  ;;  %1963 = vmatmul.mubr.bf16.gmra.mrb[152].mxu1 %v13364_v12 }
 0x1e6   : > { %v1998_v18 = vmax.f32 %v1701_v57, 0.0  ;;  %1972 = vmatprep.mubr.bf16.mxu1 %v13389_v59  ;;  %v12182_v57 = vld [vmem:[%s16420_s3 + $0x2d0] ss:$8 sps:$4 sm:$0xff]  }
 0x1e7   : > { %v2117_v19 = vpack.c.bf16 %v1997_v17, %v1995_v22  ;;  %v12184_v22 = vld [vmem:[%s16420_s3 + $0x2d4] ss:$8 sps:$4 sm:$0xff]  }
 0x1e8   : > { %v1704_v20 = vpop.f32.mrb[48].mxu1  ;;  %v2118_v23 = vpack.c.bf16 %v1998_v18, %v1996_v58 }
 0x1e9   : > { %v1705_v24 = vadd.f32 %v1704_v20, %v13500_v21  ;;  %v1706_v28 = vpop.f32.mrb[49].mxu1 }
 0x1ea   : > { %v1707_v27 = vadd.f32 %v1706_v28, %v13507_v55  ;;  %v1708_v30 = vpop.f32.mrb[50].mxu1  ;;  %2438 = vmatprep.mubr.bf16.mxu0 %v2118_v23 }
 0x1eb   : > { %v1709_v33 = vadd.f32 %v1708_v30, %v13500_v21  ;;  %v1710_v34 = vpop.f32.mrb[51].mxu1  ;;  %2439 = vmatmul.mubr.bf16.gmra.mrb[108].mxu0 %v2117_v19  ;;  %v1999_v35 = vmax.f32 %v1705_v24, 0.0 }
 0x1ec   : > { %v1711_v12 = vadd.f32 %v1710_v34, %v13507_v55  ;;  %v2000_v59 = vmax.f32 %v1707_v27, 0.0 }
 0x1ed   : > { %v2001_v36 = vmax.f32 %v1709_v33, 0.0  ;;  %1973 = vmatmul.mubr.bf16.gmra.mrb[156].mxu1 %v13380_v51  ;;  %v12179_v51 = vld [vmem:[%s16420_s3 + $0x2c0] ss:$8 sps:$4 sm:$0xff]  }
 0x1ee   : > { %v2002_v37 = vmax.f32 %v1711_v12, 0.0  ;;  %3147 = vmatpush1.bf16.msra.mxu1 %v12179_v51 }
 0x1ef   : > { %v2119_v38 = vpack.c.bf16 %v2001_v36, %v1999_v35  ;;  %3148 = vmatprep.subr.bf16.mxu1 %v12184_v22 }
 0x1f0   : > { %v1714_v39 = vpop.f32.mrb[52].mxu1  ;;  %v2120_v40 = vpack.c.bf16 %v2002_v37, %v2000_v59 }
 0x1f1   : > { %v1715_v42 = vadd.f32 %v1714_v39, %v13500_v21  ;;  %v1716_v43 = vpop.f32.mrb[53].mxu1 }
 0x1f2   : > { %v1717_v44 = vadd.f32 %v1716_v43, %v13507_v55  ;;  %v1718_v29 = vpop.f32.mrb[54].mxu1  ;;  %2448 = vmatprep.mubr.bf16.mxu0 %v2120_v40  ;;  %3149 = vmatpush1.bf16.msra.mxu1 %v12182_v57  ;;  %v12185_v40 = vld [vmem:[%s16420_s3 + $0x300] ss:$8 sps:$4 sm:$0xff]  }
 0x1f3   : > { %v1719_v63 = vadd.f32 %v1718_v29, %v13500_v21  ;;  %v1720_v45 = vpop.f32.mrb[55].mxu1  ;;  %2449 = vmatmul.mubr.bf16.gmra.mrb[112].mxu0 %v2119_v38  ;;  %v2003_v49 = vmax.f32 %v1715_v42, 0.0  ;;  %v12187_v42 = vld [vmem:[%s16420_s3 + $0x304] ss:$8 sps:$4 sm:$0xff]  }
 0x1f4   : > { %v1721_v48 = vadd.f32 %v1720_v45, %v13507_v55  ;;  %v2004_v52 = vmax.f32 %v1717_v44, 0.0  ;;  %3869 = vmatprep.subr.bf16.mxu0 %v12187_v42 }
 0x1f5   : > { %v2005_v50 = vmax.f32 %v1719_v63, 0.0  ;;  %3870 = vmatpush1.bf16.msra.mxu0 %v12185_v40 }
 0x1f6   : > { %v2006_v53 = vmax.f32 %v1721_v48, 0.0 }
 0x1f7   : > { %v2121_v54 = vpack.c.bf16 %v2005_v50, %v2003_v49  ;;  %v12188_v50 = vld [vmem:[%s16420_s3 + $0x2e0] ss:$8 sps:$4 sm:$0xff]  }
 0x1f8   : > { %v1724_v60 = vpop.f32.mrb[56].mxu1  ;;  %v2122_v61 = vpack.c.bf16 %v2006_v53, %v2004_v52  ;;  %v12190_v52 = vld [vmem:[%s16420_s3 + $0x2e4] ss:$8 sps:$4 sm:$0xff]  }
 0x1f9   : > { %v1725_v62 = vadd.f32 %v1724_v60, %v13500_v21  ;;  %v1726_v0 = vpop.f32.mrb[57].mxu1  ;;  %3150 = vmatprep.subr.bf16.mxu1 %v12190_v52  ;;  %v12199_v52 = vld [vmem:[%s16420_s3 + $0x324] ss:$8 sps:$4 sm:$0xff]  }
 0x1fa   : > { %v1727_v1 = vadd.f32 %v1726_v0, %v13507_v55  ;;  %v1728_v3 = vpop.f32.mrb[58].mxu1  ;;  %2458 = vmatprep.mubr.bf16.mxu0 %v2122_v61  ;;  %3151 = vmatpush1.bf16.msra.mxu1 %v12188_v50  ;;  %v12197_v50 = vld [vmem:[%s16420_s3 + $0x320] ss:$8 sps:$4 sm:$0xff]  }
 0x1fb   : > { %v1729_v7 = vadd.f32 %v1728_v3, %v13500_v21  ;;  %v1730_v4 = vpop.f32.mrb[59].mxu1  ;;  %2459 = vmatmul.mubr.bf16.gmra.mrb[116].mxu0 %v2121_v54  ;;  %v2007_v41 = vmax.f32 %v1725_v62, 0.0 }
 0x1fc   : > { %v1731_v5 = vadd.f32 %v1730_v4, %v13507_v55  ;;  %v2008_v8 = vmax.f32 %v1727_v1, 0.0 }
 0x1fd   : > { %v2009_v6 = vmax.f32 %v1729_v7, 0.0 }
 0x1fe   : > { %v2010_v9 = vmax.f32 %v1731_v5, 0.0 }
 0x1ff   : > { %v2123_v10 = vpack.c.bf16 %v2009_v6, %v2007_v41 }
 0x200   : > { %v1734_v13 = vpop.f32.mrb[60].mxu1  ;;  %v2124_v14 = vpack.c.bf16 %v2010_v9, %v2008_v8 }
 0x201   : > { %v1735_v31 = vadd.f32 %v1734_v13, %v13500_v21  ;;  %v1736_v15 = vpop.f32.mrb[61].mxu1 }
 0x202   : > { %v1737_v56 = vadd.f32 %v1736_v15, %v13507_v55  ;;  %v1738_v16 = vpop.f32.mrb[62].mxu1  ;;  %2468 = vmatprep.mubr.bf16.mxu0 %v2124_v14  ;;  %v12191_v15 = vld [vmem:[%s16420_s3 + $0x310] ss:$8 sps:$4 sm:$0xff]  }
 0x203   : > { %v1739_v47 = vadd.f32 %v1738_v16, %v13500_v21  ;;  %v1740_v11 = vpop.f32.mrb[63].mxu1  ;;  %2469 = vmatmul.mubr.bf16.gmra.mrb[120].mxu0 %v2123_v10  ;;  %v2011_v58 = vmax.f32 %v1735_v31, 0.0 }
 0x204   : > { %v1741_v17 = vadd.f32 %v1740_v11, %v13507_v55  ;;  %v2012_v19 = vmax.f32 %v1737_v56, 0.0  ;;  %v12193_v56 = vld [vmem:[%s16420_s3 + $0x314] ss:$8 sps:$4 sm:$0xff]  }
 0x205   : > { %v2013_v18 = vmax.f32 %v1739_v47, 0.0  ;;  %3871 = vmatprep.subr.bf16.mxu0 %v12193_v56 }
 0x206   : > { %v2014_v20 = vmax.f32 %v1741_v17, 0.0  ;;  %3872 = vmatpush1.bf16.msra.mxu0 %v12191_v15 }
 0x207   : > { %v2125_v23 = vpack.c.bf16 %v2013_v18, %v2011_v58  ;;  %3873 = vmatprep.subr.bf16.mxu0 %v12199_v52 }
 0x208   : > { %v1744_v24 = vpop.f32.mrb[64].mxu1  ;;  %v2126_v28 = vpack.c.bf16 %v2014_v20, %v2012_v19  ;;  %v12194_v20 = vld [vmem:[%s16420_s3 + $0x2f0] ss:$8 sps:$4 sm:$0xff]  }
 0x209   : > { %v1745_v27 = vadd.f32 %v1744_v24, %v13500_v21  ;;  %v1746_v30 = vpop.f32.mrb[65].mxu1 }
 0x20a   : > { %v1747_v33 = vadd.f32 %v1746_v30, %v13507_v55  ;;  %v1748_v34 = vpop.f32.mrb[66].mxu1  ;;  %2478 = vmatprep.mubr.bf16.mxu0 %v2126_v28  ;;  %3874 = vmatpush1.bf16.msra.mxu0 %v12197_v50 }
 0x20b   : > { %v1749_v12 = vadd.f32 %v1748_v34, %v13500_v21  ;;  %v1750_v35 = vpop.f32.mrb[67].mxu1  ;;  %2479 = vmatmul.mubr.bf16.gmra.mrb[124].mxu0 %v2125_v23  ;;  %v2015_v59 = vmax.f32 %v1745_v27, 0.0  ;;  %v12196_v23 = vld [vmem:[%s16420_s3 + $0x2f4] ss:$8 sps:$4 sm:$0xff]  }
 0x20c   : > { %v1751_v36 = vadd.f32 %v1750_v35, %v13507_v55  ;;  %v2016_v38 = vmax.f32 %v1747_v33, 0.0  ;;  %3152 = vmatprep.subr.bf16.mxu1 %v12196_v23 }
 0x20d   : > { %v2017_v37 = vmax.f32 %v1749_v12, 0.0  ;;  %3153 = vmatpush1.bf16.msra.mxu1 %v12194_v20 }
 0x20e   : > { %v2018_v39 = vmax.f32 %v1751_v36, 0.0 }
 0x20f   : > { %v2127_v43 = vpack.c.bf16 %v2017_v37, %v2015_v59 }
 0x210   : > { %v1754_v44 = vpop.f32.mrb[68].mxu1  ;;  %v2128_v29 = vpack.c.bf16 %v2018_v39, %v2016_v38 }
 0x211   : > { %v1755_v63 = vadd.f32 %v1754_v44, %v13500_v21  ;;  %v1756_v45 = vpop.f32.mrb[69].mxu1 }
 0x212   : > { %v1757_v51 = vadd.f32 %v1756_v45, %v13507_v55  ;;  %v1758_v46 = vpop.f32.mrb[70].mxu1  ;;  %2488 = vmatprep.mubr.bf16.mxu0 %v2128_v29 }
 0x213   : > { %v1759_v48 = vadd.f32 %v1758_v46, %v13500_v21  ;;  %v1760_v49 = vpop.f32.mrb[71].mxu1  ;;  %2489 = vmatmul.mubr.bf16.gmra.mrb[128].mxu0 %v2127_v43  ;;  %v2019_v54 = vmax.f32 %v1755_v63, 0.0 }
 0x214   : > { %v1761_v53 = vadd.f32 %v1760_v49, %v13507_v55  ;;  %v2020_v61 = vmax.f32 %v1757_v51, 0.0 }
 0x215   : > { %v2021_v60 = vmax.f32 %v1759_v48, 0.0 }
 0x216   : > { %v2022_v62 = vmax.f32 %v1761_v53, 0.0 }
 0x217   : > { %v2129_v0 = vpack.c.bf16 %v2021_v60, %v2019_v54 }
 0x218   : > { %v1764_v1 = vpop.f32.mrb[72].mxu1  ;;  %v2130_v3 = vpack.c.bf16 %v2022_v62, %v2020_v61 }
 0x219   : > { %v1765_v7 = vadd.f32 %v1764_v1, %v13500_v21  ;;  %v1766_v4 = vpop.f32.mrb[73].mxu1 }
 0x21a   : > { %v1767_v5 = vadd.f32 %v1766_v4, %v13507_v55  ;;  %v1768_v41 = vpop.f32.mrb[74].mxu1  ;;  %2498 = vmatprep.mubr.bf16.mxu0 %v2130_v3 }
 0x21b   : > { %v1769_v6 = vadd.f32 %v1768_v41, %v13500_v21  ;;  %v1770_v8 = vpop.f32.mrb[75].mxu1  ;;  %2499 = vmatmul.mubr.bf16.gmra.mrb[132].mxu0 %v2129_v0  ;;  %v2023_v10 = vmax.f32 %v1765_v7, 0.0 }
 0x21c   : > { %v1771_v9 = vadd.f32 %v1770_v8, %v13507_v55  ;;  %v2024_v14 = vmax.f32 %v1767_v5, 0.0 }
 0x21d   : > { %v2025_v13 = vmax.f32 %v1769_v6, 0.0 }
 0x21e   : > { %v2026_v31 = vmax.f32 %v1771_v9, 0.0 }
 0x21f   : > { %v2131_v16 = vpack.c.bf16 %v2025_v13, %v2023_v10 }
 0x220   : > { %v1774_v47 = vpop.f32.mrb[76].mxu1  ;;  %v2132_v11 = vpack.c.bf16 %v2026_v31, %v2024_v14 }
 0x221   : > { %v1775_v57 = vadd.f32 %v1774_v47, %v13500_v21  ;;  %v1776_v22 = vpop.f32.mrb[77].mxu1 }
 0x222   : > { %v1777_v17 = vadd.f32 %v1776_v22, %v13507_v55  ;;  %v1778_v58 = vpop.f32.mrb[78].mxu1  ;;  %2508 = vmatprep.mubr.bf16.mxu0 %v2132_v11 }
 0x223   : > { %v1779_v18 = vadd.f32 %v1778_v58, %v13500_v21  ;;  %v1780_v19 = vpop.f32.mrb[79].mxu1  ;;  %2509 = vmatmul.mubr.bf16.gmra.mrb[136].mxu0 %v2131_v16  ;;  %v2027_v28 = vmax.f32 %v1775_v57, 0.0 }
 0x224   : > { %v1781_v24 = vadd.f32 %v1780_v19, %v13507_v55  ;;  %v2028_v30 = vmax.f32 %v1777_v17, 0.0  ;;  %v12202_v19 = vld [vmem:[%s16420_s3 + $0x334] ss:$8 sps:$4 sm:$0xff]  }
 0x225   : > { %v2029_v27 = vmax.f32 %v1779_v18, 0.0  ;;  %v12200_v18 = vld [vmem:[%s16420_s3 + $0x330] ss:$8 sps:$4 sm:$0xff]   ;;  %3875 = vmatprep.subr.bf16.mxu0 %v12202_v19 }
 0x226   : > { %v2030_v33 = vmax.f32 %v1781_v24, 0.0  ;;  %3876 = vmatpush1.bf16.msra.mxu0 %v12200_v18 }
 0x227   : > { %v2133_v34 = vpack.c.bf16 %v2029_v27, %v2027_v28 }
 0x228   : > { %v1784_v12 = vpop.f32.mrb[80].mxu1  ;;  %v2134_v35 = vpack.c.bf16 %v2030_v33, %v2028_v30 }
 0x229   : > { %v1785_v36 = vadd.f32 %v1784_v12, %v13500_v21  ;;  %v1786_v59 = vpop.f32.mrb[81].mxu1 }
 0x22a   : > { %v1787_v37 = vadd.f32 %v1786_v59, %v13507_v55  ;;  %v1788_v38 = vpop.f32.mrb[82].mxu1  ;;  %2518 = vmatprep.mubr.bf16.mxu0 %v2134_v35 }
 0x22b   : > { %v1789_v39 = vadd.f32 %v1788_v38, %v13500_v21  ;;  %v1790_v40 = vpop.f32.mrb[83].mxu1  ;;  %2519 = vmatmul.mubr.bf16.gmra.mrb[140].mxu0 %v2133_v34  ;;  %v2031_v43 = vmax.f32 %v1785_v36, 0.0 }
 0x22c   : > { %v1791_v42 = vadd.f32 %v1790_v40, %v13507_v55  ;;  %v2032_v29 = vmax.f32 %v1787_v37, 0.0 }
 0x22d   : > { %v2033_v44 = vmax.f32 %v1789_v39, 0.0 }
 0x22e   : > { %v2034_v63 = vmax.f32 %v1791_v42, 0.0 }
 0x22f   : > { %v2135_v45 = vpack.c.bf16 %v2033_v44, %v2031_v43 }
 0x230   : > { %v1794_v51 = vpop.f32.mrb[84].mxu1  ;;  %v2136_v46 = vpack.c.bf16 %v2034_v63, %v2032_v29 }
 0x231   : > { %v1795_v48 = vadd.f32 %v1794_v51, %v13500_v21  ;;  %v1796_v49 = vpop.f32.mrb[85].mxu1 }
 0x232   : > { %v1797_v53 = vadd.f32 %v1796_v49, %v13507_v55  ;;  %v1798_v54 = vpop.f32.mrb[86].mxu1  ;;  %2528 = vmatprep.mubr.bf16.mxu0 %v2136_v46 }
 0x233   : > { %v1799_v60 = vadd.f32 %v1798_v54, %v13500_v21  ;;  %v1800_v61 = vpop.f32.mrb[87].mxu1  ;;  %2529 = vmatmul.mubr.bf16.gmra.mrb[144].mxu0 %v2135_v45  ;;  %v2035_v0 = vmax.f32 %v1795_v48, 0.0  ;;  %v12205_v54 = vld [vmem:[%s16420_s3 + $0x344] ss:$8 sps:$4 sm:$0xff]  }
 0x234   : > { %v1801_v62 = vadd.f32 %v1800_v61, %v13507_v55  ;;  %v2036_v3 = vmax.f32 %v1797_v53, 0.0  ;;  %v12203_v53 = vld [vmem:[%s16420_s3 + $0x340] ss:$8 sps:$4 sm:$0xff]   ;;  %3877 = vmatprep.subr.bf16.mxu0 %v12205_v54 }
 0x235   : > { %v2037_v1 = vmax.f32 %v1799_v60, 0.0  ;;  %3878 = vmatpush1.bf16.msra.mxu0 %v12203_v53 }
 0x236   : > { %v2038_v7 = vmax.f32 %v1801_v62, 0.0 }
 0x237   : > { %v2137_v4 = vpack.c.bf16 %v2037_v1, %v2035_v0 }
 0x238   : > { %v1804_v5 = vpop.f32.mrb[88].mxu1  ;;  %v2138_v41 = vpack.c.bf16 %v2038_v7, %v2036_v3 }
 0x239   : > { %v1805_v6 = vadd.f32 %v1804_v5, %v13500_v21  ;;  %v1806_v8 = vpop.f32.mrb[89].mxu1 }
 0x23a   : > { %v1807_v9 = vadd.f32 %v1806_v8, %v13507_v55  ;;  %v1808_v10 = vpop.f32.mrb[90].mxu1  ;;  %2538 = vmatprep.mubr.bf16.mxu0 %v2138_v41 }
 0x23b   : > { %v1809_v13 = vadd.f32 %v1808_v10, %v13500_v21  ;;  %v1810_v14 = vpop.f32.mrb[91].mxu1  ;;  %2539 = vmatmul.mubr.bf16.gmra.mrb[148].mxu0 %v2137_v4  ;;  %v2039_v15 = vmax.f32 %v1805_v6, 0.0 }
 0x23c   : > { %v1811_v31 = vadd.f32 %v1810_v14, %v13507_v55  ;;  %v2040_v16 = vmax.f32 %v1807_v9, 0.0 }
 0x23d   : > { %v2041_v56 = vmax.f32 %v1809_v13, 0.0 }
 0x23e   : > { %v2042_v47 = vmax.f32 %v1811_v31, 0.0 }
 0x23f   : > { %v2139_v11 = vpack.c.bf16 %v2041_v56, %v2039_v15 }
 0x240   : > { %v1814_v57 = vpop.f32.mrb[92].mxu1  ;;  %v2140_v22 = vpack.c.bf16 %v2042_v47, %v2040_v16 }
 0x241   : > { %v1815_v17 = vadd.f32 %v1814_v57, %v13500_v21  ;;  %v1816_v58 = vpop.f32.mrb[93].mxu1 }
 0x242   : > { %v1817_v20 = vadd.f32 %v1816_v58, %v13507_v55  ;;  %v1818_v23 = vpop.f32.mrb[94].mxu1  ;;  %2548 = vmatprep.mubr.bf16.mxu0 %v2140_v22 }
 0x243   : > { %v1819_v24 = vadd.f32 %v1818_v23, %v13500_v21  ;;  %v1820_v28 = vpop.f32.mrb[95].mxu1  ;;  %2549 = vmatmul.mubr.bf16.gmra.mrb[152].mxu0 %v2139_v11  ;;  %v2043_v30 = vmax.f32 %v1815_v17, 0.0  ;;  %v12208_v23 = vld [vmem:[%s16420_s3 + $0x354] ss:$8 sps:$4 sm:$0xff]  }
 0x244   : > { %v1821_v27 = vadd.f32 %v1820_v28, %v13507_v55  ;;  %v2044_v34 = vmax.f32 %v1817_v20, 0.0  ;;  %v12206_v20 = vld [vmem:[%s16420_s3 + $0x350] ss:$8 sps:$4 sm:$0xff]   ;;  %3879 = vmatprep.subr.bf16.mxu0 %v12208_v23 }
 0x245   : > { %v2045_v33 = vmax.f32 %v1819_v24, 0.0  ;;  %3880 = vmatpush1.bf16.msra.mxu0 %v12206_v20 }
 0x246   : > { %v2046_v12 = vmax.f32 %v1821_v27, 0.0 }
 0x247   : > { %v2141_v35 = vpack.c.bf16 %v2045_v33, %v2043_v30 }
 0x248   : > { %v1824_v36 = vpop.f32.mrb[96].mxu1  ;;  %v2142_v59 = vpack.c.bf16 %v2046_v12, %v2044_v34 }
 0x249   : > { %v1825_v37 = vadd.f32 %v1824_v36, %v13500_v21  ;;  %v1826_v38 = vpop.f32.mrb[97].mxu1 }
 0x24a   : > { %v1827_v39 = vadd.f32 %v1826_v38, %v13507_v55  ;;  %v1828_v40 = vpop.f32.mrb[98].mxu1  ;;  %2558 = vmatprep.mubr.bf16.mxu0 %v2142_v59 }
 0x24b   : > { %v1829_v42 = vadd.f32 %v1828_v40, %v13500_v21  ;;  %v1830_v43 = vpop.f32.mrb[99].mxu1  ;;  %2559 = vmatmul.mubr.bf16.gmra.mrb[156].mxu0 %v2141_v35  ;;  %v2047_v29 = vmax.f32 %v1825_v37, 0.0 }
 0x24c   : > { %v1831_v44 = vadd.f32 %v1830_v43, %v13507_v55  ;;  %v2048_v45 = vmax.f32 %v1827_v39, 0.0 }
 0x24d   : > { %v2049_v63 = vmax.f32 %v1829_v42, 0.0 }
 0x24e   : > { %v2050_v51 = vmax.f32 %v1831_v44, 0.0 }
 0x24f   : > { %v2143_v46 = vpack.c.bf16 %v2049_v63, %v2047_v29 }
 0x250   : > { %v1834_v48 = vpop.f32.mrb[100].mxu1  ;;  %v2144_v49 = vpack.c.bf16 %v2050_v51, %v2048_v45 }
 0x251   : > { %v1835_v50 = vadd.f32 %v1834_v48, %v13500_v21  ;;  %v1836_v52 = vpop.f32.mrb[101].mxu1 }
 0x252   : > { %v1837_v60 = vadd.f32 %v1836_v52, %v13507_v55  ;;  %v1838_v61 = vpop.f32.mrb[102].mxu1  ;;  %2568 = vmatprep.mubr.bf16.mxu0 %v2144_v49 }
 0x253   : > { %v1839_v62 = vadd.f32 %v1838_v61, %v13500_v21  ;;  %v1840_v0 = vpop.f32.mrb[103].mxu1  ;;  %2569 = vmatmul.mubr.bf16.gmra.mrb[160].mxu0 %v2143_v46  ;;  %v2051_v3 = vmax.f32 %v1835_v50, 0.0  ;;  %v12211_v61 = vld [vmem:[%s16420_s3 + $0x364] ss:$8 sps:$4 sm:$0xff]  }
 0x254   : > { %v1841_v1 = vadd.f32 %v1840_v0, %v13507_v55  ;;  %v2052_v4 = vmax.f32 %v1837_v60, 0.0  ;;  %v12209_v60 = vld [vmem:[%s16420_s3 + $0x360] ss:$8 sps:$4 sm:$0xff]   ;;  %3881 = vmatprep.subr.bf16.mxu0 %v12211_v61 }
 0x255   : > { %v2053_v7 = vmax.f32 %v1839_v62, 0.0  ;;  %3882 = vmatpush1.bf16.msra.mxu0 %v12209_v60 }
 0x256   : > { %v2054_v5 = vmax.f32 %v1841_v1, 0.0 }
 0x257   : > { %v2145_v41 = vpack.c.bf16 %v2053_v7, %v2051_v3 }
 0x258   : > { %v1844_v6 = vpop.f32.mrb[104].mxu1  ;;  %v2146_v8 = vpack.c.bf16 %v2054_v5, %v2052_v4 }
 0x259   : > { %v1845_v9 = vadd.f32 %v1844_v6, %v13500_v21  ;;  %v1846_v10 = vpop.f32.mrb[105].mxu1 }
 0x25a   : > { %v1847_v13 = vadd.f32 %v1846_v10, %v13507_v55  ;;  %v1848_v14 = vpop.f32.mrb[106].mxu1  ;;  %2578 = vmatprep.mubr.bf16.mxu0 %v2146_v8 }
 0x25b   : > { %v1849_v31 = vadd.f32 %v1848_v14, %v13500_v21  ;;  %v1850_v15 = vpop.f32.mrb[107].mxu1  ;;  %2579 = vmatmul.mubr.bf16.gmra.mrb[164].mxu0 %v2145_v41  ;;  %v2055_v16 = vmax.f32 %v1845_v9, 0.0 }
 0x25c   : > { %v1851_v56 = vadd.f32 %v1850_v15, %v13507_v55  ;;  %v2056_v11 = vmax.f32 %v1847_v13, 0.0 }
 0x25d   : > { %v2057_v47 = vmax.f32 %v1849_v31, 0.0 }
 0x25e   : > { %v2058_v57 = vmax.f32 %v1851_v56, 0.0 }
 0x25f   : > { %v2147_v22 = vpack.c.bf16 %v2057_v47, %v2055_v16 }
 0x260   : > { %v1854_v17 = vpop.f32.mrb[108].mxu1  ;;  %v2148_v58 = vpack.c.bf16 %v2058_v57, %v2056_v11 }
 0x261   : > { %v1855_v18 = vadd.f32 %v1854_v17, %v13500_v21  ;;  %v1856_v19 = vpop.f32.mrb[109].mxu1 }
 0x262   : > { %v1857_v24 = vadd.f32 %v1856_v19, %v13507_v55  ;;  %v1858_v28 = vpop.f32.mrb[110].mxu1  ;;  %2588 = vmatprep.mubr.bf16.mxu0 %v2148_v58 }
 0x263   : > { %v1859_v27 = vadd.f32 %v1858_v28, %v13500_v21  ;;  %v1860_v30 = vpop.f32.mrb[111].mxu1  ;;  %2589 = vmatmul.mubr.bf16.gmra.mrb[168].mxu0 %v2147_v22  ;;  %v2059_v34 = vmax.f32 %v1855_v18, 0.0  ;;  %v12214_v28 = vld [vmem:[%s16420_s3 + $0x374] ss:$8 sps:$4 sm:$0xff]  }
 0x264   : > { %v1861_v33 = vadd.f32 %v1860_v30, %v13507_v55  ;;  %v2060_v35 = vmax.f32 %v1857_v24, 0.0  ;;  %v12212_v24 = vld [vmem:[%s16420_s3 + $0x370] ss:$8 sps:$4 sm:$0xff]   ;;  %3883 = vmatprep.subr.bf16.mxu0 %v12214_v28 }
 0x265   : > { %v2061_v12 = vmax.f32 %v1859_v27, 0.0  ;;  %3884 = vmatpush1.bf16.msra.mxu0 %v12212_v24 }
 0x266   : > { %v2062_v36 = vmax.f32 %v1861_v33, 0.0 }
 0x267   : > { %v2149_v59 = vpack.c.bf16 %v2061_v12, %v2059_v34 }
 0x268   : > { %v1864_v37 = vpop.f32.mrb[112].mxu1  ;;  %v2150_v38 = vpack.c.bf16 %v2062_v36, %v2060_v35 }
 0x269   : > { %v1865_v39 = vadd.f32 %v1864_v37, %v13500_v21  ;;  %v1866_v40 = vpop.f32.mrb[113].mxu1 }
 0x26a   : > { %v1867_v42 = vadd.f32 %v1866_v40, %v13507_v55  ;;  %v1868_v43 = vpop.f32.mrb[114].mxu1  ;;  %2598 = vmatprep.mubr.bf16.mxu0 %v2150_v38 }
 0x26b   : > { %v1869_v44 = vadd.f32 %v1868_v43, %v13500_v21  ;;  %v1870_v29 = vpop.f32.mrb[115].mxu1  ;;  %2599 = vmatmul.mubr.bf16.gmra.mrb[172].mxu0 %v2149_v59  ;;  %v2063_v45 = vmax.f32 %v1865_v39, 0.0 }
 0x26c   : > { %v1871_v63 = vadd.f32 %v1870_v29, %v13507_v55  ;;  %v2064_v46 = vmax.f32 %v1867_v42, 0.0 }
 0x26d   : > { %v2065_v51 = vmax.f32 %v1869_v44, 0.0 }
 0x26e   : > { %v2066_v48 = vmax.f32 %v1871_v63, 0.0 }
 0x26f   : > { %v2151_v49 = vpack.c.bf16 %v2065_v51, %v2063_v45 }
 0x270   : > { %v1874_v50 = vpop.f32.mrb[116].mxu1  ;;  %v2152_v52 = vpack.c.bf16 %v2066_v48, %v2064_v46 }
 0x271   : > { %v1875_v53 = vadd.f32 %v1874_v50, %v13500_v21  ;;  %v1876_v54 = vpop.f32.mrb[117].mxu1 }
 0x272   : > { %v1877_v62 = vadd.f32 %v1876_v54, %v13507_v55  ;;  %v1878_v0 = vpop.f32.mrb[118].mxu1  ;;  %2608 = vmatprep.mubr.bf16.mxu0 %v2152_v52 }
 0x273   : > { %v1879_v1 = vadd.f32 %v1878_v0, %v13500_v21  ;;  %v1880_v3 = vpop.f32.mrb[119].mxu1  ;;  %2609 = vmatmul.mubr.bf16.gmra.mrb[176].mxu0 %v2151_v49  ;;  %v2067_v4 = vmax.f32 %v1875_v53, 0.0  ;;  %v12217_v0 = vld [vmem:[%s16420_s3 + $0x384] ss:$8 sps:$4 sm:$0xff]  }
 0x274   : > { %v1881_v7 = vadd.f32 %v1880_v3, %v13507_v55  ;;  %v2068_v41 = vmax.f32 %v1877_v62, 0.0  ;;  %v12215_v62 = vld [vmem:[%s16420_s3 + $0x380] ss:$8 sps:$4 sm:$0xff]   ;;  %3885 = vmatprep.subr.bf16.mxu0 %v12217_v0 }
 0x275   : > { %v2069_v5 = vmax.f32 %v1879_v1, 0.0  ;;  %3886 = vmatpush1.bf16.msra.mxu0 %v12215_v62 }
 0x276   : > { %v2070_v6 = vmax.f32 %v1881_v7, 0.0 }
 0x277   : > { %v2153_v8 = vpack.c.bf16 %v2069_v5, %v2067_v4 }
 0x278   : > { %v1884_v9 = vpop.f32.mrb[120].mxu1  ;;  %v2154_v10 = vpack.c.bf16 %v2070_v6, %v2068_v41 }
 0x279   : > { %v1885_v13 = vadd.f32 %v1884_v9, %v13500_v21  ;;  %v1886_v14 = vpop.f32.mrb[121].mxu1 }
 0x27a   : > { %v1887_v31 = vadd.f32 %v1886_v14, %v13507_v55  ;;  %v1888_v15 = vpop.f32.mrb[122].mxu1  ;;  %2618 = vmatprep.mubr.bf16.mxu0 %v2154_v10 }
 0x27b   : > { %v1889_v56 = vadd.f32 %v1888_v15, %v13500_v21  ;;  %v1890_v16 = vpop.f32.mrb[123].mxu1  ;;  %2619 = vmatmul.mubr.bf16.gmra.mrb[180].mxu0 %v2153_v8  ;;  %v2071_v11 = vmax.f32 %v1885_v13, 0.0 }
 0x27c   : > { %v1891_v47 = vadd.f32 %v1890_v16, %v13507_v55  ;;  %v2072_v22 = vmax.f32 %v1887_v31, 0.0 }
 0x27d   : > { %v2073_v57 = vmax.f32 %v1889_v56, 0.0 }
 0x27e   : > { %v2074_v17 = vmax.f32 %v1891_v47, 0.0 }
 0x27f   : > { %v2155_v58 = vpack.c.bf16 %v2073_v57, %v2071_v11 }
 0x280   : > { %v1894_v18 = vpop.f32.mrb[124].mxu1  ;;  %v2156_v19 = vpack.c.bf16 %v2074_v17, %v2072_v22 }
 0x281   : > { %v1895_v20 = vadd.f32 %v1894_v18, %v13500_v21  ;;  %v1896_v23 = vpop.f32.mrb[125].mxu1 }
 0x282   : > { %v1897_v27 = vadd.f32 %v1896_v23, %v13507_v55  ;;  %v1898_v30 = vpop.f32.mrb[126].mxu1  ;;  %2628 = vmatprep.mubr.bf16.mxu0 %v2156_v19 }
 0x283   : > { %v1899_v33 = vadd.f32 %v1898_v30, %v13500_v21  ;;  %v1900_v34 = vpop.f32.mrb[127].mxu1  ;;  %2629 = vmatmul.mubr.bf16.gmra.mrb[184].mxu0 %v2155_v58  ;;  %v2075_v35 = vmax.f32 %v1895_v20, 0.0  ;;  %v2210_v20 = vsub.s32 2, %v13196_v25  ;;  %v12218_v30 = vld [vmem:[%s16420_s3 + $0x390] ss:$8 sps:$4 sm:$0xff]  }
 0x284   : > { %v1901_v12 = vadd.f32 %v1900_v34, %v13507_v55  ;;  %v2076_v59 = vmax.f32 %v1897_v27, 0.0 }
 0x285   : > { %v2077_v36 = vmax.f32 %v1899_v33, 0.0  ;;  %v12220_v33 = vld [vmem:[%s16420_s3 + $0x394] ss:$8 sps:$4 sm:$0xff]  }
 0x286   : > { %v2078_v37 = vmax.f32 %v1901_v12, 0.0  ;;  %3887 = vmatprep.subr.bf16.mxu0 %v12220_v33  ;;  %v12223_v33 = vld [vmem:[%s16420_s3 + $0x3a4] ss:$8 sps:$4 sm:$0xff]  }
 0x287   : > { %v2157_v38 = vpack.c.bf16 %v2077_v36, %v2075_v35  ;;  %3888 = vmatpush1.bf16.msra.mxu0 %v12218_v30 }
 0x288   : > { %v1904_v39 = vpop.f32.mrb[128].mxu1  ;;  %v2158_v40 = vpack.c.bf16 %v2078_v37, %v2076_v59  ;;  %v12798_v59 = vld [vmem:[%s16421_s4] sm:$0xff]  ;;  %3889 = vmatprep.subr.bf16.mxu0 %v12223_v33 }
 0x289   : > { %v1905_v42 = vadd.f32 %v1904_v39, %v13500_v21  ;;  %v1906_v43 = vpop.f32.mrb[129].mxu1  ;;  %v13729_v37 = vrot.slane %v12798_v59, %v2210_v20  ;;  %v12799_v39 = vld [vmem:[%s16421_s4 + $0x8] sm:$0xff] }
 0x28a   : > { %v1907_v44 = vadd.f32 %v1906_v43, %v13507_v55  ;;  %v1908_v29 = vpop.f32.mrb[130].mxu1  ;;  %2638 = vmatprep.mubr.bf16.mxu0 %v2158_v40  ;;  %v13735_v40 = vrot.slane %v12799_v39, %v2210_v20 }
 0x28b   : > { %v1909_v63 = vadd.f32 %v1908_v29, %v13500_v21  ;;  %v1910_v45 = vpop.f32.mrb[131].mxu1  ;;  %2639 = vmatmul.mubr.bf16.gmra.mrb[188].mxu0 %v2157_v38  ;;  %v2079_v46 = vmax.f32 %v1905_v42, 0.0 }
 0x28c   : > { %v1911_v51 = vadd.f32 %v1910_v45, %v13507_v55  ;;  %v2080_v49 = vmax.f32 %v1907_v44, 0.0 }
 0x28d   : > { %v2081_v48 = vmax.f32 %v1909_v63, 0.0 }
 0x28e   : > { %v2082_v50 = vmax.f32 %v1911_v51, 0.0 }
 0x28f   : > { %v2159_v52 = vpack.c.bf16 %v2081_v48, %v2079_v46 }
 0x290   : > { %v1914_v53 = vpop.f32.mrb[132].mxu1  ;;  %v2160_v54 = vpack.c.bf16 %v2082_v50, %v2080_v49 }
 0x291   : > { %v1915_v60 = vadd.f32 %v1914_v53, %v13500_v21  ;;  %v1916_v61 = vpop.f32.mrb[133].mxu1 }
 0x292   : > { %v1917_v1 = vadd.f32 %v1916_v61, %v13507_v55  ;;  %v1918_v3 = vpop.f32.mrb[134].mxu1  ;;  %2648 = vmatprep.mubr.bf16.mxu0 %v2160_v54 }
 0x293   : > { %v1919_v7 = vadd.f32 %v1918_v3, %v13500_v21  ;;  %v1920_v4 = vpop.f32.mrb[135].mxu1  ;;  %2649 = vmatmul.mubr.bf16.gmra.mrb[192].mxu0 %v2159_v52  ;;  %v2083_v41 = vmax.f32 %v1915_v60, 0.0 }
 0x294   : > { %v1921_v5 = vadd.f32 %v1920_v4, %v13507_v55  ;;  %v2084_v8 = vmax.f32 %v1917_v1, 0.0 }
 0x295   : > { %v2085_v6 = vmax.f32 %v1919_v7, 0.0 }
 0x296   : > { %v2086_v9 = vmax.f32 %v1921_v5, 0.0 }
 0x297   : > { %v2161_v10 = vpack.c.bf16 %v2085_v6, %v2083_v41 }
 0x298   : > { %v1924_v13 = vpop.f32.mrb[136].mxu1  ;;  %v2162_v14 = vpack.c.bf16 %v2086_v9, %v2084_v8 }
 0x299   : > { %v1925_v31 = vadd.f32 %v1924_v13, %v13500_v21  ;;  %v1926_v15 = vpop.f32.mrb[137].mxu1 }
 0x29a   : > { %v1927_v56 = vadd.f32 %v1926_v15, %v13507_v55  ;;  %v1928_v16 = vpop.f32.mrb[138].mxu1  ;;  %2658 = vmatprep.mubr.bf16.mxu0 %v2162_v14 }
 0x29b   : > { %v1929_v47 = vadd.f32 %v1928_v16, %v13500_v21  ;;  %v1930_v11 = vpop.f32.mrb[139].mxu1  ;;  %2659 = vmatmul.mubr.bf16.gmra.mrb[196].mxu0 %v2161_v10  ;;  %v2087_v22 = vmax.f32 %v1925_v31, 0.0 }
 0x29c   : > { %v1931_v57 = vadd.f32 %v1930_v11, %v13507_v55  ;;  %v2088_v58 = vmax.f32 %v1927_v56, 0.0 }
 0x29d   : > { %v2089_v17 = vmax.f32 %v1929_v47, 0.0 }
 0x29e   : > { %v2090_v18 = vmax.f32 %v1931_v57, 0.0 }
 0x29f   : > { %v2163_v19 = vpack.c.bf16 %v2089_v17, %v2087_v22 }
 0x2a0   : > { %v1934_v23 = vpop.f32.mrb[140].mxu1  ;;  %v2164_v24 = vpack.c.bf16 %v2090_v18, %v2088_v58 }
 0x2a1   : > { %v1935_v28 = vadd.f32 %v1934_v23, %v13500_v21  ;;  %v1936_v27 = vpop.f32.mrb[141].mxu1 }
 0x2a2   : > { %v1937_v34 = vadd.f32 %v1936_v27, %v13507_v55  ;;  %v1938_v12 = vpop.f32.mrb[142].mxu1  ;;  %2668 = vmatprep.mubr.bf16.mxu0 %v2164_v24  ;;  %v12221_v24 = vld [vmem:[%s16420_s3 + $0x3a0] ss:$8 sps:$4 sm:$0xff]  }
 0x2a3   : > { %v1939_v35 = vadd.f32 %v1938_v12, %v13500_v21  ;;  %v1940_v36 = vpop.f32.mrb[143].mxu1  ;;  %2669 = vmatmul.mubr.bf16.gmra.mrb[200].mxu0 %v2163_v19  ;;  %v2091_v42 = vmax.f32 %v1935_v28, 0.0 }
 0x2a4   : > { %v1941_v38 = vadd.f32 %v1940_v36, %v13507_v55  ;;  %v2092_v44 = vmax.f32 %v1937_v34, 0.0  ;;  %3890 = vmatpush1.bf16.msra.mxu0 %v12221_v24 }
 0x2a5   : > { %v2093_v43 = vmax.f32 %v1939_v35, 0.0 }
 0x2a6   : > { %v2094_v29 = vmax.f32 %v1941_v38, 0.0  ;;  %v2410_v63 = vpop.f32.mrb[96].mxu0 }
 0x2a7   : > { %v2411_v45 = vadd.f32 %v2410_v63, %v13729_v37  ;;  %v2412_v51 = vpop.f32.mrb[97].mxu0  ;;  %v2165_v46 = vpack.c.bf16 %v2093_v43, %v2091_v42 }
 0x2a8   : > { %v2413_v48 = vadd.f32 %v2412_v51, %v13735_v40  ;;  %v1944_v49 = vpop.f32.mrb[144].mxu1  ;;  %v2414_v50 = vpop.f32.mrb[98].mxu0  ;;  %v2166_v52 = vpack.c.bf16 %v2094_v29, %v2092_v44 }
 0x2a9   : > { %v1945_v53 = vadd.f32 %v1944_v49, %v13500_v21  ;;  %v2415_v54 = vadd.f32 %v2414_v50, %v13729_v37  ;;  %v1946_v60 = vpop.f32.mrb[145].mxu1  ;;  %v2416_v61 = vpop.f32.mrb[99].mxu0  ;;  %v2729_v3 = vmax.f32 %v2411_v45, 0.0 }
 0x2aa   : > { %v1947_v62 = vadd.f32 %v1946_v60, %v13507_v55  ;;  %v2417_v0 = vadd.f32 %v2416_v61, %v13735_v40  ;;  %v1948_v1 = vpop.f32.mrb[146].mxu1  ;;  %2678 = vmatprep.mubr.bf16.mxu0 %v2166_v52  ;;  %v2730_v41 = vmax.f32 %v2413_v48, 0.0 }
 0x2ab   : > { %v2731_v7 = vmax.f32 %v2415_v54, 0.0  ;;  %v1949_v4 = vadd.f32 %v1948_v1, %v13500_v21  ;;  %v1950_v5 = vpop.f32.mrb[147].mxu1  ;;  %2679 = vmatmul.mubr.bf16.gmra.mrb[204].mxu0 %v2165_v46  ;;  %v2095_v9 = vmax.f32 %v1945_v53, 0.0 }
 0x2ac   : > { %v2732_v6 = vmax.f32 %v2417_v0, 0.0  ;;  %v1951_v8 = vadd.f32 %v1950_v5, %v13507_v55  ;;  %v2096_v14 = vmax.f32 %v1947_v62, 0.0 }
 0x2ad   : > { %v2857_v10 = vpack.c.bf16 %v2731_v7, %v2729_v3  ;;  %v2097_v13 = vmax.f32 %v1949_v4, 0.0 }
 0x2ae   : > { %v2098_v31 = vmax.f32 %v1951_v8, 0.0  ;;  %v2420_v15 = vpop.f32.mrb[100].mxu0  ;;  %v2858_v56 = vpack.c.bf16 %v2732_v6, %v2730_v41 }
 0x2af   : > { %v2421_v16 = vadd.f32 %v2420_v15, %v13729_v37  ;;  %v2422_v47 = vpop.f32.mrb[101].mxu0  ;;  %v2167_v11 = vpack.c.bf16 %v2097_v13, %v2095_v9 }
 0x2b0   : > { %v2423_v57 = vadd.f32 %v2422_v47, %v13735_v40  ;;  %v1954_v22 = vpop.f32.mrb[148].mxu1  ;;  %v2424_v17 = vpop.f32.mrb[102].mxu0  ;;  %3154 = vmatprep.mubr.bf16.mxu1 %v2858_v56  ;;  %v2168_v58 = vpack.c.bf16 %v2098_v31, %v2096_v14 }
 0x2b1   : > { %v1955_v18 = vadd.f32 %v1954_v22, %v13500_v21  ;;  %v2425_v19 = vadd.f32 %v2424_v17, %v13729_v37  ;;  %v1956_v20 = vpop.f32.mrb[149].mxu1  ;;  %v2426_v23 = vpop.f32.mrb[103].mxu0  ;;  %3155 = vmatmul.mubr.bf16.vlgmr.msra.gmra.mrb[160].mxu1 %v2857_v10  ;;  %v2733_v34 = vmax.f32 %v2421_v16, 0.0 }
 0x2b2   : > { %v1957_v28 = vadd.f32 %v1956_v20, %v13507_v55  ;;  %v2427_v27 = vadd.f32 %v2426_v23, %v13735_v40  ;;  %v1958_v30 = vpop.f32.mrb[150].mxu1  ;;  %2688 = vmatprep.mubr.bf16.mxu0 %v2168_v58  ;;  %v2734_v59 = vmax.f32 %v2423_v57, 0.0 }
 0x2b3   : > { %v2735_v12 = vmax.f32 %v2425_v19, 0.0  ;;  %v1959_v35 = vadd.f32 %v1958_v30, %v13500_v21  ;;  %v1960_v36 = vpop.f32.mrb[151].mxu1  ;;  %2689 = vmatmul.mubr.bf16.gmra.mrb[208].mxu0 %v2167_v11  ;;  %v2099_v42 = vmax.f32 %v1955_v18, 0.0 }
 0x2b4   : > { %v2736_v38 = vmax.f32 %v2427_v27, 0.0  ;;  %v1961_v39 = vadd.f32 %v1960_v36, %v13507_v55  ;;  %v2100_v29 = vmax.f32 %v1957_v28, 0.0  ;;  %v12224_v27 = vld [vmem:[%s16420_s3 + $0x3b0] ss:$8 sps:$4 sm:$0xff]  }
 0x2b5   : > { %v2101_v43 = vmax.f32 %v1959_v35, 0.0  ;;  %v2859_v44 = vpack.c.bf16 %v2735_v12, %v2733_v34  ;;  %v12226_v12 = vld [vmem:[%s16420_s3 + $0x3b4] ss:$8 sps:$4 sm:$0xff]  }
 0x2b6   : > { %v2102_v63 = vmax.f32 %v1961_v39, 0.0  ;;  %v2430_v45 = vpop.f32.mrb[104].mxu0  ;;  %v2860_v51 = vpack.c.bf16 %v2736_v38, %v2734_v59  ;;  %3891 = vmatprep.subr.bf16.mxu0 %v12226_v12 }
 0x2b7   : > { %v2431_v46 = vadd.f32 %v2430_v45, %v13729_v37  ;;  %v2432_v48 = vpop.f32.mrb[105].mxu0  ;;  %v2169_v49 = vpack.c.bf16 %v2101_v43, %v2099_v42  ;;  %3892 = vmatpush1.bf16.msra.mxu0 %v12224_v27 }
 0x2b8   : > { %v2433_v50 = vadd.f32 %v2432_v48, %v13735_v40  ;;  %v1964_v52 = vpop.f32.mrb[152].mxu1  ;;  %v2434_v53 = vpop.f32.mrb[106].mxu0  ;;  %3164 = vmatprep.mubr.bf16.mxu1 %v2860_v51  ;;  %v2170_v54 = vpack.c.bf16 %v2102_v63, %v2100_v29 }
 0x2b9   : > { %v1965_v60 = vadd.f32 %v1964_v52, %v13500_v21  ;;  %v2435_v61 = vadd.f32 %v2434_v53, %v13729_v37  ;;  %v1966_v62 = vpop.f32.mrb[153].mxu1  ;;  %v2436_v0 = vpop.f32.mrb[107].mxu0  ;;  %3165 = vmatmul.mubr.bf16.gmra.mrb[164].mxu1 %v2859_v44  ;;  %v2737_v4 = vmax.f32 %v2431_v46, 0.0 }
 0x2ba   : > { %v1967_v1 = vadd.f32 %v1966_v62, %v13507_v55  ;;  %v2437_v3 = vadd.f32 %v2436_v0, %v13735_v40  ;;  %v1968_v7 = vpop.f32.mrb[154].mxu1  ;;  %2698 = vmatprep.mubr.bf16.mxu0 %v2170_v54  ;;  %v2738_v8 = vmax.f32 %v2433_v50, 0.0 }
 0x2bb   : > { %v2739_v5 = vmax.f32 %v2435_v61, 0.0  ;;  %v1969_v41 = vadd.f32 %v1968_v7, %v13500_v21  ;;  %v1970_v6 = vpop.f32.mrb[155].mxu1  ;;  %2699 = vmatmul.mubr.bf16.gmra.mrb[212].mxu0 %v2169_v49  ;;  %v2103_v13 = vmax.f32 %v1965_v60, 0.0 }
 0x2bc   : > { %v2740_v9 = vmax.f32 %v2437_v3, 0.0  ;;  %v1971_v10 = vadd.f32 %v1970_v6, %v13507_v55  ;;  %v2104_v15 = vmax.f32 %v1967_v1, 0.0 }
 0x2bd   : > { %v2105_v14 = vmax.f32 %v1969_v41, 0.0  ;;  %v2861_v31 = vpack.c.bf16 %v2739_v5, %v2737_v4 }
 0x2be   : > { %v2106_v56 = vmax.f32 %v1971_v10, 0.0  ;;  %v2440_v16 = vpop.f32.mrb[108].mxu0  ;;  %v2862_v47 = vpack.c.bf16 %v2740_v9, %v2738_v8 }
 0x2bf   : > { %v2441_v11 = vadd.f32 %v2440_v16, %v13729_v37  ;;  %v2442_v57 = vpop.f32.mrb[109].mxu0  ;;  %v2171_v22 = vpack.c.bf16 %v2105_v14, %v2103_v13  ;;  %v12227_v14 = vld [vmem:[%s16420_s3 + $0x3c0] ss:$8 sps:$4 sm:$0xff]  }
 0x2c0   : > { %v2443_v17 = vadd.f32 %v2442_v57, %v13735_v40  ;;  %v1974_v58 = vpop.f32.mrb[156].mxu1  ;;  %v2444_v18 = vpop.f32.mrb[110].mxu0  ;;  %3174 = vmatprep.mubr.bf16.mxu1 %v2862_v47  ;;  %v2172_v19 = vpack.c.bf16 %v2106_v56, %v2104_v15 }
 0x2c1   : > { %v1975_v20 = vadd.f32 %v1974_v58, %v13500_v21  ;;  %v2445_v23 = vadd.f32 %v2444_v18, %v13729_v37  ;;  %v1976_v24 = vpop.f32.mrb[157].mxu1  ;;  %v2446_v28 = vpop.f32.mrb[111].mxu0  ;;  %3175 = vmatmul.mubr.bf16.gmra.mrb[168].mxu1 %v2861_v31  ;;  %v2741_v35 = vmax.f32 %v2441_v11, 0.0  ;;  %v12229_v31 = vld [vmem:[%s16420_s3 + $0x3c4] ss:$8 sps:$4 sm:$0xff]  }
 0x2c2   : > { %v1977_v30 = vadd.f32 %v1976_v24, %v13507_v55  ;;  %v2447_v33 = vadd.f32 %v2446_v28, %v13735_v40  ;;  %v1978_v34 = vpop.f32.mrb[158].mxu1  ;;  %2708 = vmatprep.mubr.bf16.mxu0 %v2172_v19  ;;  %v2742_v39 = vmax.f32 %v2443_v17, 0.0  ;;  %3893 = vmatprep.subr.bf16.mxu0 %v12229_v31 }
 0x2c3   : > { %v2743_v36 = vmax.f32 %v2445_v23, 0.0  ;;  %v1979_v59 = vadd.f32 %v1978_v34, %v13500_v21  ;;  %v1980_v38 = vpop.f32.mrb[159].mxu1  ;;  %2709 = vmatmul.mubr.bf16.gmra.mrb[216].mxu0 %v2171_v22  ;;  %v2107_v44 = vmax.f32 %v1975_v20, 0.0 }
 0x2c4   : > { %v2744_v42 = vmax.f32 %v2447_v33, 0.0  ;;  %v1981_v43 = vadd.f32 %v1980_v38, %v13507_v55  ;;  %v2108_v45 = vmax.f32 %v1977_v30, 0.0  ;;  %3894 = vmatpush1.bf16.msra.mxu0 %v12227_v14 }
 0x2c5   : > { %v2109_v29 = vmax.f32 %v1979_v59, 0.0  ;;  %v2863_v63 = vpack.c.bf16 %v2743_v36, %v2741_v35 }
 0x2c6   : > { %v2110_v51 = vmax.f32 %v1981_v43, 0.0  ;;  %v2450_v46 = vpop.f32.mrb[112].mxu0  ;;  %v2864_v48 = vpack.c.bf16 %v2744_v42, %v2742_v39 }
 0x2c7   : > { %v2451_v49 = vadd.f32 %v2450_v46, %v13729_v37  ;;  %v2452_v50 = vpop.f32.mrb[113].mxu0  ;;  %v2173_v52 = vpack.c.bf16 %v2109_v29, %v2107_v44  ;;  %v12230_v29 = vld [vmem:[%s16420_s3 + $0x3d0] ss:$8 sps:$4 sm:$0xff]  }
 0x2c8   : > { %v2453_v21 = vadd.f32 %v2452_v50, %v13735_v40  ;;  %v2454_v53 = vpop.f32.mrb[114].mxu0  ;;  %3184 = vmatprep.mubr.bf16.mxu1 %v2864_v48  ;;  %v2174_v54 = vpack.c.bf16 %v2110_v51, %v2108_v45 }
 0x2c9   : > { %v2455_v55 = vadd.f32 %v2454_v53, %v13729_v37  ;;  %v2456_v60 = vpop.f32.mrb[115].mxu0  ;;  %3185 = vmatmul.mubr.bf16.gmra.mrb[172].mxu1 %v2863_v63  ;;  %v2745_v62 = vmax.f32 %v2451_v49, 0.0  ;;  %v12232_v63 = vld [vmem:[%s16420_s3 + $0x3d4] ss:$8 sps:$4 sm:$0xff]  }
 0x2ca   : > { %v2457_v61 = vadd.f32 %v2456_v60, %v13735_v40  ;;  %2718 = vmatprep.mubr.bf16.mxu0 %v2174_v54  ;;  %v2746_v1 = vmax.f32 %v2453_v21, 0.0  ;;  %3895 = vmatprep.subr.bf16.mxu0 %v12232_v63 }
 0x2cb   : > { %v2747_v0 = vmax.f32 %v2455_v55, 0.0  ;;  %2719 = vmatmul.mubr.bf16.gmra.mrb[220].mxu0 %v2173_v52 }
 0x2cc   : > { %v2748_v3 = vmax.f32 %v2457_v61, 0.0  ;;  %3896 = vmatpush1.bf16.msra.mxu0 %v12230_v29 }
 0x2cd   : > { %v2865_v7 = vpack.c.bf16 %v2747_v0, %v2745_v62 }
 0x2ce   : > { %v2460_v4 = vpop.f32.mrb[116].mxu0  ;;  %v2866_v5 = vpack.c.bf16 %v2748_v3, %v2746_v1 }
 0x2cf   : > { %v2461_v41 = vadd.f32 %v2460_v4, %v13729_v37  ;;  %v2462_v6 = vpop.f32.mrb[117].mxu0 }
 0x2d0   : > { %v2463_v8 = vadd.f32 %v2462_v6, %v13735_v40  ;;  %v2464_v9 = vpop.f32.mrb[118].mxu0  ;;  %3194 = vmatprep.mubr.bf16.mxu1 %v2866_v5 }
 0x2d1   : > { %v2465_v10 = vadd.f32 %v2464_v9, %v13729_v37  ;;  %v2466_v13 = vpop.f32.mrb[119].mxu0  ;;  %3195 = vmatmul.mubr.bf16.gmra.mrb[176].mxu1 %v2865_v7  ;;  %v2749_v56 = vmax.f32 %v2461_v41, 0.0 }
 0x2d2   : > { %v2467_v15 = vadd.f32 %v2466_v13, %v13735_v40  ;;  %v2750_v47 = vmax.f32 %v2463_v8, 0.0 }
 0x2d3   : > { %v2751_v16 = vmax.f32 %v2465_v10, 0.0 }
 0x2d4   : > { %v2752_v11 = vmax.f32 %v2467_v15, 0.0  ;;  %v12233_v15 = vld [vmem:[%s16420_s3 + $0x3e0] ss:$8 sps:$4 sm:$0xff]  }
 0x2d5   : > { %v2867_v57 = vpack.c.bf16 %v2751_v16, %v2749_v56  ;;  %v12235_v56 = vld [vmem:[%s16420_s3 + $0x3e4] ss:$8 sps:$4 sm:$0xff]  }
 0x2d6   : > { %v2470_v22 = vpop.f32.mrb[120].mxu0  ;;  %v2868_v17 = vpack.c.bf16 %v2752_v11, %v2750_v47  ;;  %3897 = vmatprep.subr.bf16.mxu0 %v12235_v56 }
 0x2d7   : > { %v2471_v58 = vadd.f32 %v2470_v22, %v13729_v37  ;;  %v2472_v18 = vpop.f32.mrb[121].mxu0  ;;  %3898 = vmatpush1.bf16.msra.mxu0 %v12233_v15 }
 0x2d8   : > { %v2473_v19 = vadd.f32 %v2472_v18, %v13735_v40  ;;  %v2474_v20 = vpop.f32.mrb[122].mxu0  ;;  %3204 = vmatprep.mubr.bf16.mxu1 %v2868_v17 }
 0x2d9   : > { %v2475_v23 = vadd.f32 %v2474_v20, %v13729_v37  ;;  %v2476_v24 = vpop.f32.mrb[123].mxu0  ;;  %3205 = vmatmul.mubr.bf16.gmra.mrb[180].mxu1 %v2867_v57  ;;  %v2753_v27 = vmax.f32 %v2471_v58, 0.0 }
 0x2da   : > { %v2477_v28 = vadd.f32 %v2476_v24, %v13735_v40  ;;  %v2754_v33 = vmax.f32 %v2473_v19, 0.0 }
 0x2db   : > { %v2755_v30 = vmax.f32 %v2475_v23, 0.0 }
 0x2dc   : > { %v2756_v34 = vmax.f32 %v2477_v28, 0.0 }
 0x2dd   : > { %v2869_v12 = vpack.c.bf16 %v2755_v30, %v2753_v27 }
 0x2de   : > { %v2480_v35 = vpop.f32.mrb[124].mxu0  ;;  %v2870_v36 = vpack.c.bf16 %v2756_v34, %v2754_v33 }
 0x2df   : > { %v2481_v59 = vadd.f32 %v2480_v35, %v13729_v37  ;;  %v2482_v38 = vpop.f32.mrb[125].mxu0 }
 0x2e0   : > { %v2483_v39 = vadd.f32 %v2482_v38, %v13735_v40  ;;  %v2484_v42 = vpop.f32.mrb[126].mxu0  ;;  %3214 = vmatprep.mubr.bf16.mxu1 %v2870_v36 }
 0x2e1   : > { %v2485_v43 = vadd.f32 %v2484_v42, %v13729_v37  ;;  %v2486_v44 = vpop.f32.mrb[127].mxu0  ;;  %3215 = vmatmul.mubr.bf16.gmra.mrb[184].mxu1 %v2869_v12  ;;  %v2757_v51 = vmax.f32 %v2481_v59, 0.0 }
 0x2e2   : > { %v2487_v45 = vadd.f32 %v2486_v44, %v13735_v40  ;;  %v2758_v48 = vmax.f32 %v2483_v39, 0.0 }
 0x2e3   : > { %v2759_v46 = vmax.f32 %v2485_v43, 0.0 }
 0x2e4   : > { %v2760_v49 = vmax.f32 %v2487_v45, 0.0  ;;  %v12236_v45 = vld [vmem:[%s16420_s3 + $0x3f0] ss:$8 sps:$4 sm:$0xff]  }
 0x2e5   : > { %v2871_v50 = vpack.c.bf16 %v2759_v46, %v2757_v51  ;;  %v12238_v51 = vld [vmem:[%s16420_s3 + $0x3f4] ss:$8 sps:$4 sm:$0xff]  }
 0x2e6   : > { %v2490_v52 = vpop.f32.mrb[128].mxu0  ;;  %v2872_v21 = vpack.c.bf16 %v2760_v49, %v2758_v48  ;;  %3899 = vmatprep.subr.bf16.mxu0 %v12238_v51 }
 0x2e7   : > { %v2491_v53 = vadd.f32 %v2490_v52, %v13729_v37  ;;  %v2492_v54 = vpop.f32.mrb[129].mxu0  ;;  %3900 = vmatpush1.bf16.msra.mxu0 %v12236_v45 }
 0x2e8   : > { %v2493_v55 = vadd.f32 %v2492_v54, %v13735_v40  ;;  %v2494_v60 = vpop.f32.mrb[130].mxu0  ;;  %3224 = vmatprep.mubr.bf16.mxu1 %v2872_v21 }
 0x2e9   : > { %v2495_v61 = vadd.f32 %v2494_v60, %v13729_v37  ;;  %v2496_v62 = vpop.f32.mrb[131].mxu0  ;;  %3225 = vmatmul.mubr.bf16.gmra.mrb[188].mxu1 %v2871_v50  ;;  %v2761_v1 = vmax.f32 %v2491_v53, 0.0 }
 0x2ea   : > { %v2497_v0 = vadd.f32 %v2496_v62, %v13735_v40  ;;  %v2762_v7 = vmax.f32 %v2493_v55, 0.0 }
 0x2eb   : > { %v2763_v3 = vmax.f32 %v2495_v61, 0.0 }
 0x2ec   : > { %v2764_v4 = vmax.f32 %v2497_v0, 0.0 }
 0x2ed   : > { %v2873_v5 = vpack.c.bf16 %v2763_v3, %v2761_v1 }
 0x2ee   : > { %v2500_v41 = vpop.f32.mrb[132].mxu0  ;;  %v2874_v6 = vpack.c.bf16 %v2764_v4, %v2762_v7 }
 0x2ef   : > { %v2501_v8 = vadd.f32 %v2500_v41, %v13729_v37  ;;  %v2502_v9 = vpop.f32.mrb[133].mxu0 }
 0x2f0   : > { %v2503_v10 = vadd.f32 %v2502_v9, %v13735_v40  ;;  %v2504_v13 = vpop.f32.mrb[134].mxu0  ;;  %3234 = vmatprep.mubr.bf16.mxu1 %v2874_v6 }
 0x2f1   : > { %v2505_v14 = vadd.f32 %v2504_v13, %v13729_v37  ;;  %v2506_v31 = vpop.f32.mrb[135].mxu0  ;;  %3235 = vmatmul.mubr.bf16.gmra.mrb[192].mxu1 %v2873_v5  ;;  %v2765_v47 = vmax.f32 %v2501_v8, 0.0 }
 0x2f2   : > { %v2507_v16 = vadd.f32 %v2506_v31, %v13735_v40  ;;  %v2766_v57 = vmax.f32 %v2503_v10, 0.0 }
 0x2f3   : > { %v2767_v11 = vmax.f32 %v2505_v14, 0.0 }
 0x2f4   : > { %v2768_v22 = vmax.f32 %v2507_v16, 0.0  ;;  %v12241_v16 = vld [vmem:[%s16419_s2 + $0x44] ss:$8 sps:$4 sm:$0xff]  }
 0x2f5   : > { %v2875_v17 = vpack.c.bf16 %v2767_v11, %v2765_v47  ;;  %4262 = vmatprep.subr.bf16.mxu0 %v12241_v16 }
 0x2f6   : > { %v2510_v58 = vpop.f32.mrb[136].mxu0  ;;  %v2876_v18 = vpack.c.bf16 %v2768_v22, %v2766_v57 }
 0x2f7   : > { %v2511_v19 = vadd.f32 %v2510_v58, %v13729_v37  ;;  %v2512_v20 = vpop.f32.mrb[137].mxu0 }
 0x2f8   : > { %v2513_v23 = vadd.f32 %v2512_v20, %v13735_v40  ;;  %v2514_v24 = vpop.f32.mrb[138].mxu0  ;;  %3244 = vmatprep.mubr.bf16.mxu1 %v2876_v18 }
 0x2f9   : > { %v2515_v28 = vadd.f32 %v2514_v24, %v13729_v37  ;;  %v2516_v27 = vpop.f32.mrb[139].mxu0  ;;  %3245 = vmatmul.mubr.bf16.gmra.mrb[196].mxu1 %v2875_v17  ;;  %v2769_v33 = vmax.f32 %v2511_v19, 0.0 }
 0x2fa   : > { %v2517_v30 = vadd.f32 %v2516_v27, %v13735_v40  ;;  %v2770_v12 = vmax.f32 %v2513_v23, 0.0 }
 0x2fb   : > { %v2771_v34 = vmax.f32 %v2515_v28, 0.0 }
 0x2fc   : > { %v2772_v35 = vmax.f32 %v2517_v30, 0.0 }
 0x2fd   : > { %v2877_v36 = vpack.c.bf16 %v2771_v34, %v2769_v33 }
 0x2fe   : > { %v2520_v59 = vpop.f32.mrb[140].mxu0  ;;  %v2878_v38 = vpack.c.bf16 %v2772_v35, %v2770_v12 }
 0x2ff   : > { %v2521_v39 = vadd.f32 %v2520_v59, %v13729_v37  ;;  %v2522_v42 = vpop.f32.mrb[141].mxu0 }
 0x300   : > { %v2523_v43 = vadd.f32 %v2522_v42, %v13735_v40  ;;  %v2524_v44 = vpop.f32.mrb[142].mxu0  ;;  %3254 = vmatprep.mubr.bf16.mxu1 %v2878_v38 }
 0x301   : > { %v2525_v29 = vadd.f32 %v2524_v44, %v13729_v37  ;;  %v2526_v63 = vpop.f32.mrb[143].mxu0  ;;  %3255 = vmatmul.mubr.bf16.gmra.mrb[200].mxu1 %v2877_v36  ;;  %v2773_v48 = vmax.f32 %v2521_v39, 0.0 }
 0x302   : > { %v2527_v46 = vadd.f32 %v2526_v63, %v13735_v40  ;;  %v2774_v50 = vmax.f32 %v2523_v43, 0.0 }
 0x303   : > { %v2775_v49 = vmax.f32 %v2525_v29, 0.0 }
 0x304   : > { %v2776_v52 = vmax.f32 %v2527_v46, 0.0 }
 0x305   : > { %v2879_v21 = vpack.c.bf16 %v2775_v49, %v2773_v48 }
 0x306   : > { %v2530_v53 = vpop.f32.mrb[144].mxu0  ;;  %v2880_v54 = vpack.c.bf16 %v2776_v52, %v2774_v50 }
 0x307   : > { %v2531_v55 = vadd.f32 %v2530_v53, %v13729_v37  ;;  %v2532_v60 = vpop.f32.mrb[145].mxu0 }
 0x308   : > { %v2533_v61 = vadd.f32 %v2532_v60, %v13735_v40  ;;  %v2534_v62 = vpop.f32.mrb[146].mxu0  ;;  %3264 = vmatprep.mubr.bf16.mxu1 %v2880_v54 }
 0x309   : > { %v2535_v0 = vadd.f32 %v2534_v62, %v13729_v37  ;;  %v2536_v1 = vpop.f32.mrb[147].mxu0  ;;  %3265 = vmatmul.mubr.bf16.gmra.mrb[204].mxu1 %v2879_v21  ;;  %v2777_v7 = vmax.f32 %v2531_v55, 0.0 }
 0x30a   : > { %v2537_v3 = vadd.f32 %v2536_v1, %v13735_v40  ;;  %v2778_v5 = vmax.f32 %v2533_v61, 0.0 }
 0x30b   : > { %v2779_v4 = vmax.f32 %v2535_v0, 0.0 }
 0x30c   : > { %v2780_v41 = vmax.f32 %v2537_v3, 0.0 }
 0x30d   : > { %v2881_v6 = vpack.c.bf16 %v2779_v4, %v2777_v7 }
 0x30e   : > { %v2540_v8 = vpop.f32.mrb[148].mxu0  ;;  %v2882_v9 = vpack.c.bf16 %v2780_v41, %v2778_v5 }
 0x30f   : > { %v2541_v10 = vadd.f32 %v2540_v8, %v13729_v37  ;;  %v2542_v13 = vpop.f32.mrb[149].mxu0 }
 0x310   : > { %v2543_v14 = vadd.f32 %v2542_v13, %v13735_v40  ;;  %v2544_v31 = vpop.f32.mrb[150].mxu0  ;;  %3274 = vmatprep.mubr.bf16.mxu1 %v2882_v9 }
 0x311   : > { %v2545_v15 = vadd.f32 %v2544_v31, %v13729_v37  ;;  %v2546_v56 = vpop.f32.mrb[151].mxu0  ;;  %3275 = vmatmul.mubr.bf16.gmra.mrb[208].mxu1 %v2881_v6  ;;  %v2781_v11 = vmax.f32 %v2541_v10, 0.0 }
 0x312   : > { %v2547_v47 = vadd.f32 %v2546_v56, %v13735_v40  ;;  %v2782_v22 = vmax.f32 %v2543_v14, 0.0 }
 0x313   : > { %v2783_v57 = vmax.f32 %v2545_v15, 0.0 }
 0x314   : > { %v2784_v17 = vmax.f32 %v2547_v47, 0.0 }
 0x315   : > { %v2883_v58 = vpack.c.bf16 %v2783_v57, %v2781_v11 }
 0x316   : > { %v2550_v18 = vpop.f32.mrb[152].mxu0  ;;  %v2884_v19 = vpack.c.bf16 %v2784_v17, %v2782_v22 }
 0x317   : > { %v2551_v20 = vadd.f32 %v2550_v18, %v13729_v37  ;;  %v2552_v23 = vpop.f32.mrb[153].mxu0 }
 0x318   : > { %v2553_v24 = vadd.f32 %v2552_v23, %v13735_v40  ;;  %v2554_v28 = vpop.f32.mrb[154].mxu0  ;;  %3284 = vmatprep.mubr.bf16.mxu1 %v2884_v19 }
 0x319   : > { %v2555_v27 = vadd.f32 %v2554_v28, %v13729_v37  ;;  %v2556_v30 = vpop.f32.mrb[155].mxu0  ;;  %3285 = vmatmul.mubr.bf16.gmra.mrb[212].mxu1 %v2883_v58  ;;  %v2785_v34 = vmax.f32 %v2551_v20, 0.0 }
 0x31a   : > { %v2557_v33 = vadd.f32 %v2556_v30, %v13735_v40  ;;  %v2786_v35 = vmax.f32 %v2553_v24, 0.0 }
 0x31b   : > { %v2787_v12 = vmax.f32 %v2555_v27, 0.0 }
 0x31c   : > { %v2788_v36 = vmax.f32 %v2557_v33, 0.0 }
 0x31d   : > { %v2885_v59 = vpack.c.bf16 %v2787_v12, %v2785_v34 }
 0x31e   : > { %v2560_v38 = vpop.f32.mrb[156].mxu0  ;;  %v2886_v39 = vpack.c.bf16 %v2788_v36, %v2786_v35 }
 0x31f   : > { %v2561_v42 = vadd.f32 %v2560_v38, %v13729_v37  ;;  %v2562_v43 = vpop.f32.mrb[157].mxu0 }
 0x320   : > { %v2563_v44 = vadd.f32 %v2562_v43, %v13735_v40  ;;  %v2564_v29 = vpop.f32.mrb[158].mxu0  ;;  %3294 = vmatprep.mubr.bf16.mxu1 %v2886_v39 }
 0x321   : > { %v2565_v63 = vadd.f32 %v2564_v29, %v13729_v37  ;;  %v2566_v45 = vpop.f32.mrb[159].mxu0  ;;  %3295 = vmatmul.mubr.bf16.gmra.mrb[216].mxu1 %v2885_v59  ;;  %v2789_v46 = vmax.f32 %v2561_v42, 0.0 }
 0x322   : > { %v2567_v51 = vadd.f32 %v2566_v45, %v13735_v40  ;;  %v2790_v49 = vmax.f32 %v2563_v44, 0.0 }
 0x323   : > { %v2791_v48 = vmax.f32 %v2565_v63, 0.0 }
 0x324   : > { %v2792_v50 = vmax.f32 %v2567_v51, 0.0 }
 0x325   : > { %v2887_v52 = vpack.c.bf16 %v2791_v48, %v2789_v46 }
 0x326   : > { %v2570_v21 = vpop.f32.mrb[160].mxu0  ;;  %v2888_v53 = vpack.c.bf16 %v2792_v50, %v2790_v49 }
 0x327   : > { %v2571_v54 = vadd.f32 %v2570_v21, %v13729_v37  ;;  %v2572_v55 = vpop.f32.mrb[161].mxu0 }
 0x328   : > { %v2573_v60 = vadd.f32 %v2572_v55, %v13735_v40  ;;  %v2574_v61 = vpop.f32.mrb[162].mxu0  ;;  %3304 = vmatprep.mubr.bf16.mxu1 %v2888_v53 }
 0x329   : > { %v2575_v62 = vadd.f32 %v2574_v61, %v13729_v37  ;;  %v2576_v0 = vpop.f32.mrb[163].mxu0  ;;  %3305 = vmatmul.mubr.bf16.gmra.mrb[220].mxu1 %v2887_v52  ;;  %v2793_v3 = vmax.f32 %v2571_v54, 0.0 }
 0x32a   : > { %v2577_v1 = vadd.f32 %v2576_v0, %v13735_v40  ;;  %v2794_v4 = vmax.f32 %v2573_v60, 0.0 }
 0x32b   : > { %v2795_v7 = vmax.f32 %v2575_v62, 0.0 }
 0x32c   : > { %v2796_v5 = vmax.f32 %v2577_v1, 0.0 }
 0x32d   : > { %v2889_v41 = vpack.c.bf16 %v2795_v7, %v2793_v3 }
 0x32e   : > { %v2580_v6 = vpop.f32.mrb[164].mxu0  ;;  %v2890_v8 = vpack.c.bf16 %v2796_v5, %v2794_v4 }
 0x32f   : > { %v2581_v9 = vadd.f32 %v2580_v6, %v13729_v37  ;;  %v2582_v10 = vpop.f32.mrb[165].mxu0 }
 0x330   : > { %v2583_v13 = vadd.f32 %v2582_v10, %v13735_v40  ;;  %v2584_v14 = vpop.f32.mrb[166].mxu0  ;;  %3314 = vmatprep.mubr.bf16.mxu1 %v2890_v8 }
 0x331   : > { %v2585_v31 = vadd.f32 %v2584_v14, %v13729_v37  ;;  %v2586_v15 = vpop.f32.mrb[167].mxu0  ;;  %3315 = vmatmul.mubr.bf16.gmra.mrb[224].mxu1 %v2889_v41  ;;  %v2797_v16 = vmax.f32 %v2581_v9, 0.0 }
 0x332   : > { %v2587_v56 = vadd.f32 %v2586_v15, %v13735_v40  ;;  %v2798_v11 = vmax.f32 %v2583_v13, 0.0 }
 0x333   : > { %v2799_v47 = vmax.f32 %v2585_v31, 0.0 }
 0x334   : > { %v2800_v57 = vmax.f32 %v2587_v56, 0.0 }
 0x335   : > { %v2891_v22 = vpack.c.bf16 %v2799_v47, %v2797_v16 }
 0x336   : > { %v2590_v17 = vpop.f32.mrb[168].mxu0  ;;  %v2892_v58 = vpack.c.bf16 %v2800_v57, %v2798_v11 }
 0x337   : > { %v2591_v18 = vadd.f32 %v2590_v17, %v13729_v37  ;;  %v2592_v19 = vpop.f32.mrb[169].mxu0 }
 0x338   : > { %v2593_v20 = vadd.f32 %v2592_v19, %v13735_v40  ;;  %v2594_v23 = vpop.f32.mrb[170].mxu0  ;;  %3324 = vmatprep.mubr.bf16.mxu1 %v2892_v58 }
 0x339   : > { %v2595_v24 = vadd.f32 %v2594_v23, %v13729_v37  ;;  %v2596_v28 = vpop.f32.mrb[171].mxu0  ;;  %3325 = vmatmul.mubr.bf16.gmra.mrb[228].mxu1 %v2891_v22  ;;  %v2801_v30 = vmax.f32 %v2591_v18, 0.0 }
 0x33a   : > { %v2597_v27 = vadd.f32 %v2596_v28, %v13735_v40  ;;  %v2802_v34 = vmax.f32 %v2593_v20, 0.0 }
 0x33b   : > { %v2803_v33 = vmax.f32 %v2595_v24, 0.0 }
 0x33c   : > { %v2804_v12 = vmax.f32 %v2597_v27, 0.0 }
 0x33d   : > { %v2893_v35 = vpack.c.bf16 %v2803_v33, %v2801_v30 }
 0x33e   : > { %v2600_v36 = vpop.f32.mrb[172].mxu0  ;;  %v2894_v59 = vpack.c.bf16 %v2804_v12, %v2802_v34 }
 0x33f   : > { %v2601_v38 = vadd.f32 %v2600_v36, %v13729_v37  ;;  %v2602_v39 = vpop.f32.mrb[173].mxu0 }
 0x340   : > { %v2603_v42 = vadd.f32 %v2602_v39, %v13735_v40  ;;  %v2604_v43 = vpop.f32.mrb[174].mxu0  ;;  %3334 = vmatprep.mubr.bf16.mxu1 %v2894_v59 }
 0x341   : > { %v2605_v44 = vadd.f32 %v2604_v43, %v13729_v37  ;;  %v2606_v29 = vpop.f32.mrb[175].mxu0  ;;  %3335 = vmatmul.mubr.bf16.gmra.mrb[232].mxu1 %v2893_v35  ;;  %v2805_v45 = vmax.f32 %v2601_v38, 0.0 }
 0x342   : > { %v2607_v63 = vadd.f32 %v2606_v29, %v13735_v40  ;;  %v2806_v46 = vmax.f32 %v2603_v42, 0.0 }
 0x343   : > { %v2807_v51 = vmax.f32 %v2605_v44, 0.0 }
 0x344   : > { %v2808_v48 = vmax.f32 %v2607_v63, 0.0 }
 0x345   : > { %v2895_v49 = vpack.c.bf16 %v2807_v51, %v2805_v45 }
 0x346   : > { %v2610_v50 = vpop.f32.mrb[176].mxu0  ;;  %v2896_v52 = vpack.c.bf16 %v2808_v48, %v2806_v46 }
 0x347   : > { %v2611_v21 = vadd.f32 %v2610_v50, %v13729_v37  ;;  %v2612_v53 = vpop.f32.mrb[177].mxu0 }
 0x348   : > { %v2613_v54 = vadd.f32 %v2612_v53, %v13735_v40  ;;  %v2614_v55 = vpop.f32.mrb[178].mxu0  ;;  %3344 = vmatprep.mubr.bf16.mxu1 %v2896_v52 }
 0x349   : > { %v2615_v60 = vadd.f32 %v2614_v55, %v13729_v37  ;;  %v2616_v61 = vpop.f32.mrb[179].mxu0  ;;  %3345 = vmatmul.mubr.bf16.gmra.mrb[236].mxu1 %v2895_v49  ;;  %v2809_v0 = vmax.f32 %v2611_v21, 0.0 }
 0x34a   : > { %v2617_v62 = vadd.f32 %v2616_v61, %v13735_v40  ;;  %v2810_v3 = vmax.f32 %v2613_v54, 0.0 }
 0x34b   : > { %v2811_v1 = vmax.f32 %v2615_v60, 0.0 }
 0x34c   : > { %v2812_v7 = vmax.f32 %v2617_v62, 0.0 }
 0x34d   : > { %v2897_v4 = vpack.c.bf16 %v2811_v1, %v2809_v0 }
 0x34e   : > { %v2620_v5 = vpop.f32.mrb[180].mxu0  ;;  %v2898_v41 = vpack.c.bf16 %v2812_v7, %v2810_v3 }
 0x34f   : > { %v2621_v6 = vadd.f32 %v2620_v5, %v13729_v37  ;;  %v2622_v8 = vpop.f32.mrb[181].mxu0 }
 0x350   : > { %v2623_v9 = vadd.f32 %v2622_v8, %v13735_v40  ;;  %v2624_v10 = vpop.f32.mrb[182].mxu0  ;;  %3354 = vmatprep.mubr.bf16.mxu1 %v2898_v41 }
 0x351   : > { %v2625_v13 = vadd.f32 %v2624_v10, %v13729_v37  ;;  %v2626_v14 = vpop.f32.mrb[183].mxu0  ;;  %3355 = vmatmul.mubr.bf16.gmra.mrb[240].mxu1 %v2897_v4  ;;  %v2813_v15 = vmax.f32 %v2621_v6, 0.0 }
 0x352   : > { %v2627_v31 = vadd.f32 %v2626_v14, %v13735_v40  ;;  %v2814_v16 = vmax.f32 %v2623_v9, 0.0 }
 0x353   : > { %v2815_v56 = vmax.f32 %v2625_v13, 0.0 }
 0x354   : > { %v2816_v47 = vmax.f32 %v2627_v31, 0.0 }
 0x355   : > { %v2899_v11 = vpack.c.bf16 %v2815_v56, %v2813_v15 }
 0x356   : > { %v2630_v57 = vpop.f32.mrb[184].mxu0  ;;  %v2900_v22 = vpack.c.bf16 %v2816_v47, %v2814_v16 }
 0x357   : > { %v2631_v17 = vadd.f32 %v2630_v57, %v13729_v37  ;;  %v2632_v58 = vpop.f32.mrb[185].mxu0 }
 0x358   : > { %v2633_v18 = vadd.f32 %v2632_v58, %v13735_v40  ;;  %v2634_v19 = vpop.f32.mrb[186].mxu0  ;;  %3364 = vmatprep.mubr.bf16.mxu1 %v2900_v22 }
 0x359   : > { %v2635_v20 = vadd.f32 %v2634_v19, %v13729_v37  ;;  %v2636_v23 = vpop.f32.mrb[187].mxu0  ;;  %3365 = vmatmul.mubr.bf16.gmra.mrb[244].mxu1 %v2899_v11  ;;  %v2817_v28 = vmax.f32 %v2631_v17, 0.0 }
 0x35a   : > { %v2637_v24 = vadd.f32 %v2636_v23, %v13735_v40  ;;  %v2818_v30 = vmax.f32 %v2633_v18, 0.0 }
 0x35b   : > { %v2819_v27 = vmax.f32 %v2635_v20, 0.0 }
 0x35c   : > { %v2820_v33 = vmax.f32 %v2637_v24, 0.0 }
 0x35d   : > { %v2901_v34 = vpack.c.bf16 %v2819_v27, %v2817_v28 }
 0x35e   : > { %v2640_v12 = vpop.f32.mrb[188].mxu0  ;;  %v2902_v35 = vpack.c.bf16 %v2820_v33, %v2818_v30  ;;  %v2956_v33 = vsub.s32 3, %v13196_v25 }
 0x35f   : > { %v2641_v36 = vadd.f32 %v2640_v12, %v13729_v37  ;;  %v2642_v59 = vpop.f32.mrb[189].mxu0 }
 0x360   : > { %v2643_v38 = vadd.f32 %v2642_v59, %v13735_v40  ;;  %v2644_v39 = vpop.f32.mrb[190].mxu0  ;;  %3374 = vmatprep.mubr.bf16.mxu1 %v2902_v35 }
 0x361   : > { %v2645_v42 = vadd.f32 %v2644_v39, %v13729_v37  ;;  %v2646_v43 = vpop.f32.mrb[191].mxu0  ;;  %3375 = vmatmul.mubr.bf16.gmra.mrb[248].mxu1 %v2901_v34  ;;  %v2821_v29 = vmax.f32 %v2641_v36, 0.0 }
 0x362   : > { %v2647_v44 = vadd.f32 %v2646_v43, %v13735_v40  ;;  %v2822_v45 = vmax.f32 %v2643_v38, 0.0  ;;  %v12800_v43 = vld [vmem:[%s16421_s4] sm:$0xff] }
 0x363   : > { %v2823_v63 = vmax.f32 %v2645_v42, 0.0 }
 0x364   : > { %v2824_v51 = vmax.f32 %v2647_v44, 0.0  ;;  %v13907_v44 = vrot.slane %v12800_v43, %v2956_v33 }
 0x365   : > { %v2903_v46 = vpack.c.bf16 %v2823_v63, %v2821_v29  ;;  %v12801_v63 = vld [vmem:[%s16421_s4 + $0x8] sm:$0xff] }
 0x366   : > { %v2650_v48 = vpop.f32.mrb[192].mxu0  ;;  %v2904_v49 = vpack.c.bf16 %v2824_v51, %v2822_v45  ;;  %v13913_v45 = vrot.slane %v12801_v63, %v2956_v33 }
 0x367   : > { %v2651_v50 = vadd.f32 %v2650_v48, %v13729_v37  ;;  %v2652_v52 = vpop.f32.mrb[193].mxu0 }
 0x368   : > { %v2653_v21 = vadd.f32 %v2652_v52, %v13735_v40  ;;  %v2654_v53 = vpop.f32.mrb[194].mxu0  ;;  %3384 = vmatprep.mubr.bf16.mxu1 %v2904_v49 }
 0x369   : > { %v2655_v54 = vadd.f32 %v2654_v53, %v13729_v37  ;;  %v2656_v55 = vpop.f32.mrb[195].mxu0  ;;  %3385 = vmatmul.mubr.bf16.gmra.mrb[252].mxu1 %v2903_v46  ;;  %v2825_v61 = vmax.f32 %v2651_v50, 0.0 }
 0x36a   : > { %v2657_v60 = vadd.f32 %v2656_v55, %v13735_v40  ;;  %v2826_v0 = vmax.f32 %v2653_v21, 0.0 }
 0x36b   : > { %v2827_v62 = vmax.f32 %v2655_v54, 0.0 }
 0x36c   : > { %v2828_v1 = vmax.f32 %v2657_v60, 0.0 }
 0x36d   : > { %v2905_v3 = vpack.c.bf16 %v2827_v62, %v2825_v61 }
 0x36e   : > { %v2660_v7 = vpop.f32.mrb[196].mxu0  ;;  %v2906_v4 = vpack.c.bf16 %v2828_v1, %v2826_v0 }
 0x36f   : > { %v2661_v5 = vadd.f32 %v2660_v7, %v13729_v37  ;;  %v2662_v41 = vpop.f32.mrb[197].mxu0 }
 0x370   : > { %v2663_v6 = vadd.f32 %v2662_v41, %v13735_v40  ;;  %v2664_v8 = vpop.f32.mrb[198].mxu0  ;;  %3394 = vmatprep.mubr.bf16.mxu1 %v2906_v4 }
 0x371   : > { %v2665_v9 = vadd.f32 %v2664_v8, %v13729_v37  ;;  %v2666_v10 = vpop.f32.mrb[199].mxu0  ;;  %3395 = vmatmul.mubr.bf16.gmra.mrb[0].mxu1 %v2905_v3  ;;  %v2829_v14 = vmax.f32 %v2661_v5, 0.0 }
 0x372   : > { %v2667_v13 = vadd.f32 %v2666_v10, %v13735_v40  ;;  %v2830_v15 = vmax.f32 %v2663_v6, 0.0 }
 0x373   : > { %v2831_v31 = vmax.f32 %v2665_v9, 0.0 }
 0x374   : > { %v2832_v56 = vmax.f32 %v2667_v13, 0.0 }
 0x375   : > { %v2907_v16 = vpack.c.bf16 %v2831_v31, %v2829_v14 }
 0x376   : > { %v2670_v47 = vpop.f32.mrb[200].mxu0  ;;  %v2908_v11 = vpack.c.bf16 %v2832_v56, %v2830_v15 }
 0x377   : > { %v2671_v57 = vadd.f32 %v2670_v47, %v13729_v37  ;;  %v2672_v22 = vpop.f32.mrb[201].mxu0 }
 0x378   : > { %v2673_v17 = vadd.f32 %v2672_v22, %v13735_v40  ;;  %v2674_v58 = vpop.f32.mrb[202].mxu0  ;;  %3404 = vmatprep.mubr.bf16.mxu1 %v2908_v11  ;;  %v12239_v22 = vld [vmem:[%s16419_s2 + $0x40] ss:$8 sps:$4 sm:$0xff]  }
 0x379   : > { %v2675_v18 = vadd.f32 %v2674_v58, %v13729_v37  ;;  %v2676_v19 = vpop.f32.mrb[203].mxu0  ;;  %3405 = vmatmul.mubr.bf16.gmra.mrb[4].mxu1 %v2907_v16  ;;  %v2833_v23 = vmax.f32 %v2671_v57, 0.0 }
 0x37a   : > { %v2677_v20 = vadd.f32 %v2676_v19, %v13735_v40  ;;  %v2834_v28 = vmax.f32 %v2673_v17, 0.0  ;;  %v12244_v19 = vld [vmem:[%s16419_s2 + $0x54] ss:$8 sps:$4 sm:$0xff]  }
 0x37b   : > { %v2835_v24 = vmax.f32 %v2675_v18, 0.0 }
 0x37c   : > { %v2836_v27 = vmax.f32 %v2677_v20, 0.0 }
 0x37d   : > { %v2909_v30 = vpack.c.bf16 %v2835_v24, %v2833_v23 }
 0x37e   : > { %v2680_v34 = vpop.f32.mrb[204].mxu0  ;;  %v2910_v12 = vpack.c.bf16 %v2836_v27, %v2834_v28 }
 0x37f   : > { %v2681_v35 = vadd.f32 %v2680_v34, %v13729_v37  ;;  %v2682_v36 = vpop.f32.mrb[205].mxu0 }
 0x380   : > { %v2683_v59 = vadd.f32 %v2682_v36, %v13735_v40  ;;  %v2684_v38 = vpop.f32.mrb[206].mxu0  ;;  %3414 = vmatprep.mubr.bf16.mxu1 %v2910_v12 }
 0x381   : > { %v2685_v39 = vadd.f32 %v2684_v38, %v13729_v37  ;;  %v2686_v42 = vpop.f32.mrb[207].mxu0  ;;  %3415 = vmatmul.mubr.bf16.gmra.mrb[8].mxu1 %v2909_v30  ;;  %v2837_v51 = vmax.f32 %v2681_v35, 0.0 }
 0x382   : > { %v2687_v29 = vadd.f32 %v2686_v42, %v13735_v40  ;;  %v2838_v48 = vmax.f32 %v2683_v59, 0.0  ;;  %v12242_v59 = vld [vmem:[%s16419_s2 + $0x50] ss:$8 sps:$4 sm:$0xff]  }
 0x383   : > { %v2839_v46 = vmax.f32 %v2685_v39, 0.0 }
 0x384   : > { %v2840_v49 = vmax.f32 %v2687_v29, 0.0  ;;  %v3156_v50 = vpop.f32.mrb[160].mxu1 }
 0x385   : > { %v2911_v52 = vpack.c.bf16 %v2839_v46, %v2837_v51  ;;  %v3157_v21 = vadd.f32 %v3156_v50, %v13907_v44  ;;  %v3158_v53 = vpop.f32.mrb[161].mxu1  ;;  %v12247_v50 = vld [vmem:[%s16419_s2 + $0x64] ss:$8 sps:$4 sm:$0xff]  }
 0x386   : > { %v3159_v54 = vadd.f32 %v3158_v53, %v13913_v45  ;;  %v2690_v55 = vpop.f32.mrb[208].mxu0  ;;  %v3160_v60 = vpop.f32.mrb[162].mxu1  ;;  %v2912_v61 = vpack.c.bf16 %v2840_v49, %v2838_v48 }
 0x387   : > { %v2691_v62 = vadd.f32 %v2690_v55, %v13729_v37  ;;  %v3161_v0 = vadd.f32 %v3160_v60, %v13907_v44  ;;  %v2692_v1 = vpop.f32.mrb[209].mxu0  ;;  %v3162_v3 = vpop.f32.mrb[163].mxu1  ;;  %v3475_v41 = vmax.f32 %v3157_v21, 0.0  ;;  %v12245_v55 = vld [vmem:[%s16419_s2 + $0x60] ss:$8 sps:$4 sm:$0xff]  }
 0x388   : > { %v2693_v7 = vadd.f32 %v2692_v1, %v13735_v40  ;;  %v3163_v4 = vadd.f32 %v3162_v3, %v13913_v45  ;;  %v2694_v5 = vpop.f32.mrb[210].mxu0  ;;  %3424 = vmatprep.mubr.bf16.mxu1 %v2912_v61  ;;  %v3476_v10 = vmax.f32 %v3159_v54, 0.0 }
 0x389   : > { %v3477_v6 = vmax.f32 %v3161_v0, 0.0  ;;  %v2695_v8 = vadd.f32 %v2694_v5, %v13729_v37  ;;  %v2696_v9 = vpop.f32.mrb[211].mxu0  ;;  %3425 = vmatmul.mubr.bf16.gmra.mrb[12].mxu1 %v2911_v52  ;;  %v2841_v31 = vmax.f32 %v2691_v62, 0.0 }
 0x38a   : > { %v3478_v13 = vmax.f32 %v3163_v4, 0.0  ;;  %v2697_v14 = vadd.f32 %v2696_v9, %v13735_v40  ;;  %v2842_v16 = vmax.f32 %v2693_v7, 0.0 }
 0x38b   : > { %v3603_v15 = vpack.c.bf16 %v3477_v6, %v3475_v41  ;;  %v2843_v56 = vmax.f32 %v2695_v8, 0.0 }
 0x38c   : > { %v2844_v47 = vmax.f32 %v2697_v14, 0.0  ;;  %v3166_v11 = vpop.f32.mrb[164].mxu1  ;;  %v3604_v57 = vpack.c.bf16 %v3478_v13, %v3476_v10 }
 0x38d   : > { %v2913_v17 = vpack.c.bf16 %v2843_v56, %v2841_v31  ;;  %v3167_v58 = vadd.f32 %v3166_v11, %v13907_v44  ;;  %v3168_v18 = vpop.f32.mrb[165].mxu1 }
 0x38e   : > { %v3169_v20 = vadd.f32 %v3168_v18, %v13913_v45  ;;  %v2700_v23 = vpop.f32.mrb[212].mxu0  ;;  %v3170_v24 = vpop.f32.mrb[166].mxu1  ;;  %3901 = vmatprep.mubr.bf16.mxu0 %v3604_v57  ;;  %v2914_v28 = vpack.c.bf16 %v2844_v47, %v2842_v16 }
 0x38f   : > { %v2701_v27 = vadd.f32 %v2700_v23, %v13729_v37  ;;  %v3171_v30 = vadd.f32 %v3170_v24, %v13907_v44  ;;  %v2702_v33 = vpop.f32.mrb[213].mxu0  ;;  %v3172_v34 = vpop.f32.mrb[167].mxu1  ;;  %3902 = vmatmul.mubr.bf16.vlgmr.msra.gmra.mrb[224].mxu0 %v3603_v15  ;;  %v3479_v38 = vmax.f32 %v3167_v58, 0.0 }
 0x390   : > { %v2703_v12 = vadd.f32 %v2702_v33, %v13735_v40  ;;  %v3173_v35 = vadd.f32 %v3172_v34, %v13913_v45  ;;  %4263 = vmatpush1.bf16.msra.mxu0 %v12239_v22  ;;  %v2704_v36 = vpop.f32.mrb[214].mxu0  ;;  %3434 = vmatprep.mubr.bf16.mxu1 %v2914_v28  ;;  %v3480_v29 = vmax.f32 %v3169_v20, 0.0 }
 0x391   : > { %v3481_v39 = vmax.f32 %v3171_v30, 0.0  ;;  %v2705_v42 = vadd.f32 %v2704_v36, %v13729_v37  ;;  %v2706_v43 = vpop.f32.mrb[215].mxu0  ;;  %3435 = vmatmul.mubr.bf16.gmra.mrb[16].mxu1 %v2913_v17  ;;  %4264 = vmatprep.subr.bf16.mxu0 %v12244_v19  ;;  %v2845_v46 = vmax.f32 %v2701_v27, 0.0 }
 0x392   : > { %v3482_v63 = vmax.f32 %v3173_v35, 0.0  ;;  %v2707_v51 = vadd.f32 %v2706_v43, %v13735_v40  ;;  %v2846_v52 = vmax.f32 %v2703_v12, 0.0 }
 0x393   : > { %v2847_v48 = vmax.f32 %v2705_v42, 0.0  ;;  %v3605_v49 = vpack.c.bf16 %v3481_v39, %v3479_v38 }
 0x394   : > { %v2848_v21 = vmax.f32 %v2707_v51, 0.0  ;;  %v3176_v53 = vpop.f32.mrb[168].mxu1  ;;  %v3606_v54 = vpack.c.bf16 %v3482_v63, %v3480_v29  ;;  %4265 = vmatpush1.bf16.msra.mxu0 %v12242_v59 }
 0x395   : > { %v2915_v60 = vpack.c.bf16 %v2847_v48, %v2845_v46  ;;  %v3177_v61 = vadd.f32 %v3176_v53, %v13907_v44  ;;  %v3178_v62 = vpop.f32.mrb[169].mxu1  ;;  %4266 = vmatprep.subr.bf16.mxu0 %v12247_v50 }
 0x396   : > { %v3179_v0 = vadd.f32 %v3178_v62, %v13913_v45  ;;  %v2710_v1 = vpop.f32.mrb[216].mxu0  ;;  %v3180_v3 = vpop.f32.mrb[170].mxu1  ;;  %3911 = vmatprep.mubr.bf16.mxu0 %v3606_v54  ;;  %v2916_v7 = vpack.c.bf16 %v2848_v21, %v2846_v52 }
 0x397   : > { %v2711_v4 = vadd.f32 %v2710_v1, %v13729_v37  ;;  %v3181_v5 = vadd.f32 %v3180_v3, %v13907_v44  ;;  %v2712_v41 = vpop.f32.mrb[217].mxu0  ;;  %v3182_v6 = vpop.f32.mrb[171].mxu1  ;;  %3912 = vmatmul.mubr.bf16.gmra.mrb[228].mxu0 %v3605_v49  ;;  %v3483_v13 = vmax.f32 %v3177_v61, 0.0 }
 0x398   : > { %v2713_v8 = vadd.f32 %v2712_v41, %v13735_v40  ;;  %v3183_v9 = vadd.f32 %v3182_v6, %v13913_v45  ;;  %v2714_v10 = vpop.f32.mrb[218].mxu0  ;;  %3444 = vmatprep.mubr.bf16.mxu1 %v2916_v7  ;;  %4267 = vmatpush1.bf16.msra.mxu0 %v12245_v55  ;;  %v3484_v56 = vmax.f32 %v3179_v0, 0.0 }
 0x399   : > { %v3485_v14 = vmax.f32 %v3181_v5, 0.0  ;;  %v2715_v31 = vadd.f32 %v2714_v10, %v13729_v37  ;;  %v2716_v15 = vpop.f32.mrb[219].mxu0  ;;  %3445 = vmatmul.mubr.bf16.gmra.mrb[20].mxu1 %v2915_v60  ;;  %v2849_v11 = vmax.f32 %v2711_v4, 0.0 }
 0x39a   : > { %v3486_v16 = vmax.f32 %v3183_v9, 0.0  ;;  %v2717_v47 = vadd.f32 %v2716_v15, %v13735_v40  ;;  %v2850_v17 = vmax.f32 %v2713_v8, 0.0 }
 0x39b   : > { %v2851_v57 = vmax.f32 %v2715_v31, 0.0  ;;  %v3607_v22 = vpack.c.bf16 %v3485_v14, %v3483_v13 }
 0x39c   : > { %v2852_v58 = vmax.f32 %v2717_v47, 0.0  ;;  %v3186_v18 = vpop.f32.mrb[172].mxu1  ;;  %v3608_v19 = vpack.c.bf16 %v3486_v16, %v3484_v56 }
 0x39d   : > { %v2917_v20 = vpack.c.bf16 %v2851_v57, %v2849_v11  ;;  %v3187_v23 = vadd.f32 %v3186_v18, %v13907_v44  ;;  %v3188_v24 = vpop.f32.mrb[173].mxu1 }
 0x39e   : > { %v3189_v28 = vadd.f32 %v3188_v24, %v13913_v45  ;;  %v2720_v27 = vpop.f32.mrb[220].mxu0  ;;  %v3190_v30 = vpop.f32.mrb[174].mxu1  ;;  %3921 = vmatprep.mubr.bf16.mxu0 %v3608_v19  ;;  %v2918_v33 = vpack.c.bf16 %v2852_v58, %v2850_v17 }
 0x39f   : > { %v2721_v34 = vadd.f32 %v2720_v27, %v13729_v37  ;;  %v3191_v12 = vadd.f32 %v3190_v30, %v13907_v44  ;;  %v2722_v35 = vpop.f32.mrb[221].mxu0  ;;  %v3192_v36 = vpop.f32.mrb[175].mxu1  ;;  %3922 = vmatmul.mubr.bf16.gmra.mrb[232].mxu0 %v3607_v22  ;;  %v3487_v42 = vmax.f32 %v3187_v23, 0.0 }
 0x3a0   : > { %v2723_v59 = vadd.f32 %v2722_v35, %v13735_v40  ;;  %v3193_v38 = vadd.f32 %v3192_v36, %v13913_v45  ;;  %v2724_v39 = vpop.f32.mrb[222].mxu0  ;;  %3454 = vmatprep.mubr.bf16.mxu1 %v2918_v33  ;;  %v3488_v51 = vmax.f32 %v3189_v28, 0.0 }
 0x3a1   : > { %v3489_v43 = vmax.f32 %v3191_v12, 0.0  ;;  %v2725_v29 = vadd.f32 %v2724_v39, %v13729_v37  ;;  %v2726_v63 = vpop.f32.mrb[223].mxu0  ;;  %3455 = vmatmul.mubr.bf16.gmra.mrb[24].mxu1 %v2917_v20  ;;  %v2853_v49 = vmax.f32 %v2721_v34, 0.0 }
 0x3a2   : > { %v3490_v46 = vmax.f32 %v3193_v38, 0.0  ;;  %v2727_v48 = vadd.f32 %v2726_v63, %v13735_v40  ;;  %v2854_v21 = vmax.f32 %v2723_v59, 0.0 }
 0x3a3   : > { %v2855_v50 = vmax.f32 %v2725_v29, 0.0  ;;  %v3609_v52 = vpack.c.bf16 %v3489_v43, %v3487_v42 }
 0x3a4   : > { %v2856_v53 = vmax.f32 %v2727_v48, 0.0  ;;  %v3196_v54 = vpop.f32.mrb[176].mxu1  ;;  %v3610_v55 = vpack.c.bf16 %v3490_v46, %v3488_v51 }
 0x3a5   : > { %v2919_v60 = vpack.c.bf16 %v2855_v50, %v2853_v49  ;;  %v3197_v61 = vadd.f32 %v3196_v54, %v13907_v44  ;;  %v3198_v62 = vpop.f32.mrb[177].mxu1 }
 0x3a6   : > { %v3199_v0 = vadd.f32 %v3198_v62, %v13913_v45  ;;  %v3200_v37 = vpop.f32.mrb[178].mxu1  ;;  %3931 = vmatprep.mubr.bf16.mxu0 %v3610_v55  ;;  %v2920_v1 = vpack.c.bf16 %v2856_v53, %v2854_v21 }
 0x3a7   : > { %v3201_v3 = vadd.f32 %v3200_v37, %v13907_v44  ;;  %v3202_v7 = vpop.f32.mrb[179].mxu1  ;;  %3932 = vmatmul.mubr.bf16.gmra.mrb[236].mxu0 %v3609_v52  ;;  %v3491_v4 = vmax.f32 %v3197_v61, 0.0 }
 0x3a8   : > { %v3203_v40 = vadd.f32 %v3202_v7, %v13913_v45  ;;  %3464 = vmatprep.mubr.bf16.mxu1 %v2920_v1  ;;  %v3492_v41 = vmax.f32 %v3199_v0, 0.0 }
 0x3a9   : > { %v3493_v5 = vmax.f32 %v3201_v3, 0.0  ;;  %3465 = vmatmul.mubr.bf16.gmra.mrb[28].mxu1 %v2919_v60 }
 0x3aa   : > { %v3494_v6 = vmax.f32 %v3203_v40, 0.0 }
 0x3ab   : > { %v3611_v8 = vpack.c.bf16 %v3493_v5, %v3491_v4 }
 0x3ac   : > { %v3206_v9 = vpop.f32.mrb[180].mxu1  ;;  %v3612_v10 = vpack.c.bf16 %v3494_v6, %v3492_v41 }
 0x3ad   : > { %v3207_v13 = vadd.f32 %v3206_v9, %v13907_v44  ;;  %v3208_v14 = vpop.f32.mrb[181].mxu1 }
 0x3ae   : > { %v3209_v31 = vadd.f32 %v3208_v14, %v13913_v45  ;;  %v3210_v15 = vpop.f32.mrb[182].mxu1  ;;  %3941 = vmatprep.mubr.bf16.mxu0 %v3612_v10 }
 0x3af   : > { %v3211_v56 = vadd.f32 %v3210_v15, %v13907_v44  ;;  %v3212_v16 = vpop.f32.mrb[183].mxu1  ;;  %3942 = vmatmul.mubr.bf16.gmra.mrb[240].mxu0 %v3611_v8  ;;  %v3495_v11 = vmax.f32 %v3207_v13, 0.0 }
 0x3b0   : > { %v3213_v47 = vadd.f32 %v3212_v16, %v13913_v45  ;;  %v3496_v22 = vmax.f32 %v3209_v31, 0.0 }
 0x3b1   : > { %v3497_v57 = vmax.f32 %v3211_v56, 0.0 }
 0x3b2   : > { %v3498_v17 = vmax.f32 %v3213_v47, 0.0 }
 0x3b3   : > { %v3613_v58 = vpack.c.bf16 %v3497_v57, %v3495_v11 }
 0x3b4   : > { %v3216_v18 = vpop.f32.mrb[184].mxu1  ;;  %v3614_v19 = vpack.c.bf16 %v3498_v17, %v3496_v22  ;;  %v12248_v17 = vld [vmem:[%s16419_s2 + $0x70] ss:$8 sps:$4 sm:$0xff]  }
 0x3b5   : > { %v3217_v20 = vadd.f32 %v3216_v18, %v13907_v44  ;;  %v3218_v23 = vpop.f32.mrb[185].mxu1 }
 0x3b6   : > { %v3219_v24 = vadd.f32 %v3218_v23, %v13913_v45  ;;  %v3220_v28 = vpop.f32.mrb[186].mxu1  ;;  %3951 = vmatprep.mubr.bf16.mxu0 %v3614_v19 }
 0x3b7   : > { %v3221_v27 = vadd.f32 %v3220_v28, %v13907_v44  ;;  %v3222_v30 = vpop.f32.mrb[187].mxu1  ;;  %3952 = vmatmul.mubr.bf16.gmra.mrb[244].mxu0 %v3613_v58  ;;  %v3499_v34 = vmax.f32 %v3217_v20, 0.0  ;;  %v12250_v58 = vld [vmem:[%s16419_s2 + $0x74] ss:$8 sps:$4 sm:$0xff]  }
 0x3b8   : > { %v3223_v33 = vadd.f32 %v3222_v30, %v13913_v45  ;;  %v3500_v35 = vmax.f32 %v3219_v24, 0.0  ;;  %4268 = vmatprep.subr.bf16.mxu0 %v12250_v58 }
 0x3b9   : > { %v3501_v12 = vmax.f32 %v3221_v27, 0.0  ;;  %4269 = vmatpush1.bf16.msra.mxu0 %v12248_v17 }
 0x3ba   : > { %v3502_v36 = vmax.f32 %v3223_v33, 0.0 }
 0x3bb   : > { %v3615_v59 = vpack.c.bf16 %v3501_v12, %v3499_v34 }
 0x3bc   : > { %v3226_v38 = vpop.f32.mrb[188].mxu1  ;;  %v3616_v39 = vpack.c.bf16 %v3502_v36, %v3500_v35 }
 0x3bd   : > { %v3227_v42 = vadd.f32 %v3226_v38, %v13907_v44  ;;  %v3228_v43 = vpop.f32.mrb[189].mxu1 }
 0x3be   : > { %v3229_v29 = vadd.f32 %v3228_v43, %v13913_v45  ;;  %v3230_v63 = vpop.f32.mrb[190].mxu1  ;;  %3961 = vmatprep.mubr.bf16.mxu0 %v3616_v39 }
 0x3bf   : > { %v3231_v51 = vadd.f32 %v3230_v63, %v13907_v44  ;;  %v3232_v46 = vpop.f32.mrb[191].mxu1  ;;  %3962 = vmatmul.mubr.bf16.gmra.mrb[248].mxu0 %v3615_v59  ;;  %v3503_v49 = vmax.f32 %v3227_v42, 0.0 }
 0x3c0   : > { %v3233_v48 = vadd.f32 %v3232_v46, %v13913_v45  ;;  %v3504_v52 = vmax.f32 %v3229_v29, 0.0 }
 0x3c1   : > { %v3505_v50 = vmax.f32 %v3231_v51, 0.0 }
 0x3c2   : > { %v3506_v21 = vmax.f32 %v3233_v48, 0.0 }
 0x3c3   : > { %v3617_v53 = vpack.c.bf16 %v3505_v50, %v3503_v49 }
 0x3c4   : > { %v3236_v54 = vpop.f32.mrb[192].mxu1  ;;  %v3618_v55 = vpack.c.bf16 %v3506_v21, %v3504_v52 }
 0x3c5   : > { %v3237_v60 = vadd.f32 %v3236_v54, %v13907_v44  ;;  %v3238_v61 = vpop.f32.mrb[193].mxu1 }
 0x3c6   : > { %v3239_v62 = vadd.f32 %v3238_v61, %v13913_v45  ;;  %v3240_v0 = vpop.f32.mrb[194].mxu1  ;;  %3971 = vmatprep.mubr.bf16.mxu0 %v3618_v55 }
 0x3c7   : > { %v3241_v37 = vadd.f32 %v3240_v0, %v13907_v44  ;;  %v3242_v1 = vpop.f32.mrb[195].mxu1  ;;  %3972 = vmatmul.mubr.bf16.gmra.mrb[252].mxu0 %v3617_v53  ;;  %v3507_v7 = vmax.f32 %v3237_v60, 0.0 }
 0x3c8   : > { %v3243_v3 = vadd.f32 %v3242_v1, %v13913_v45  ;;  %v3508_v4 = vmax.f32 %v3239_v62, 0.0 }
 0x3c9   : > { %v3509_v40 = vmax.f32 %v3241_v37, 0.0 }
 0x3ca   : > { %v3510_v5 = vmax.f32 %v3243_v3, 0.0 }
 0x3cb   : > { %v3619_v41 = vpack.c.bf16 %v3509_v40, %v3507_v7 }
 0x3cc   : > { %v3246_v6 = vpop.f32.mrb[196].mxu1  ;;  %v3620_v8 = vpack.c.bf16 %v3510_v5, %v3508_v4 }
 0x3cd   : > { %v3247_v9 = vadd.f32 %v3246_v6, %v13907_v44  ;;  %v3248_v10 = vpop.f32.mrb[197].mxu1 }
 0x3ce   : > { %v3249_v13 = vadd.f32 %v3248_v10, %v13913_v45  ;;  %v3250_v14 = vpop.f32.mrb[198].mxu1  ;;  %3981 = vmatprep.mubr.bf16.mxu0 %v3620_v8 }
 0x3cf   : > { %v3251_v31 = vadd.f32 %v3250_v14, %v13907_v44  ;;  %v3252_v15 = vpop.f32.mrb[199].mxu1  ;;  %3982 = vmatmul.mubr.bf16.gmra.mrb[0].mxu0 %v3619_v41  ;;  %v3511_v16 = vmax.f32 %v3247_v9, 0.0 }
 0x3d0   : > { %v3253_v56 = vadd.f32 %v3252_v15, %v13913_v45  ;;  %v3512_v11 = vmax.f32 %v3249_v13, 0.0 }
 0x3d1   : > { %v3513_v47 = vmax.f32 %v3251_v31, 0.0 }
 0x3d2   : > { %v3514_v57 = vmax.f32 %v3253_v56, 0.0  ;;  %v12251_v56 = vld [vmem:[%s16420_s3 + $0x400] ss:$8 sps:$4 sm:$0xff]  }
 0x3d3   : > { %v3621_v22 = vpack.c.bf16 %v3513_v47, %v3511_v16  ;;  %v12253_v16 = vld [vmem:[%s16420_s3 + $0x404] ss:$8 sps:$4 sm:$0xff]  }
 0x3d4   : > { %v3256_v18 = vpop.f32.mrb[200].mxu1  ;;  %v3622_v19 = vpack.c.bf16 %v3514_v57, %v3512_v11  ;;  %5144 = vmatprep.subr.bf16.mxu1 %v12253_v16 }
 0x3d5   : > { %v3257_v20 = vadd.f32 %v3256_v18, %v13907_v44  ;;  %v3258_v23 = vpop.f32.mrb[201].mxu1  ;;  %5145 = vmatpush1.bf16.msra.mxu1 %v12251_v56 }
 0x3d6   : > { %v3259_v24 = vadd.f32 %v3258_v23, %v13913_v45  ;;  %v3260_v28 = vpop.f32.mrb[202].mxu1  ;;  %3991 = vmatprep.mubr.bf16.mxu0 %v3622_v19 }
 0x3d7   : > { %v3261_v27 = vadd.f32 %v3260_v28, %v13907_v44  ;;  %v3262_v30 = vpop.f32.mrb[203].mxu1  ;;  %3992 = vmatmul.mubr.bf16.gmra.mrb[4].mxu0 %v3621_v22  ;;  %v3515_v34 = vmax.f32 %v3257_v20, 0.0 }
 0x3d8   : > { %v3263_v33 = vadd.f32 %v3262_v30, %v13913_v45  ;;  %v3516_v35 = vmax.f32 %v3259_v24, 0.0 }
 0x3d9   : > { %v3517_v12 = vmax.f32 %v3261_v27, 0.0 }
 0x3da   : > { %v3518_v36 = vmax.f32 %v3263_v33, 0.0 }
 0x3db   : > { %v3623_v59 = vpack.c.bf16 %v3517_v12, %v3515_v34 }
 0x3dc   : > { %v3266_v38 = vpop.f32.mrb[204].mxu1  ;;  %v3624_v39 = vpack.c.bf16 %v3518_v36, %v3516_v35 }
 0x3dd   : > { %v3267_v42 = vadd.f32 %v3266_v38, %v13907_v44  ;;  %v3268_v43 = vpop.f32.mrb[205].mxu1 }
 0x3de   : > { %v3269_v29 = vadd.f32 %v3268_v43, %v13913_v45  ;;  %v3270_v63 = vpop.f32.mrb[206].mxu1  ;;  %4001 = vmatprep.mubr.bf16.mxu0 %v3624_v39 }
 0x3df   : > { %v3271_v51 = vadd.f32 %v3270_v63, %v13907_v44  ;;  %v3272_v46 = vpop.f32.mrb[207].mxu1  ;;  %4002 = vmatmul.mubr.bf16.gmra.mrb[8].mxu0 %v3623_v59  ;;  %v3519_v49 = vmax.f32 %v3267_v42, 0.0 }
 0x3e0   : > { %v3273_v48 = vadd.f32 %v3272_v46, %v13913_v45  ;;  %v3520_v52 = vmax.f32 %v3269_v29, 0.0 }
 0x3e1   : > { %v3521_v50 = vmax.f32 %v3271_v51, 0.0 }
 0x3e2   : > { %v3522_v21 = vmax.f32 %v3273_v48, 0.0  ;;  %v12254_v48 = vld [vmem:[%s16420_s3 + $0x410] ss:$8 sps:$4 sm:$0xff]  }
 0x3e3   : > { %v3625_v53 = vpack.c.bf16 %v3521_v50, %v3519_v49  ;;  %v12256_v49 = vld [vmem:[%s16420_s3 + $0x414] ss:$8 sps:$4 sm:$0xff]  }
 0x3e4   : > { %v3276_v54 = vpop.f32.mrb[208].mxu1  ;;  %v3626_v55 = vpack.c.bf16 %v3522_v21, %v3520_v52  ;;  %5146 = vmatprep.subr.bf16.mxu1 %v12256_v49 }
 0x3e5   : > { %v3277_v60 = vadd.f32 %v3276_v54, %v13907_v44  ;;  %v3278_v61 = vpop.f32.mrb[209].mxu1  ;;  %5147 = vmatpush1.bf16.msra.mxu1 %v12254_v48 }
 0x3e6   : > { %v3279_v62 = vadd.f32 %v3278_v61, %v13913_v45  ;;  %v3280_v0 = vpop.f32.mrb[210].mxu1  ;;  %4011 = vmatprep.mubr.bf16.mxu0 %v3626_v55 }
 0x3e7   : > { %v3281_v37 = vadd.f32 %v3280_v0, %v13907_v44  ;;  %v3282_v1 = vpop.f32.mrb[211].mxu1  ;;  %4012 = vmatmul.mubr.bf16.gmra.mrb[12].mxu0 %v3625_v53  ;;  %v3523_v7 = vmax.f32 %v3277_v60, 0.0 }
 0x3e8   : > { %v3283_v3 = vadd.f32 %v3282_v1, %v13913_v45  ;;  %v3524_v4 = vmax.f32 %v3279_v62, 0.0 }
 0x3e9   : > { %v3525_v40 = vmax.f32 %v3281_v37, 0.0 }
 0x3ea   : > { %v3526_v5 = vmax.f32 %v3283_v3, 0.0 }
 0x3eb   : > { %v3627_v41 = vpack.c.bf16 %v3525_v40, %v3523_v7  ;;  %v12257_v40 = vld [vmem:[%s16420_s3 + $0x420] ss:$8 sps:$4 sm:$0xff]  }
 0x3ec   : > { %v3286_v6 = vpop.f32.mrb[212].mxu1  ;;  %v3628_v8 = vpack.c.bf16 %v3526_v5, %v3524_v4  ;;  %v12259_v4 = vld [vmem:[%s16420_s3 + $0x424] ss:$8 sps:$4 sm:$0xff]  }
 0x3ed   : > { %v3287_v9 = vadd.f32 %v3286_v6, %v13907_v44  ;;  %v3288_v10 = vpop.f32.mrb[213].mxu1  ;;  %5148 = vmatprep.subr.bf16.mxu1 %v12259_v4 }
 0x3ee   : > { %v3289_v13 = vadd.f32 %v3288_v10, %v13913_v45  ;;  %v3290_v14 = vpop.f32.mrb[214].mxu1  ;;  %4021 = vmatprep.mubr.bf16.mxu0 %v3628_v8  ;;  %5149 = vmatpush1.bf16.msra.mxu1 %v12257_v40 }
 0x3ef   : > { %v3291_v31 = vadd.f32 %v3290_v14, %v13907_v44  ;;  %v3292_v15 = vpop.f32.mrb[215].mxu1  ;;  %4022 = vmatmul.mubr.bf16.gmra.mrb[16].mxu0 %v3627_v41  ;;  %v3527_v11 = vmax.f32 %v3287_v9, 0.0 }
 0x3f0   : > { %v3293_v47 = vadd.f32 %v3292_v15, %v13913_v45  ;;  %v3528_v22 = vmax.f32 %v3289_v13, 0.0 }
 0x3f1   : > { %v3529_v57 = vmax.f32 %v3291_v31, 0.0 }
 0x3f2   : > { %v3530_v17 = vmax.f32 %v3293_v47, 0.0 }
 0x3f3   : > { %v3629_v58 = vpack.c.bf16 %v3529_v57, %v3527_v11 }
 0x3f4   : > { %v3296_v18 = vpop.f32.mrb[216].mxu1  ;;  %v3630_v19 = vpack.c.bf16 %v3530_v17, %v3528_v22 }
 0x3f5   : > { %v3297_v20 = vadd.f32 %v3296_v18, %v13907_v44  ;;  %v3298_v23 = vpop.f32.mrb[217].mxu1 }
 0x3f6   : > { %v3299_v24 = vadd.f32 %v3298_v23, %v13913_v45  ;;  %v3300_v28 = vpop.f32.mrb[218].mxu1  ;;  %4031 = vmatprep.mubr.bf16.mxu0 %v3630_v19 }
 0x3f7   : > { %v3301_v27 = vadd.f32 %v3300_v28, %v13907_v44  ;;  %v3302_v30 = vpop.f32.mrb[219].mxu1  ;;  %4032 = vmatmul.mubr.bf16.gmra.mrb[20].mxu0 %v3629_v58  ;;  %v3531_v34 = vmax.f32 %v3297_v20, 0.0 }
 0x3f8   : > { %v3303_v33 = vadd.f32 %v3302_v30, %v13913_v45  ;;  %v3532_v35 = vmax.f32 %v3299_v24, 0.0 }
 0x3f9   : > { %v3533_v12 = vmax.f32 %v3301_v27, 0.0 }
 0x3fa   : > { %v3534_v36 = vmax.f32 %v3303_v33, 0.0 }
 0x3fb   : > { %v3631_v59 = vpack.c.bf16 %v3533_v12, %v3531_v34  ;;  %v12260_v12 = vld [vmem:[%s16420_s3 + $0x430] ss:$8 sps:$4 sm:$0xff]  }
 0x3fc   : > { %v3306_v38 = vpop.f32.mrb[220].mxu1  ;;  %v3632_v39 = vpack.c.bf16 %v3534_v36, %v3532_v35  ;;  %v12262_v35 = vld [vmem:[%s16420_s3 + $0x434] ss:$8 sps:$4 sm:$0xff]  }
 0x3fd   : > { %v3307_v42 = vadd.f32 %v3306_v38, %v13907_v44  ;;  %v3308_v43 = vpop.f32.mrb[221].mxu1  ;;  %5150 = vmatprep.subr.bf16.mxu1 %v12262_v35 }
 0x3fe   : > { %v3309_v29 = vadd.f32 %v3308_v43, %v13913_v45  ;;  %v3310_v63 = vpop.f32.mrb[222].mxu1  ;;  %4041 = vmatprep.mubr.bf16.mxu0 %v3632_v39  ;;  %5151 = vmatpush1.bf16.msra.mxu1 %v12260_v12 }
 0x3ff   : > { %v3311_v51 = vadd.f32 %v3310_v63, %v13907_v44  ;;  %v3312_v46 = vpop.f32.mrb[223].mxu1  ;;  %4042 = vmatmul.mubr.bf16.gmra.mrb[24].mxu0 %v3631_v59  ;;  %v3535_v52 = vmax.f32 %v3307_v42, 0.0 }
 0x400   : > { %v3313_v50 = vadd.f32 %v3312_v46, %v13913_v45  ;;  %v3536_v53 = vmax.f32 %v3309_v29, 0.0 }
 0x401   : > { %v3537_v21 = vmax.f32 %v3311_v51, 0.0 }
 0x402   : > { %v3538_v54 = vmax.f32 %v3313_v50, 0.0 }
 0x403   : > { %v3633_v55 = vpack.c.bf16 %v3537_v21, %v3535_v52 }
 0x404   : > { %v3316_v60 = vpop.f32.mrb[224].mxu1  ;;  %v3634_v61 = vpack.c.bf16 %v3538_v54, %v3536_v53 }
 0x405   : > { %v3317_v62 = vadd.f32 %v3316_v60, %v13907_v44  ;;  %v3318_v0 = vpop.f32.mrb[225].mxu1 }
 0x406   : > { %v3319_v37 = vadd.f32 %v3318_v0, %v13913_v45  ;;  %v3320_v1 = vpop.f32.mrb[226].mxu1  ;;  %4051 = vmatprep.mubr.bf16.mxu0 %v3634_v61 }
 0x407   : > { %v3321_v3 = vadd.f32 %v3320_v1, %v13907_v44  ;;  %v3322_v7 = vpop.f32.mrb[227].mxu1  ;;  %4052 = vmatmul.mubr.bf16.gmra.mrb[28].mxu0 %v3633_v55  ;;  %v3539_v41 = vmax.f32 %v3317_v62, 0.0 }
 0x408   : > { %v3323_v5 = vadd.f32 %v3322_v7, %v13913_v45  ;;  %v3540_v8 = vmax.f32 %v3319_v37, 0.0 }
 0x409   : > { %v3541_v6 = vmax.f32 %v3321_v3, 0.0 }
 0x40a   : > { %v3542_v9 = vmax.f32 %v3323_v5, 0.0  ;;  %v12263_v5 = vld [vmem:[%s16420_s3 + $0x440] ss:$8 sps:$4 sm:$0xff]  }
 0x40b   : > { %v3635_v10 = vpack.c.bf16 %v3541_v6, %v3539_v41  ;;  %v12265_v41 = vld [vmem:[%s16420_s3 + $0x444] ss:$8 sps:$4 sm:$0xff]  }
 0x40c   : > { %v3326_v13 = vpop.f32.mrb[228].mxu1  ;;  %v3636_v14 = vpack.c.bf16 %v3542_v9, %v3540_v8  ;;  %5152 = vmatprep.subr.bf16.mxu1 %v12265_v41 }
 0x40d   : > { %v3327_v31 = vadd.f32 %v3326_v13, %v13907_v44  ;;  %v3328_v15 = vpop.f32.mrb[229].mxu1  ;;  %5153 = vmatpush1.bf16.msra.mxu1 %v12263_v5 }
 0x40e   : > { %v3329_v56 = vadd.f32 %v3328_v15, %v13913_v45  ;;  %v3330_v16 = vpop.f32.mrb[230].mxu1  ;;  %4061 = vmatprep.mubr.bf16.mxu0 %v3636_v14 }
 0x40f   : > { %v3331_v47 = vadd.f32 %v3330_v16, %v13907_v44  ;;  %v3332_v11 = vpop.f32.mrb[231].mxu1  ;;  %4062 = vmatmul.mubr.bf16.gmra.mrb[32].mxu0 %v3635_v10  ;;  %v3543_v22 = vmax.f32 %v3327_v31, 0.0 }
 0x410   : > { %v3333_v57 = vadd.f32 %v3332_v11, %v13913_v45  ;;  %v3544_v58 = vmax.f32 %v3329_v56, 0.0 }
 0x411   : > { %v3545_v17 = vmax.f32 %v3331_v47, 0.0 }
 0x412   : > { %v3546_v18 = vmax.f32 %v3333_v57, 0.0 }
 0x413   : > { %v3637_v19 = vpack.c.bf16 %v3545_v17, %v3543_v22 }
 0x414   : > { %v3336_v20 = vpop.f32.mrb[232].mxu1  ;;  %v3638_v23 = vpack.c.bf16 %v3546_v18, %v3544_v58 }
 0x415   : > { %v3337_v24 = vadd.f32 %v3336_v20, %v13907_v44  ;;  %v3338_v28 = vpop.f32.mrb[233].mxu1 }
 0x416   : > { %v3339_v27 = vadd.f32 %v3338_v28, %v13913_v45  ;;  %v3340_v30 = vpop.f32.mrb[234].mxu1  ;;  %4071 = vmatprep.mubr.bf16.mxu0 %v3638_v23 }
 0x417   : > { %v3341_v33 = vadd.f32 %v3340_v30, %v13907_v44  ;;  %v3342_v34 = vpop.f32.mrb[235].mxu1  ;;  %4072 = vmatmul.mubr.bf16.gmra.mrb[36].mxu0 %v3637_v19  ;;  %v3547_v59 = vmax.f32 %v3337_v24, 0.0 }
 0x418   : > { %v3343_v36 = vadd.f32 %v3342_v34, %v13913_v45  ;;  %v3548_v39 = vmax.f32 %v3339_v27, 0.0 }
 0x419   : > { %v3549_v38 = vmax.f32 %v3341_v33, 0.0 }
 0x41a   : > { %v3550_v42 = vmax.f32 %v3343_v36, 0.0  ;;  %v12266_v36 = vld [vmem:[%s16420_s3 + $0x450] ss:$8 sps:$4 sm:$0xff]  }
 0x41b   : > { %v3639_v43 = vpack.c.bf16 %v3549_v38, %v3547_v59  ;;  %v12268_v59 = vld [vmem:[%s16420_s3 + $0x454] ss:$8 sps:$4 sm:$0xff]  }
 0x41c   : > { %v3346_v29 = vpop.f32.mrb[236].mxu1  ;;  %v3640_v63 = vpack.c.bf16 %v3550_v42, %v3548_v39  ;;  %5154 = vmatprep.subr.bf16.mxu1 %v12268_v59 }
 0x41d   : > { %v3347_v51 = vadd.f32 %v3346_v29, %v13907_v44  ;;  %v3348_v46 = vpop.f32.mrb[237].mxu1  ;;  %5155 = vmatpush1.bf16.msra.mxu1 %v12266_v36 }
 0x41e   : > { %v3349_v48 = vadd.f32 %v3348_v46, %v13913_v45  ;;  %v3350_v49 = vpop.f32.mrb[238].mxu1  ;;  %4081 = vmatprep.mubr.bf16.mxu0 %v3640_v63 }
 0x41f   : > { %v3351_v50 = vadd.f32 %v3350_v49, %v13907_v44  ;;  %v3352_v52 = vpop.f32.mrb[239].mxu1  ;;  %4082 = vmatmul.mubr.bf16.gmra.mrb[40].mxu0 %v3639_v43  ;;  %v3551_v53 = vmax.f32 %v3347_v51, 0.0 }
 0x420   : > { %v3353_v21 = vadd.f32 %v3352_v52, %v13913_v45  ;;  %v3552_v55 = vmax.f32 %v3349_v48, 0.0 }
 0x421   : > { %v3553_v54 = vmax.f32 %v3351_v50, 0.0 }
 0x422   : > { %v3554_v60 = vmax.f32 %v3353_v21, 0.0 }
 0x423   : > { %v3641_v61 = vpack.c.bf16 %v3553_v54, %v3551_v53 }
 0x424   : > { %v3356_v62 = vpop.f32.mrb[240].mxu1  ;;  %v3642_v0 = vpack.c.bf16 %v3554_v60, %v3552_v55 }
 0x425   : > { %v3357_v37 = vadd.f32 %v3356_v62, %v13907_v44  ;;  %v3358_v1 = vpop.f32.mrb[241].mxu1 }
 0x426   : > { %v3359_v3 = vadd.f32 %v3358_v1, %v13913_v45  ;;  %v3360_v7 = vpop.f32.mrb[242].mxu1  ;;  %4091 = vmatprep.mubr.bf16.mxu0 %v3642_v0 }
 0x427   : > { %v3361_v40 = vadd.f32 %v3360_v7, %v13907_v44  ;;  %v3362_v4 = vpop.f32.mrb[243].mxu1  ;;  %4092 = vmatmul.mubr.bf16.gmra.mrb[44].mxu0 %v3641_v61  ;;  %v3555_v8 = vmax.f32 %v3357_v37, 0.0 }
 0x428   : > { %v3363_v6 = vadd.f32 %v3362_v4, %v13913_v45  ;;  %v3556_v10 = vmax.f32 %v3359_v3, 0.0 }
 0x429   : > { %v3557_v9 = vmax.f32 %v3361_v40, 0.0 }
 0x42a   : > { %v3558_v13 = vmax.f32 %v3363_v6, 0.0  ;;  %v12269_v6 = vld [vmem:[%s16420_s3 + $0x460] ss:$8 sps:$4 sm:$0xff]  }
 0x42b   : > { %v3643_v14 = vpack.c.bf16 %v3557_v9, %v3555_v8  ;;  %v12271_v8 = vld [vmem:[%s16420_s3 + $0x464] ss:$8 sps:$4 sm:$0xff]  }
 0x42c   : > { %v3366_v31 = vpop.f32.mrb[244].mxu1  ;;  %v3644_v15 = vpack.c.bf16 %v3558_v13, %v3556_v10  ;;  %5156 = vmatprep.subr.bf16.mxu1 %v12271_v8 }
 0x42d   : > { %v3367_v56 = vadd.f32 %v3366_v31, %v13907_v44  ;;  %v3368_v16 = vpop.f32.mrb[245].mxu1  ;;  %5157 = vmatpush1.bf16.msra.mxu1 %v12269_v6 }
 0x42e   : > { %v3369_v47 = vadd.f32 %v3368_v16, %v13913_v45  ;;  %v3370_v11 = vpop.f32.mrb[246].mxu1  ;;  %4101 = vmatprep.mubr.bf16.mxu0 %v3644_v15 }
 0x42f   : > { %v3371_v57 = vadd.f32 %v3370_v11, %v13907_v44  ;;  %v3372_v22 = vpop.f32.mrb[247].mxu1  ;;  %4102 = vmatmul.mubr.bf16.gmra.mrb[48].mxu0 %v3643_v14  ;;  %v3559_v58 = vmax.f32 %v3367_v56, 0.0 }
 0x430   : > { %v3373_v17 = vadd.f32 %v3372_v22, %v13913_v45  ;;  %v3560_v19 = vmax.f32 %v3369_v47, 0.0 }
 0x431   : > { %v3561_v18 = vmax.f32 %v3371_v57, 0.0 }
 0x432   : > { %v3562_v20 = vmax.f32 %v3373_v17, 0.0 }
 0x433   : > { %v3645_v23 = vpack.c.bf16 %v3561_v18, %v3559_v58 }
 0x434   : > { %v3376_v24 = vpop.f32.mrb[248].mxu1  ;;  %v3646_v28 = vpack.c.bf16 %v3562_v20, %v3560_v19 }
 0x435   : > { %v3377_v27 = vadd.f32 %v3376_v24, %v13907_v44  ;;  %v3378_v30 = vpop.f32.mrb[249].mxu1 }
 0x436   : > { %v3379_v33 = vadd.f32 %v3378_v30, %v13913_v45  ;;  %v3380_v34 = vpop.f32.mrb[250].mxu1  ;;  %4111 = vmatprep.mubr.bf16.mxu0 %v3646_v28 }
 0x437   : > { %v3381_v12 = vadd.f32 %v3380_v34, %v13907_v44  ;;  %v3382_v35 = vpop.f32.mrb[251].mxu1  ;;  %4112 = vmatmul.mubr.bf16.gmra.mrb[52].mxu0 %v3645_v23  ;;  %v3563_v39 = vmax.f32 %v3377_v27, 0.0 }
 0x438   : > { %v3383_v38 = vadd.f32 %v3382_v35, %v13913_v45  ;;  %v3564_v43 = vmax.f32 %v3379_v33, 0.0 }
 0x439   : > { %v3565_v42 = vmax.f32 %v3381_v12, 0.0 }
 0x43a   : > { %v3566_v29 = vmax.f32 %v3383_v38, 0.0  ;;  %v12272_v38 = vld [vmem:[%s16420_s3 + $0x470] ss:$8 sps:$4 sm:$0xff]  }
 0x43b   : > { %v3647_v63 = vpack.c.bf16 %v3565_v42, %v3563_v39  ;;  %v12274_v39 = vld [vmem:[%s16420_s3 + $0x474] ss:$8 sps:$4 sm:$0xff]  }
 0x43c   : > { %v3386_v51 = vpop.f32.mrb[252].mxu1  ;;  %v3648_v46 = vpack.c.bf16 %v3566_v29, %v3564_v43  ;;  %5158 = vmatprep.subr.bf16.mxu1 %v12274_v39 }
 0x43d   : > { %v3387_v48 = vadd.f32 %v3386_v51, %v13907_v44  ;;  %v3388_v49 = vpop.f32.mrb[253].mxu1  ;;  %5159 = vmatpush1.bf16.msra.mxu1 %v12272_v38 }
 0x43e   : > { %v3389_v50 = vadd.f32 %v3388_v49, %v13913_v45  ;;  %v3390_v52 = vpop.f32.mrb[254].mxu1  ;;  %4121 = vmatprep.mubr.bf16.mxu0 %v3648_v46 }
 0x43f   : > { %v3391_v21 = vadd.f32 %v3390_v52, %v13907_v44  ;;  %v3392_v53 = vpop.f32.mrb[255].mxu1  ;;  %4122 = vmatmul.mubr.bf16.gmra.mrb[56].mxu0 %v3647_v63  ;;  %v3567_v55 = vmax.f32 %v3387_v48, 0.0 }
 0x440   : > { %v3393_v54 = vadd.f32 %v3392_v53, %v13913_v45  ;;  %v3568_v61 = vmax.f32 %v3389_v50, 0.0 }
 0x441   : > { %v3569_v60 = vmax.f32 %v3391_v21, 0.0 }
 0x442   : > { %v3570_v62 = vmax.f32 %v3393_v54, 0.0 }
 0x443   : > { %v3649_v0 = vpack.c.bf16 %v3569_v60, %v3567_v55 }
 0x444   : > { %v3396_v37 = vpop.f32.mrb[0].mxu1  ;;  %v3650_v1 = vpack.c.bf16 %v3570_v62, %v3568_v61 }
 0x445   : > { %v3397_v3 = vadd.f32 %v3396_v37, %v13907_v44  ;;  %v3398_v7 = vpop.f32.mrb[1].mxu1 }
 0x446   : > { %v3399_v40 = vadd.f32 %v3398_v7, %v13913_v45  ;;  %v3400_v4 = vpop.f32.mrb[2].mxu1  ;;  %4131 = vmatprep.mubr.bf16.mxu0 %v3650_v1 }
 0x447   : > { %v3401_v5 = vadd.f32 %v3400_v4, %v13907_v44  ;;  %v3402_v41 = vpop.f32.mrb[3].mxu1  ;;  %4132 = vmatmul.mubr.bf16.gmra.mrb[60].mxu0 %v3649_v0  ;;  %v3571_v10 = vmax.f32 %v3397_v3, 0.0 }
 0x448   : > { %v3403_v9 = vadd.f32 %v3402_v41, %v13913_v45  ;;  %v3572_v14 = vmax.f32 %v3399_v40, 0.0 }
 0x449   : > { %v3573_v13 = vmax.f32 %v3401_v5, 0.0 }
 0x44a   : > { %v3574_v31 = vmax.f32 %v3403_v9, 0.0  ;;  %v12275_v9 = vld [vmem:[%s16420_s3 + $0x480] ss:$8 sps:$4 sm:$0xff]  }
 0x44b   : > { %v3651_v15 = vpack.c.bf16 %v3573_v13, %v3571_v10  ;;  %v12277_v10 = vld [vmem:[%s16420_s3 + $0x484] ss:$8 sps:$4 sm:$0xff]  }
 0x44c   : > { %v3406_v56 = vpop.f32.mrb[4].mxu1  ;;  %v3652_v16 = vpack.c.bf16 %v3574_v31, %v3572_v14  ;;  %5160 = vmatprep.subr.bf16.mxu1 %v12277_v10  ;;  %v12287_v10 = vld [vmem:[%s16420_s3 + $0x4c0] ss:$8 sps:$4 sm:$0xff]  }
 0x44d   : > { %v3407_v47 = vadd.f32 %v3406_v56, %v13907_v44  ;;  %v3408_v11 = vpop.f32.mrb[5].mxu1  ;;  %5161 = vmatpush1.bf16.msra.mxu1 %v12275_v9  ;;  %v12805_v9 = vld [vmem:[%s12953_s19 + $0x18] sm:$0xff]  }
 0x44e   : > { %v3409_v57 = vadd.f32 %v3408_v11, %v13913_v45  ;;  %v3410_v22 = vpop.f32.mrb[6].mxu1  ;;  %4141 = vmatprep.mubr.bf16.mxu0 %v3652_v16 }
 0x44f   : > { %v3411_v17 = vadd.f32 %v3410_v22, %v13907_v44  ;;  %v3412_v58 = vpop.f32.mrb[7].mxu1  ;;  %4142 = vmatmul.mubr.bf16.gmra.mrb[64].mxu0 %v3651_v15  ;;  %v3575_v19 = vmax.f32 %v3407_v47, 0.0 }
 0x450   : > { %v3413_v18 = vadd.f32 %v3412_v58, %v13913_v45  ;;  %v3576_v23 = vmax.f32 %v3409_v57, 0.0 }
 0x451   : > { %v3577_v20 = vmax.f32 %v3411_v17, 0.0 }
 0x452   : > { %v3578_v24 = vmax.f32 %v3413_v18, 0.0 }
 0x453   : > { %v3653_v28 = vpack.c.bf16 %v3577_v20, %v3575_v19 }
 0x454   : > { %v3416_v27 = vpop.f32.mrb[8].mxu1  ;;  %v3654_v30 = vpack.c.bf16 %v3578_v24, %v3576_v23 }
 0x455   : > { %v3417_v33 = vadd.f32 %v3416_v27, %v13907_v44  ;;  %v3418_v34 = vpop.f32.mrb[9].mxu1 }
 0x456   : > { %v3419_v12 = vadd.f32 %v3418_v34, %v13913_v45  ;;  %v3420_v35 = vpop.f32.mrb[10].mxu1  ;;  %4151 = vmatprep.mubr.bf16.mxu0 %v3654_v30 }
 0x457   : > { %v3421_v36 = vadd.f32 %v3420_v35, %v13907_v44  ;;  %v3422_v59 = vpop.f32.mrb[11].mxu1  ;;  %4152 = vmatmul.mubr.bf16.gmra.mrb[68].mxu0 %v3653_v28  ;;  %v3579_v43 = vmax.f32 %v3417_v33, 0.0 }
 0x458   : > { %v3423_v42 = vadd.f32 %v3422_v59, %v13913_v45  ;;  %v3580_v63 = vmax.f32 %v3419_v12, 0.0 }
 0x459   : > { %v3581_v29 = vmax.f32 %v3421_v36, 0.0 }
 0x45a   : > { %v3582_v51 = vmax.f32 %v3423_v42, 0.0  ;;  %v12278_v42 = vld [vmem:[%s16420_s3 + $0x490] ss:$8 sps:$4 sm:$0xff]  }
 0x45b   : > { %v3655_v46 = vpack.c.bf16 %v3581_v29, %v3579_v43  ;;  %v12280_v43 = vld [vmem:[%s16420_s3 + $0x494] ss:$8 sps:$4 sm:$0xff]  }
 0x45c   : > { %v3426_v48 = vpop.f32.mrb[12].mxu1  ;;  %v3656_v49 = vpack.c.bf16 %v3582_v51, %v3580_v63  ;;  %5162 = vmatprep.subr.bf16.mxu1 %v12280_v43  ;;  %v12827_v43 = vld [vmem:[%s12953_s19 + $0xc8] sm:$0xff]  }
 0x45d   : > { %v3427_v50 = vadd.f32 %v3426_v48, %v13907_v44  ;;  %v3428_v52 = vpop.f32.mrb[13].mxu1  ;;  %5163 = vmatpush1.bf16.msra.mxu1 %v12278_v42  ;;  %v12826_v42 = vld [vmem:[%s12953_s19 + $0xc0] sm:$0xff]  }
 0x45e   : > { %v3429_v21 = vadd.f32 %v3428_v52, %v13913_v45  ;;  %v3430_v53 = vpop.f32.mrb[14].mxu1  ;;  %4161 = vmatprep.mubr.bf16.mxu0 %v3656_v49 }
 0x45f   : > { %v3431_v54 = vadd.f32 %v3430_v53, %v13907_v44  ;;  %v3432_v55 = vpop.f32.mrb[15].mxu1  ;;  %4162 = vmatmul.mubr.bf16.gmra.mrb[72].mxu0 %v3655_v46  ;;  %v3583_v61 = vmax.f32 %v3427_v50, 0.0 }
 0x460   : > { %v3433_v60 = vadd.f32 %v3432_v55, %v13913_v45  ;;  %v3584_v0 = vmax.f32 %v3429_v21, 0.0 }
 0x461   : > { %v3585_v62 = vmax.f32 %v3431_v54, 0.0 }
 0x462   : > { %v3586_v37 = vmax.f32 %v3433_v60, 0.0 }
 0x463   : > { %v3657_v1 = vpack.c.bf16 %v3585_v62, %v3583_v61 }
 0x464   : > { %v3436_v3 = vpop.f32.mrb[16].mxu1  ;;  %v3658_v7 = vpack.c.bf16 %v3586_v37, %v3584_v0 }
 0x465   : > { %v3437_v40 = vadd.f32 %v3436_v3, %v13907_v44  ;;  %v3438_v4 = vpop.f32.mrb[17].mxu1 }
 0x466   : > { %v3439_v5 = vadd.f32 %v3438_v4, %v13913_v45  ;;  %v3440_v41 = vpop.f32.mrb[18].mxu1  ;;  %4171 = vmatprep.mubr.bf16.mxu0 %v3658_v7  ;;  %v12281_v4 = vld [vmem:[%s16420_s3 + $0x4a0] ss:$8 sps:$4 sm:$0xff]  }
 0x467   : > { %v3441_v6 = vadd.f32 %v3440_v41, %v13907_v44  ;;  %v3442_v8 = vpop.f32.mrb[19].mxu1  ;;  %4172 = vmatmul.mubr.bf16.gmra.mrb[76].mxu0 %v3657_v1  ;;  %v3587_v14 = vmax.f32 %v3437_v40, 0.0  ;;  %v12284_v41 = vld [vmem:[%s16420_s3 + $0x4b0] ss:$8 sps:$4 sm:$0xff]  }
 0x468   : > { %v3443_v13 = vadd.f32 %v3442_v8, %v13913_v45  ;;  %v3588_v15 = vmax.f32 %v3439_v5, 0.0  ;;  %v12803_v5 = vld [vmem:[%s12953_s19 + $0x8] sm:$0xff]   ;;  %v12804_v8 = vld [vmem:[%s12953_s19 + $0x10] sm:$0xff]  }
 0x469   : > { %v3589_v31 = vmax.f32 %v3441_v6, 0.0  ;;  %v12286_v6 = vld [vmem:[%s16420_s3 + $0x4b4] ss:$8 sps:$4 sm:$0xff]  }
 0x46a   : > { %v3590_v56 = vmax.f32 %v3443_v13, 0.0  ;;  %v12289_v13 = vld [vmem:[%s16420_s3 + $0x4c4] ss:$8 sps:$4 sm:$0xff]  }
 0x46b   : > { %v3659_v16 = vpack.c.bf16 %v3589_v31, %v3587_v14  ;;  %v12806_v14 = vld [vmem:[%s12953_s19 + $0x20] sm:$0xff]   ;;  %v12807_v31 = vld [vmem:[%s12953_s19 + $0x28] sm:$0xff]  }
 0x46c   : > { %v3446_v47 = vpop.f32.mrb[20].mxu1  ;;  %v3660_v11 = vpack.c.bf16 %v3590_v56, %v3588_v15  ;;  %v12290_v15 = vld [vmem:[%s16420_s3 + $0x4d0] ss:$8 sps:$4 sm:$0xff]   ;;  %v12292_v56 = vld [vmem:[%s16420_s3 + $0x4d4] ss:$8 sps:$4 sm:$0xff]  }
 0x46d   : > { %v3447_v57 = vadd.f32 %v3446_v47, %v13907_v44  ;;  %v3448_v22 = vpop.f32.mrb[21].mxu1  ;;  %v12809_v47 = vld [vmem:[%s12953_s19 + $0x38] sm:$0xff]  }
 0x46e   : > { %v3449_v17 = vadd.f32 %v3448_v22, %v13913_v45  ;;  %v3450_v58 = vpop.f32.mrb[22].mxu1  ;;  %4181 = vmatprep.mubr.bf16.mxu0 %v3660_v11  ;;  %v12293_v11 = vld [vmem:[%s16420_s3 + $0x4e0] ss:$8 sps:$4 sm:$0xff]  }
 0x46f   : > { %v3451_v18 = vadd.f32 %v3450_v58, %v13907_v44  ;;  %v3452_v19 = vpop.f32.mrb[23].mxu1  ;;  %4182 = vmatmul.mubr.bf16.gmra.mrb[80].mxu0 %v3659_v16  ;;  %v3591_v23 = vmax.f32 %v3447_v57, 0.0  ;;  %v12808_v16 = vld [vmem:[%s12953_s19 + $0x30] sm:$0xff]   ;;  %v12295_v57 = vld [vmem:[%s16420_s3 + $0x4e4] ss:$8 sps:$4 sm:$0xff]  }
 0x470   : > { %v3453_v20 = vadd.f32 %v3452_v19, %v13913_v45  ;;  %v3592_v28 = vmax.f32 %v3449_v17, 0.0  ;;  %v12810_v22 = vld [vmem:[%s12953_s19 + $0x40] sm:$0xff]   ;;  %v12811_v17 = vld [vmem:[%s12953_s19 + $0x48] sm:$0xff]   ;;  %v12296_v58 = vld [vmem:[%s16420_s3 + $0x4f0] ss:$8 sps:$4 sm:$0xff]  }
 0x471   : > { %v3593_v24 = vmax.f32 %v3451_v18, 0.0  ;;  %v12298_v18 = vld [vmem:[%s16420_s3 + $0x4f4] ss:$8 sps:$4 sm:$0xff]  }
 0x472   : > { %v3594_v27 = vmax.f32 %v3453_v20, 0.0  ;;  %v12812_v19 = vld [vmem:[%s12953_s19 + $0x50] sm:$0xff]   ;;  %v12813_v20 = vld [vmem:[%s12953_s19 + $0x58] sm:$0xff]  }
 0x473   : > { %v3661_v30 = vpack.c.bf16 %v3593_v24, %v3591_v23  ;;  %v12814_v23 = vld [vmem:[%s12953_s19 + $0x60] sm:$0xff]  }
 0x474   : > { %v3456_v33 = vpop.f32.mrb[24].mxu1  ;;  %v3662_v34 = vpack.c.bf16 %v3594_v27, %v3592_v28  ;;  %v12301_v24 = vld [vmem:[%s16420_s3 + $0x504] ss:$8 sps:$4 sm:$0xff]   ;;  %v12816_v27 = vld [vmem:[%s12953_s19 + $0x70] sm:$0xff]  }
 0x475   : > { %v3457_v12 = vadd.f32 %v3456_v33, %v13907_v44  ;;  %v3458_v35 = vpop.f32.mrb[25].mxu1  ;;  %v12815_v28 = vld [vmem:[%s12953_s19 + $0x68] sm:$0xff]   ;;  %v12818_v33 = vld [vmem:[%s12953_s19 + $0x80] sm:$0xff]  }
 0x476   : > { %v3459_v36 = vadd.f32 %v3458_v35, %v13913_v45  ;;  %v3460_v59 = vpop.f32.mrb[26].mxu1  ;;  %4191 = vmatprep.mubr.bf16.mxu0 %v3662_v34  ;;  %v12819_v34 = vld [vmem:[%s12953_s19 + $0x88] sm:$0xff]   ;;  %v12821_v35 = vld [vmem:[%s12953_s19 + $0x98] sm:$0xff]  }
 0x477   : > { %v3461_v38 = vadd.f32 %v3460_v59, %v13907_v44  ;;  %v3462_v39 = vpop.f32.mrb[27].mxu1  ;;  %4192 = vmatmul.mubr.bf16.gmra.mrb[84].mxu0 %v3661_v30  ;;  %v3595_v63 = vmax.f32 %v3457_v12, 0.0  ;;  %v12817_v30 = vld [vmem:[%s12953_s19 + $0x78] sm:$0xff]   ;;  %v12820_v12 = vld [vmem:[%s12953_s19 + $0x90] sm:$0xff]   ;;  %v12823_v59 = vld [vmem:[%s12953_s19 + $0xa8] sm:$0xff]  }
 0x478   : > { %v3463_v29 = vadd.f32 %v3462_v39, %v13913_v45  ;;  %v3596_v46 = vmax.f32 %v3459_v36, 0.0  ;;  %v12822_v36 = vld [vmem:[%s12953_s19 + $0xa0] sm:$0xff]   ;;  %v12825_v39 = vld [vmem:[%s12953_s19 + $0xb8] sm:$0xff]  }
 0x479   : > { %v3597_v51 = vmax.f32 %v3461_v38, 0.0  ;;  %v12824_v38 = vld [vmem:[%s12953_s19 + $0xb0] sm:$0xff]  }
 0x47a   : > { %v3598_v48 = vmax.f32 %v3463_v29, 0.0  ;;  %v4617_v29 = vsub.s32 4, %v13196_v25 }
 0x47b   : > { %v3663_v49 = vpack.c.bf16 %v3597_v51, %v3595_v63  ;;  %v12828_v63 = vld [vmem:[%s12953_s19 + $0xd0] sm:$0xff]   ;;  %v12829_v51 = vld [vmem:[%s16421_s4] sm:$0xff] }
 0x47c   : > { %v3466_v50 = vpop.f32.mrb[28].mxu1  ;;  %v3664_v52 = vpack.c.bf16 %v3598_v48, %v3596_v46  ;;  %v14264_v46 = vrot.slane %v12829_v51, %v4617_v29  ;;  %v12830_v48 = vld [vmem:[%s16421_s4 + $0x8] sm:$0xff] }
 0x47d   : > { %v3467_v21 = vadd.f32 %v3466_v50, %v13907_v44  ;;  %v3468_v53 = vpop.f32.mrb[29].mxu1 }
 0x47e   : > { %v3469_v54 = vadd.f32 %v3468_v53, %v13913_v45  ;;  %v3470_v55 = vpop.f32.mrb[30].mxu1  ;;  %4201 = vmatprep.mubr.bf16.mxu0 %v3664_v52 }
 0x47f   : > { %v3471_v60 = vadd.f32 %v3470_v55, %v13907_v44  ;;  %v3472_v61 = vpop.f32.mrb[31].mxu1  ;;  %4202 = vmatmul.mubr.bf16.gmra.mrb[88].mxu0 %v3663_v49  ;;  %v3599_v0 = vmax.f32 %v3467_v21, 0.0  ;;  %v12283_v44 = vld [vmem:[%s16420_s3 + $0x4a4] ss:$8 sps:$4 sm:$0xff]   ;;  %v14269_v49 = vrot.slane %v12830_v48, %v4617_v29  ;;  %v12311_v29 = vld [vmem:[%s16420_s3 + $0x540] ss:$8 sps:$4 sm:$0xff]  }
 0x480   : > { %v3473_v62 = vadd.f32 %v3472_v61, %v13913_v45  ;;  %v3600_v1 = vmax.f32 %v3469_v54, 0.0  ;;  %5164 = vmatprep.subr.bf16.mxu1 %v12283_v44  ;;  %v12802_v45 = vld [vmem:[%s12953_s19] sm:$0xff]   ;;  %v12316_v48 = vld [vmem:[%s16420_s3 + $0x554] ss:$8 sps:$4 sm:$0xff]  }
 0x481   : > { %v3601_v37 = vmax.f32 %v3471_v60, 0.0  ;;  %5165 = vmatpush1.bf16.msra.mxu1 %v12281_v4  ;;  %v12299_v44 = vld [vmem:[%s16420_s3 + $0x500] ss:$8 sps:$4 sm:$0xff]  }
 0x482   : > { %v3602_v3 = vmax.f32 %v3473_v62, 0.0  ;;  %5166 = vmatprep.subr.bf16.mxu1 %v12286_v6 }
 0x483   : > { %v3665_v7 = vpack.c.bf16 %v3601_v37, %v3599_v0  ;;  %v12831_v37 = vld [vmem:[%s12953_s19 + $0xd8] sm:$0xff]  }
 0x484   : > { %v3666_v40 = vpack.c.bf16 %v3602_v3, %v3600_v1 }
 0x485   : > { %5167 = vmatpush1.bf16.msra.mxu1 %v12284_v41  ;;  %v12304_v41 = vld [vmem:[%s16420_s3 + $0x514] ss:$8 sps:$4 sm:$0xff]  }
 0x486   : > { %4211 = vmatprep.mubr.bf16.mxu0 %v3666_v40  ;;  %5168 = vmatprep.subr.bf16.mxu1 %v12289_v13 }
 0x487   : > { %4212 = vmatmul.mubr.bf16.gmra.mrb[92].mxu0 %v3665_v7 }
 0x488   : > { %4294 = vmatprep.mubr.bf16.mxu0 %v12853_v2 }
 0x489   : > { %5169 = vmatpush1.bf16.msra.mxu1 %v12287_v10 }
 0x48a   : > { %5170 = vmatprep.subr.bf16.mxu1 %v12292_v56  ;;  %v12832_v56 = vld [vmem:[%s12953_s19 + $0xe0] sm:$0xff]  }
 0x48d   : > { %5171 = vmatpush1.bf16.msra.mxu1 %v12290_v15 }
 0x48e   : > { %5172 = vmatprep.subr.bf16.mxu1 %v12295_v57 }
 0x48f   : > { %11047 = vmatmul.mubr.msk.bf16.vlgmr.msra.gmra.mrb[224].mxu0 %vm788_vm0, %v12802_v45 }
 0x490   : > { %4304 = vmatprep.mubr.bf16.mxu0 %v12853_v2 }
 0x491   : > { %5173 = vmatpush1.bf16.msra.mxu1 %v12293_v11 }
 0x492   : > { %5174 = vmatprep.subr.bf16.mxu1 %v12298_v18 }
 0x495   : > { %5175 = vmatpush1.bf16.msra.mxu1 %v12296_v58  ;;  %v12305_v58 = vld [vmem:[%s16420_s3 + $0x520] ss:$8 sps:$4 sm:$0xff]  }
 0x496   : > { %5890 = vmatprep.subr.bf16.mxu1 %v12301_v24 }
 0x497   : > { %11048 = vmatmul.mubr.msk.bf16.gmra.mrb[228].mxu0 %vm788_vm0, %v12803_v5 }
 0x498   : > { %4314 = vmatprep.mubr.bf16.mxu0 %v12853_v2 }
 0x49f   : > { %11049 = vmatmul.mubr.msk.bf16.gmra.mrb[232].mxu0 %vm788_vm0, %v12804_v8 }
 0x4a0   : > { %4324 = vmatprep.mubr.bf16.mxu0 %v12853_v2 }
 0x4a7   : > { %11050 = vmatmul.mubr.msk.bf16.gmra.mrb[236].mxu0 %vm788_vm0, %v12805_v9 }
 0x4a8   : > { %4334 = vmatprep.mubr.bf16.mxu0 %v12853_v2 }
 0x4af   : > { %11051 = vmatmul.mubr.msk.bf16.gmra.mrb[240].mxu0 %vm788_vm0, %v12806_v14  ;;  %v12302_v14 = vld [vmem:[%s16420_s3 + $0x510] ss:$8 sps:$4 sm:$0xff]  }
 0x4b0   : > { %4344 = vmatprep.mubr.bf16.mxu0 %v12853_v2 }
 0x4b7   : > { %11052 = vmatmul.mubr.msk.bf16.gmra.mrb[244].mxu0 %vm788_vm0, %v12807_v31 }
 0x4b8   : > { %4354 = vmatprep.mubr.bf16.mxu0 %v12853_v2 }
 0x4bf   : > { %11053 = vmatmul.mubr.msk.bf16.gmra.mrb[248].mxu0 %vm788_vm0, %v12808_v16  ;;  %v12307_v16 = vld [vmem:[%s16420_s3 + $0x524] ss:$8 sps:$4 sm:$0xff]  }
 0x4c0   : > { %4364 = vmatprep.mubr.bf16.mxu0 %v12853_v2 }
 0x4c7   : > { %11054 = vmatmul.mubr.msk.bf16.gmra.mrb[252].mxu0 %vm788_vm0, %v12809_v47 }
 0x4c8   : > { %4374 = vmatprep.mubr.bf16.mxu0 %v12853_v2 }
 0x4cf   : > { %11055 = vmatmul.mubr.msk.bf16.gmra.mrb[0].mxu0 %vm788_vm0, %v12810_v22 }
 0x4d0   : > { %4384 = vmatprep.mubr.bf16.mxu0 %v12853_v2 }
 0x4d7   : > { %11056 = vmatmul.mubr.msk.bf16.gmra.mrb[4].mxu0 %vm788_vm0, %v12811_v17 }
 0x4d8   : > { %4394 = vmatprep.mubr.bf16.mxu0 %v12853_v2 }
 0x4df   : > { %11057 = vmatmul.mubr.msk.bf16.gmra.mrb[8].mxu0 %vm788_vm0, %v12812_v19 }
 0x4e0   : > { %4404 = vmatprep.mubr.bf16.mxu0 %v12853_v2 }
 0x4e7   : > { %11058 = vmatmul.mubr.msk.bf16.gmra.mrb[12].mxu0 %vm788_vm0, %v12813_v20  ;;  %v12310_v20 = vld [vmem:[%s16420_s3 + $0x534] ss:$8 sps:$4 sm:$0xff]  }
 0x4e8   : > { %4414 = vmatprep.mubr.bf16.mxu0 %v12853_v2 }
 0x4ef   : > { %11059 = vmatmul.mubr.msk.bf16.gmra.mrb[16].mxu0 %vm788_vm0, %v12814_v23 }
 0x4f0   : > { %4424 = vmatprep.mubr.bf16.mxu0 %v12853_v2 }
 0x4f7   : > { %11060 = vmatmul.mubr.msk.bf16.gmra.mrb[20].mxu0 %vm788_vm0, %v12815_v28 }
 0x4f8   : > { %4434 = vmatprep.mubr.bf16.mxu0 %v12853_v2 }
 0x4ff   : > { %11061 = vmatmul.mubr.msk.bf16.gmra.mrb[24].mxu0 %vm788_vm0, %v12816_v27 }
 0x500   : > { %4444 = vmatprep.mubr.bf16.mxu0 %v12853_v2 }
 0x507   : > { %11062 = vmatmul.mubr.msk.bf16.gmra.mrb[28].mxu0 %vm788_vm0, %v12817_v30 }
 0x508   : > { %4454 = vmatprep.mubr.bf16.mxu0 %v12853_v2 }
 0x50f   : > { %11063 = vmatmul.mubr.msk.bf16.gmra.mrb[32].mxu0 %vm788_vm0, %v12818_v33  ;;  %v12308_v33 = vld [vmem:[%s16420_s3 + $0x530] ss:$8 sps:$4 sm:$0xff]  }
 0x510   : > { %4464 = vmatprep.mubr.bf16.mxu0 %v12853_v2 }
 0x517   : > { %11064 = vmatmul.mubr.msk.bf16.gmra.mrb[36].mxu0 %vm788_vm0, %v12819_v34 }
 0x518   : > { %4474 = vmatprep.mubr.bf16.mxu0 %v12853_v2 }
 0x51f   : > { %11065 = vmatmul.mubr.msk.bf16.gmra.mrb[40].mxu0 %vm788_vm0, %v12820_v12 }
 0x520   : > { %4484 = vmatprep.mubr.bf16.mxu0 %v12853_v2 }
 0x527   : > { %11066 = vmatmul.mubr.msk.bf16.gmra.mrb[44].mxu0 %vm788_vm0, %v12821_v35  ;;  %v12833_v35 = vld [vmem:[%s12953_s19 + $0xe8] sm:$0xff]  }
 0x528   : > { %4494 = vmatprep.mubr.bf16.mxu0 %v12853_v2 }
 0x52f   : > { %11067 = vmatmul.mubr.msk.bf16.gmra.mrb[48].mxu0 %vm788_vm0, %v12822_v36  ;;  %v12313_v36 = vld [vmem:[%s16420_s3 + $0x544] ss:$8 sps:$4 sm:$0xff]  }
 0x530   : > { %4504 = vmatprep.mubr.bf16.mxu0 %v12853_v2 }
 0x537   : > { %11068 = vmatmul.mubr.msk.bf16.gmra.mrb[52].mxu0 %vm788_vm0, %v12823_v59 }
 0x538   : > { %4514 = vmatprep.mubr.bf16.mxu0 %v12853_v2 }
 0x53f   : > { %11069 = vmatmul.mubr.msk.bf16.gmra.mrb[56].mxu0 %vm788_vm0, %v12824_v38 }
 0x540   : > { %4524 = vmatprep.mubr.bf16.mxu0 %v12853_v2 }
 0x547   : > { %11070 = vmatmul.mubr.msk.bf16.gmra.mrb[60].mxu0 %vm788_vm0, %v12825_v39 }
 0x548   : > { %4534 = vmatprep.mubr.bf16.mxu0 %v12853_v2 }
 0x54f   : > { %11071 = vmatmul.mubr.msk.bf16.gmra.mrb[64].mxu0 %vm788_vm0, %v12826_v42 }
 0x550   : > { %4544 = vmatprep.mubr.bf16.mxu0 %v12853_v2 }
 0x557   : > { %11072 = vmatmul.mubr.msk.bf16.gmra.mrb[68].mxu0 %vm788_vm0, %v12827_v43 }
 0x558   : > { %4554 = vmatprep.mubr.bf16.mxu0 %v12853_v2 }
 0x55f   : > { %11073 = vmatmul.mubr.msk.bf16.gmra.mrb[72].mxu0 %vm788_vm0, %v12828_v63 }
 0x560   : > { %4564 = vmatprep.mubr.bf16.mxu0 %v12853_v2 }
 0x562   : > { %v4296_v50 = vpop.f32.mrb[224].mxu0 }
 0x563   : > { %v4623_v52 = vadd.f32 %v14264_v46, %v4296_v50  ;;  %v4298_v21 = vpop.f32.mrb[225].mxu0 }
 0x564   : > { %v4624_v53 = vadd.f32 %v14269_v49, %v4298_v21  ;;  %v4300_v54 = vpop.f32.mrb[226].mxu0 }
 0x565   : > { %v4625_v55 = vadd.f32 %v14264_v46, %v4300_v54  ;;  %v4302_v60 = vpop.f32.mrb[227].mxu0  ;;  %v4751_v62 = vmax.f32 %v4623_v52, 0.0 }
 0x566   : > { %v4626_v61 = vadd.f32 %v14269_v49, %v4302_v60  ;;  %v4752_v1 = vmax.f32 %v4624_v53, 0.0 }
 0x567   : > { %v4753_v0 = vmax.f32 %v4625_v55, 0.0  ;;  %11074 = vmatmul.mubr.msk.bf16.gmra.mrb[76].mxu0 %vm788_vm0, %v12831_v37  ;;  %v12314_v55 = vld [vmem:[%s16420_s3 + $0x550] ss:$8 sps:$4 sm:$0xff]  }
 0x568   : > { %v4754_v3 = vmax.f32 %v4626_v61, 0.0  ;;  %4574 = vmatprep.mubr.bf16.mxu0 %v12853_v2 }
 0x569   : > { %v4879_v7 = vpack.c.bf16 %v4753_v0, %v4751_v62  ;;  %v12834_v62 = vld [vmem:[%s12953_s19 + $0xf0] sm:$0xff]   ;;  %v12319_v0 = vld [vmem:[%s16420_s3 + $0x564] ss:$8 sps:$4 sm:$0xff]  }
 0x56a   : > { %v4306_v40 = vpop.f32.mrb[228].mxu0  ;;  %v4880_v4 = vpack.c.bf16 %v4754_v3, %v4752_v1 }
 0x56b   : > { %v4627_v45 = vadd.f32 %v14264_v46, %v4306_v40  ;;  %v4308_v5 = vpop.f32.mrb[229].mxu0 }
 0x56c   : > { %v4628_v6 = vadd.f32 %v14269_v49, %v4308_v5  ;;  %v4310_v8 = vpop.f32.mrb[230].mxu0  ;;  %5176 = vmatprep.mubr.bf16.mxu1 %v4880_v4  ;;  %v12317_v4 = vld [vmem:[%s16420_s3 + $0x560] ss:$8 sps:$4 sm:$0xff]   ;;  %v12322_v5 = vld [vmem:[%s16420_s3 + $0x574] ss:$8 sps:$4 sm:$0xff]  }
 0x56d   : > { %v4629_v9 = vadd.f32 %v14264_v46, %v4310_v8  ;;  %v4312_v10 = vpop.f32.mrb[231].mxu0  ;;  %5177 = vmatmul.mubr.bf16.vlgmr.msra.gmra.mrb[32].mxu1 %v4879_v7  ;;  %v4755_v31 = vmax.f32 %v4627_v45, 0.0 }
 0x56e   : > { %v4630_v13 = vadd.f32 %v14269_v49, %v4312_v10  ;;  %5891 = vmatpush1.bf16.msra.mxu1 %v12299_v44  ;;  %v4756_v47 = vmax.f32 %v4628_v6, 0.0  ;;  %v12320_v10 = vld [vmem:[%s16420_s3 + $0x570] ss:$8 sps:$4 sm:$0xff]  }
 0x56f   : > { %v4757_v15 = vmax.f32 %v4629_v9, 0.0  ;;  %11075 = vmatmul.mubr.msk.bf16.gmra.mrb[80].mxu0 %vm788_vm0, %v12832_v56  ;;  %5892 = vmatprep.subr.bf16.mxu1 %v12304_v41 }
 0x570   : > { %v4758_v11 = vmax.f32 %v4630_v13, 0.0  ;;  %4584 = vmatprep.mubr.bf16.mxu0 %v12853_v2 }
 0x571   : > { %v4881_v57 = vpack.c.bf16 %v4757_v15, %v4755_v31  ;;  %v12835_v31 = vld [vmem:[%s12953_s19 + $0xf8] sm:$0xff]   ;;  %v12325_v15 = vld [vmem:[%s16420_s3 + $0x584] ss:$8 sps:$4 sm:$0xff]  }
 0x572   : > { %v4316_v22 = vpop.f32.mrb[232].mxu0  ;;  %v4882_v17 = vpack.c.bf16 %v4758_v11, %v4756_v47  ;;  %5893 = vmatpush1.bf16.msra.mxu1 %v12302_v14 }
 0x573   : > { %v4631_v18 = vadd.f32 %v14264_v46, %v4316_v22  ;;  %v4318_v19 = vpop.f32.mrb[233].mxu0  ;;  %5894 = vmatprep.subr.bf16.mxu1 %v12307_v16  ;;  %v12323_v22 = vld [vmem:[%s16420_s3 + $0x580] ss:$8 sps:$4 sm:$0xff]  }
 0x574   : > { %v4632_v23 = vadd.f32 %v14269_v49, %v4318_v19  ;;  %v4320_v24 = vpop.f32.mrb[234].mxu0  ;;  %5186 = vmatprep.mubr.bf16.mxu1 %v4882_v17 }
 0x575   : > { %v4633_v28 = vadd.f32 %v14264_v46, %v4320_v24  ;;  %v4322_v27 = vpop.f32.mrb[235].mxu0  ;;  %5187 = vmatmul.mubr.bf16.gmra.mrb[36].mxu1 %v4881_v57  ;;  %v4759_v34 = vmax.f32 %v4631_v18, 0.0  ;;  %v12328_v18 = vld [vmem:[%s16420_s3 + $0x594] ss:$8 sps:$4 sm:$0xff]  }
 0x576   : > { %v4634_v30 = vadd.f32 %v14269_v49, %v4322_v27  ;;  %5895 = vmatpush1.bf16.msra.mxu1 %v12305_v58  ;;  %v4760_v59 = vmax.f32 %v4632_v23, 0.0  ;;  %v12326_v27 = vld [vmem:[%s16420_s3 + $0x590] ss:$8 sps:$4 sm:$0xff]  }
 0x577   : > { %v4761_v12 = vmax.f32 %v4633_v28, 0.0  ;;  %11076 = vmatmul.mubr.msk.bf16.gmra.mrb[84].mxu0 %vm788_vm0, %v12833_v35  ;;  %5896 = vmatprep.subr.bf16.mxu1 %v12310_v20 }
 0x578   : > { %v4762_v38 = vmax.f32 %v4634_v30, 0.0  ;;  %4594 = vmatprep.mubr.bf16.mxu0 %v12853_v2 }
 0x579   : > { %v4883_v39 = vpack.c.bf16 %v4761_v12, %v4759_v34 }
 0x57a   : > { %v4326_v42 = vpop.f32.mrb[236].mxu0  ;;  %v4884_v43 = vpack.c.bf16 %v4762_v38, %v4760_v59  ;;  %5897 = vmatpush1.bf16.msra.mxu1 %v12308_v33 }
 0x57b   : > { %v4635_v63 = vadd.f32 %v14264_v46, %v4326_v42  ;;  %v4328_v51 = vpop.f32.mrb[237].mxu0  ;;  %5898 = vmatprep.subr.bf16.mxu1 %v12313_v36  ;;  %v12331_v36 = vld [vmem:[%s16420_s3 + $0x5a4] ss:$8 sps:$4 sm:$0xff]  }
 0x57c   : > { %v4636_v50 = vadd.f32 %v14269_v49, %v4328_v51  ;;  %v4330_v52 = vpop.f32.mrb[238].mxu0  ;;  %5196 = vmatprep.mubr.bf16.mxu1 %v4884_v43 }
 0x57d   : > { %v4637_v21 = vadd.f32 %v14264_v46, %v4330_v52  ;;  %v4332_v53 = vpop.f32.mrb[239].mxu0  ;;  %5197 = vmatmul.mubr.bf16.gmra.mrb[40].mxu1 %v4883_v39  ;;  %v4763_v60 = vmax.f32 %v4635_v63, 0.0  ;;  %v12329_v39 = vld [vmem:[%s16420_s3 + $0x5a0] ss:$8 sps:$4 sm:$0xff]  }
 0x57e   : > { %v4638_v54 = vadd.f32 %v14269_v49, %v4332_v53  ;;  %5899 = vmatpush1.bf16.msra.mxu1 %v12311_v29  ;;  %v4764_v37 = vmax.f32 %v4636_v50, 0.0 }
 0x57f   : > { %v4765_v61 = vmax.f32 %v4637_v21, 0.0  ;;  %11077 = vmatmul.mubr.msk.bf16.gmra.mrb[88].mxu0 %vm788_vm0, %v12834_v62  ;;  %5900 = vmatprep.subr.bf16.mxu1 %v12316_v48 }
 0x580   : > { %v4766_v1 = vmax.f32 %v4638_v54, 0.0  ;;  %4604 = vmatprep.mubr.bf16.mxu0 %v12853_v2 }
 0x581   : > { %v4885_v3 = vpack.c.bf16 %v4765_v61, %v4763_v60 }
 0x582   : > { %v4336_v7 = vpop.f32.mrb[240].mxu0  ;;  %v4886_v40 = vpack.c.bf16 %v4766_v1, %v4764_v37  ;;  %5901 = vmatpush1.bf16.msra.mxu1 %v12314_v55 }
 0x583   : > { %v4639_v44 = vadd.f32 %v14264_v46, %v4336_v7  ;;  %v4338_v45 = vpop.f32.mrb[241].mxu0  ;;  %5902 = vmatprep.subr.bf16.mxu1 %v12319_v0 }
 0x584   : > { %v4640_v41 = vadd.f32 %v14269_v49, %v4338_v45  ;;  %v4340_v2 = vpop.f32.mrb[242].mxu0  ;;  %5206 = vmatprep.mubr.bf16.mxu1 %v4886_v40 }
 0x585   : > { %v4641_v6 = vadd.f32 %v14264_v46, %v4340_v2  ;;  %v4342_v8 = vpop.f32.mrb[243].mxu0  ;;  %5207 = vmatmul.mubr.bf16.gmra.mrb[44].mxu1 %v4885_v3  ;;  %v4767_v13 = vmax.f32 %v4639_v44, 0.0  ;;  %v12332_v2 = vld [vmem:[%s16420_s3 + $0x5b0] ss:$8 sps:$4 sm:$0xff]  }
 0x586   : > { %v4642_v9 = vadd.f32 %v14269_v49, %v4342_v8  ;;  %5903 = vmatpush1.bf16.msra.mxu1 %v12317_v4  ;;  %v4768_v56 = vmax.f32 %v4640_v41, 0.0 }
 0x587   : > { %v4769_v14 = vmax.f32 %v4641_v6, 0.0  ;;  %11078 = vmatmul.mubr.msk.bf16.gmra.mrb[92].mxu0 %vm788_vm0, %v12835_v31  ;;  %5904 = vmatprep.subr.bf16.mxu1 %v12322_v5  ;;  %v12334_v6 = vld [vmem:[%s16420_s3 + $0x5b4] ss:$8 sps:$4 sm:$0xff]  }
 0x588   : > { %v4770_v16 = vmax.f32 %v4642_v9, 0.0 }
 0x589   : > { %v4887_v47 = vpack.c.bf16 %v4769_v14, %v4767_v13 }
 0x58a   : > { %v4346_v11 = vpop.f32.mrb[244].mxu0  ;;  %v4888_v57 = vpack.c.bf16 %v4770_v16, %v4768_v56  ;;  %5905 = vmatpush1.bf16.msra.mxu1 %v12320_v10 }
 0x58b   : > { %v4643_v17 = vadd.f32 %v14264_v46, %v4346_v11  ;;  %v4348_v58 = vpop.f32.mrb[245].mxu0  ;;  %5906 = vmatprep.subr.bf16.mxu1 %v12325_v15 }
 0x58c   : > { %v4644_v19 = vadd.f32 %v14269_v49, %v4348_v58  ;;  %v4350_v20 = vpop.f32.mrb[246].mxu0  ;;  %5216 = vmatprep.mubr.bf16.mxu1 %v4888_v57 }
 0x58d   : > { %v4645_v23 = vadd.f32 %v14264_v46, %v4350_v20  ;;  %v4352_v24 = vpop.f32.mrb[247].mxu0  ;;  %5217 = vmatmul.mubr.bf16.gmra.mrb[48].mxu1 %v4887_v47  ;;  %v4771_v30 = vmax.f32 %v4643_v17, 0.0 }
 0x58e   : > { %v4646_v28 = vadd.f32 %v14269_v49, %v4352_v24  ;;  %5907 = vmatpush1.bf16.msra.mxu1 %v12323_v22  ;;  %v4772_v34 = vmax.f32 %v4644_v19, 0.0 }
 0x58f   : > { %v4773_v33 = vmax.f32 %v4645_v23, 0.0  ;;  %5908 = vmatprep.subr.bf16.mxu1 %v12328_v18 }
 0x590   : > { %v4774_v12 = vmax.f32 %v4646_v28, 0.0 }
 0x591   : > { %v4889_v35 = vpack.c.bf16 %v4773_v33, %v4771_v30 }
 0x592   : > { %v4356_v59 = vpop.f32.mrb[248].mxu0  ;;  %v4890_v38 = vpack.c.bf16 %v4774_v12, %v4772_v34  ;;  %5909 = vmatpush1.bf16.msra.mxu1 %v12326_v27 }
 0x593   : > { %v4647_v42 = vadd.f32 %v14264_v46, %v4356_v59  ;;  %v4358_v43 = vpop.f32.mrb[249].mxu0  ;;  %5910 = vmatprep.subr.bf16.mxu1 %v12331_v36  ;;  %v12335_v59 = vld [vmem:[%s16420_s3 + $0x5c0] ss:$8 sps:$4 sm:$0xff]  }
 0x594   : > { %v4648_v29 = vadd.f32 %v14269_v49, %v4358_v43  ;;  %v4360_v63 = vpop.f32.mrb[250].mxu0  ;;  %5226 = vmatprep.mubr.bf16.mxu1 %v4890_v38  ;;  %v12337_v38 = vld [vmem:[%s16420_s3 + $0x5c4] ss:$8 sps:$4 sm:$0xff]  }
 0x595   : > { %v4649_v51 = vadd.f32 %v14264_v46, %v4360_v63  ;;  %v4362_v48 = vpop.f32.mrb[251].mxu0  ;;  %5227 = vmatmul.mubr.bf16.gmra.mrb[52].mxu1 %v4889_v35  ;;  %v4775_v52 = vmax.f32 %v4647_v42, 0.0 }
 0x596   : > { %v4650_v50 = vadd.f32 %v14269_v49, %v4362_v48  ;;  %5911 = vmatpush1.bf16.msra.mxu1 %v12329_v39  ;;  %v4776_v53 = vmax.f32 %v4648_v29, 0.0 }
 0x597   : > { %v4777_v21 = vmax.f32 %v4649_v51, 0.0  ;;  %5912 = vmatprep.subr.bf16.mxu1 %v12334_v6  ;;  %v12338_v6 = vld [vmem:[%s16420_s3 + $0x5d0] ss:$8 sps:$4 sm:$0xff]  }
 0x598   : > { %v4778_v54 = vmax.f32 %v4650_v50, 0.0 }
 0x599   : > { %v4891_v55 = vpack.c.bf16 %v4777_v21, %v4775_v52 }
 0x59a   : > { %v4366_v60 = vpop.f32.mrb[252].mxu0  ;;  %v4892_v61 = vpack.c.bf16 %v4778_v54, %v4776_v53  ;;  %5913 = vmatpush1.bf16.msra.mxu1 %v12332_v2 }
 0x59b   : > { %v4651_v62 = vadd.f32 %v14264_v46, %v4366_v60  ;;  %v4368_v0 = vpop.f32.mrb[253].mxu0  ;;  %5914 = vmatprep.subr.bf16.mxu1 %v12337_v38 }
 0x59c   : > { %v4652_v37 = vadd.f32 %v14269_v49, %v4368_v0  ;;  %v4370_v1 = vpop.f32.mrb[254].mxu0  ;;  %5236 = vmatprep.mubr.bf16.mxu1 %v4892_v61 }
 0x59d   : > { %v4653_v3 = vadd.f32 %v14264_v46, %v4370_v1  ;;  %v4372_v7 = vpop.f32.mrb[255].mxu0  ;;  %5237 = vmatmul.mubr.bf16.gmra.mrb[56].mxu1 %v4891_v55  ;;  %v4779_v4 = vmax.f32 %v4651_v62, 0.0 }
 0x59e   : > { %v4654_v40 = vadd.f32 %v14269_v49, %v4372_v7  ;;  %v4780_v45 = vmax.f32 %v4652_v37, 0.0  ;;  %5915 = vmatpush1.bf16.msra.mxu1 %v12335_v59 }
 0x59f   : > { %v4781_v44 = vmax.f32 %v4653_v3, 0.0 }
 0x5a0   : > { %v4782_v5 = vmax.f32 %v4654_v40, 0.0 }
 0x5a1   : > { %v4893_v41 = vpack.c.bf16 %v4781_v44, %v4779_v4 }
 0x5a2   : > { %v4376_v8 = vpop.f32.mrb[0].mxu0  ;;  %v4894_v9 = vpack.c.bf16 %v4782_v5, %v4780_v45 }
 0x5a3   : > { %v4655_v10 = vadd.f32 %v14264_v46, %v4376_v8  ;;  %v4378_v13 = vpop.f32.mrb[1].mxu0  ;;  %v12340_v8 = vld [vmem:[%s16420_s3 + $0x5d4] ss:$8 sps:$4 sm:$0xff]  }
 0x5a4   : > { %v4656_v14 = vadd.f32 %v14269_v49, %v4378_v13  ;;  %v4380_v31 = vpop.f32.mrb[2].mxu0  ;;  %5246 = vmatprep.mubr.bf16.mxu1 %v4894_v9  ;;  %5916 = vmatprep.subr.bf16.mxu1 %v12340_v8  ;;  %v12349_v8 = vld [vmem:[%s16420_s3 + $0x614] ss:$8 sps:$4 sm:$0xff]  }
 0x5a5   : > { %v4657_v15 = vadd.f32 %v14264_v46, %v4380_v31  ;;  %v4382_v56 = vpop.f32.mrb[3].mxu0  ;;  %5247 = vmatmul.mubr.bf16.gmra.mrb[60].mxu1 %v4893_v41  ;;  %v4783_v47 = vmax.f32 %v4655_v10, 0.0 }
 0x5a6   : > { %v4658_v16 = vadd.f32 %v14269_v49, %v4382_v56  ;;  %v4784_v57 = vmax.f32 %v4656_v14, 0.0  ;;  %5917 = vmatpush1.bf16.msra.mxu1 %v12338_v6  ;;  %v12347_v6 = vld [vmem:[%s16420_s3 + $0x610] ss:$8 sps:$4 sm:$0xff]  }
 0x5a7   : > { %v4785_v11 = vmax.f32 %v4657_v15, 0.0 }
 0x5a8   : > { %v4786_v22 = vmax.f32 %v4658_v16, 0.0 }
 0x5a9   : > { %v4895_v17 = vpack.c.bf16 %v4785_v11, %v4783_v47 }
 0x5aa   : > { %v4386_v58 = vpop.f32.mrb[4].mxu0  ;;  %v4896_v18 = vpack.c.bf16 %v4786_v22, %v4784_v57 }
 0x5ab   : > { %v4659_v19 = vadd.f32 %v14264_v46, %v4386_v58  ;;  %v4388_v20 = vpop.f32.mrb[5].mxu0 }
 0x5ac   : > { %v4660_v23 = vadd.f32 %v14269_v49, %v4388_v20  ;;  %v4390_v24 = vpop.f32.mrb[6].mxu0  ;;  %5256 = vmatprep.mubr.bf16.mxu1 %v4896_v18 }
 0x5ad   : > { %v4661_v28 = vadd.f32 %v14264_v46, %v4390_v24  ;;  %v4392_v27 = vpop.f32.mrb[7].mxu0  ;;  %5257 = vmatmul.mubr.bf16.gmra.mrb[64].mxu1 %v4895_v17  ;;  %v4787_v33 = vmax.f32 %v4659_v19, 0.0 }
 0x5ae   : > { %v4662_v30 = vadd.f32 %v14269_v49, %v4392_v27  ;;  %v4788_v12 = vmax.f32 %v4660_v23, 0.0 }
 0x5af   : > { %v4789_v34 = vmax.f32 %v4661_v28, 0.0 }
 0x5b0   : > { %v4790_v35 = vmax.f32 %v4662_v30, 0.0 }
 0x5b1   : > { %v4897_v36 = vpack.c.bf16 %v4789_v34, %v4787_v33 }
 0x5b2   : > { %v4396_v39 = vpop.f32.mrb[8].mxu0  ;;  %v4898_v42 = vpack.c.bf16 %v4790_v35, %v4788_v12  ;;  %v12341_v35 = vld [vmem:[%s16420_s3 + $0x600] ss:$8 sps:$4 sm:$0xff]  }
 0x5b3   : > { %v4663_v43 = vadd.f32 %v14264_v46, %v4396_v39  ;;  %v4398_v29 = vpop.f32.mrb[9].mxu0 }
 0x5b4   : > { %v4664_v63 = vadd.f32 %v14269_v49, %v4398_v29  ;;  %v4400_v51 = vpop.f32.mrb[10].mxu0  ;;  %5266 = vmatprep.mubr.bf16.mxu1 %v4898_v42  ;;  %v12344_v42 = vld [vmem:[%s16420_s3 + $0x5e0] ss:$8 sps:$4 sm:$0xff]  }
 0x5b5   : > { %v4665_v48 = vadd.f32 %v14264_v46, %v4400_v51  ;;  %v4402_v50 = vpop.f32.mrb[11].mxu0  ;;  %5267 = vmatmul.mubr.bf16.gmra.mrb[68].mxu1 %v4897_v36  ;;  %v4791_v21 = vmax.f32 %v4663_v43, 0.0  ;;  %v12343_v36 = vld [vmem:[%s16420_s3 + $0x604] ss:$8 sps:$4 sm:$0xff]  }
 0x5b6   : > { %v4666_v52 = vadd.f32 %v14269_v49, %v4402_v50  ;;  %v4792_v54 = vmax.f32 %v4664_v63, 0.0  ;;  %6636 = vmatprep.subr.bf16.mxu0 %v12343_v36  ;;  %v12346_v43 = vld [vmem:[%s16420_s3 + $0x5e4] ss:$8 sps:$4 sm:$0xff]  }
 0x5b7   : > { %v4793_v53 = vmax.f32 %v4665_v48, 0.0  ;;  %6637 = vmatpush1.bf16.msra.mxu0 %v12341_v35  ;;  %5918 = vmatprep.subr.bf16.mxu1 %v12346_v43  ;;  %v12355_v43 = vld [vmem:[%s16420_s3 + $0x624] ss:$8 sps:$4 sm:$0xff]  }
 0x5b8   : > { %v4794_v55 = vmax.f32 %v4666_v52, 0.0  ;;  %5919 = vmatpush1.bf16.msra.mxu1 %v12344_v42  ;;  %6638 = vmatprep.subr.bf16.mxu0 %v12349_v8  ;;  %v12353_v42 = vld [vmem:[%s16420_s3 + $0x620] ss:$8 sps:$4 sm:$0xff]  }
 0x5b9   : > { %v4899_v60 = vpack.c.bf16 %v4793_v53, %v4791_v21 }
 0x5ba   : > { %v4406_v61 = vpop.f32.mrb[12].mxu0  ;;  %v4900_v62 = vpack.c.bf16 %v4794_v55, %v4792_v54 }
 0x5bb   : > { %v4667_v0 = vadd.f32 %v14264_v46, %v4406_v61  ;;  %v4408_v37 = vpop.f32.mrb[13].mxu0  ;;  %6639 = vmatpush1.bf16.msra.mxu0 %v12347_v6 }
 0x5bc   : > { %v4668_v1 = vadd.f32 %v14269_v49, %v4408_v37  ;;  %v4410_v3 = vpop.f32.mrb[14].mxu0  ;;  %5276 = vmatprep.mubr.bf16.mxu1 %v4900_v62  ;;  %6640 = vmatprep.subr.bf16.mxu0 %v12355_v43  ;;  %v12359_v43 = vld [vmem:[%s16420_s3 + $0x640] ss:$8 sps:$4 sm:$0xff]  }
 0x5bd   : > { %v4669_v7 = vadd.f32 %v14264_v46, %v4410_v3  ;;  %v4412_v40 = vpop.f32.mrb[15].mxu0  ;;  %5277 = vmatmul.mubr.bf16.gmra.mrb[72].mxu1 %v4899_v60  ;;  %v4795_v44 = vmax.f32 %v4667_v0, 0.0 }
 0x5be   : > { %v4670_v4 = vadd.f32 %v14269_v49, %v4412_v40  ;;  %v4796_v5 = vmax.f32 %v4668_v1, 0.0 }
 0x5bf   : > { %v4797_v45 = vmax.f32 %v4669_v7, 0.0  ;;  %6641 = vmatpush1.bf16.msra.mxu0 %v12353_v42 }
 0x5c0   : > { %v4798_v41 = vmax.f32 %v4670_v4, 0.0 }
 0x5c1   : > { %v4901_v2 = vpack.c.bf16 %v4797_v45, %v4795_v44 }
 0x5c2   : > { %v4416_v9 = vpop.f32.mrb[16].mxu0  ;;  %v4902_v10 = vpack.c.bf16 %v4798_v41, %v4796_v5 }
 0x5c3   : > { %v4671_v13 = vadd.f32 %v14264_v46, %v4416_v9  ;;  %v4418_v14 = vpop.f32.mrb[17].mxu0 }
 0x5c4   : > { %v4672_v31 = vadd.f32 %v14269_v49, %v4418_v14  ;;  %v4420_v15 = vpop.f32.mrb[18].mxu0  ;;  %5286 = vmatprep.mubr.bf16.mxu1 %v4902_v10  ;;  %v12350_v14 = vld [vmem:[%s16420_s3 + $0x5f0] ss:$8 sps:$4 sm:$0xff]  }
 0x5c5   : > { %v4673_v56 = vadd.f32 %v14264_v46, %v4420_v15  ;;  %v4422_v16 = vpop.f32.mrb[19].mxu0  ;;  %5287 = vmatmul.mubr.bf16.gmra.mrb[76].mxu1 %v4901_v2  ;;  %v4799_v11 = vmax.f32 %v4671_v13, 0.0 }
 0x5c6   : > { %v4674_v47 = vadd.f32 %v14269_v49, %v4422_v16  ;;  %v4800_v22 = vmax.f32 %v4672_v31, 0.0  ;;  %v12352_v31 = vld [vmem:[%s16420_s3 + $0x5f4] ss:$8 sps:$4 sm:$0xff]  }
 0x5c7   : > { %v4801_v57 = vmax.f32 %v4673_v56, 0.0  ;;  %5920 = vmatprep.subr.bf16.mxu1 %v12352_v31 }
 0x5c8   : > { %v4802_v17 = vmax.f32 %v4674_v47, 0.0  ;;  %5921 = vmatpush1.bf16.msra.mxu1 %v12350_v14 }
 0x5c9   : > { %v4903_v58 = vpack.c.bf16 %v4801_v57, %v4799_v11 }
 0x5ca   : > { %v4426_v18 = vpop.f32.mrb[20].mxu0  ;;  %v4904_v19 = vpack.c.bf16 %v4802_v17, %v4800_v22 }
 0x5cb   : > { %v4675_v20 = vadd.f32 %v14264_v46, %v4426_v18  ;;  %v4428_v23 = vpop.f32.mrb[21].mxu0 }
 0x5cc   : > { %v4676_v24 = vadd.f32 %v14269_v49, %v4428_v23  ;;  %v4430_v28 = vpop.f32.mrb[22].mxu0  ;;  %5296 = vmatprep.mubr.bf16.mxu1 %v4904_v19 }
 0x5cd   : > { %v4677_v27 = vadd.f32 %v14264_v46, %v4430_v28  ;;  %v4432_v30 = vpop.f32.mrb[23].mxu0  ;;  %5297 = vmatmul.mubr.bf16.gmra.mrb[80].mxu1 %v4903_v58  ;;  %v4803_v34 = vmax.f32 %v4675_v20, 0.0 }
 0x5ce   : > { %v4678_v33 = vadd.f32 %v14269_v49, %v4432_v30  ;;  %v4804_v59 = vmax.f32 %v4676_v24, 0.0 }
 0x5cf   : > { %v4805_v12 = vmax.f32 %v4677_v27, 0.0 }
 0x5d0   : > { %v4806_v38 = vmax.f32 %v4678_v33, 0.0 }
 0x5d1   : > { %v4905_v39 = vpack.c.bf16 %v4805_v12, %v4803_v34 }
 0x5d2   : > { %v4436_v29 = vpop.f32.mrb[24].mxu0  ;;  %v4906_v63 = vpack.c.bf16 %v4806_v38, %v4804_v59 }
 0x5d3   : > { %v4679_v51 = vadd.f32 %v14264_v46, %v4436_v29  ;;  %v4438_v48 = vpop.f32.mrb[25].mxu0 }
 0x5d4   : > { %v4680_v50 = vadd.f32 %v14269_v49, %v4438_v48  ;;  %v4440_v52 = vpop.f32.mrb[26].mxu0  ;;  %5306 = vmatprep.mubr.bf16.mxu1 %v4906_v63 }
 0x5d5   : > { %v4681_v21 = vadd.f32 %v14264_v46, %v4440_v52  ;;  %v4442_v53 = vpop.f32.mrb[27].mxu0  ;;  %5307 = vmatmul.mubr.bf16.gmra.mrb[84].mxu1 %v4905_v39  ;;  %v4807_v55 = vmax.f32 %v4679_v51, 0.0 }
 0x5d6   : > { %v4682_v54 = vadd.f32 %v14269_v49, %v4442_v53  ;;  %v4808_v61 = vmax.f32 %v4680_v50, 0.0 }
 0x5d7   : > { %v4809_v60 = vmax.f32 %v4681_v21, 0.0 }
 0x5d8   : > { %v4810_v62 = vmax.f32 %v4682_v54, 0.0 }
 0x5d9   : > { %v4907_v0 = vpack.c.bf16 %v4809_v60, %v4807_v55 }
 0x5da   : > { %v4446_v37 = vpop.f32.mrb[28].mxu0  ;;  %v4908_v1 = vpack.c.bf16 %v4810_v62, %v4808_v61 }
 0x5db   : > { %v4683_v3 = vadd.f32 %v14264_v46, %v4446_v37  ;;  %v4448_v7 = vpop.f32.mrb[29].mxu0 }
 0x5dc   : > { %v4684_v40 = vadd.f32 %v14269_v49, %v4448_v7  ;;  %v4450_v4 = vpop.f32.mrb[30].mxu0  ;;  %5316 = vmatprep.mubr.bf16.mxu1 %v4908_v1 }
 0x5dd   : > { %v4685_v44 = vadd.f32 %v14264_v46, %v4450_v4  ;;  %v4452_v45 = vpop.f32.mrb[31].mxu0  ;;  %5317 = vmatmul.mubr.bf16.gmra.mrb[88].mxu1 %v4907_v0  ;;  %v4811_v41 = vmax.f32 %v4683_v3, 0.0 }
 0x5de   : > { %v4686_v5 = vadd.f32 %v14269_v49, %v4452_v45  ;;  %v4812_v9 = vmax.f32 %v4684_v40, 0.0 }
 0x5df   : > { %v4813_v2 = vmax.f32 %v4685_v44, 0.0 }
 0x5e0   : > { %v4814_v10 = vmax.f32 %v4686_v5, 0.0 }
 0x5e1   : > { %v4909_v13 = vpack.c.bf16 %v4813_v2, %v4811_v41 }
 0x5e2   : > { %v4456_v15 = vpop.f32.mrb[32].mxu0  ;;  %v4910_v56 = vpack.c.bf16 %v4814_v10, %v4812_v9  ;;  %v12356_v10 = vld [vmem:[%s16420_s3 + $0x630] ss:$8 sps:$4 sm:$0xff]  }
 0x5e3   : > { %v4687_v16 = vadd.f32 %v14264_v46, %v4456_v15  ;;  %v4458_v47 = vpop.f32.mrb[33].mxu0 }
 0x5e4   : > { %v4688_v11 = vadd.f32 %v14269_v49, %v4458_v47  ;;  %v4460_v57 = vpop.f32.mrb[34].mxu0  ;;  %5326 = vmatprep.mubr.bf16.mxu1 %v4910_v56 }
 0x5e5   : > { %v4689_v22 = vadd.f32 %v14264_v46, %v4460_v57  ;;  %v4462_v17 = vpop.f32.mrb[35].mxu0  ;;  %5327 = vmatmul.mubr.bf16.gmra.mrb[92].mxu1 %v4909_v13  ;;  %v4815_v18 = vmax.f32 %v4687_v16, 0.0  ;;  %v12358_v13 = vld [vmem:[%s16420_s3 + $0x634] ss:$8 sps:$4 sm:$0xff]  }
 0x5e6   : > { %v4690_v58 = vadd.f32 %v14269_v49, %v4462_v17  ;;  %v4816_v20 = vmax.f32 %v4688_v11, 0.0  ;;  %6642 = vmatprep.subr.bf16.mxu0 %v12358_v13  ;;  %v12362_v13 = vld [vmem:[%s16420_s3 + $0x650] ss:$8 sps:$4 sm:$0xff]  }
 0x5e7   : > { %v4817_v19 = vmax.f32 %v4689_v22, 0.0  ;;  %6643 = vmatpush1.bf16.msra.mxu0 %v12356_v10 }
 0x5e8   : > { %v4818_v23 = vmax.f32 %v4690_v58, 0.0 }
 0x5e9   : > { %v4911_v24 = vpack.c.bf16 %v4817_v19, %v4815_v18 }
 0x5ea   : > { %v4466_v28 = vpop.f32.mrb[36].mxu0  ;;  %v4912_v27 = vpack.c.bf16 %v4818_v23, %v4816_v20 }
 0x5eb   : > { %v4691_v30 = vadd.f32 %v14264_v46, %v4466_v28  ;;  %v4468_v33 = vpop.f32.mrb[37].mxu0 }
 0x5ec   : > { %v4692_v34 = vadd.f32 %v14269_v49, %v4468_v33  ;;  %v4470_v12 = vpop.f32.mrb[38].mxu0  ;;  %5336 = vmatprep.mubr.bf16.mxu1 %v4912_v27 }
 0x5ed   : > { %v4693_v35 = vadd.f32 %v14264_v46, %v4470_v12  ;;  %v4472_v36 = vpop.f32.mrb[39].mxu0  ;;  %5337 = vmatmul.mubr.bf16.gmra.mrb[96].mxu1 %v4911_v24  ;;  %v4819_v38 = vmax.f32 %v4691_v30, 0.0 }
 0x5ee   : > { %v4694_v59 = vadd.f32 %v14269_v49, %v4472_v36  ;;  %v4820_v29 = vmax.f32 %v4692_v34, 0.0 }
 0x5ef   : > { %v4821_v39 = vmax.f32 %v4693_v35, 0.0 }
 0x5f0   : > { %v4822_v63 = vmax.f32 %v4694_v59, 0.0 }
 0x5f1   : > { %v4913_v51 = vpack.c.bf16 %v4821_v39, %v4819_v38 }
 0x5f2   : > { %v4476_v48 = vpop.f32.mrb[40].mxu0  ;;  %v4914_v50 = vpack.c.bf16 %v4822_v63, %v4820_v29  ;;  %v12361_v29 = vld [vmem:[%s16420_s3 + $0x644] ss:$8 sps:$4 sm:$0xff]  }
 0x5f3   : > { %v4695_v52 = vadd.f32 %v14264_v46, %v4476_v48  ;;  %v4478_v21 = vpop.f32.mrb[41].mxu0  ;;  %6644 = vmatprep.subr.bf16.mxu0 %v12361_v29  ;;  %v12365_v29 = vld [vmem:[%s16420_s3 + $0x660] ss:$8 sps:$4 sm:$0xff]  }
 0x5f4   : > { %v4696_v53 = vadd.f32 %v14269_v49, %v4478_v21  ;;  %v4480_v54 = vpop.f32.mrb[42].mxu0  ;;  %5346 = vmatprep.mubr.bf16.mxu1 %v4914_v50  ;;  %6645 = vmatpush1.bf16.msra.mxu0 %v12359_v43 }
 0x5f5   : > { %v4697_v55 = vadd.f32 %v14264_v46, %v4480_v54  ;;  %v4482_v60 = vpop.f32.mrb[43].mxu0  ;;  %5347 = vmatmul.mubr.bf16.gmra.mrb[100].mxu1 %v4913_v51  ;;  %v4823_v62 = vmax.f32 %v4695_v52, 0.0 }
 0x5f6   : > { %v4698_v61 = vadd.f32 %v14269_v49, %v4482_v60  ;;  %v4824_v37 = vmax.f32 %v4696_v53, 0.0 }
 0x5f7   : > { %v4825_v0 = vmax.f32 %v4697_v55, 0.0 }
 0x5f8   : > { %v4826_v1 = vmax.f32 %v4698_v61, 0.0 }
 0x5f9   : > { %v4915_v3 = vpack.c.bf16 %v4825_v0, %v4823_v62 }
 0x5fa   : > { %v4486_v7 = vpop.f32.mrb[44].mxu0  ;;  %v4916_v40 = vpack.c.bf16 %v4826_v1, %v4824_v37 }
 0x5fb   : > { %v4699_v4 = vadd.f32 %v14264_v46, %v4486_v7  ;;  %v4488_v44 = vpop.f32.mrb[45].mxu0 }
 0x5fc   : > { %v4700_v45 = vadd.f32 %v14269_v49, %v4488_v44  ;;  %v4490_v5 = vpop.f32.mrb[46].mxu0  ;;  %5356 = vmatprep.mubr.bf16.mxu1 %v4916_v40 }
 0x5fd   : > { %v4701_v41 = vadd.f32 %v14264_v46, %v4490_v5  ;;  %v4492_v2 = vpop.f32.mrb[47].mxu0  ;;  %5357 = vmatmul.mubr.bf16.gmra.mrb[104].mxu1 %v4915_v3  ;;  %v4827_v8 = vmax.f32 %v4699_v4, 0.0 }
 0x5fe   : > { %v4702_v6 = vadd.f32 %v14269_v49, %v4492_v2  ;;  %v4828_v14 = vmax.f32 %v4700_v45, 0.0 }
 0x5ff   : > { %v4829_v9 = vmax.f32 %v4701_v41, 0.0 }
 0x600   : > { %v4830_v31 = vmax.f32 %v4702_v6, 0.0 }
 0x601   : > { %v4917_v15 = vpack.c.bf16 %v4829_v9, %v4827_v8 }
 0x602   : > { %v4496_v56 = vpop.f32.mrb[48].mxu0  ;;  %v4918_v16 = vpack.c.bf16 %v4830_v31, %v4828_v14  ;;  %v12364_v14 = vld [vmem:[%s16420_s3 + $0x654] ss:$8 sps:$4 sm:$0xff]  }
 0x603   : > { %v4703_v47 = vadd.f32 %v14264_v46, %v4496_v56  ;;  %v4498_v11 = vpop.f32.mrb[49].mxu0  ;;  %6646 = vmatprep.subr.bf16.mxu0 %v12364_v14 }
 0x604   : > { %v4704_v57 = vadd.f32 %v14269_v49, %v4498_v11  ;;  %v4500_v22 = vpop.f32.mrb[50].mxu0  ;;  %5366 = vmatprep.mubr.bf16.mxu1 %v4918_v16  ;;  %6647 = vmatpush1.bf16.msra.mxu0 %v12362_v13 }
 0x605   : > { %v4705_v17 = vadd.f32 %v14264_v46, %v4500_v22  ;;  %v4502_v58 = vpop.f32.mrb[51].mxu0  ;;  %5367 = vmatmul.mubr.bf16.gmra.mrb[108].mxu1 %v4917_v15  ;;  %v4831_v19 = vmax.f32 %v4703_v47, 0.0 }
 0x606   : > { %v4706_v18 = vadd.f32 %v14269_v49, %v4502_v58  ;;  %v4832_v23 = vmax.f32 %v4704_v57, 0.0 }
 0x607   : > { %v4833_v20 = vmax.f32 %v4705_v17, 0.0 }
 0x608   : > { %v4834_v24 = vmax.f32 %v4706_v18, 0.0 }
 0x609   : > { %v4919_v28 = vpack.c.bf16 %v4833_v20, %v4831_v19 }
 0x60a   : > { %v4506_v27 = vpop.f32.mrb[52].mxu0  ;;  %v4920_v30 = vpack.c.bf16 %v4834_v24, %v4832_v23 }
 0x60b   : > { %v4707_v33 = vadd.f32 %v14264_v46, %v4506_v27  ;;  %v4508_v34 = vpop.f32.mrb[53].mxu0 }
 0x60c   : > { %v4708_v12 = vadd.f32 %v14269_v49, %v4508_v34  ;;  %v4510_v35 = vpop.f32.mrb[54].mxu0  ;;  %5376 = vmatprep.mubr.bf16.mxu1 %v4920_v30 }
 0x60d   : > { %v4709_v36 = vadd.f32 %v14264_v46, %v4510_v35  ;;  %v4512_v59 = vpop.f32.mrb[55].mxu0  ;;  %5377 = vmatmul.mubr.bf16.gmra.mrb[112].mxu1 %v4919_v28  ;;  %v4835_v39 = vmax.f32 %v4707_v33, 0.0 }
 0x60e   : > { %v4710_v38 = vadd.f32 %v14269_v49, %v4512_v59  ;;  %v4836_v63 = vmax.f32 %v4708_v12, 0.0 }
 0x60f   : > { %v4837_v42 = vmax.f32 %v4709_v36, 0.0 }
 0x610   : > { %v4838_v51 = vmax.f32 %v4710_v38, 0.0 }
 0x611   : > { %v4921_v48 = vpack.c.bf16 %v4837_v42, %v4835_v39 }
 0x612   : > { %v4516_v50 = vpop.f32.mrb[56].mxu0  ;;  %v4922_v52 = vpack.c.bf16 %v4838_v51, %v4836_v63  ;;  %v12367_v63 = vld [vmem:[%s16420_s3 + $0x664] ss:$8 sps:$4 sm:$0xff]  }
 0x613   : > { %v4711_v21 = vadd.f32 %v14264_v46, %v4516_v50  ;;  %v4518_v53 = vpop.f32.mrb[57].mxu0  ;;  %6648 = vmatprep.subr.bf16.mxu0 %v12367_v63 }
 0x614   : > { %v4712_v54 = vadd.f32 %v14269_v49, %v4518_v53  ;;  %v4520_v55 = vpop.f32.mrb[58].mxu0  ;;  %5386 = vmatprep.mubr.bf16.mxu1 %v4922_v52  ;;  %6649 = vmatpush1.bf16.msra.mxu0 %v12365_v29 }
 0x615   : > { %v4713_v60 = vadd.f32 %v14264_v46, %v4520_v55  ;;  %v4522_v61 = vpop.f32.mrb[59].mxu0  ;;  %5387 = vmatmul.mubr.bf16.gmra.mrb[116].mxu1 %v4921_v48  ;;  %v4839_v0 = vmax.f32 %v4711_v21, 0.0 }
 0x616   : > { %v4714_v62 = vadd.f32 %v14269_v49, %v4522_v61  ;;  %v4840_v1 = vmax.f32 %v4712_v54, 0.0 }
 0x617   : > { %v4841_v37 = vmax.f32 %v4713_v60, 0.0 }
 0x618   : > { %v4842_v3 = vmax.f32 %v4714_v62, 0.0 }
 0x619   : > { %v4923_v7 = vpack.c.bf16 %v4841_v37, %v4839_v0 }
 0x61a   : > { %v4526_v40 = vpop.f32.mrb[60].mxu0  ;;  %v4924_v4 = vpack.c.bf16 %v4842_v3, %v4840_v1 }
 0x61b   : > { %v4715_v44 = vadd.f32 %v14264_v46, %v4526_v40  ;;  %v4528_v45 = vpop.f32.mrb[61].mxu0 }
 0x61c   : > { %v4716_v5 = vadd.f32 %v14269_v49, %v4528_v45  ;;  %v4530_v41 = vpop.f32.mrb[62].mxu0  ;;  %5396 = vmatprep.mubr.bf16.mxu1 %v4924_v4  ;;  %v4978_v4 = vsub.s32 5, %v13196_v25 }
 0x61d   : > { %v4717_v2 = vadd.f32 %v14264_v46, %v4530_v41  ;;  %v4532_v6 = vpop.f32.mrb[63].mxu0  ;;  %5397 = vmatmul.mubr.bf16.gmra.mrb[120].mxu1 %v4923_v7  ;;  %v4843_v9 = vmax.f32 %v4715_v44, 0.0 }
 0x61e   : > { %v4718_v8 = vadd.f32 %v14269_v49, %v4532_v6  ;;  %v4844_v31 = vmax.f32 %v4716_v5, 0.0 }
 0x61f   : > { %v4845_v10 = vmax.f32 %v4717_v2, 0.0 }
 0x620   : > { %v4846_v15 = vmax.f32 %v4718_v8, 0.0 }
 0x621   : > { %v4925_v56 = vpack.c.bf16 %v4845_v10, %v4843_v9  ;;  %v12836_v10 = vld [vmem:[%s16421_s4] sm:$0xff] }
 0x622   : > { %v4536_v16 = vpop.f32.mrb[64].mxu0  ;;  %v4926_v47 = vpack.c.bf16 %v4846_v15, %v4844_v31  ;;  %v14536_v13 = vrot.slane %v12836_v10, %v4978_v4  ;;  %v12837_v31 = vld [vmem:[%s16421_s4 + $0x8] sm:$0xff] }
 0x623   : > { %v4719_v11 = vadd.f32 %v14264_v46, %v4536_v16  ;;  %v4538_v57 = vpop.f32.mrb[65].mxu0  ;;  %v14542_v15 = vrot.slane %v12837_v31, %v4978_v4 }
 0x624   : > { %v4720_v22 = vadd.f32 %v14269_v49, %v4538_v57  ;;  %v4540_v17 = vpop.f32.mrb[66].mxu0  ;;  %5406 = vmatprep.mubr.bf16.mxu1 %v4926_v47  ;;  %v12368_v47 = vld [vmem:[%s16420_s3 + $0x670] ss:$8 sps:$4 sm:$0xff]  }
 0x625   : > { %v4721_v58 = vadd.f32 %v14264_v46, %v4540_v17  ;;  %v4542_v18 = vpop.f32.mrb[67].mxu0  ;;  %5407 = vmatmul.mubr.bf16.gmra.mrb[124].mxu1 %v4925_v56  ;;  %v4847_v20 = vmax.f32 %v4719_v11, 0.0  ;;  %v12370_v11 = vld [vmem:[%s16420_s3 + $0x674] ss:$8 sps:$4 sm:$0xff]  }
 0x626   : > { %v4722_v19 = vadd.f32 %v14269_v49, %v4542_v18  ;;  %v4848_v24 = vmax.f32 %v4720_v22, 0.0  ;;  %6650 = vmatprep.subr.bf16.mxu0 %v12370_v11  ;;  %v12373_v11 = vld [vmem:[%s16420_s3 + $0x684] ss:$8 sps:$4 sm:$0xff]  }
 0x627   : > { %v4849_v23 = vmax.f32 %v4721_v58, 0.0  ;;  %6651 = vmatpush1.bf16.msra.mxu0 %v12368_v47  ;;  %v12371_v47 = vld [vmem:[%s16420_s3 + $0x680] ss:$8 sps:$4 sm:$0xff]  }
 0x628   : > { %v4850_v28 = vmax.f32 %v4722_v19, 0.0  ;;  %6652 = vmatprep.subr.bf16.mxu0 %v12373_v11 }
 0x629   : > { %v4927_v27 = vpack.c.bf16 %v4849_v23, %v4847_v20 }
 0x62a   : > { %v4546_v30 = vpop.f32.mrb[68].mxu0  ;;  %v4928_v33 = vpack.c.bf16 %v4850_v28, %v4848_v24 }
 0x62b   : > { %v4723_v34 = vadd.f32 %v14264_v46, %v4546_v30  ;;  %v4548_v12 = vpop.f32.mrb[69].mxu0  ;;  %6653 = vmatpush1.bf16.msra.mxu0 %v12371_v47 }
 0x62c   : > { %v4724_v35 = vadd.f32 %v14269_v49, %v4548_v12  ;;  %v4550_v36 = vpop.f32.mrb[70].mxu0  ;;  %5416 = vmatprep.mubr.bf16.mxu1 %v4928_v33 }
 0x62d   : > { %v4725_v59 = vadd.f32 %v14264_v46, %v4550_v36  ;;  %v4552_v38 = vpop.f32.mrb[71].mxu0  ;;  %5417 = vmatmul.mubr.bf16.gmra.mrb[128].mxu1 %v4927_v27  ;;  %v4851_v42 = vmax.f32 %v4723_v34, 0.0 }
 0x62e   : > { %v4726_v39 = vadd.f32 %v14269_v49, %v4552_v38  ;;  %v4852_v51 = vmax.f32 %v4724_v35, 0.0 }
 0x62f   : > { %v4853_v43 = vmax.f32 %v4725_v59, 0.0 }
 0x630   : > { %v4854_v48 = vmax.f32 %v4726_v39, 0.0 }
 0x631   : > { %v4929_v50 = vpack.c.bf16 %v4853_v43, %v4851_v42 }
 0x632   : > { %v4556_v52 = vpop.f32.mrb[72].mxu0  ;;  %v4930_v21 = vpack.c.bf16 %v4854_v48, %v4852_v51 }
 0x633   : > { %v4727_v53 = vadd.f32 %v14264_v46, %v4556_v52  ;;  %v4558_v54 = vpop.f32.mrb[73].mxu0 }
 0x634   : > { %v4728_v55 = vadd.f32 %v14269_v49, %v4558_v54  ;;  %v4560_v60 = vpop.f32.mrb[74].mxu0  ;;  %5426 = vmatprep.mubr.bf16.mxu1 %v4930_v21 }
 0x635   : > { %v4729_v61 = vadd.f32 %v14264_v46, %v4560_v60  ;;  %v4562_v62 = vpop.f32.mrb[75].mxu0  ;;  %5427 = vmatmul.mubr.bf16.gmra.mrb[132].mxu1 %v4929_v50  ;;  %v4855_v37 = vmax.f32 %v4727_v53, 0.0 }
 0x636   : > { %v4730_v0 = vadd.f32 %v14269_v49, %v4562_v62  ;;  %v4856_v3 = vmax.f32 %v4728_v55, 0.0 }
 0x637   : > { %v4857_v1 = vmax.f32 %v4729_v61, 0.0 }
 0x638   : > { %v4858_v7 = vmax.f32 %v4730_v0, 0.0 }
 0x639   : > { %v4931_v40 = vpack.c.bf16 %v4857_v1, %v4855_v37 }
 0x63a   : > { %v4566_v44 = vpop.f32.mrb[76].mxu0  ;;  %v4932_v45 = vpack.c.bf16 %v4858_v7, %v4856_v3 }
 0x63b   : > { %v4731_v5 = vadd.f32 %v14264_v46, %v4566_v44  ;;  %v4568_v41 = vpop.f32.mrb[77].mxu0 }
 0x63c   : > { %v4732_v2 = vadd.f32 %v14269_v49, %v4568_v41  ;;  %v4570_v6 = vpop.f32.mrb[78].mxu0  ;;  %5436 = vmatprep.mubr.bf16.mxu1 %v4932_v45 }
 0x63d   : > { %v4733_v8 = vadd.f32 %v14264_v46, %v4570_v6  ;;  %v4572_v9 = vpop.f32.mrb[79].mxu0  ;;  %5437 = vmatmul.mubr.bf16.gmra.mrb[136].mxu1 %v4931_v40  ;;  %v4859_v56 = vmax.f32 %v4731_v5, 0.0 }
 0x63e   : > { %v4734_v14 = vadd.f32 %v14269_v49, %v4572_v9  ;;  %v4860_v57 = vmax.f32 %v4732_v2, 0.0 }
 0x63f   : > { %v4861_v16 = vmax.f32 %v4733_v8, 0.0 }
 0x640   : > { %v4862_v22 = vmax.f32 %v4734_v14, 0.0  ;;  %v5178_v17 = vpop.f32.mrb[32].mxu1 }
 0x641   : > { %v4933_v58 = vpack.c.bf16 %v4861_v16, %v4859_v56  ;;  %v5179_v18 = vadd.f32 %v5178_v17, %v14536_v13  ;;  %v5180_v19 = vpop.f32.mrb[33].mxu1 }
 0x642   : > { %v5181_v20 = vadd.f32 %v5180_v19, %v14542_v15  ;;  %v4576_v23 = vpop.f32.mrb[80].mxu0  ;;  %v5182_v24 = vpop.f32.mrb[34].mxu1  ;;  %v4934_v28 = vpack.c.bf16 %v4862_v22, %v4860_v57 }
 0x643   : > { %v4735_v27 = vadd.f32 %v14264_v46, %v4576_v23  ;;  %v5183_v30 = vadd.f32 %v5182_v24, %v14536_v13  ;;  %v4578_v33 = vpop.f32.mrb[81].mxu0  ;;  %v5184_v34 = vpop.f32.mrb[35].mxu1  ;;  %v5497_v59 = vmax.f32 %v5179_v18, 0.0 }
 0x644   : > { %v4736_v12 = vadd.f32 %v14269_v49, %v4578_v33  ;;  %v5185_v35 = vadd.f32 %v5184_v34, %v14542_v15  ;;  %v4580_v36 = vpop.f32.mrb[82].mxu0  ;;  %5446 = vmatprep.mubr.bf16.mxu1 %v4934_v28  ;;  %v5498_v43 = vmax.f32 %v5181_v20, 0.0 }
 0x645   : > { %v5499_v38 = vmax.f32 %v5183_v30, 0.0  ;;  %v4737_v39 = vadd.f32 %v14264_v46, %v4580_v36  ;;  %v4582_v42 = vpop.f32.mrb[83].mxu0  ;;  %5447 = vmatmul.mubr.bf16.gmra.mrb[140].mxu1 %v4933_v58  ;;  %v4863_v51 = vmax.f32 %v4735_v27, 0.0 }
 0x646   : > { %v5500_v29 = vmax.f32 %v5185_v35, 0.0  ;;  %v4738_v63 = vadd.f32 %v14269_v49, %v4582_v42  ;;  %v4864_v52 = vmax.f32 %v4736_v12, 0.0 }
 0x647   : > { %v14558_v48 = vpack.c.bf16 %v5499_v38, %v5497_v59  ;;  %v4865_v50 = vmax.f32 %v4737_v39, 0.0 }
 0x648   : > { %v4866_v21 = vmax.f32 %v4738_v63, 0.0  ;;  %v5188_v53 = vpop.f32.mrb[36].mxu1  ;;  %v14560_v54 = vpack.c.bf16 %v5500_v29, %v5498_v43 }
 0x649   : > { %v4935_v55 = vpack.c.bf16 %v4865_v50, %v4863_v51  ;;  %v5189_v60 = vadd.f32 %v5188_v53, %v14536_v13  ;;  %v5190_v61 = vpop.f32.mrb[37].mxu1 }
 0x64a   : > { %v5191_v62 = vadd.f32 %v5190_v61, %v14542_v15  ;;  %v4586_v0 = vpop.f32.mrb[84].mxu0  ;;  %v5192_v37 = vpop.f32.mrb[38].mxu1  ;;  %v4936_v1 = vpack.c.bf16 %v4866_v21, %v4864_v52 }
 0x64b   : > { %v4739_v3 = vadd.f32 %v14264_v46, %v4586_v0  ;;  %v5193_v7 = vadd.f32 %v5192_v37, %v14536_v13  ;;  %v4588_v40 = vpop.f32.mrb[85].mxu0  ;;  %v5194_v4 = vpop.f32.mrb[39].mxu1  ;;  %v5501_v41 = vmax.f32 %v5189_v60, 0.0 }
 0x64c   : > { %v4740_v44 = vadd.f32 %v14269_v49, %v4588_v40  ;;  %v5195_v45 = vadd.f32 %v5194_v4, %v14542_v15  ;;  %v4590_v5 = vpop.f32.mrb[86].mxu0  ;;  %5456 = vmatprep.mubr.bf16.mxu1 %v4936_v1  ;;  %v5502_v9 = vmax.f32 %v5191_v62, 0.0 }
 0x64d   : > { %v5503_v2 = vmax.f32 %v5193_v7, 0.0  ;;  %v4741_v6 = vadd.f32 %v14264_v46, %v4590_v5  ;;  %v4592_v8 = vpop.f32.mrb[87].mxu0  ;;  %5457 = vmatmul.mubr.bf16.gmra.mrb[144].mxu1 %v4935_v55  ;;  %v4867_v31 = vmax.f32 %v4739_v3, 0.0 }
 0x64e   : > { %v5504_v10 = vmax.f32 %v5195_v45, 0.0  ;;  %v4742_v14 = vadd.f32 %v14269_v49, %v4592_v8  ;;  %v4868_v57 = vmax.f32 %v4740_v44, 0.0 }
 0x64f   : > { %v14570_v56 = vpack.c.bf16 %v5503_v2, %v5501_v41  ;;  %v4869_v16 = vmax.f32 %v4741_v6, 0.0 }
 0x650   : > { %v4870_v22 = vmax.f32 %v4742_v14, 0.0  ;;  %v5198_v17 = vpop.f32.mrb[40].mxu1  ;;  %v14578_v58 = vpack.c.bf16 %v5504_v10, %v5502_v9 }
 0x651   : > { %v4937_v18 = vpack.c.bf16 %v4869_v16, %v4867_v31  ;;  %v5199_v19 = vadd.f32 %v5198_v17, %v14536_v13  ;;  %v5200_v20 = vpop.f32.mrb[41].mxu1  ;;  %v12374_v17 = vld [vmem:[%s16420_s3 + $0x690] ss:$8 sps:$4 sm:$0xff]  }
 0x652   : > { %v5201_v23 = vadd.f32 %v5200_v20, %v14542_v15  ;;  %v4596_v24 = vpop.f32.mrb[88].mxu0  ;;  %v5202_v28 = vpop.f32.mrb[42].mxu1  ;;  %v4938_v27 = vpack.c.bf16 %v4870_v22, %v4868_v57 }
 0x653   : > { %v4743_v30 = vadd.f32 %v14264_v46, %v4596_v24  ;;  %v5203_v33 = vadd.f32 %v5202_v28, %v14536_v13  ;;  %v4598_v34 = vpop.f32.mrb[89].mxu0  ;;  %v5204_v12 = vpop.f32.mrb[43].mxu1  ;;  %v5505_v38 = vmax.f32 %v5199_v19, 0.0 }
 0x654   : > { %v4744_v35 = vadd.f32 %v14269_v49, %v4598_v34  ;;  %v5205_v36 = vadd.f32 %v5204_v12, %v14542_v15  ;;  %v4600_v59 = vpop.f32.mrb[90].mxu0  ;;  %5466 = vmatprep.mubr.bf16.mxu1 %v4938_v27  ;;  %v5506_v29 = vmax.f32 %v5201_v23, 0.0 }
 0x655   : > { %v5507_v39 = vmax.f32 %v5203_v33, 0.0  ;;  %v4745_v42 = vadd.f32 %v14264_v46, %v4600_v59  ;;  %v4602_v43 = vpop.f32.mrb[91].mxu0  ;;  %5467 = vmatmul.mubr.bf16.gmra.mrb[148].mxu1 %v4937_v18  ;;  %v4871_v50 = vmax.f32 %v4743_v30, 0.0  ;;  %v12376_v18 = vld [vmem:[%s16420_s3 + $0x694] ss:$8 sps:$4 sm:$0xff]  }
 0x656   : > { %v5508_v63 = vmax.f32 %v5205_v36, 0.0  ;;  %v4746_v51 = vadd.f32 %v14269_v49, %v4602_v43  ;;  %v4872_v53 = vmax.f32 %v4744_v35, 0.0  ;;  %6654 = vmatprep.subr.bf16.mxu0 %v12376_v18 }
 0x657   : > { %v14588_v52 = vpack.c.bf16 %v5507_v39, %v5505_v38  ;;  %v4873_v21 = vmax.f32 %v4745_v42, 0.0  ;;  %6655 = vmatpush1.bf16.msra.mxu0 %v12374_v17 }
 0x658   : > { %v4874_v55 = vmax.f32 %v4746_v51, 0.0  ;;  %v5208_v60 = vpop.f32.mrb[44].mxu1  ;;  %v14590_v61 = vpack.c.bf16 %v5508_v63, %v5506_v29 }
 0x659   : > { %v4939_v62 = vpack.c.bf16 %v4873_v21, %v4871_v50  ;;  %v5209_v0 = vadd.f32 %v5208_v60, %v14536_v13  ;;  %v5210_v37 = vpop.f32.mrb[45].mxu1 }
 0x65a   : > { %v5211_v1 = vadd.f32 %v5210_v37, %v14542_v15  ;;  %v4606_v3 = vpop.f32.mrb[92].mxu0  ;;  %v5212_v7 = vpop.f32.mrb[46].mxu1  ;;  %v4940_v40 = vpack.c.bf16 %v4874_v55, %v4872_v53 }
 0x65b   : > { %v4747_v4 = vadd.f32 %v14264_v46, %v4606_v3  ;;  %v5213_v44 = vadd.f32 %v5212_v7, %v14536_v13  ;;  %v4608_v45 = vpop.f32.mrb[93].mxu0  ;;  %v5214_v5 = vpop.f32.mrb[47].mxu1  ;;  %v5509_v8 = vmax.f32 %v5209_v0, 0.0  ;;  %v12377_v3 = vld [vmem:[%s16420_s3 + $0x6a0] ss:$8 sps:$4 sm:$0xff]  }
 0x65c   : > { %v4748_v41 = vadd.f32 %v14269_v49, %v4608_v45  ;;  %v5215_v2 = vadd.f32 %v5214_v5, %v14542_v15  ;;  %v4610_v6 = vpop.f32.mrb[94].mxu0  ;;  %5476 = vmatprep.mubr.bf16.mxu1 %v4940_v40  ;;  %v5510_v31 = vmax.f32 %v5211_v1, 0.0  ;;  %v12379_v7 = vld [vmem:[%s16420_s3 + $0x6a4] ss:$8 sps:$4 sm:$0xff]  }
 0x65d   : > { %v5511_v9 = vmax.f32 %v5213_v44, 0.0  ;;  %v4749_v10 = vadd.f32 %v14264_v46, %v4610_v6  ;;  %v4612_v14 = vpop.f32.mrb[95].mxu0  ;;  %5477 = vmatmul.mubr.bf16.gmra.mrb[152].mxu1 %v4939_v62  ;;  %v4875_v11 = vmax.f32 %v4747_v4, 0.0  ;;  %6656 = vmatprep.subr.bf16.mxu0 %v12379_v7 }
 0x65e   : > { %v5512_v16 = vmax.f32 %v5215_v2, 0.0  ;;  %v4750_v47 = vadd.f32 %v14269_v49, %v4612_v14  ;;  %v4876_v19 = vmax.f32 %v4748_v41, 0.0  ;;  %6657 = vmatpush1.bf16.msra.mxu0 %v12377_v3 }
 0x65f   : > { %v14600_v57 = vpack.c.bf16 %v5511_v9, %v5509_v8  ;;  %v4877_v22 = vmax.f32 %v4749_v10, 0.0 }
 0x660   : > { %v4878_v46 = vmax.f32 %v4750_v47, 0.0  ;;  %v5218_v20 = vpop.f32.mrb[48].mxu1  ;;  %v14608_v23 = vpack.c.bf16 %v5512_v16, %v5510_v31 }
 0x661   : > { %v4941_v24 = vpack.c.bf16 %v4877_v22, %v4875_v11  ;;  %v5219_v49 = vadd.f32 %v5218_v20, %v14536_v13  ;;  %v5220_v28 = vpop.f32.mrb[49].mxu1 }
 0x662   : > { %v5221_v27 = vadd.f32 %v5220_v28, %v14542_v15  ;;  %v5222_v30 = vpop.f32.mrb[50].mxu1  ;;  %v4942_v33 = vpack.c.bf16 %v4878_v46, %v4876_v19  ;;  %v12380_v28 = vld [vmem:[%s16420_s3 + $0x6b0] ss:$8 sps:$4 sm:$0xff]  }
 0x663   : > { %v5223_v34 = vadd.f32 %v5222_v30, %v14536_v13  ;;  %v5224_v12 = vpop.f32.mrb[51].mxu1  ;;  %v5513_v36 = vmax.f32 %v5219_v49, 0.0 }
 0x664   : > { %v5225_v35 = vadd.f32 %v5224_v12, %v14542_v15  ;;  %5486 = vmatprep.mubr.bf16.mxu1 %v4942_v33  ;;  %v5514_v38 = vmax.f32 %v5221_v27, 0.0  ;;  %v12382_v27 = vld [vmem:[%s16420_s3 + $0x6b4] ss:$8 sps:$4 sm:$0xff]  }
 0x665   : > { %v5515_v59 = vmax.f32 %v5223_v34, 0.0  ;;  %5487 = vmatmul.mubr.bf16.gmra.mrb[156].mxu1 %v4941_v24  ;;  %6658 = vmatprep.subr.bf16.mxu0 %v12382_v27 }
 0x666   : > { %v5516_v39 = vmax.f32 %v5225_v35, 0.0  ;;  %5922 = vmatprep.mubr.bf16.mxu1 %v14560_v54  ;;  %6659 = vmatpush1.bf16.msra.mxu0 %v12380_v28 }
 0x667   : > { %v14615_v42 = vpack.c.bf16 %v5515_v59, %v5513_v36 }
 0x668   : > { %v5228_v43 = vpop.f32.mrb[52].mxu1  ;;  %v14617_v29 = vpack.c.bf16 %v5516_v39, %v5514_v38 }
 0x669   : > { %v5229_v63 = vadd.f32 %v5228_v43, %v14536_v13  ;;  %v5230_v51 = vpop.f32.mrb[53].mxu1 }
 0x66a   : > { %v5231_v50 = vadd.f32 %v5230_v51, %v14542_v15  ;;  %v5232_v21 = vpop.f32.mrb[54].mxu1 }
 0x66b   : > { %v5233_v53 = vadd.f32 %v5232_v21, %v14536_v13  ;;  %v5234_v55 = vpop.f32.mrb[55].mxu1  ;;  %v5517_v62 = vmax.f32 %v5229_v63, 0.0 }
 0x66c   : > { %v5235_v60 = vadd.f32 %v5234_v55, %v14542_v15  ;;  %v5518_v54 = vmax.f32 %v5231_v50, 0.0 }
 0x66d   : > { %v5519_v0 = vmax.f32 %v5233_v53, 0.0  ;;  %5923 = vmatmul.mubr.bf16.vlgmr.msra.gmra.mrb[160].mxu1 %v14558_v48 }
 0x66e   : > { %v5520_v37 = vmax.f32 %v5235_v60, 0.0  ;;  %5932 = vmatprep.mubr.bf16.mxu1 %v14578_v58 }
 0x66f   : > { %v14625_v1 = vpack.c.bf16 %v5519_v0, %v5517_v62 }
 0x670   : > { %v5238_v40 = vpop.f32.mrb[56].mxu1  ;;  %v14633_v4 = vpack.c.bf16 %v5520_v37, %v5518_v54 }
 0x671   : > { %v5239_v44 = vadd.f32 %v5238_v40, %v14536_v13  ;;  %v5240_v48 = vpop.f32.mrb[57].mxu1 }
 0x672   : > { %v5241_v45 = vadd.f32 %v5240_v48, %v14542_v15  ;;  %v5242_v58 = vpop.f32.mrb[58].mxu1  ;;  %v12385_v48 = vld [vmem:[%s16420_s3 + $0x6c4] ss:$8 sps:$4 sm:$0xff]  }
 0x673   : > { %v5243_v5 = vadd.f32 %v5242_v58, %v14536_v13  ;;  %v5244_v41 = vpop.f32.mrb[59].mxu1  ;;  %v5521_v6 = vmax.f32 %v5239_v44, 0.0  ;;  %v12383_v44 = vld [vmem:[%s16420_s3 + $0x6c0] ss:$8 sps:$4 sm:$0xff]   ;;  %6660 = vmatprep.subr.bf16.mxu0 %v12385_v48 }
 0x674   : > { %v5245_v2 = vadd.f32 %v5244_v41, %v14542_v15  ;;  %v5522_v9 = vmax.f32 %v5241_v45, 0.0  ;;  %6661 = vmatpush1.bf16.msra.mxu0 %v12383_v44 }
 0x675   : > { %v5523_v8 = vmax.f32 %v5243_v5, 0.0  ;;  %5933 = vmatmul.mubr.bf16.gmra.mrb[164].mxu1 %v14570_v56 }
 0x676   : > { %v5524_v10 = vmax.f32 %v5245_v2, 0.0  ;;  %5942 = vmatprep.mubr.bf16.mxu1 %v14590_v61 }
 0x677   : > { %v14641_v14 = vpack.c.bf16 %v5523_v8, %v5521_v6 }
 0x678   : > { %v5248_v31 = vpop.f32.mrb[60].mxu1  ;;  %v14643_v16 = vpack.c.bf16 %v5524_v10, %v5522_v9 }
 0x679   : > { %v5249_v47 = vadd.f32 %v5248_v31, %v14536_v13  ;;  %v5250_v11 = vpop.f32.mrb[61].mxu1 }
 0x67a   : > { %v5251_v22 = vadd.f32 %v5250_v11, %v14542_v15  ;;  %v5252_v17 = vpop.f32.mrb[62].mxu1 }
 0x67b   : > { %v5253_v18 = vadd.f32 %v5252_v17, %v14536_v13  ;;  %v5254_v19 = vpop.f32.mrb[63].mxu1  ;;  %v5525_v46 = vmax.f32 %v5249_v47, 0.0 }
 0x67c   : > { %v5255_v56 = vadd.f32 %v5254_v19, %v14542_v15  ;;  %v5526_v61 = vmax.f32 %v5251_v22, 0.0 }
 0x67d   : > { %v5527_v20 = vmax.f32 %v5253_v18, 0.0  ;;  %5943 = vmatmul.mubr.bf16.gmra.mrb[168].mxu1 %v14588_v52 }
 0x67e   : > { %v5528_v24 = vmax.f32 %v5255_v56, 0.0  ;;  %5952 = vmatprep.mubr.bf16.mxu1 %v14608_v23 }
 0x67f   : > { %v14651_v49 = vpack.c.bf16 %v5527_v20, %v5525_v46 }
 0x680   : > { %v5258_v30 = vpop.f32.mrb[64].mxu1  ;;  %v14659_v33 = vpack.c.bf16 %v5528_v24, %v5526_v61 }
 0x681   : > { %v5259_v34 = vadd.f32 %v5258_v30, %v14536_v13  ;;  %v5260_v52 = vpop.f32.mrb[65].mxu1 }
 0x682   : > { %v5261_v12 = vadd.f32 %v5260_v52, %v14542_v15  ;;  %v5262_v23 = vpop.f32.mrb[66].mxu1  ;;  %v12388_v52 = vld [vmem:[%s16420_s3 + $0x6d4] ss:$8 sps:$4 sm:$0xff]  }
 0x683   : > { %v5263_v35 = vadd.f32 %v5262_v23, %v14536_v13  ;;  %v5264_v36 = vpop.f32.mrb[67].mxu1  ;;  %v5529_v38 = vmax.f32 %v5259_v34, 0.0  ;;  %v12386_v34 = vld [vmem:[%s16420_s3 + $0x6d0] ss:$8 sps:$4 sm:$0xff]   ;;  %6662 = vmatprep.subr.bf16.mxu0 %v12388_v52 }
 0x684   : > { %v5265_v59 = vadd.f32 %v5264_v36, %v14542_v15  ;;  %v5530_v43 = vmax.f32 %v5261_v12, 0.0  ;;  %6663 = vmatpush1.bf16.msra.mxu0 %v12386_v34 }
 0x685   : > { %v5531_v39 = vmax.f32 %v5263_v35, 0.0  ;;  %5953 = vmatmul.mubr.bf16.gmra.mrb[172].mxu1 %v14600_v57 }
 0x686   : > { %v5532_v63 = vmax.f32 %v5265_v59, 0.0  ;;  %5962 = vmatprep.mubr.bf16.mxu1 %v14617_v29 }
 0x687   : > { %v14667_v51 = vpack.c.bf16 %v5531_v39, %v5529_v38 }
 0x688   : > { %v5268_v50 = vpop.f32.mrb[68].mxu1  ;;  %v14669_v21 = vpack.c.bf16 %v5532_v63, %v5530_v43 }
 0x689   : > { %v5269_v53 = vadd.f32 %v5268_v50, %v14536_v13  ;;  %v5270_v55 = vpop.f32.mrb[69].mxu1 }
 0x68a   : > { %v5271_v60 = vadd.f32 %v5270_v55, %v14542_v15  ;;  %v5272_v62 = vpop.f32.mrb[70].mxu1 }
 0x68b   : > { %v5273_v0 = vadd.f32 %v5272_v62, %v14536_v13  ;;  %v5274_v54 = vpop.f32.mrb[71].mxu1  ;;  %v5533_v37 = vmax.f32 %v5269_v53, 0.0 }
 0x68c   : > { %v5275_v57 = vadd.f32 %v5274_v54, %v14542_v15  ;;  %v5534_v29 = vmax.f32 %v5271_v60, 0.0 }
 0x68d   : > { %v5535_v3 = vmax.f32 %v5273_v0, 0.0  ;;  %5963 = vmatmul.mubr.bf16.gmra.mrb[176].mxu1 %v14615_v42 }
 0x68e   : > { %v5536_v7 = vmax.f32 %v5275_v57, 0.0  ;;  %5972 = vmatprep.mubr.bf16.mxu1 %v14633_v4 }
 0x68f   : > { %v14677_v40 = vpack.c.bf16 %v5535_v3, %v5533_v37 }
 0x690   : > { %v5278_v45 = vpop.f32.mrb[72].mxu1  ;;  %v14685_v58 = vpack.c.bf16 %v5536_v7, %v5534_v29 }
 0x691   : > { %v5279_v5 = vadd.f32 %v5278_v45, %v14536_v13  ;;  %v5280_v42 = vpop.f32.mrb[73].mxu1 }
 0x692   : > { %v5281_v41 = vadd.f32 %v5280_v42, %v14542_v15  ;;  %v5282_v4 = vpop.f32.mrb[74].mxu1 }
 0x693   : > { %v5283_v2 = vadd.f32 %v5282_v4, %v14536_v13  ;;  %v5284_v6 = vpop.f32.mrb[75].mxu1  ;;  %v5537_v9 = vmax.f32 %v5279_v5, 0.0  ;;  %v12394_v4 = vld [vmem:[%s16420_s3 + $0x6e4] ss:$8 sps:$4 sm:$0xff]  }
 0x694   : > { %v5285_v8 = vadd.f32 %v5284_v6, %v14542_v15  ;;  %v5538_v31 = vmax.f32 %v5281_v41, 0.0  ;;  %v12392_v41 = vld [vmem:[%s16420_s3 + $0x6e0] ss:$8 sps:$4 sm:$0xff]   ;;  %6664 = vmatprep.subr.bf16.mxu0 %v12394_v4 }
 0x695   : > { %v5539_v10 = vmax.f32 %v5283_v2, 0.0  ;;  %5973 = vmatmul.mubr.bf16.gmra.mrb[180].mxu1 %v14625_v1  ;;  %6665 = vmatpush1.bf16.msra.mxu0 %v12392_v41 }
 0x696   : > { %v5540_v47 = vmax.f32 %v5285_v8, 0.0  ;;  %5982 = vmatprep.mubr.bf16.mxu1 %v14643_v16 }
 0x697   : > { %v14693_v11 = vpack.c.bf16 %v5539_v10, %v5537_v9 }
 0x698   : > { %v5288_v22 = vpop.f32.mrb[76].mxu1  ;;  %v14695_v17 = vpack.c.bf16 %v5540_v47, %v5538_v31 }
 0x699   : > { %v5289_v18 = vadd.f32 %v5288_v22, %v14536_v13  ;;  %v5290_v19 = vpop.f32.mrb[77].mxu1 }
 0x69a   : > { %v5291_v56 = vadd.f32 %v5290_v19, %v14542_v15  ;;  %v5292_v46 = vpop.f32.mrb[78].mxu1 }
 0x69b   : > { %v5293_v20 = vadd.f32 %v5292_v46, %v14536_v13  ;;  %v5294_v61 = vpop.f32.mrb[79].mxu1  ;;  %v5541_v24 = vmax.f32 %v5289_v18, 0.0 }
 0x69c   : > { %v5295_v1 = vadd.f32 %v5294_v61, %v14542_v15  ;;  %v5542_v16 = vmax.f32 %v5291_v56, 0.0 }
 0x69d   : > { %v5543_v28 = vmax.f32 %v5293_v20, 0.0  ;;  %5983 = vmatmul.mubr.bf16.gmra.mrb[184].mxu1 %v14641_v14 }
 0x69e   : > { %v5544_v27 = vmax.f32 %v5295_v1, 0.0  ;;  %5992 = vmatprep.mubr.bf16.mxu1 %v14659_v33 }
 0x69f   : > { %v14703_v30 = vpack.c.bf16 %v5543_v28, %v5541_v24 }
 0x6a0   : > { %v5298_v12 = vpop.f32.mrb[80].mxu1  ;;  %v14711_v23 = vpack.c.bf16 %v5544_v27, %v5542_v16 }
 0x6a1   : > { %v5299_v35 = vadd.f32 %v5298_v12, %v14536_v13  ;;  %v5300_v14 = vpop.f32.mrb[81].mxu1 }
 0x6a2   : > { %v5301_v36 = vadd.f32 %v5300_v14, %v14542_v15  ;;  %v5302_v33 = vpop.f32.mrb[82].mxu1 }
 0x6a3   : > { %v5303_v59 = vadd.f32 %v5302_v33, %v14536_v13  ;;  %v5304_v38 = vpop.f32.mrb[83].mxu1  ;;  %v5545_v43 = vmax.f32 %v5299_v35, 0.0 }
 0x6a4   : > { %v5305_v39 = vadd.f32 %v5304_v38, %v14542_v15  ;;  %v5546_v50 = vmax.f32 %v5301_v36, 0.0  ;;  %v12400_v38 = vld [vmem:[%s16420_s3 + $0x6f4] ss:$8 sps:$4 sm:$0xff]  }
 0x6a5   : > { %v5547_v63 = vmax.f32 %v5303_v59, 0.0  ;;  %5993 = vmatmul.mubr.bf16.gmra.mrb[188].mxu1 %v14651_v49  ;;  %v12389_v49 = vld [vmem:[%s16420_s3 + $0x700] ss:$8 sps:$4 sm:$0xff]   ;;  %v12398_v59 = vld [vmem:[%s16420_s3 + $0x6f0] ss:$8 sps:$4 sm:$0xff]   ;;  %6666 = vmatprep.subr.bf16.mxu0 %v12400_v38 }
 0x6a6   : > { %v5548_v53 = vmax.f32 %v5305_v39, 0.0  ;;  %6002 = vmatprep.mubr.bf16.mxu1 %v14669_v21  ;;  %v12391_v21 = vld [vmem:[%s16420_s3 + $0x704] ss:$8 sps:$4 sm:$0xff]   ;;  %6667 = vmatpush1.bf16.msra.mxu0 %v12398_v59 }
 0x6a7   : > { %v14719_v55 = vpack.c.bf16 %v5547_v63, %v5545_v43  ;;  %7382 = vmatprep.subr.bf16.mxu1 %v12391_v21 }
 0x6a8   : > { %v5308_v60 = vpop.f32.mrb[84].mxu1  ;;  %v14721_v62 = vpack.c.bf16 %v5548_v53, %v5546_v50  ;;  %7383 = vmatpush1.bf16.msra.mxu1 %v12389_v49 }
 0x6a9   : > { %v5309_v0 = vadd.f32 %v5308_v60, %v14536_v13  ;;  %v5310_v54 = vpop.f32.mrb[85].mxu1 }
 0x6aa   : > { %v5311_v57 = vadd.f32 %v5310_v54, %v14542_v15  ;;  %v5312_v37 = vpop.f32.mrb[86].mxu1 }
 0x6ab   : > { %v5313_v3 = vadd.f32 %v5312_v37, %v14536_v13  ;;  %v5314_v29 = vpop.f32.mrb[87].mxu1  ;;  %v5549_v44 = vmax.f32 %v5309_v0, 0.0 }
 0x6ac   : > { %v5315_v7 = vadd.f32 %v5314_v29, %v14542_v15  ;;  %v5550_v45 = vmax.f32 %v5311_v57, 0.0 }
 0x6ad   : > { %v5551_v48 = vmax.f32 %v5313_v3, 0.0  ;;  %6003 = vmatmul.mubr.bf16.gmra.mrb[192].mxu1 %v14667_v51 }
 0x6ae   : > { %v5552_v5 = vmax.f32 %v5315_v7, 0.0  ;;  %6012 = vmatprep.mubr.bf16.mxu1 %v14685_v58 }
 0x6af   : > { %v14735_v42 = vpack.c.bf16 %v5551_v48, %v5549_v44 }
 0x6b0   : > { %v5318_v2 = vpop.f32.mrb[88].mxu1  ;;  %v14743_v6 = vpack.c.bf16 %v5552_v5, %v5550_v45 }
 0x6b1   : > { %v5319_v51 = vadd.f32 %v5318_v2, %v14536_v13  ;;  %v5320_v8 = vpop.f32.mrb[89].mxu1 }
 0x6b2   : > { %v5321_v58 = vadd.f32 %v5320_v8, %v14542_v15  ;;  %v5322_v9 = vpop.f32.mrb[90].mxu1 }
 0x6b3   : > { %v5323_v10 = vadd.f32 %v5322_v9, %v14536_v13  ;;  %v5324_v31 = vpop.f32.mrb[91].mxu1  ;;  %v5553_v22 = vmax.f32 %v5319_v51, 0.0 }
 0x6b4   : > { %v5325_v47 = vadd.f32 %v5324_v31, %v14542_v15  ;;  %v5554_v19 = vmax.f32 %v5321_v58, 0.0 }
 0x6b5   : > { %v5555_v18 = vmax.f32 %v5323_v10, 0.0  ;;  %6013 = vmatmul.mubr.bf16.gmra.mrb[196].mxu1 %v14677_v40  ;;  %v12395_v40 = vld [vmem:[%s16420_s3 + $0x710] ss:$8 sps:$4 sm:$0xff]  }
 0x6b6   : > { %v5556_v56 = vmax.f32 %v5325_v47, 0.0  ;;  %6022 = vmatprep.mubr.bf16.mxu1 %v14695_v17  ;;  %v12397_v17 = vld [vmem:[%s16420_s3 + $0x714] ss:$8 sps:$4 sm:$0xff]  }
 0x6b7   : > { %v14751_v46 = vpack.c.bf16 %v5555_v18, %v5553_v22  ;;  %7384 = vmatprep.subr.bf16.mxu1 %v12397_v17 }
 0x6b8   : > { %v5328_v20 = vpop.f32.mrb[92].mxu1  ;;  %v14753_v61 = vpack.c.bf16 %v5556_v56, %v5554_v19  ;;  %7385 = vmatpush1.bf16.msra.mxu1 %v12395_v40 }
 0x6b9   : > { %v5329_v1 = vadd.f32 %v5328_v20, %v14536_v13  ;;  %v5330_v24 = vpop.f32.mrb[93].mxu1 }
 0x6ba   : > { %v5331_v28 = vadd.f32 %v5330_v24, %v14542_v15  ;;  %v5332_v16 = vpop.f32.mrb[94].mxu1 }
 0x6bb   : > { %v5333_v27 = vadd.f32 %v5332_v16, %v14536_v13  ;;  %v5334_v34 = vpop.f32.mrb[95].mxu1  ;;  %v5557_v12 = vmax.f32 %v5329_v1, 0.0 }
 0x6bc   : > { %v5335_v52 = vadd.f32 %v5334_v34, %v14542_v15  ;;  %v5558_v14 = vmax.f32 %v5331_v28, 0.0 }
 0x6bd   : > { %v5559_v35 = vmax.f32 %v5333_v27, 0.0  ;;  %6023 = vmatmul.mubr.bf16.gmra.mrb[200].mxu1 %v14693_v11 }
 0x6be   : > { %v5560_v36 = vmax.f32 %v5335_v52, 0.0  ;;  %6032 = vmatprep.mubr.bf16.mxu1 %v14711_v23 }
 0x6bf   : > { %v14767_v33 = vpack.c.bf16 %v5559_v35, %v5557_v12 }
 0x6c0   : > { %v5338_v39 = vpop.f32.mrb[96].mxu1  ;;  %v14775_v43 = vpack.c.bf16 %v5560_v36, %v5558_v14 }
 0x6c1   : > { %v5339_v11 = vadd.f32 %v5338_v39, %v14536_v13  ;;  %v5340_v63 = vpop.f32.mrb[97].mxu1 }
 0x6c2   : > { %v5341_v23 = vadd.f32 %v5340_v63, %v14542_v15  ;;  %v5342_v50 = vpop.f32.mrb[98].mxu1 }
 0x6c3   : > { %v5343_v53 = vadd.f32 %v5342_v50, %v14536_v13  ;;  %v5344_v60 = vpop.f32.mrb[99].mxu1  ;;  %v5561_v54 = vmax.f32 %v5339_v11, 0.0 }
 0x6c4   : > { %v5345_v0 = vadd.f32 %v5344_v60, %v14542_v15  ;;  %v5562_v37 = vmax.f32 %v5341_v23, 0.0 }
 0x6c5   : > { %v5563_v57 = vmax.f32 %v5343_v53, 0.0  ;;  %6033 = vmatmul.mubr.bf16.gmra.mrb[204].mxu1 %v14703_v30  ;;  %v12401_v30 = vld [vmem:[%s16420_s3 + $0x720] ss:$8 sps:$4 sm:$0xff]  }
 0x6c6   : > { %v5564_v3 = vmax.f32 %v5345_v0, 0.0  ;;  %6042 = vmatprep.mubr.bf16.mxu1 %v14721_v62  ;;  %v12403_v62 = vld [vmem:[%s16420_s3 + $0x724] ss:$8 sps:$4 sm:$0xff]  }
 0x6c7   : > { %v14783_v29 = vpack.c.bf16 %v5563_v57, %v5561_v54  ;;  %7386 = vmatprep.subr.bf16.mxu1 %v12403_v62 }
 0x6c8   : > { %v5348_v49 = vpop.f32.mrb[100].mxu1  ;;  %v14785_v21 = vpack.c.bf16 %v5564_v3, %v5562_v37  ;;  %7387 = vmatpush1.bf16.msra.mxu1 %v12401_v30 }
 0x6c9   : > { %v5349_v7 = vadd.f32 %v5348_v49, %v14536_v13  ;;  %v5350_v44 = vpop.f32.mrb[101].mxu1 }
 0x6ca   : > { %v5351_v48 = vadd.f32 %v5350_v44, %v14542_v15  ;;  %v5352_v45 = vpop.f32.mrb[102].mxu1 }
 0x6cb   : > { %v5353_v5 = vadd.f32 %v5352_v45, %v14536_v13  ;;  %v5354_v41 = vpop.f32.mrb[103].mxu1  ;;  %v5565_v2 = vmax.f32 %v5349_v7, 0.0 }
 0x6cc   : > { %v5355_v4 = vadd.f32 %v5354_v41, %v14542_v15  ;;  %v5566_v8 = vmax.f32 %v5351_v48, 0.0 }
 0x6cd   : > { %v5567_v51 = vmax.f32 %v5353_v5, 0.0  ;;  %6043 = vmatmul.mubr.bf16.gmra.mrb[208].mxu1 %v14719_v55 }
 0x6ce   : > { %v5568_v58 = vmax.f32 %v5355_v4, 0.0  ;;  %6052 = vmatprep.mubr.bf16.mxu1 %v14743_v6 }
 0x6cf   : > { %v14799_v9 = vpack.c.bf16 %v5567_v51, %v5565_v2 }
 0x6d0   : > { %v5358_v10 = vpop.f32.mrb[104].mxu1  ;;  %v14801_v31 = vpack.c.bf16 %v5568_v58, %v5566_v8 }
 0x6d1   : > { %v5359_v47 = vadd.f32 %v5358_v10, %v14536_v13  ;;  %v5360_v22 = vpop.f32.mrb[105].mxu1 }
 0x6d2   : > { %v5361_v18 = vadd.f32 %v5360_v22, %v14542_v15  ;;  %v5362_v19 = vpop.f32.mrb[106].mxu1 }
 0x6d3   : > { %v5363_v56 = vadd.f32 %v5362_v19, %v14536_v13  ;;  %v5364_v55 = vpop.f32.mrb[107].mxu1  ;;  %v5569_v1 = vmax.f32 %v5359_v47, 0.0 }
 0x6d4   : > { %v5365_v20 = vadd.f32 %v5364_v55, %v14542_v15  ;;  %v5570_v6 = vmax.f32 %v5361_v18, 0.0 }
 0x6d5   : > { %v5571_v24 = vmax.f32 %v5363_v56, 0.0  ;;  %6053 = vmatmul.mubr.bf16.gmra.mrb[212].mxu1 %v14735_v42  ;;  %v12404_v42 = vld [vmem:[%s16420_s3 + $0x730] ss:$8 sps:$4 sm:$0xff]  }
 0x6d6   : > { %v5572_v28 = vmax.f32 %v5365_v20, 0.0  ;;  %6062 = vmatprep.mubr.bf16.mxu1 %v14753_v61  ;;  %v12406_v61 = vld [vmem:[%s16420_s3 + $0x734] ss:$8 sps:$4 sm:$0xff]  }
 0x6d7   : > { %v14809_v16 = vpack.c.bf16 %v5571_v24, %v5569_v1  ;;  %7388 = vmatprep.subr.bf16.mxu1 %v12406_v61 }
 0x6d8   : > { %v5368_v27 = vpop.f32.mrb[108].mxu1  ;;  %v14811_v34 = vpack.c.bf16 %v5572_v28, %v5570_v6  ;;  %7389 = vmatpush1.bf16.msra.mxu1 %v12404_v42 }
 0x6d9   : > { %v5369_v40 = vadd.f32 %v5368_v27, %v14536_v13  ;;  %v5370_v17 = vpop.f32.mrb[109].mxu1 }
 0x6da   : > { %v5371_v52 = vadd.f32 %v5370_v17, %v14542_v15  ;;  %v5372_v12 = vpop.f32.mrb[110].mxu1 }
 0x6db   : > { %v5373_v35 = vadd.f32 %v5372_v12, %v14536_v13  ;;  %v5374_v14 = vpop.f32.mrb[111].mxu1  ;;  %v5573_v59 = vmax.f32 %v5369_v40, 0.0 }
 0x6dc   : > { %v5375_v36 = vadd.f32 %v5374_v14, %v14542_v15  ;;  %v5574_v39 = vmax.f32 %v5371_v52, 0.0 }
 0x6dd   : > { %v5575_v38 = vmax.f32 %v5373_v35, 0.0  ;;  %6063 = vmatmul.mubr.bf16.gmra.mrb[216].mxu1 %v14751_v46 }
 0x6de   : > { %v5576_v11 = vmax.f32 %v5375_v36, 0.0  ;;  %6072 = vmatprep.mubr.bf16.mxu1 %v14775_v43 }
 0x6df   : > { %v14825_v63 = vpack.c.bf16 %v5575_v38, %v5573_v59 }
 0x6e0   : > { %v5378_v23 = vpop.f32.mrb[112].mxu1  ;;  %v14827_v50 = vpack.c.bf16 %v5576_v11, %v5574_v39 }
 0x6e1   : > { %v5379_v53 = vadd.f32 %v5378_v23, %v14536_v13  ;;  %v5380_v60 = vpop.f32.mrb[113].mxu1 }
 0x6e2   : > { %v5381_v0 = vadd.f32 %v5380_v60, %v14542_v15  ;;  %v5382_v54 = vpop.f32.mrb[114].mxu1 }
 0x6e3   : > { %v5383_v57 = vadd.f32 %v5382_v54, %v14536_v13  ;;  %v5384_v46 = vpop.f32.mrb[115].mxu1  ;;  %v5577_v3 = vmax.f32 %v5379_v53, 0.0 }
 0x6e4   : > { %v5385_v37 = vadd.f32 %v5384_v46, %v14542_v15  ;;  %v5578_v43 = vmax.f32 %v5381_v0, 0.0 }
 0x6e5   : > { %v5579_v49 = vmax.f32 %v5383_v57, 0.0  ;;  %6073 = vmatmul.mubr.bf16.gmra.mrb[220].mxu1 %v14767_v33  ;;  %v12407_v33 = vld [vmem:[%s16420_s3 + $0x740] ss:$8 sps:$4 sm:$0xff]  }
 0x6e6   : > { %v5580_v7 = vmax.f32 %v5385_v37, 0.0  ;;  %6082 = vmatprep.mubr.bf16.mxu1 %v14785_v21  ;;  %v12409_v21 = vld [vmem:[%s16420_s3 + $0x744] ss:$8 sps:$4 sm:$0xff]  }
 0x6e7   : > { %v14835_v44 = vpack.c.bf16 %v5579_v49, %v5577_v3  ;;  %7390 = vmatprep.subr.bf16.mxu1 %v12409_v21 }
 0x6e8   : > { %v5388_v48 = vpop.f32.mrb[116].mxu1  ;;  %v14837_v45 = vpack.c.bf16 %v5580_v7, %v5578_v43  ;;  %7391 = vmatpush1.bf16.msra.mxu1 %v12407_v33 }
 0x6e9   : > { %v5389_v5 = vadd.f32 %v5388_v48, %v14536_v13  ;;  %v5390_v41 = vpop.f32.mrb[117].mxu1 }
 0x6ea   : > { %v5391_v30 = vadd.f32 %v5390_v41, %v14542_v15  ;;  %v5392_v62 = vpop.f32.mrb[118].mxu1 }
 0x6eb   : > { %v5393_v4 = vadd.f32 %v5392_v62, %v14536_v13  ;;  %v5394_v2 = vpop.f32.mrb[119].mxu1  ;;  %v5581_v8 = vmax.f32 %v5389_v5, 0.0 }
 0x6ec   : > { %v5395_v51 = vadd.f32 %v5394_v2, %v14542_v15  ;;  %v5582_v10 = vmax.f32 %v5391_v30, 0.0 }
 0x6ed   : > { %v5583_v58 = vmax.f32 %v5393_v4, 0.0  ;;  %6083 = vmatmul.mubr.bf16.gmra.mrb[224].mxu1 %v14783_v29 }
 0x6ee   : > { %v5584_v47 = vmax.f32 %v5395_v51, 0.0  ;;  %6092 = vmatprep.mubr.bf16.mxu1 %v14801_v31 }
 0x6ef   : > { %v14851_v22 = vpack.c.bf16 %v5583_v58, %v5581_v8 }
 0x6f0   : > { %v5398_v18 = vpop.f32.mrb[120].mxu1  ;;  %v14853_v19 = vpack.c.bf16 %v5584_v47, %v5582_v10 }
 0x6f1   : > { %v5399_v56 = vadd.f32 %v5398_v18, %v14536_v13  ;;  %v5400_v55 = vpop.f32.mrb[121].mxu1 }
 0x6f2   : > { %v5401_v20 = vadd.f32 %v5400_v55, %v14542_v15  ;;  %v5402_v1 = vpop.f32.mrb[122].mxu1 }
 0x6f3   : > { %v5403_v24 = vadd.f32 %v5402_v1, %v14536_v13  ;;  %v5404_v29 = vpop.f32.mrb[123].mxu1  ;;  %v5585_v28 = vmax.f32 %v5399_v56, 0.0 }
 0x6f4   : > { %v5405_v6 = vadd.f32 %v5404_v29, %v14542_v15  ;;  %v5586_v31 = vmax.f32 %v5401_v20, 0.0 }
 0x6f5   : > { %v5587_v27 = vmax.f32 %v5403_v24, 0.0  ;;  %6093 = vmatmul.mubr.bf16.gmra.mrb[228].mxu1 %v14799_v9  ;;  %v12410_v9 = vld [vmem:[%s16420_s3 + $0x750] ss:$8 sps:$4 sm:$0xff]  }
 0x6f6   : > { %v5588_v40 = vmax.f32 %v5405_v6, 0.0  ;;  %6102 = vmatprep.mubr.bf16.mxu1 %v14811_v34  ;;  %v12412_v34 = vld [vmem:[%s16420_s3 + $0x754] ss:$8 sps:$4 sm:$0xff]  }
 0x6f7   : > { %v14861_v17 = vpack.c.bf16 %v5587_v27, %v5585_v28  ;;  %7392 = vmatprep.subr.bf16.mxu1 %v12412_v34 }
 0x6f8   : > { %v5408_v52 = vpop.f32.mrb[124].mxu1  ;;  %v14863_v12 = vpack.c.bf16 %v5588_v40, %v5586_v31  ;;  %7393 = vmatpush1.bf16.msra.mxu1 %v12410_v9 }
 0x6f9   : > { %v5409_v35 = vadd.f32 %v5408_v52, %v14536_v13  ;;  %v5410_v14 = vpop.f32.mrb[125].mxu1 }
 0x6fa   : > { %v5411_v42 = vadd.f32 %v5410_v14, %v14542_v15  ;;  %v5412_v61 = vpop.f32.mrb[126].mxu1 }
 0x6fb   : > { %v5413_v36 = vadd.f32 %v5412_v61, %v14536_v13  ;;  %v5414_v59 = vpop.f32.mrb[127].mxu1  ;;  %v5589_v39 = vmax.f32 %v5409_v35, 0.0 }
 0x6fc   : > { %v5415_v38 = vadd.f32 %v5414_v59, %v14542_v15  ;;  %v5590_v23 = vmax.f32 %v5411_v42, 0.0 }
 0x6fd   : > { %v5591_v11 = vmax.f32 %v5413_v36, 0.0  ;;  %6103 = vmatmul.mubr.bf16.gmra.mrb[232].mxu1 %v14809_v16 }
 0x6fe   : > { %v5592_v53 = vmax.f32 %v5415_v38, 0.0  ;;  %6112 = vmatprep.mubr.bf16.mxu1 %v14827_v50 }
 0x6ff   : > { %v14877_v60 = vpack.c.bf16 %v5591_v11, %v5589_v39 }
 0x700   : > { %v5418_v0 = vpop.f32.mrb[128].mxu1  ;;  %v14879_v54 = vpack.c.bf16 %v5592_v53, %v5590_v23 }
 0x701   : > { %v5419_v57 = vadd.f32 %v5418_v0, %v14536_v13  ;;  %v5420_v46 = vpop.f32.mrb[129].mxu1 }
 0x702   : > { %v5421_v37 = vadd.f32 %v5420_v46, %v14542_v15  ;;  %v5422_v3 = vpop.f32.mrb[130].mxu1 }
 0x703   : > { %v5423_v49 = vadd.f32 %v5422_v3, %v14536_v13  ;;  %v5424_v16 = vpop.f32.mrb[131].mxu1  ;;  %v5593_v7 = vmax.f32 %v5419_v57, 0.0 }
 0x704   : > { %v5425_v43 = vadd.f32 %v5424_v16, %v14542_v15  ;;  %v5594_v50 = vmax.f32 %v5421_v37, 0.0 }
 0x705   : > { %v5595_v48 = vmax.f32 %v5423_v49, 0.0  ;;  %6113 = vmatmul.mubr.bf16.gmra.mrb[236].mxu1 %v14825_v63  ;;  %v12413_v63 = vld [vmem:[%s16420_s3 + $0x760] ss:$8 sps:$4 sm:$0xff]  }
 0x706   : > { %v5596_v5 = vmax.f32 %v5425_v43, 0.0  ;;  %6122 = vmatprep.mubr.bf16.mxu1 %v14837_v45  ;;  %v12415_v45 = vld [vmem:[%s16420_s3 + $0x764] ss:$8 sps:$4 sm:$0xff]  }
 0x707   : > { %v14887_v41 = vpack.c.bf16 %v5595_v48, %v5593_v7  ;;  %7394 = vmatprep.subr.bf16.mxu1 %v12415_v45 }
 0x708   : > { %v5428_v30 = vpop.f32.mrb[132].mxu1  ;;  %v14889_v62 = vpack.c.bf16 %v5596_v5, %v5594_v50  ;;  %7395 = vmatpush1.bf16.msra.mxu1 %v12413_v63 }
 0x709   : > { %v5429_v4 = vadd.f32 %v5428_v30, %v14536_v13  ;;  %v5430_v2 = vpop.f32.mrb[133].mxu1 }
 0x70a   : > { %v5431_v33 = vadd.f32 %v5430_v2, %v14542_v15  ;;  %v5432_v21 = vpop.f32.mrb[134].mxu1 }
 0x70b   : > { %v5433_v51 = vadd.f32 %v5432_v21, %v14536_v13  ;;  %v5434_v8 = vpop.f32.mrb[135].mxu1  ;;  %v5597_v10 = vmax.f32 %v5429_v4, 0.0 }
 0x70c   : > { %v5435_v58 = vadd.f32 %v5434_v8, %v14542_v15  ;;  %v5598_v18 = vmax.f32 %v5431_v33, 0.0 }
 0x70d   : > { %v5599_v47 = vmax.f32 %v5433_v51, 0.0  ;;  %6123 = vmatmul.mubr.bf16.gmra.mrb[240].mxu1 %v14835_v44 }
 0x70e   : > { %v5600_v56 = vmax.f32 %v5435_v58, 0.0  ;;  %6132 = vmatprep.mubr.bf16.mxu1 %v14853_v19 }
 0x70f   : > { %v14903_v55 = vpack.c.bf16 %v5599_v47, %v5597_v10 }
 0x710   : > { %v5438_v20 = vpop.f32.mrb[136].mxu1  ;;  %v14905_v1 = vpack.c.bf16 %v5600_v56, %v5598_v18 }
 0x711   : > { %v5439_v24 = vadd.f32 %v5438_v20, %v14536_v13  ;;  %v5440_v29 = vpop.f32.mrb[137].mxu1 }
 0x712   : > { %v5441_v6 = vadd.f32 %v5440_v29, %v14542_v15  ;;  %v5442_v28 = vpop.f32.mrb[138].mxu1 }
 0x713   : > { %v5443_v27 = vadd.f32 %v5442_v28, %v14536_v13  ;;  %v5444_v44 = vpop.f32.mrb[139].mxu1  ;;  %v5601_v40 = vmax.f32 %v5439_v24, 0.0 }
 0x714   : > { %v5445_v31 = vadd.f32 %v5444_v44, %v14542_v15  ;;  %v5602_v19 = vmax.f32 %v5441_v6, 0.0 }
 0x715   : > { %v5603_v52 = vmax.f32 %v5443_v27, 0.0  ;;  %6133 = vmatmul.mubr.bf16.gmra.mrb[244].mxu1 %v14851_v22  ;;  %v12416_v22 = vld [vmem:[%s16420_s3 + $0x770] ss:$8 sps:$4 sm:$0xff]  }
 0x716   : > { %v5604_v35 = vmax.f32 %v5445_v31, 0.0  ;;  %6142 = vmatprep.mubr.bf16.mxu1 %v14863_v12  ;;  %v12418_v12 = vld [vmem:[%s16420_s3 + $0x774] ss:$8 sps:$4 sm:$0xff]  }
 0x717   : > { %v14913_v14 = vpack.c.bf16 %v5603_v52, %v5601_v40  ;;  %7396 = vmatprep.subr.bf16.mxu1 %v12418_v12 }
 0x718   : > { %v5448_v42 = vpop.f32.mrb[140].mxu1  ;;  %v14915_v61 = vpack.c.bf16 %v5604_v35, %v5602_v19  ;;  %7397 = vmatpush1.bf16.msra.mxu1 %v12416_v22  ;;  %v5724_v22 = vsub.s32 6, %v13196_v25 }
 0x719   : > { %v5449_v36 = vadd.f32 %v5448_v42, %v14536_v13  ;;  %v5450_v59 = vpop.f32.mrb[141].mxu1 }
 0x71a   : > { %v5451_v9 = vadd.f32 %v5450_v59, %v14542_v15  ;;  %v5452_v34 = vpop.f32.mrb[142].mxu1 }
 0x71b   : > { %v5453_v38 = vadd.f32 %v5452_v34, %v14536_v13  ;;  %v5454_v39 = vpop.f32.mrb[143].mxu1  ;;  %v5605_v23 = vmax.f32 %v5449_v36, 0.0 }
 0x71c   : > { %v5455_v11 = vadd.f32 %v5454_v39, %v14542_v15  ;;  %v5606_v0 = vmax.f32 %v5451_v9, 0.0 }
 0x71d   : > { %v5607_v53 = vmax.f32 %v5453_v38, 0.0  ;;  %6143 = vmatmul.mubr.bf16.gmra.mrb[248].mxu1 %v14861_v17 }
 0x71e   : > { %v5608_v57 = vmax.f32 %v5455_v11, 0.0  ;;  %6152 = vmatprep.mubr.bf16.mxu1 %v14879_v54 }
 0x71f   : > { %v14929_v46 = vpack.c.bf16 %v5607_v53, %v5605_v23  ;;  %v12424_v53 = vld [vmem:[%s16420_s3 + $0x794] ss:$8 sps:$4 sm:$0xff]  }
 0x720   : > { %v5458_v37 = vpop.f32.mrb[144].mxu1  ;;  %v14931_v3 = vpack.c.bf16 %v5608_v57, %v5606_v0 }
 0x721   : > { %v5459_v49 = vadd.f32 %v5458_v37, %v14536_v13  ;;  %v5460_v16 = vpop.f32.mrb[145].mxu1 }
 0x722   : > { %v5461_v43 = vadd.f32 %v5460_v16, %v14542_v15  ;;  %v5462_v7 = vpop.f32.mrb[146].mxu1 }
 0x723   : > { %v5463_v48 = vadd.f32 %v5462_v7, %v14536_v13  ;;  %v5464_v17 = vpop.f32.mrb[147].mxu1  ;;  %v5609_v5 = vmax.f32 %v5459_v49, 0.0  ;;  %v12838_v49 = vld [vmem:[%s16421_s4] sm:$0xff]  ;;  %v12839_v7 = vld [vmem:[%s16421_s4 + $0x8] sm:$0xff] }
 0x724   : > { %v5465_v50 = vadd.f32 %v5464_v17, %v14542_v15  ;;  %v5610_v54 = vmax.f32 %v5461_v43, 0.0 }
 0x725   : > { %v5611_v30 = vmax.f32 %v5463_v48, 0.0  ;;  %6153 = vmatmul.mubr.bf16.gmra.mrb[252].mxu1 %v14877_v60  ;;  %v12419_v60 = vld [vmem:[%s16420_s3 + $0x780] ss:$8 sps:$4 sm:$0xff]  }
 0x726   : > { %v5612_v4 = vmax.f32 %v5465_v50, 0.0  ;;  %6162 = vmatprep.mubr.bf16.mxu1 %v14889_v62  ;;  %v12421_v62 = vld [vmem:[%s16420_s3 + $0x784] ss:$8 sps:$4 sm:$0xff]  }
 0x727   : > { %v14939_v2 = vpack.c.bf16 %v5611_v30, %v5609_v5  ;;  %7398 = vmatprep.subr.bf16.mxu1 %v12421_v62 }
 0x728   : > { %v5468_v33 = vpop.f32.mrb[148].mxu1  ;;  %v14941_v21 = vpack.c.bf16 %v5612_v4, %v5610_v54  ;;  %7399 = vmatpush1.bf16.msra.mxu1 %v12419_v60 }
 0x729   : > { %v5469_v51 = vadd.f32 %v5468_v33, %v14536_v13  ;;  %v5470_v8 = vpop.f32.mrb[149].mxu1  ;;  %7400 = vmatprep.subr.bf16.mxu1 %v12424_v53 }
 0x72a   : > { %v5471_v63 = vadd.f32 %v5470_v8, %v14542_v15  ;;  %v5472_v45 = vpop.f32.mrb[150].mxu1 }
 0x72b   : > { %v5473_v58 = vadd.f32 %v5472_v45, %v14536_v13  ;;  %v5474_v10 = vpop.f32.mrb[151].mxu1  ;;  %v5613_v18 = vmax.f32 %v5469_v51, 0.0 }
 0x72c   : > { %v5475_v47 = vadd.f32 %v5474_v10, %v14542_v15  ;;  %v5614_v20 = vmax.f32 %v5471_v63, 0.0 }
 0x72d   : > { %v5615_v56 = vmax.f32 %v5473_v58, 0.0  ;;  %6163 = vmatmul.mubr.bf16.gmra.mrb[0].mxu1 %v14887_v41 }
 0x72e   : > { %v5616_v24 = vmax.f32 %v5475_v47, 0.0  ;;  %6172 = vmatprep.mubr.bf16.mxu1 %v14905_v1 }
 0x72f   : > { %v14955_v29 = vpack.c.bf16 %v5615_v56, %v5613_v18 }
 0x730   : > { %v5478_v6 = vpop.f32.mrb[152].mxu1  ;;  %v14957_v28 = vpack.c.bf16 %v5616_v24, %v5614_v20 }
 0x731   : > { %v5479_v27 = vadd.f32 %v5478_v6, %v14536_v13  ;;  %v5480_v44 = vpop.f32.mrb[153].mxu1 }
 0x732   : > { %v5481_v31 = vadd.f32 %v5480_v44, %v14542_v15  ;;  %v5482_v40 = vpop.f32.mrb[154].mxu1 }
 0x733   : > { %v5483_v52 = vadd.f32 %v5482_v40, %v14536_v13  ;;  %v5484_v41 = vpop.f32.mrb[155].mxu1  ;;  %v5617_v35 = vmax.f32 %v5479_v27, 0.0 }
 0x734   : > { %v5485_v19 = vadd.f32 %v5484_v41, %v14542_v15  ;;  %v5618_v1 = vmax.f32 %v5481_v31, 0.0 }
 0x735   : > { %v5619_v42 = vmax.f32 %v5483_v52, 0.0  ;;  %6173 = vmatmul.mubr.bf16.gmra.mrb[4].mxu1 %v14903_v55 }
 0x736   : > { %v5620_v36 = vmax.f32 %v5485_v19, 0.0  ;;  %6182 = vmatprep.mubr.bf16.mxu1 %v14915_v61  ;;  %v12422_v61 = vld [vmem:[%s16420_s3 + $0x790] ss:$8 sps:$4 sm:$0xff]  }
 0x737   : > { %v14965_v59 = vpack.c.bf16 %v5619_v42, %v5617_v35  ;;  %7401 = vmatpush1.bf16.msra.mxu1 %v12422_v61 }
 0x738   : > { %v5488_v9 = vpop.f32.mrb[156].mxu1  ;;  %v14967_v34 = vpack.c.bf16 %v5620_v36, %v5618_v1 }
 0x739   : > { %v5489_v38 = vadd.f32 %v5488_v9, %v14536_v13  ;;  %v5490_v39 = vpop.f32.mrb[157].mxu1 }
 0x73a   : > { %v5491_v12 = vadd.f32 %v5490_v39, %v14542_v15  ;;  %v5492_v11 = vpop.f32.mrb[158].mxu1 }
 0x73b   : > { %v5493_v23 = vadd.f32 %v5492_v11, %v14536_v13  ;;  %v5494_v55 = vpop.f32.mrb[159].mxu1  ;;  %v5621_v57 = vmax.f32 %v5489_v38, 0.0  ;;  %v14984_v13 = vrot.slane %v12838_v49, %v5724_v22 }
 0x73c   : > { %v5495_v0 = vadd.f32 %v5494_v55, %v14542_v15  ;;  %v5622_v16 = vmax.f32 %v5491_v12, 0.0  ;;  %v14990_v15 = vrot.slane %v12839_v7, %v5724_v22 }
 0x73d   : > { %v5623_v37 = vmax.f32 %v5493_v23, 0.0  ;;  %6183 = vmatmul.mubr.bf16.gmra.mrb[8].mxu1 %v14913_v14 }
 0x73e   : > { %v5624_v43 = vmax.f32 %v5495_v0, 0.0  ;;  %6192 = vmatprep.mubr.bf16.mxu1 %v14931_v3 }
 0x73f   : > { %v14992_v48 = vpack.c.bf16 %v5623_v37, %v5621_v57 }
 0x740   : > { %v5924_v14 = vpop.f32.mrb[160].mxu1  ;;  %v14994_v17 = vpack.c.bf16 %v5624_v43, %v5622_v16 }
 0x741   : > { %v5925_v50 = vadd.f32 %v5924_v14, %v14984_v13  ;;  %v5926_v5 = vpop.f32.mrb[161].mxu1 }
 0x742   : > { %v5927_v30 = vadd.f32 %v5926_v5, %v14990_v15  ;;  %v5928_v54 = vpop.f32.mrb[162].mxu1 }
 0x743   : > { %v5929_v3 = vadd.f32 %v5928_v54, %v14984_v13  ;;  %v5930_v4 = vpop.f32.mrb[163].mxu1  ;;  %v6243_v51 = vmax.f32 %v5925_v50, 0.0 }
 0x744   : > { %v5931_v33 = vadd.f32 %v5930_v4, %v14990_v15  ;;  %v6244_v63 = vmax.f32 %v5927_v30, 0.0 }
 0x745   : > { %v6245_v8 = vmax.f32 %v5929_v3, 0.0  ;;  %6193 = vmatmul.mubr.bf16.gmra.mrb[12].mxu1 %v14929_v46  ;;  %v12425_v46 = vld [vmem:[%s16420_s3 + $0x7a0] ss:$8 sps:$4 sm:$0xff]  }
 0x746   : > { %v6246_v45 = vmax.f32 %v5931_v33, 0.0  ;;  %6202 = vmatprep.mubr.bf16.mxu1 %v14941_v21  ;;  %v12427_v21 = vld [vmem:[%s16420_s3 + $0x7a4] ss:$8 sps:$4 sm:$0xff]  }
 0x747   : > { %v6371_v58 = vpack.c.bf16 %v6245_v8, %v6243_v51  ;;  %7402 = vmatprep.subr.bf16.mxu1 %v12427_v21 }
 0x748   : > { %v5934_v10 = vpop.f32.mrb[164].mxu1  ;;  %v6372_v60 = vpack.c.bf16 %v6246_v45, %v6244_v63  ;;  %7403 = vmatpush1.bf16.msra.mxu1 %v12425_v46 }
 0x749   : > { %v5935_v62 = vadd.f32 %v5934_v10, %v14984_v13  ;;  %v5936_v47 = vpop.f32.mrb[165].mxu1 }
 0x74a   : > { %v5937_v18 = vadd.f32 %v5936_v47, %v14990_v15  ;;  %v5938_v56 = vpop.f32.mrb[166].mxu1  ;;  %6668 = vmatprep.mubr.bf16.mxu0 %v6372_v60 }
 0x74b   : > { %v5939_v20 = vadd.f32 %v5938_v56, %v14984_v13  ;;  %v5940_v24 = vpop.f32.mrb[167].mxu1  ;;  %6669 = vmatmul.mubr.bf16.vlgmr.msra.gmra.mrb[96].mxu0 %v6371_v58  ;;  %v6247_v27 = vmax.f32 %v5935_v62, 0.0 }
 0x74c   : > { %v5941_v6 = vadd.f32 %v5940_v24, %v14990_v15  ;;  %v6248_v31 = vmax.f32 %v5937_v18, 0.0 }
 0x74d   : > { %v6249_v44 = vmax.f32 %v5939_v20, 0.0  ;;  %6203 = vmatmul.mubr.bf16.gmra.mrb[16].mxu1 %v14939_v2 }
 0x74e   : > { %v6250_v40 = vmax.f32 %v5941_v6, 0.0  ;;  %6212 = vmatprep.mubr.bf16.mxu1 %v14957_v28  ;;  %v12433_v6 = vld [vmem:[%s16420_s3 + $0x7c4] ss:$8 sps:$4 sm:$0xff]  }
 0x74f   : > { %v6373_v52 = vpack.c.bf16 %v6249_v44, %v6247_v27 }
 0x750   : > { %v5944_v41 = vpop.f32.mrb[168].mxu1  ;;  %v6374_v19 = vpack.c.bf16 %v6250_v40, %v6248_v31 }
 0x751   : > { %v5945_v35 = vadd.f32 %v5944_v41, %v14984_v13  ;;  %v5946_v42 = vpop.f32.mrb[169].mxu1 }
 0x752   : > { %v5947_v1 = vadd.f32 %v5946_v42, %v14990_v15  ;;  %v5948_v36 = vpop.f32.mrb[170].mxu1  ;;  %6678 = vmatprep.mubr.bf16.mxu0 %v6374_v19 }
 0x753   : > { %v5949_v9 = vadd.f32 %v5948_v36, %v14984_v13  ;;  %v5950_v38 = vpop.f32.mrb[171].mxu1  ;;  %6679 = vmatmul.mubr.bf16.gmra.mrb[100].mxu0 %v6373_v52  ;;  %v6251_v39 = vmax.f32 %v5945_v35, 0.0 }
 0x754   : > { %v5951_v2 = vadd.f32 %v5950_v38, %v14990_v15  ;;  %v6252_v28 = vmax.f32 %v5947_v1, 0.0 }
 0x755   : > { %v6253_v22 = vmax.f32 %v5949_v9, 0.0  ;;  %6213 = vmatmul.mubr.bf16.gmra.mrb[20].mxu1 %v14955_v29  ;;  %v12428_v29 = vld [vmem:[%s16420_s3 + $0x7b0] ss:$8 sps:$4 sm:$0xff]  }
 0x756   : > { %v6254_v12 = vmax.f32 %v5951_v2, 0.0  ;;  %6222 = vmatprep.mubr.bf16.mxu1 %v14967_v34  ;;  %v12430_v34 = vld [vmem:[%s16420_s3 + $0x7b4] ss:$8 sps:$4 sm:$0xff]  }
 0x757   : > { %v6375_v11 = vpack.c.bf16 %v6253_v22, %v6251_v39  ;;  %7404 = vmatprep.subr.bf16.mxu1 %v12430_v34  ;;  %v12434_v34 = vld [vmem:[%s16420_s3 + $0x7d0] ss:$8 sps:$4 sm:$0xff]  }
 0x758   : > { %v5954_v23 = vpop.f32.mrb[172].mxu1  ;;  %v6376_v55 = vpack.c.bf16 %v6254_v12, %v6252_v28  ;;  %7405 = vmatpush1.bf16.msra.mxu1 %v12428_v29 }
 0x759   : > { %v5955_v61 = vadd.f32 %v5954_v23, %v14984_v13  ;;  %v5956_v53 = vpop.f32.mrb[173].mxu1  ;;  %7406 = vmatprep.subr.bf16.mxu1 %v12433_v6 }
 0x75a   : > { %v5957_v0 = vadd.f32 %v5956_v53, %v14990_v15  ;;  %v5958_v57 = vpop.f32.mrb[174].mxu1  ;;  %6688 = vmatprep.mubr.bf16.mxu0 %v6376_v55 }
 0x75b   : > { %v5959_v37 = vadd.f32 %v5958_v57, %v14984_v13  ;;  %v5960_v49 = vpop.f32.mrb[175].mxu1  ;;  %6689 = vmatmul.mubr.bf16.gmra.mrb[104].mxu0 %v6375_v11  ;;  %v6255_v43 = vmax.f32 %v5955_v61, 0.0 }
 0x75c   : > { %v5961_v16 = vadd.f32 %v5960_v49, %v14990_v15  ;;  %v6256_v14 = vmax.f32 %v5957_v0, 0.0 }
 0x75d   : > { %v6257_v7 = vmax.f32 %v5959_v37, 0.0  ;;  %6223 = vmatmul.mubr.bf16.gmra.mrb[24].mxu1 %v14965_v59 }
 0x75e   : > { %v6258_v50 = vmax.f32 %v5961_v16, 0.0  ;;  %6232 = vmatprep.mubr.bf16.mxu1 %v14994_v17  ;;  %v12436_v16 = vld [vmem:[%s16420_s3 + $0x7d4] ss:$8 sps:$4 sm:$0xff]  }
 0x75f   : > { %v6377_v5 = vpack.c.bf16 %v6257_v7, %v6255_v43 }
 0x760   : > { %v5964_v30 = vpop.f32.mrb[176].mxu1  ;;  %v6378_v54 = vpack.c.bf16 %v6258_v50, %v6256_v14 }
 0x761   : > { %v5965_v3 = vadd.f32 %v5964_v30, %v14984_v13  ;;  %v5966_v4 = vpop.f32.mrb[177].mxu1 }
 0x762   : > { %v5967_v33 = vadd.f32 %v5966_v4, %v14990_v15  ;;  %v5968_v51 = vpop.f32.mrb[178].mxu1  ;;  %6698 = vmatprep.mubr.bf16.mxu0 %v6378_v54 }
 0x763   : > { %v5969_v8 = vadd.f32 %v5968_v51, %v14984_v13  ;;  %v5970_v63 = vpop.f32.mrb[179].mxu1  ;;  %6699 = vmatmul.mubr.bf16.gmra.mrb[108].mxu0 %v6377_v5  ;;  %v6259_v45 = vmax.f32 %v5965_v3, 0.0 }
 0x764   : > { %v5971_v59 = vadd.f32 %v5970_v63, %v14990_v15  ;;  %v6260_v17 = vmax.f32 %v5967_v33, 0.0 }
 0x765   : > { %v6261_v58 = vmax.f32 %v5969_v8, 0.0  ;;  %6233 = vmatmul.mubr.bf16.gmra.mrb[28].mxu1 %v14992_v48  ;;  %v12431_v48 = vld [vmem:[%s16420_s3 + $0x7c0] ss:$8 sps:$4 sm:$0xff]  }
 0x766   : > { %v6262_v10 = vmax.f32 %v5971_v59, 0.0  ;;  %7407 = vmatpush1.bf16.msra.mxu1 %v12431_v48 }
 0x767   : > { %v6379_v60 = vpack.c.bf16 %v6261_v58, %v6259_v45  ;;  %7408 = vmatprep.subr.bf16.mxu1 %v12436_v16 }
 0x768   : > { %v5974_v62 = vpop.f32.mrb[180].mxu1  ;;  %v6380_v47 = vpack.c.bf16 %v6262_v10, %v6260_v17 }
 0x769   : > { %v5975_v18 = vadd.f32 %v5974_v62, %v14984_v13  ;;  %v5976_v56 = vpop.f32.mrb[181].mxu1 }
 0x76a   : > { %v5977_v20 = vadd.f32 %v5976_v56, %v14990_v15  ;;  %v5978_v24 = vpop.f32.mrb[182].mxu1  ;;  %6708 = vmatprep.mubr.bf16.mxu0 %v6380_v47  ;;  %7409 = vmatpush1.bf16.msra.mxu1 %v12434_v34  ;;  %v12437_v47 = vld [vmem:[%s16422_s5] ss:$8 sps:$4 sm:$0xff]  }
 0x76b   : > { %v5979_v46 = vadd.f32 %v5978_v24, %v14984_v13  ;;  %v5980_v21 = vpop.f32.mrb[183].mxu1  ;;  %6709 = vmatmul.mubr.bf16.gmra.mrb[112].mxu0 %v6379_v60  ;;  %v6263_v44 = vmax.f32 %v5975_v18, 0.0  ;;  %v12439_v18 = vld [vmem:[%s16422_s5 + $0x4] ss:$8 sps:$4 sm:$0xff]  }
 0x76c   : > { %v5981_v27 = vadd.f32 %v5980_v21, %v14990_v15  ;;  %v6264_v40 = vmax.f32 %v5977_v20, 0.0  ;;  %8003 = vmatprep.subr.bf16.mxu0 %v12439_v18 }
 0x76d   : > { %v6265_v31 = vmax.f32 %v5979_v46, 0.0  ;;  %8004 = vmatpush1.bf16.msra.mxu0 %v12437_v47 }
 0x76e   : > { %v6266_v52 = vmax.f32 %v5981_v27, 0.0 }
 0x76f   : > { %v6381_v41 = vpack.c.bf16 %v6265_v31, %v6263_v44  ;;  %v12440_v44 = vld [vmem:[%s16420_s3 + $0x7e0] ss:$8 sps:$4 sm:$0xff]   ;;  %v12442_v31 = vld [vmem:[%s16420_s3 + $0x7e4] ss:$8 sps:$4 sm:$0xff]  }
 0x770   : > { %v5984_v19 = vpop.f32.mrb[184].mxu1  ;;  %v6382_v35 = vpack.c.bf16 %v6266_v52, %v6264_v40  ;;  %7410 = vmatprep.subr.bf16.mxu1 %v12442_v31 }
 0x771   : > { %v5985_v42 = vadd.f32 %v5984_v19, %v14984_v13  ;;  %v5986_v1 = vpop.f32.mrb[185].mxu1  ;;  %7411 = vmatpush1.bf16.msra.mxu1 %v12440_v44 }
 0x772   : > { %v5987_v36 = vadd.f32 %v5986_v1, %v14990_v15  ;;  %v5988_v9 = vpop.f32.mrb[186].mxu1  ;;  %6718 = vmatprep.mubr.bf16.mxu0 %v6382_v35 }
 0x773   : > { %v5989_v38 = vadd.f32 %v5988_v9, %v14984_v13  ;;  %v5990_v2 = vpop.f32.mrb[187].mxu1  ;;  %6719 = vmatmul.mubr.bf16.gmra.mrb[116].mxu0 %v6381_v41  ;;  %v6267_v22 = vmax.f32 %v5985_v42, 0.0 }
 0x774   : > { %v5991_v39 = vadd.f32 %v5990_v2, %v14990_v15  ;;  %v6268_v12 = vmax.f32 %v5987_v36, 0.0 }
 0x775   : > { %v6269_v28 = vmax.f32 %v5989_v38, 0.0 }
 0x776   : > { %v6270_v11 = vmax.f32 %v5991_v39, 0.0 }
 0x777   : > { %v6383_v23 = vpack.c.bf16 %v6269_v28, %v6267_v22 }
 0x778   : > { %v5994_v55 = vpop.f32.mrb[188].mxu1  ;;  %v6384_v61 = vpack.c.bf16 %v6270_v11, %v6268_v12 }
 0x779   : > { %v5995_v53 = vadd.f32 %v5994_v55, %v14984_v13  ;;  %v5996_v0 = vpop.f32.mrb[189].mxu1 }
 0x77a   : > { %v5997_v57 = vadd.f32 %v5996_v0, %v14990_v15  ;;  %v5998_v37 = vpop.f32.mrb[190].mxu1  ;;  %6728 = vmatprep.mubr.bf16.mxu0 %v6384_v61  ;;  %v12443_v0 = vld [vmem:[%s16422_s5 + $0x10] ss:$8 sps:$4 sm:$0xff]  }
 0x77b   : > { %v5999_v49 = vadd.f32 %v5998_v37, %v14984_v13  ;;  %v6000_v29 = vpop.f32.mrb[191].mxu1  ;;  %6729 = vmatmul.mubr.bf16.gmra.mrb[120].mxu0 %v6383_v23  ;;  %v6271_v7 = vmax.f32 %v5995_v53, 0.0 }
 0x77c   : > { %v6001_v43 = vadd.f32 %v6000_v29, %v14990_v15  ;;  %v6272_v50 = vmax.f32 %v5997_v57, 0.0  ;;  %v12445_v57 = vld [vmem:[%s16422_s5 + $0x14] ss:$8 sps:$4 sm:$0xff]  }
 0x77d   : > { %v6273_v14 = vmax.f32 %v5999_v49, 0.0  ;;  %8005 = vmatprep.subr.bf16.mxu0 %v12445_v57 }
 0x77e   : > { %v6274_v5 = vmax.f32 %v6001_v43, 0.0  ;;  %8006 = vmatpush1.bf16.msra.mxu0 %v12443_v0 }
 0x77f   : > { %v6385_v30 = vpack.c.bf16 %v6273_v14, %v6271_v7 }
 0x780   : > { %v6004_v54 = vpop.f32.mrb[192].mxu1  ;;  %v6386_v3 = vpack.c.bf16 %v6274_v5, %v6272_v50  ;;  %v12446_v50 = vld [vmem:[%s16420_s3 + $0x7f0] ss:$8 sps:$4 sm:$0xff]   ;;  %v12448_v5 = vld [vmem:[%s16420_s3 + $0x7f4] ss:$8 sps:$4 sm:$0xff]  }
 0x781   : > { %v6005_v4 = vadd.f32 %v6004_v54, %v14984_v13  ;;  %v6006_v33 = vpop.f32.mrb[193].mxu1  ;;  %7412 = vmatprep.subr.bf16.mxu1 %v12448_v5 }
 0x782   : > { %v6007_v51 = vadd.f32 %v6006_v33, %v14990_v15  ;;  %v6008_v8 = vpop.f32.mrb[194].mxu1  ;;  %6738 = vmatprep.mubr.bf16.mxu0 %v6386_v3  ;;  %7413 = vmatpush1.bf16.msra.mxu1 %v12446_v50 }
 0x783   : > { %v6009_v63 = vadd.f32 %v6008_v8, %v14984_v13  ;;  %v6010_v59 = vpop.f32.mrb[195].mxu1  ;;  %6739 = vmatmul.mubr.bf16.gmra.mrb[124].mxu0 %v6385_v30  ;;  %v6275_v58 = vmax.f32 %v6005_v4, 0.0 }
 0x784   : > { %v6011_v45 = vadd.f32 %v6010_v59, %v14990_v15  ;;  %v6276_v10 = vmax.f32 %v6007_v51, 0.0 }
 0x785   : > { %v6277_v17 = vmax.f32 %v6009_v63, 0.0 }
 0x786   : > { %v6278_v60 = vmax.f32 %v6011_v45, 0.0 }
 0x787   : > { %v6387_v62 = vpack.c.bf16 %v6277_v17, %v6275_v58 }
 0x788   : > { %v6014_v56 = vpop.f32.mrb[196].mxu1  ;;  %v6388_v20 = vpack.c.bf16 %v6278_v60, %v6276_v10 }
 0x789   : > { %v6015_v24 = vadd.f32 %v6014_v56, %v14984_v13  ;;  %v6016_v46 = vpop.f32.mrb[197].mxu1 }
 0x78a   : > { %v6017_v21 = vadd.f32 %v6016_v46, %v14990_v15  ;;  %v6018_v48 = vpop.f32.mrb[198].mxu1  ;;  %6748 = vmatprep.mubr.bf16.mxu0 %v6388_v20  ;;  %v12449_v46 = vld [vmem:[%s16422_s5 + $0x20] ss:$8 sps:$4 sm:$0xff]  }
 0x78b   : > { %v6019_v6 = vadd.f32 %v6018_v48, %v14984_v13  ;;  %v6020_v27 = vpop.f32.mrb[199].mxu1  ;;  %6749 = vmatmul.mubr.bf16.gmra.mrb[128].mxu0 %v6387_v62  ;;  %v6279_v52 = vmax.f32 %v6015_v24, 0.0 }
 0x78c   : > { %v6021_v40 = vadd.f32 %v6020_v27, %v14990_v15  ;;  %v6280_v19 = vmax.f32 %v6017_v21, 0.0  ;;  %v12451_v21 = vld [vmem:[%s16422_s5 + $0x24] ss:$8 sps:$4 sm:$0xff]  }
 0x78d   : > { %v6281_v41 = vmax.f32 %v6019_v6, 0.0  ;;  %8007 = vmatprep.subr.bf16.mxu0 %v12451_v21 }
 0x78e   : > { %v6282_v35 = vmax.f32 %v6021_v40, 0.0  ;;  %8008 = vmatpush1.bf16.msra.mxu0 %v12449_v46 }
 0x78f   : > { %v6389_v42 = vpack.c.bf16 %v6281_v41, %v6279_v52 }
 0x790   : > { %v6024_v1 = vpop.f32.mrb[200].mxu1  ;;  %v6390_v36 = vpack.c.bf16 %v6282_v35, %v6280_v19 }
 0x791   : > { %v6025_v9 = vadd.f32 %v6024_v1, %v14984_v13  ;;  %v6026_v38 = vpop.f32.mrb[201].mxu1 }
 0x792   : > { %v6027_v2 = vadd.f32 %v6026_v38, %v14990_v15  ;;  %v6028_v39 = vpop.f32.mrb[202].mxu1  ;;  %6758 = vmatprep.mubr.bf16.mxu0 %v6390_v36 }
 0x793   : > { %v6029_v22 = vadd.f32 %v6028_v39, %v14984_v13  ;;  %v6030_v28 = vpop.f32.mrb[203].mxu1  ;;  %6759 = vmatmul.mubr.bf16.gmra.mrb[132].mxu0 %v6389_v42  ;;  %v6283_v11 = vmax.f32 %v6025_v9, 0.0 }
 0x794   : > { %v6031_v12 = vadd.f32 %v6030_v28, %v14990_v15  ;;  %v6284_v55 = vmax.f32 %v6027_v2, 0.0 }
 0x795   : > { %v6285_v23 = vmax.f32 %v6029_v22, 0.0 }
 0x796   : > { %v6286_v61 = vmax.f32 %v6031_v12, 0.0 }
 0x797   : > { %v6391_v53 = vpack.c.bf16 %v6285_v23, %v6283_v11 }
 0x798   : > { %v6034_v37 = vpop.f32.mrb[204].mxu1  ;;  %v6392_v49 = vpack.c.bf16 %v6286_v61, %v6284_v55 }
 0x799   : > { %v6035_v29 = vadd.f32 %v6034_v37, %v14984_v13  ;;  %v6036_v34 = vpop.f32.mrb[205].mxu1 }
 0x79a   : > { %v6037_v16 = vadd.f32 %v6036_v34, %v14990_v15  ;;  %v6038_v43 = vpop.f32.mrb[206].mxu1  ;;  %6768 = vmatprep.mubr.bf16.mxu0 %v6392_v49  ;;  %v12452_v49 = vld [vmem:[%s16422_s5 + $0x30] ss:$8 sps:$4 sm:$0xff]  }
 0x79b   : > { %v6039_v7 = vadd.f32 %v6038_v43, %v14984_v13  ;;  %v6040_v14 = vpop.f32.mrb[207].mxu1  ;;  %6769 = vmatmul.mubr.bf16.gmra.mrb[136].mxu0 %v6391_v53  ;;  %v6287_v54 = vmax.f32 %v6035_v29, 0.0  ;;  %v12454_v29 = vld [vmem:[%s16422_s5 + $0x34] ss:$8 sps:$4 sm:$0xff]  }
 0x79c   : > { %v6041_v30 = vadd.f32 %v6040_v14, %v14990_v15  ;;  %v6288_v4 = vmax.f32 %v6037_v16, 0.0  ;;  %8009 = vmatprep.subr.bf16.mxu0 %v12454_v29 }
 0x79d   : > { %v6289_v3 = vmax.f32 %v6039_v7, 0.0  ;;  %8010 = vmatpush1.bf16.msra.mxu0 %v12452_v49 }
 0x79e   : > { %v6290_v33 = vmax.f32 %v6041_v30, 0.0 }
 0x79f   : > { %v6393_v51 = vpack.c.bf16 %v6289_v3, %v6287_v54 }
 0x7a0   : > { %v6044_v8 = vpop.f32.mrb[208].mxu1  ;;  %v6394_v63 = vpack.c.bf16 %v6290_v33, %v6288_v4 }
 0x7a1   : > { %v6045_v59 = vadd.f32 %v6044_v8, %v14984_v13  ;;  %v6046_v45 = vpop.f32.mrb[209].mxu1 }
 0x7a2   : > { %v6047_v58 = vadd.f32 %v6046_v45, %v14990_v15  ;;  %v6048_v17 = vpop.f32.mrb[210].mxu1  ;;  %6778 = vmatprep.mubr.bf16.mxu0 %v6394_v63 }
 0x7a3   : > { %v6049_v10 = vadd.f32 %v6048_v17, %v14984_v13  ;;  %v6050_v60 = vpop.f32.mrb[211].mxu1  ;;  %6779 = vmatmul.mubr.bf16.gmra.mrb[140].mxu0 %v6393_v51  ;;  %v6291_v47 = vmax.f32 %v6045_v59, 0.0 }
 0x7a4   : > { %v6051_v62 = vadd.f32 %v6050_v60, %v14990_v15  ;;  %v6292_v56 = vmax.f32 %v6047_v58, 0.0 }
 0x7a5   : > { %v6293_v18 = vmax.f32 %v6049_v10, 0.0 }
 0x7a6   : > { %v6294_v20 = vmax.f32 %v6051_v62, 0.0 }
 0x7a7   : > { %v6395_v24 = vpack.c.bf16 %v6293_v18, %v6291_v47 }
 0x7a8   : > { %v6054_v48 = vpop.f32.mrb[212].mxu1  ;;  %v6396_v6 = vpack.c.bf16 %v6294_v20, %v6292_v56  ;;  %v12455_v20 = vld [vmem:[%s16422_s5 + $0x40] ss:$8 sps:$4 sm:$0xff]  }
 0x7a9   : > { %v6055_v27 = vadd.f32 %v6054_v48, %v14984_v13  ;;  %v6056_v44 = vpop.f32.mrb[213].mxu1 }
 0x7aa   : > { %v6057_v31 = vadd.f32 %v6056_v44, %v14990_v15  ;;  %v6058_v40 = vpop.f32.mrb[214].mxu1  ;;  %6788 = vmatprep.mubr.bf16.mxu0 %v6396_v6 }
 0x7ab   : > { %v6059_v52 = vadd.f32 %v6058_v40, %v14984_v13  ;;  %v6060_v41 = vpop.f32.mrb[215].mxu1  ;;  %6789 = vmatmul.mubr.bf16.gmra.mrb[144].mxu0 %v6395_v24  ;;  %v6295_v35 = vmax.f32 %v6055_v27, 0.0  ;;  %v12457_v24 = vld [vmem:[%s16422_s5 + $0x44] ss:$8 sps:$4 sm:$0xff]  }
 0x7ac   : > { %v6061_v19 = vadd.f32 %v6060_v41, %v14990_v15  ;;  %v6296_v1 = vmax.f32 %v6057_v31, 0.0  ;;  %8011 = vmatprep.subr.bf16.mxu0 %v12457_v24  ;;  %v12461_v24 = vld [vmem:[%s16422_s5 + $0x60] ss:$8 sps:$4 sm:$0xff]  }
 0x7ad   : > { %v6297_v42 = vmax.f32 %v6059_v52, 0.0  ;;  %8012 = vmatpush1.bf16.msra.mxu0 %v12455_v20 }
 0x7ae   : > { %v6298_v36 = vmax.f32 %v6061_v19, 0.0 }
 0x7af   : > { %v6397_v9 = vpack.c.bf16 %v6297_v42, %v6295_v35 }
 0x7b0   : > { %v6064_v38 = vpop.f32.mrb[216].mxu1  ;;  %v6398_v2 = vpack.c.bf16 %v6298_v36, %v6296_v1 }
 0x7b1   : > { %v6065_v39 = vadd.f32 %v6064_v38, %v14984_v13  ;;  %v6066_v22 = vpop.f32.mrb[217].mxu1 }
 0x7b2   : > { %v6067_v28 = vadd.f32 %v6066_v22, %v14990_v15  ;;  %v6068_v12 = vpop.f32.mrb[218].mxu1  ;;  %6798 = vmatprep.mubr.bf16.mxu0 %v6398_v2 }
 0x7b3   : > { %v6069_v11 = vadd.f32 %v6068_v12, %v14984_v13  ;;  %v6070_v23 = vpop.f32.mrb[219].mxu1  ;;  %6799 = vmatmul.mubr.bf16.gmra.mrb[148].mxu0 %v6397_v9  ;;  %v6299_v61 = vmax.f32 %v6065_v39, 0.0 }
 0x7b4   : > { %v6071_v55 = vadd.f32 %v6070_v23, %v14990_v15  ;;  %v6300_v0 = vmax.f32 %v6067_v28, 0.0 }
 0x7b5   : > { %v6301_v53 = vmax.f32 %v6069_v11, 0.0 }
 0x7b6   : > { %v6302_v57 = vmax.f32 %v6071_v55, 0.0 }
 0x7b7   : > { %v6399_v37 = vpack.c.bf16 %v6301_v53, %v6299_v61 }
 0x7b8   : > { %v6074_v34 = vpop.f32.mrb[220].mxu1  ;;  %v6400_v16 = vpack.c.bf16 %v6302_v57, %v6300_v0  ;;  %v12458_v57 = vld [vmem:[%s16422_s5 + $0x50] ss:$8 sps:$4 sm:$0xff]  }
 0x7b9   : > { %v6075_v43 = vadd.f32 %v6074_v34, %v14984_v13  ;;  %v6076_v7 = vpop.f32.mrb[221].mxu1 }
 0x7ba   : > { %v6077_v14 = vadd.f32 %v6076_v7, %v14990_v15  ;;  %v6078_v50 = vpop.f32.mrb[222].mxu1  ;;  %6808 = vmatprep.mubr.bf16.mxu0 %v6400_v16 }
 0x7bb   : > { %v6079_v5 = vadd.f32 %v6078_v50, %v14984_v13  ;;  %v6080_v30 = vpop.f32.mrb[223].mxu1  ;;  %6809 = vmatmul.mubr.bf16.gmra.mrb[152].mxu0 %v6399_v37  ;;  %v6303_v3 = vmax.f32 %v6075_v43, 0.0  ;;  %v12460_v37 = vld [vmem:[%s16422_s5 + $0x54] ss:$8 sps:$4 sm:$0xff]  }
 0x7bc   : > { %v6081_v54 = vadd.f32 %v6080_v30, %v14990_v15  ;;  %v6304_v33 = vmax.f32 %v6077_v14, 0.0  ;;  %8013 = vmatprep.subr.bf16.mxu0 %v12460_v37  ;;  %v12464_v37 = vld [vmem:[%s16422_s5 + $0x70] ss:$8 sps:$4 sm:$0xff]  }
 0x7bd   : > { %v6305_v4 = vmax.f32 %v6079_v5, 0.0  ;;  %8014 = vmatpush1.bf16.msra.mxu0 %v12458_v57 }
 0x7be   : > { %v6306_v51 = vmax.f32 %v6081_v54, 0.0 }
 0x7bf   : > { %v6401_v8 = vpack.c.bf16 %v6305_v4, %v6303_v3 }
 0x7c0   : > { %v6084_v63 = vpop.f32.mrb[224].mxu1  ;;  %v6402_v59 = vpack.c.bf16 %v6306_v51, %v6304_v33 }
 0x7c1   : > { %v6085_v45 = vadd.f32 %v6084_v63, %v14984_v13  ;;  %v6086_v58 = vpop.f32.mrb[225].mxu1 }
 0x7c2   : > { %v6087_v17 = vadd.f32 %v6086_v58, %v14990_v15  ;;  %v6088_v10 = vpop.f32.mrb[226].mxu1  ;;  %6818 = vmatprep.mubr.bf16.mxu0 %v6402_v59 }
 0x7c3   : > { %v6089_v60 = vadd.f32 %v6088_v10, %v14984_v13  ;;  %v6090_v62 = vpop.f32.mrb[227].mxu1  ;;  %6819 = vmatmul.mubr.bf16.gmra.mrb[156].mxu0 %v6401_v8  ;;  %v6307_v18 = vmax.f32 %v6085_v45, 0.0 }
 0x7c4   : > { %v6091_v47 = vadd.f32 %v6090_v62, %v14990_v15  ;;  %v6308_v46 = vmax.f32 %v6087_v17, 0.0 }
 0x7c5   : > { %v6309_v56 = vmax.f32 %v6089_v60, 0.0 }
 0x7c6   : > { %v6310_v21 = vmax.f32 %v6091_v47, 0.0 }
 0x7c7   : > { %v6403_v48 = vpack.c.bf16 %v6309_v56, %v6307_v18 }
 0x7c8   : > { %v6094_v6 = vpop.f32.mrb[228].mxu1  ;;  %v6404_v27 = vpack.c.bf16 %v6310_v21, %v6308_v46  ;;  %v12463_v46 = vld [vmem:[%s16422_s5 + $0x64] ss:$8 sps:$4 sm:$0xff]  }
 0x7c9   : > { %v6095_v44 = vadd.f32 %v6094_v6, %v14984_v13  ;;  %v6096_v31 = vpop.f32.mrb[229].mxu1  ;;  %8015 = vmatprep.subr.bf16.mxu0 %v12463_v46  ;;  %v12467_v46 = vld [vmem:[%s16422_s5 + $0x80] ss:$8 sps:$4 sm:$0xff]  }
 0x7ca   : > { %v6097_v40 = vadd.f32 %v6096_v31, %v14990_v15  ;;  %v6098_v52 = vpop.f32.mrb[230].mxu1  ;;  %6828 = vmatprep.mubr.bf16.mxu0 %v6404_v27  ;;  %8016 = vmatpush1.bf16.msra.mxu0 %v12461_v24 }
 0x7cb   : > { %v6099_v41 = vadd.f32 %v6098_v52, %v14984_v13  ;;  %v6100_v19 = vpop.f32.mrb[231].mxu1  ;;  %6829 = vmatmul.mubr.bf16.gmra.mrb[160].mxu0 %v6403_v48  ;;  %v6311_v42 = vmax.f32 %v6095_v44, 0.0 }
 0x7cc   : > { %v6101_v35 = vadd.f32 %v6100_v19, %v14990_v15  ;;  %v6312_v36 = vmax.f32 %v6097_v40, 0.0 }
 0x7cd   : > { %v6313_v1 = vmax.f32 %v6099_v41, 0.0 }
 0x7ce   : > { %v6314_v9 = vmax.f32 %v6101_v35, 0.0 }
 0x7cf   : > { %v6405_v38 = vpack.c.bf16 %v6313_v1, %v6311_v42 }
 0x7d0   : > { %v6104_v2 = vpop.f32.mrb[232].mxu1  ;;  %v6406_v39 = vpack.c.bf16 %v6314_v9, %v6312_v36 }
 0x7d1   : > { %v6105_v22 = vadd.f32 %v6104_v2, %v14984_v13  ;;  %v6106_v28 = vpop.f32.mrb[233].mxu1 }
 0x7d2   : > { %v6107_v12 = vadd.f32 %v6106_v28, %v14990_v15  ;;  %v6108_v11 = vpop.f32.mrb[234].mxu1  ;;  %6838 = vmatprep.mubr.bf16.mxu0 %v6406_v39 }
 0x7d3   : > { %v6109_v23 = vadd.f32 %v6108_v11, %v14984_v13  ;;  %v6110_v55 = vpop.f32.mrb[235].mxu1  ;;  %6839 = vmatmul.mubr.bf16.gmra.mrb[164].mxu0 %v6405_v38  ;;  %v6315_v53 = vmax.f32 %v6105_v22, 0.0 }
 0x7d4   : > { %v6111_v61 = vadd.f32 %v6110_v55, %v14990_v15  ;;  %v6316_v49 = vmax.f32 %v6107_v12, 0.0 }
 0x7d5   : > { %v6317_v0 = vmax.f32 %v6109_v23, 0.0 }
 0x7d6   : > { %v6318_v29 = vmax.f32 %v6111_v61, 0.0 }
 0x7d7   : > { %v6407_v34 = vpack.c.bf16 %v6317_v0, %v6315_v53 }
 0x7d8   : > { %v6114_v16 = vpop.f32.mrb[236].mxu1  ;;  %v6408_v43 = vpack.c.bf16 %v6318_v29, %v6316_v49  ;;  %v12466_v49 = vld [vmem:[%s16422_s5 + $0x74] ss:$8 sps:$4 sm:$0xff]  }
 0x7d9   : > { %v6115_v7 = vadd.f32 %v6114_v16, %v14984_v13  ;;  %v6116_v14 = vpop.f32.mrb[237].mxu1  ;;  %8017 = vmatprep.subr.bf16.mxu0 %v12466_v49 }
 0x7da   : > { %v6117_v50 = vadd.f32 %v6116_v14, %v14990_v15  ;;  %v6118_v5 = vpop.f32.mrb[238].mxu1  ;;  %6848 = vmatprep.mubr.bf16.mxu0 %v6408_v43  ;;  %8018 = vmatpush1.bf16.msra.mxu0 %v12464_v37 }
 0x7db   : > { %v6119_v30 = vadd.f32 %v6118_v5, %v14984_v13  ;;  %v6120_v54 = vpop.f32.mrb[239].mxu1  ;;  %6849 = vmatmul.mubr.bf16.gmra.mrb[168].mxu0 %v6407_v34  ;;  %v6319_v4 = vmax.f32 %v6115_v7, 0.0 }
 0x7dc   : > { %v6121_v3 = vadd.f32 %v6120_v54, %v14990_v15  ;;  %v6320_v51 = vmax.f32 %v6117_v50, 0.0 }
 0x7dd   : > { %v6321_v33 = vmax.f32 %v6119_v30, 0.0 }
 0x7de   : > { %v6322_v8 = vmax.f32 %v6121_v3, 0.0 }
 0x7df   : > { %v6409_v63 = vpack.c.bf16 %v6321_v33, %v6319_v4 }
 0x7e0   : > { %v6124_v59 = vpop.f32.mrb[240].mxu1  ;;  %v6410_v45 = vpack.c.bf16 %v6322_v8, %v6320_v51 }
 0x7e1   : > { %v6125_v58 = vadd.f32 %v6124_v59, %v14984_v13  ;;  %v6126_v17 = vpop.f32.mrb[241].mxu1 }
 0x7e2   : > { %v6127_v10 = vadd.f32 %v6126_v17, %v14990_v15  ;;  %v6128_v60 = vpop.f32.mrb[242].mxu1  ;;  %6858 = vmatprep.mubr.bf16.mxu0 %v6410_v45 }
 0x7e3   : > { %v6129_v62 = vadd.f32 %v6128_v60, %v14984_v13  ;;  %v6130_v47 = vpop.f32.mrb[243].mxu1  ;;  %6859 = vmatmul.mubr.bf16.gmra.mrb[172].mxu0 %v6409_v63  ;;  %v6323_v56 = vmax.f32 %v6125_v58, 0.0 }
 0x7e4   : > { %v6131_v18 = vadd.f32 %v6130_v47, %v14990_v15  ;;  %v6324_v21 = vmax.f32 %v6127_v10, 0.0 }
 0x7e5   : > { %v6325_v20 = vmax.f32 %v6129_v62, 0.0 }
 0x7e6   : > { %v6326_v48 = vmax.f32 %v6131_v18, 0.0 }
 0x7e7   : > { %v6411_v6 = vpack.c.bf16 %v6325_v20, %v6323_v56 }
 0x7e8   : > { %v6134_v27 = vpop.f32.mrb[244].mxu1  ;;  %v6412_v44 = vpack.c.bf16 %v6326_v48, %v6324_v21  ;;  %v12469_v21 = vld [vmem:[%s16422_s5 + $0x84] ss:$8 sps:$4 sm:$0xff]  }
 0x7e9   : > { %v6135_v31 = vadd.f32 %v6134_v27, %v14984_v13  ;;  %v6136_v40 = vpop.f32.mrb[245].mxu1  ;;  %v15198_v48 = vld [vmem:[%s16424_s7] sm:$0xff]   ;;  %8019 = vmatprep.subr.bf16.mxu0 %v12469_v21 }
 0x7ea   : > { %v6137_v52 = vadd.f32 %v6136_v40, %v14990_v15  ;;  %v6138_v41 = vpop.f32.mrb[246].mxu1  ;;  %6868 = vmatprep.mubr.bf16.mxu0 %v6412_v44  ;;  %11631 = vmatprep.subr.bf16.mxu1 %v15198_v48 }
 0x7eb   : > { %v6139_v19 = vadd.f32 %v6138_v41, %v14984_v13  ;;  %v6140_v35 = vpop.f32.mrb[247].mxu1  ;;  %6869 = vmatmul.mubr.bf16.gmra.mrb[176].mxu0 %v6411_v6  ;;  %v6327_v1 = vmax.f32 %v6135_v31, 0.0 }
 0x7ec   : > { %v6141_v42 = vadd.f32 %v6140_v35, %v14990_v15  ;;  %v6328_v9 = vmax.f32 %v6137_v52, 0.0  ;;  %8020 = vmatpush1.bf16.msra.mxu0 %v12467_v46 }
 0x7ed   : > { %v6329_v36 = vmax.f32 %v6139_v19, 0.0 }
 0x7ee   : > { %v6330_v38 = vmax.f32 %v6141_v42, 0.0 }
 0x7ef   : > { %v6413_v2 = vpack.c.bf16 %v6329_v36, %v6327_v1 }
 0x7f0   : > { %v6144_v39 = vpop.f32.mrb[248].mxu1  ;;  %v6414_v22 = vpack.c.bf16 %v6330_v38, %v6328_v9 }
 0x7f1   : > { %v6145_v28 = vadd.f32 %v6144_v39, %v14984_v13  ;;  %v6146_v12 = vpop.f32.mrb[249].mxu1 }
 0x7f2   : > { %v6147_v11 = vadd.f32 %v6146_v12, %v14990_v15  ;;  %v6148_v23 = vpop.f32.mrb[250].mxu1  ;;  %6878 = vmatprep.mubr.bf16.mxu0 %v6414_v22 }
 0x7f3   : > { %v6149_v55 = vadd.f32 %v6148_v23, %v14984_v13  ;;  %v6150_v61 = vpop.f32.mrb[251].mxu1  ;;  %6879 = vmatmul.mubr.bf16.gmra.mrb[180].mxu0 %v6413_v2  ;;  %v6331_v0 = vmax.f32 %v6145_v28, 0.0 }
 0x7f4   : > { %v6151_v53 = vadd.f32 %v6150_v61, %v14990_v15  ;;  %v6332_v29 = vmax.f32 %v6147_v11, 0.0 }
 0x7f5   : > { %v6333_v57 = vmax.f32 %v6149_v55, 0.0 }
 0x7f6   : > { %v6334_v34 = vmax.f32 %v6151_v53, 0.0 }
 0x7f7   : > { %v6415_v16 = vpack.c.bf16 %v6333_v57, %v6331_v0 }
 0x7f8   : > { %v6154_v43 = vpop.f32.mrb[252].mxu1  ;;  %v6416_v7 = vpack.c.bf16 %v6334_v34, %v6332_v29  ;;  %v12471_v29 = vld [vmem:[%s16422_s5 + $0x90] ss:$8 sps:$4 sm:$0xff]   ;;  %v12473_v34 = vld [vmem:[%s16422_s5 + $0x94] ss:$8 sps:$4 sm:$0xff]  }
 0x7f9   : > { %v6155_v14 = vadd.f32 %v6154_v43, %v14984_v13  ;;  %v6156_v50 = vpop.f32.mrb[253].mxu1  ;;  %8021 = vmatprep.subr.bf16.mxu0 %v12473_v34 }
 0x7fa   : > { %v6157_v5 = vadd.f32 %v6156_v50, %v14990_v15  ;;  %v6158_v30 = vpop.f32.mrb[254].mxu1  ;;  %6888 = vmatprep.mubr.bf16.mxu0 %v6416_v7  ;;  %8022 = vmatpush1.bf16.msra.mxu0 %v12471_v29 }
 0x7fb   : > { %v6159_v54 = vadd.f32 %v6158_v30, %v14984_v13  ;;  %v6160_v3 = vpop.f32.mrb[255].mxu1  ;;  %6889 = vmatmul.mubr.bf16.gmra.mrb[184].mxu0 %v6415_v16  ;;  %v6335_v33 = vmax.f32 %v6155_v14, 0.0  ;;  %v6470_v14 = vsub.s32 7, %v13196_v25 }
 0x7fc   : > { %v6161_v4 = vadd.f32 %v6160_v3, %v14990_v15  ;;  %v6336_v8 = vmax.f32 %v6157_v5, 0.0 }
 0x7fd   : > { %v6337_v51 = vmax.f32 %v6159_v54, 0.0 }
 0x7fe   : > { %v6338_v63 = vmax.f32 %v6161_v4, 0.0 }
 0x7ff   : > { %v6417_v59 = vpack.c.bf16 %v6337_v51, %v6335_v33 }
 0x800   : > { %v6164_v45 = vpop.f32.mrb[0].mxu1  ;;  %v6418_v58 = vpack.c.bf16 %v6338_v63, %v6336_v8  ;;  %v12840_v8 = vld [vmem:[%s16421_s4] sm:$0xff] }
 0x801   : > { %v6165_v17 = vadd.f32 %v6164_v45, %v14984_v13  ;;  %v6166_v10 = vpop.f32.mrb[1].mxu1  ;;  %v15222_v25 = vrot.slane %v12840_v8, %v6470_v14 }
 0x802   : > { %v6167_v60 = vadd.f32 %v6166_v10, %v14990_v15  ;;  %v6168_v62 = vpop.f32.mrb[2].mxu1  ;;  %6898 = vmatprep.mubr.bf16.mxu0 %v6418_v58 }
 0x803   : > { %v6169_v47 = vadd.f32 %v6168_v62, %v14984_v13  ;;  %v6170_v18 = vpop.f32.mrb[3].mxu1  ;;  %6899 = vmatmul.mubr.bf16.gmra.mrb[188].mxu0 %v6417_v59  ;;  %v6339_v56 = vmax.f32 %v6165_v17, 0.0  ;;  %v12841_v59 = vld [vmem:[%s16421_s4 + $0x8] sm:$0xff] }
 0x804   : > { %v6171_v20 = vadd.f32 %v6170_v18, %v14990_v15  ;;  %v6340_v6 = vmax.f32 %v6167_v60, 0.0  ;;  %v15228_v45 = vrot.slane %v12841_v59, %v6470_v14 }
 0x805   : > { %v6341_v24 = vmax.f32 %v6169_v47, 0.0 }
 0x806   : > { %v6342_v27 = vmax.f32 %v6171_v20, 0.0 }
 0x807   : > { %v6419_v44 = vpack.c.bf16 %v6341_v24, %v6339_v56 }
 0x808   : > { %v6174_v31 = vpop.f32.mrb[4].mxu1  ;;  %v6420_v40 = vpack.c.bf16 %v6342_v27, %v6340_v6 }
 0x809   : > { %v6175_v52 = vadd.f32 %v6174_v31, %v14984_v13  ;;  %v6176_v41 = vpop.f32.mrb[5].mxu1 }
 0x80a   : > { %v6177_v19 = vadd.f32 %v6176_v41, %v14990_v15  ;;  %v6178_v35 = vpop.f32.mrb[6].mxu1  ;;  %6908 = vmatprep.mubr.bf16.mxu0 %v6420_v40 }
 0x80b   : > { %v6179_v42 = vadd.f32 %v6178_v35, %v14984_v13  ;;  %v6180_v1 = vpop.f32.mrb[7].mxu1  ;;  %6909 = vmatmul.mubr.bf16.gmra.mrb[192].mxu0 %v6419_v44  ;;  %v6343_v9 = vmax.f32 %v6175_v52, 0.0 }
 0x80c   : > { %v6181_v36 = vadd.f32 %v6180_v1, %v14990_v15  ;;  %v6344_v2 = vmax.f32 %v6177_v19, 0.0 }
 0x80d   : > { %v6345_v38 = vmax.f32 %v6179_v42, 0.0 }
 0x80e   : > { %v6346_v39 = vmax.f32 %v6181_v36, 0.0 }
 0x80f   : > { %v6421_v22 = vpack.c.bf16 %v6345_v38, %v6343_v9 }
 0x810   : > { %v6184_v28 = vpop.f32.mrb[8].mxu1  ;;  %v6422_v12 = vpack.c.bf16 %v6346_v39, %v6344_v2 }
 0x811   : > { %v6185_v11 = vadd.f32 %v6184_v28, %v14984_v13  ;;  %v6186_v23 = vpop.f32.mrb[9].mxu1 }
 0x812   : > { %v6187_v55 = vadd.f32 %v6186_v23, %v14990_v15  ;;  %v6188_v61 = vpop.f32.mrb[10].mxu1  ;;  %6918 = vmatprep.mubr.bf16.mxu0 %v6422_v12 }
 0x813   : > { %v6189_v53 = vadd.f32 %v6188_v61, %v14984_v13  ;;  %v6190_v0 = vpop.f32.mrb[11].mxu1  ;;  %6919 = vmatmul.mubr.bf16.gmra.mrb[196].mxu0 %v6421_v22  ;;  %v6347_v37 = vmax.f32 %v6185_v11, 0.0  ;;  %v12476_v61 = vld [vmem:[%s16422_s5 + $0xa4] ss:$8 sps:$4 sm:$0xff]  }
 0x814   : > { %v6191_v57 = vadd.f32 %v6190_v0, %v14990_v15  ;;  %v6348_v16 = vmax.f32 %v6187_v55, 0.0  ;;  %v12474_v55 = vld [vmem:[%s16422_s5 + $0xa0] ss:$8 sps:$4 sm:$0xff]   ;;  %8023 = vmatprep.subr.bf16.mxu0 %v12476_v61  ;;  %v12479_v61 = vld [vmem:[%s16422_s5 + $0xb4] ss:$8 sps:$4 sm:$0xff]  }
 0x815   : > { %v6349_v49 = vmax.f32 %v6189_v53, 0.0  ;;  %8024 = vmatpush1.bf16.msra.mxu0 %v12474_v55  ;;  %v12477_v55 = vld [vmem:[%s16422_s5 + $0xb0] ss:$8 sps:$4 sm:$0xff]  }
 0x816   : > { %v6350_v43 = vmax.f32 %v6191_v57, 0.0  ;;  %8025 = vmatprep.subr.bf16.mxu0 %v12479_v61 }
 0x817   : > { %v6423_v7 = vpack.c.bf16 %v6349_v49, %v6347_v37 }
 0x818   : > { %v6194_v50 = vpop.f32.mrb[12].mxu1  ;;  %v6424_v5 = vpack.c.bf16 %v6350_v43, %v6348_v16 }
 0x819   : > { %v6195_v30 = vadd.f32 %v6194_v50, %v14984_v13  ;;  %v6196_v54 = vpop.f32.mrb[13].mxu1  ;;  %8026 = vmatpush1.bf16.msra.mxu0 %v12477_v55 }
 0x81a   : > { %v6197_v3 = vadd.f32 %v6196_v54, %v14990_v15  ;;  %v6198_v4 = vpop.f32.mrb[14].mxu1  ;;  %6928 = vmatprep.mubr.bf16.mxu0 %v6424_v5 }
 0x81b   : > { %v6199_v33 = vadd.f32 %v6198_v4, %v14984_v13  ;;  %v6200_v51 = vpop.f32.mrb[15].mxu1  ;;  %6929 = vmatmul.mubr.bf16.gmra.mrb[200].mxu0 %v6423_v7  ;;  %v6351_v58 = vmax.f32 %v6195_v30, 0.0 }
 0x81c   : > { %v6201_v63 = vadd.f32 %v6200_v51, %v14990_v15  ;;  %v6352_v10 = vmax.f32 %v6197_v3, 0.0 }
 0x81d   : > { %v6353_v17 = vmax.f32 %v6199_v33, 0.0 }
 0x81e   : > { %v6354_v60 = vmax.f32 %v6201_v63, 0.0  ;;  %v6670_v62 = vpop.f32.mrb[96].mxu0 }
 0x81f   : > { %v6425_v47 = vpack.c.bf16 %v6353_v17, %v6351_v58  ;;  %v6671_v18 = vadd.f32 %v6670_v62, %v15222_v25  ;;  %v6672_v56 = vpop.f32.mrb[97].mxu0 }
 0x820   : > { %v6673_v20 = vadd.f32 %v6672_v56, %v15228_v45  ;;  %v6204_v24 = vpop.f32.mrb[16].mxu1  ;;  %v6674_v46 = vpop.f32.mrb[98].mxu0  ;;  %v6426_v21 = vpack.c.bf16 %v6354_v60, %v6352_v10 }
 0x821   : > { %v6205_v6 = vadd.f32 %v6204_v24, %v14984_v13  ;;  %v6675_v27 = vadd.f32 %v6674_v46, %v15222_v25  ;;  %v6206_v44 = vpop.f32.mrb[17].mxu1  ;;  %v6676_v31 = vpop.f32.mrb[99].mxu0  ;;  %v6989_v19 = vmax.f32 %v6671_v18, 0.0 }
 0x822   : > { %v6207_v40 = vadd.f32 %v6206_v44, %v14990_v15  ;;  %v6677_v52 = vadd.f32 %v6676_v31, %v15228_v45  ;;  %v6208_v41 = vpop.f32.mrb[18].mxu1  ;;  %6938 = vmatprep.mubr.bf16.mxu0 %v6426_v21  ;;  %v6990_v36 = vmax.f32 %v6673_v20, 0.0 }
 0x823   : > { %v6991_v35 = vmax.f32 %v6675_v27, 0.0  ;;  %v6209_v42 = vadd.f32 %v6208_v41, %v14984_v13  ;;  %v6210_v1 = vpop.f32.mrb[19].mxu1  ;;  %6939 = vmatmul.mubr.bf16.gmra.mrb[204].mxu0 %v6425_v47  ;;  %v6355_v2 = vmax.f32 %v6205_v6, 0.0 }
 0x824   : > { %v6992_v9 = vmax.f32 %v6677_v52, 0.0  ;;  %v6211_v38 = vadd.f32 %v6210_v1, %v14990_v15  ;;  %v6356_v22 = vmax.f32 %v6207_v40, 0.0 }
 0x825   : > { %v7117_v39 = vpack.c.bf16 %v6991_v35, %v6989_v19  ;;  %v6357_v28 = vmax.f32 %v6209_v42, 0.0 }
 0x826   : > { %v6358_v12 = vmax.f32 %v6211_v38, 0.0  ;;  %v6680_v11 = vpop.f32.mrb[100].mxu0  ;;  %v7118_v23 = vpack.c.bf16 %v6992_v9, %v6990_v36 }
 0x827   : > { %v6427_v53 = vpack.c.bf16 %v6357_v28, %v6355_v2  ;;  %v6681_v0 = vadd.f32 %v6680_v11, %v15222_v25  ;;  %v6682_v57 = vpop.f32.mrb[101].mxu0 }
 0x828   : > { %v6683_v37 = vadd.f32 %v6682_v57, %v15228_v45  ;;  %v6214_v49 = vpop.f32.mrb[20].mxu1  ;;  %v6684_v29 = vpop.f32.mrb[102].mxu0  ;;  %7414 = vmatprep.mubr.bf16.mxu1 %v7118_v23  ;;  %v6428_v34 = vpack.c.bf16 %v6358_v12, %v6356_v22 }
 0x829   : > { %v6215_v16 = vadd.f32 %v6214_v49, %v14984_v13  ;;  %v6685_v43 = vadd.f32 %v6684_v29, %v15222_v25  ;;  %v6216_v7 = vpop.f32.mrb[21].mxu1  ;;  %v6686_v14 = vpop.f32.mrb[103].mxu0  ;;  %7415 = vmatmul.mubr.bf16.vlgmr.msra.gmra.mrb[32].mxu1 %v7117_v39  ;;  %v6993_v54 = vmax.f32 %v6681_v0, 0.0 }
 0x82a   : > { %v6217_v50 = vadd.f32 %v6216_v7, %v14990_v15  ;;  %v6687_v5 = vadd.f32 %v6686_v14, %v15228_v45  ;;  %v6218_v30 = vpop.f32.mrb[22].mxu1  ;;  %6948 = vmatprep.mubr.bf16.mxu0 %v6428_v34  ;;  %11632 = vmatpush3.bf16.msra.mxu1 %v15198_v48  ;;  %v6994_v51 = vmax.f32 %v6683_v37, 0.0 }
 0x82b   : > { %v6995_v3 = vmax.f32 %v6685_v43, 0.0  ;;  %v6219_v4 = vadd.f32 %v6218_v30, %v14984_v13  ;;  %v6220_v33 = vpop.f32.mrb[23].mxu1  ;;  %6949 = vmatmul.mubr.bf16.gmra.mrb[208].mxu0 %v6427_v53  ;;  %v6359_v59 = vmax.f32 %v6215_v16, 0.0 }
 0x82c   : > { %v6996_v8 = vmax.f32 %v6687_v5, 0.0  ;;  %v6221_v63 = vadd.f32 %v6220_v33, %v14990_v15  ;;  %v6360_v10 = vmax.f32 %v6217_v50, 0.0 }
 0x82d   : > { %v7119_v58 = vpack.c.bf16 %v6995_v3, %v6993_v54  ;;  %v6361_v17 = vmax.f32 %v6219_v4, 0.0 }
 0x82e   : > { %v6362_v60 = vmax.f32 %v6221_v63, 0.0  ;;  %v6690_v62 = vpop.f32.mrb[104].mxu0  ;;  %v7120_v47 = vpack.c.bf16 %v6996_v8, %v6994_v51 }
 0x82f   : > { %v6429_v18 = vpack.c.bf16 %v6361_v17, %v6359_v59  ;;  %v6691_v48 = vadd.f32 %v6690_v62, %v15222_v25  ;;  %v6692_v56 = vpop.f32.mrb[105].mxu0 }
 0x830   : > { %v6693_v20 = vadd.f32 %v6692_v56, %v15228_v45  ;;  %v6224_v24 = vpop.f32.mrb[24].mxu1  ;;  %v6694_v46 = vpop.f32.mrb[106].mxu0  ;;  %7424 = vmatprep.mubr.bf16.mxu1 %v7120_v47  ;;  %v6430_v21 = vpack.c.bf16 %v6362_v60, %v6360_v10 }
 0x831   : > { %v6225_v6 = vadd.f32 %v6224_v24, %v14984_v13  ;;  %v6695_v27 = vadd.f32 %v6694_v46, %v15222_v25  ;;  %v6226_v44 = vpop.f32.mrb[25].mxu1  ;;  %v6696_v31 = vpop.f32.mrb[107].mxu0  ;;  %7425 = vmatmul.mubr.bf16.gmra.mrb[36].mxu1 %v7119_v58  ;;  %v6997_v19 = vmax.f32 %v6691_v48, 0.0 }
 0x832   : > { %v6227_v40 = vadd.f32 %v6226_v44, %v14990_v15  ;;  %v6697_v52 = vadd.f32 %v6696_v31, %v15228_v45  ;;  %v6228_v41 = vpop.f32.mrb[26].mxu1  ;;  %6958 = vmatprep.mubr.bf16.mxu0 %v6430_v21  ;;  %v6998_v36 = vmax.f32 %v6693_v20, 0.0 }
 0x833   : > { %v6999_v35 = vmax.f32 %v6695_v27, 0.0  ;;  %v6229_v42 = vadd.f32 %v6228_v41, %v14984_v13  ;;  %v6230_v1 = vpop.f32.mrb[27].mxu1  ;;  %6959 = vmatmul.mubr.bf16.gmra.mrb[212].mxu0 %v6429_v18  ;;  %v6363_v2 = vmax.f32 %v6225_v6, 0.0 }
 0x834   : > { %v7000_v9 = vmax.f32 %v6697_v52, 0.0  ;;  %v6231_v38 = vadd.f32 %v6230_v1, %v14990_v15  ;;  %v6364_v22 = vmax.f32 %v6227_v40, 0.0 }
 0x835   : > { %v7121_v39 = vpack.c.bf16 %v6999_v35, %v6997_v19  ;;  %v6365_v28 = vmax.f32 %v6229_v42, 0.0  ;;  %v12480_v19 = vld [vmem:[%s16422_s5 + $0xc0] ss:$8 sps:$4 sm:$0xff]   ;;  %v12482_v35 = vld [vmem:[%s16422_s5 + $0xc4] ss:$8 sps:$4 sm:$0xff]  }
 0x836   : > { %v6366_v12 = vmax.f32 %v6231_v38, 0.0  ;;  %v6700_v11 = vpop.f32.mrb[108].mxu0  ;;  %v7122_v23 = vpack.c.bf16 %v7000_v9, %v6998_v36  ;;  %8027 = vmatprep.subr.bf16.mxu0 %v12482_v35  ;;  %v12488_v35 = vld [vmem:[%s16422_s5 + $0xe4] ss:$8 sps:$4 sm:$0xff]  }
 0x837   : > { %v6431_v53 = vpack.c.bf16 %v6365_v28, %v6363_v2  ;;  %v6701_v0 = vadd.f32 %v6700_v11, %v15222_v25  ;;  %v6702_v57 = vpop.f32.mrb[109].mxu0  ;;  %8028 = vmatpush1.bf16.msra.mxu0 %v12480_v19  ;;  %v12486_v19 = vld [vmem:[%s16422_s5 + $0xe0] ss:$8 sps:$4 sm:$0xff]  }
 0x838   : > { %v6703_v37 = vadd.f32 %v6702_v57, %v15228_v45  ;;  %v6234_v49 = vpop.f32.mrb[28].mxu1  ;;  %v6704_v29 = vpop.f32.mrb[110].mxu0  ;;  %7434 = vmatprep.mubr.bf16.mxu1 %v7122_v23  ;;  %v6432_v34 = vpack.c.bf16 %v6366_v12, %v6364_v22 }
 0x839   : > { %v6235_v16 = vadd.f32 %v6234_v49, %v14984_v13  ;;  %v6705_v43 = vadd.f32 %v6704_v29, %v15222_v25  ;;  %v6236_v7 = vpop.f32.mrb[29].mxu1  ;;  %v6706_v14 = vpop.f32.mrb[111].mxu0  ;;  %7435 = vmatmul.mubr.bf16.gmra.mrb[40].mxu1 %v7121_v39  ;;  %v7001_v54 = vmax.f32 %v6701_v0, 0.0 }
 0x83a   : > { %v6237_v50 = vadd.f32 %v6236_v7, %v14990_v15  ;;  %v6707_v5 = vadd.f32 %v6706_v14, %v15228_v45  ;;  %v6238_v30 = vpop.f32.mrb[30].mxu1  ;;  %6968 = vmatprep.mubr.bf16.mxu0 %v6432_v34  ;;  %v7002_v51 = vmax.f32 %v6703_v37, 0.0 }
 0x83b   : > { %v7003_v3 = vmax.f32 %v6705_v43, 0.0  ;;  %v6239_v4 = vadd.f32 %v6238_v30, %v14984_v13  ;;  %v6240_v33 = vpop.f32.mrb[31].mxu1  ;;  %6969 = vmatmul.mubr.bf16.gmra.mrb[216].mxu0 %v6431_v53  ;;  %v6367_v59 = vmax.f32 %v6235_v16, 0.0 }
 0x83c   : > { %v7004_v8 = vmax.f32 %v6707_v5, 0.0  ;;  %v6241_v63 = vadd.f32 %v6240_v33, %v14990_v15  ;;  %v6368_v10 = vmax.f32 %v6237_v50, 0.0 }
 0x83d   : > { %v7123_v58 = vpack.c.bf16 %v7003_v3, %v7001_v54  ;;  %v6369_v17 = vmax.f32 %v6239_v4, 0.0  ;;  %v12483_v54 = vld [vmem:[%s16422_s5 + $0xd0] ss:$8 sps:$4 sm:$0xff]   ;;  %v12485_v3 = vld [vmem:[%s16422_s5 + $0xd4] ss:$8 sps:$4 sm:$0xff]  }
 0x83e   : > { %v6370_v60 = vmax.f32 %v6241_v63, 0.0  ;;  %v6710_v62 = vpop.f32.mrb[112].mxu0  ;;  %v7124_v47 = vpack.c.bf16 %v7004_v8, %v7002_v51  ;;  %8029 = vmatprep.subr.bf16.mxu0 %v12485_v3  ;;  %v12491_v3 = vld [vmem:[%s16422_s5 + $0xf4] ss:$8 sps:$4 sm:$0xff]  }
 0x83f   : > { %v6433_v18 = vpack.c.bf16 %v6369_v17, %v6367_v59  ;;  %v6711_v48 = vadd.f32 %v6710_v62, %v15222_v25  ;;  %v6712_v56 = vpop.f32.mrb[113].mxu0  ;;  %8030 = vmatpush1.bf16.msra.mxu0 %v12483_v54  ;;  %v12489_v54 = vld [vmem:[%s16422_s5 + $0xf0] ss:$8 sps:$4 sm:$0xff]  }
 0x840   : > { %v6713_v20 = vadd.f32 %v6712_v56, %v15228_v45  ;;  %v6714_v13 = vpop.f32.mrb[114].mxu0  ;;  %7444 = vmatprep.mubr.bf16.mxu1 %v7124_v47  ;;  %v6434_v24 = vpack.c.bf16 %v6370_v60, %v6368_v10  ;;  %8031 = vmatprep.subr.bf16.mxu0 %v12488_v35 }
 0x841   : > { %v6715_v46 = vadd.f32 %v6714_v13, %v15222_v25  ;;  %v6716_v21 = vpop.f32.mrb[115].mxu0  ;;  %7445 = vmatmul.mubr.bf16.gmra.mrb[44].mxu1 %v7123_v58  ;;  %v7005_v6 = vmax.f32 %v6711_v48, 0.0 }
 0x842   : > { %v6717_v15 = vadd.f32 %v6716_v21, %v15228_v45  ;;  %6978 = vmatprep.mubr.bf16.mxu0 %v6434_v24  ;;  %v7006_v44 = vmax.f32 %v6713_v20, 0.0 }
 0x843   : > { %v7007_v27 = vmax.f32 %v6715_v46, 0.0  ;;  %6979 = vmatmul.mubr.bf16.gmra.mrb[220].mxu0 %v6433_v18 }
 0x844   : > { %v7008_v31 = vmax.f32 %v6717_v15, 0.0  ;;  %8032 = vmatpush1.bf16.msra.mxu0 %v12486_v19 }
 0x845   : > { %v7125_v40 = vpack.c.bf16 %v7007_v27, %v7005_v6  ;;  %8033 = vmatprep.subr.bf16.mxu0 %v12491_v3 }
 0x846   : > { %v6720_v52 = vpop.f32.mrb[116].mxu0  ;;  %v7126_v41 = vpack.c.bf16 %v7008_v31, %v7006_v44 }
 0x847   : > { %v6721_v42 = vadd.f32 %v6720_v52, %v15222_v25  ;;  %v6722_v1 = vpop.f32.mrb[117].mxu0 }
 0x848   : > { %v6723_v36 = vadd.f32 %v6722_v1, %v15228_v45  ;;  %v6724_v9 = vpop.f32.mrb[118].mxu0  ;;  %7454 = vmatprep.mubr.bf16.mxu1 %v7126_v41  ;;  %8034 = vmatpush1.bf16.msra.mxu0 %v12489_v54 }
 0x849   : > { %v6725_v38 = vadd.f32 %v6724_v9, %v15222_v25  ;;  %v6726_v2 = vpop.f32.mrb[119].mxu0  ;;  %7455 = vmatmul.mubr.bf16.gmra.mrb[48].mxu1 %v7125_v40  ;;  %v7009_v22 = vmax.f32 %v6721_v42, 0.0 }
 0x84a   : > { %v6727_v39 = vadd.f32 %v6726_v2, %v15228_v45  ;;  %v7010_v12 = vmax.f32 %v6723_v36, 0.0 }
 0x84b   : > { %v7011_v28 = vmax.f32 %v6725_v38, 0.0 }
 0x84c   : > { %v7012_v11 = vmax.f32 %v6727_v39, 0.0 }
 0x84d   : > { %v7127_v23 = vpack.c.bf16 %v7011_v28, %v7009_v22 }
 0x84e   : > { %v6730_v55 = vpop.f32.mrb[120].mxu0  ;;  %v7128_v61 = vpack.c.bf16 %v7012_v11, %v7010_v12 }
 0x84f   : > { %v6731_v53 = vadd.f32 %v6730_v55, %v15222_v25  ;;  %v6732_v0 = vpop.f32.mrb[121].mxu0 }
 0x850   : > { %v6733_v57 = vadd.f32 %v6732_v0, %v15228_v45  ;;  %v6734_v37 = vpop.f32.mrb[122].mxu0  ;;  %7464 = vmatprep.mubr.bf16.mxu1 %v7128_v61 }
 0x851   : > { %v6735_v49 = vadd.f32 %v6734_v37, %v15222_v25  ;;  %v6736_v29 = vpop.f32.mrb[123].mxu0  ;;  %7465 = vmatmul.mubr.bf16.gmra.mrb[52].mxu1 %v7127_v23  ;;  %v7013_v16 = vmax.f32 %v6731_v53, 0.0 }
 0x852   : > { %v6737_v34 = vadd.f32 %v6736_v29, %v15228_v45  ;;  %v7014_v7 = vmax.f32 %v6733_v57, 0.0 }
 0x853   : > { %v7015_v43 = vmax.f32 %v6735_v49, 0.0 }
 0x854   : > { %v7016_v14 = vmax.f32 %v6737_v34, 0.0 }
 0x855   : > { %v7129_v50 = vpack.c.bf16 %v7015_v43, %v7013_v16 }
 0x856   : > { %v6740_v5 = vpop.f32.mrb[124].mxu0  ;;  %v7130_v30 = vpack.c.bf16 %v7016_v14, %v7014_v7 }
 0x857   : > { %v6741_v4 = vadd.f32 %v6740_v5, %v15222_v25  ;;  %v6742_v33 = vpop.f32.mrb[125].mxu0 }
 0x858   : > { %v6743_v51 = vadd.f32 %v6742_v33, %v15228_v45  ;;  %v6744_v8 = vpop.f32.mrb[126].mxu0  ;;  %7474 = vmatprep.mubr.bf16.mxu1 %v7130_v30 }
 0x859   : > { %v6745_v63 = vadd.f32 %v6744_v8, %v15222_v25  ;;  %v6746_v59 = vpop.f32.mrb[127].mxu0  ;;  %7475 = vmatmul.mubr.bf16.gmra.mrb[56].mxu1 %v7129_v50  ;;  %v7017_v17 = vmax.f32 %v6741_v4, 0.0 }
 0x85a   : > { %v6747_v58 = vadd.f32 %v6746_v59, %v15228_v45  ;;  %v7018_v60 = vmax.f32 %v6743_v51, 0.0 }
 0x85b   : > { %v7019_v10 = vmax.f32 %v6745_v63, 0.0 }
 0x85c   : > { %v7020_v62 = vmax.f32 %v6747_v58, 0.0 }
 0x85d   : > { %v7131_v47 = vpack.c.bf16 %v7019_v10, %v7017_v17 }
 0x85e   : > { %v6750_v18 = vpop.f32.mrb[128].mxu0  ;;  %v7132_v48 = vpack.c.bf16 %v7020_v62, %v7018_v60 }
 0x85f   : > { %v6751_v56 = vadd.f32 %v6750_v18, %v15222_v25  ;;  %v6752_v20 = vpop.f32.mrb[129].mxu0 }
 0x860   : > { %v6753_v13 = vadd.f32 %v6752_v20, %v15228_v45  ;;  %v6754_v24 = vpop.f32.mrb[130].mxu0  ;;  %7484 = vmatprep.mubr.bf16.mxu1 %v7132_v48 }
 0x861   : > { %v6755_v46 = vadd.f32 %v6754_v24, %v15222_v25  ;;  %v6756_v21 = vpop.f32.mrb[131].mxu0  ;;  %7485 = vmatmul.mubr.bf16.gmra.mrb[60].mxu1 %v7131_v47  ;;  %v7021_v6 = vmax.f32 %v6751_v56, 0.0 }
 0x862   : > { %v6757_v15 = vadd.f32 %v6756_v21, %v15228_v45  ;;  %v7022_v44 = vmax.f32 %v6753_v13, 0.0 }
 0x863   : > { %v7023_v27 = vmax.f32 %v6755_v46, 0.0 }
 0x864   : > { %v7024_v31 = vmax.f32 %v6757_v15, 0.0 }
 0x865   : > { %v7133_v40 = vpack.c.bf16 %v7023_v27, %v7021_v6 }
 0x866   : > { %v6760_v52 = vpop.f32.mrb[132].mxu0  ;;  %v7134_v41 = vpack.c.bf16 %v7024_v31, %v7022_v44 }
 0x867   : > { %v6761_v42 = vadd.f32 %v6760_v52, %v15222_v25  ;;  %v6762_v1 = vpop.f32.mrb[133].mxu0 }
 0x868   : > { %v6763_v36 = vadd.f32 %v6762_v1, %v15228_v45  ;;  %v6764_v9 = vpop.f32.mrb[134].mxu0  ;;  %7494 = vmatprep.mubr.bf16.mxu1 %v7134_v41 }
 0x869   : > { %v6765_v38 = vadd.f32 %v6764_v9, %v15222_v25  ;;  %v6766_v2 = vpop.f32.mrb[135].mxu0  ;;  %7495 = vmatmul.mubr.bf16.gmra.mrb[64].mxu1 %v7133_v40  ;;  %v7025_v22 = vmax.f32 %v6761_v42, 0.0 }
 0x86a   : > { %v6767_v39 = vadd.f32 %v6766_v2, %v15228_v45  ;;  %v7026_v12 = vmax.f32 %v6763_v36, 0.0 }
 0x86b   : > { %v7027_v28 = vmax.f32 %v6765_v38, 0.0 }
 0x86c   : > { %v7028_v11 = vmax.f32 %v6767_v39, 0.0 }
 0x86d   : > { %v7135_v23 = vpack.c.bf16 %v7027_v28, %v7025_v22 }
 0x86e   : > { %v6770_v55 = vpop.f32.mrb[136].mxu0  ;;  %v7136_v61 = vpack.c.bf16 %v7028_v11, %v7026_v12 }
 0x86f   : > { %v6771_v53 = vadd.f32 %v6770_v55, %v15222_v25  ;;  %v6772_v0 = vpop.f32.mrb[137].mxu0 }
 0x870   : > { %v6773_v57 = vadd.f32 %v6772_v0, %v15228_v45  ;;  %v6774_v37 = vpop.f32.mrb[138].mxu0  ;;  %7504 = vmatprep.mubr.bf16.mxu1 %v7136_v61 }
 0x871   : > { %v6775_v49 = vadd.f32 %v6774_v37, %v15222_v25  ;;  %v6776_v29 = vpop.f32.mrb[139].mxu0  ;;  %7505 = vmatmul.mubr.bf16.gmra.mrb[68].mxu1 %v7135_v23  ;;  %v7029_v16 = vmax.f32 %v6771_v53, 0.0 }
 0x872   : > { %v6777_v34 = vadd.f32 %v6776_v29, %v15228_v45  ;;  %v7030_v7 = vmax.f32 %v6773_v57, 0.0 }
 0x873   : > { %v7031_v43 = vmax.f32 %v6775_v49, 0.0 }
 0x874   : > { %v7032_v14 = vmax.f32 %v6777_v34, 0.0 }
 0x875   : > { %v7137_v50 = vpack.c.bf16 %v7031_v43, %v7029_v16 }
 0x876   : > { %v6780_v5 = vpop.f32.mrb[140].mxu0  ;;  %v7138_v30 = vpack.c.bf16 %v7032_v14, %v7030_v7 }
 0x877   : > { %v6781_v4 = vadd.f32 %v6780_v5, %v15222_v25  ;;  %v6782_v33 = vpop.f32.mrb[141].mxu0 }
 0x878   : > { %v6783_v51 = vadd.f32 %v6782_v33, %v15228_v45  ;;  %v6784_v8 = vpop.f32.mrb[142].mxu0  ;;  %7514 = vmatprep.mubr.bf16.mxu1 %v7138_v30 }
 0x879   : > { %v6785_v63 = vadd.f32 %v6784_v8, %v15222_v25  ;;  %v6786_v59 = vpop.f32.mrb[143].mxu0  ;;  %7515 = vmatmul.mubr.bf16.gmra.mrb[72].mxu1 %v7137_v50  ;;  %v7033_v17 = vmax.f32 %v6781_v4, 0.0 }
 0x87a   : > { %v6787_v58 = vadd.f32 %v6786_v59, %v15228_v45  ;;  %v7034_v60 = vmax.f32 %v6783_v51, 0.0 }
 0x87b   : > { %v7035_v10 = vmax.f32 %v6785_v63, 0.0 }
 0x87c   : > { %v7036_v62 = vmax.f32 %v6787_v58, 0.0 }
 0x87d   : > { %v7139_v47 = vpack.c.bf16 %v7035_v10, %v7033_v17 }
 0x87e   : > { %v6790_v18 = vpop.f32.mrb[144].mxu0  ;;  %v7140_v48 = vpack.c.bf16 %v7036_v62, %v7034_v60 }
 0x87f   : > { %v6791_v56 = vadd.f32 %v6790_v18, %v15222_v25  ;;  %v6792_v20 = vpop.f32.mrb[145].mxu0 }
 0x880   : > { %v6793_v13 = vadd.f32 %v6792_v20, %v15228_v45  ;;  %v6794_v24 = vpop.f32.mrb[146].mxu0  ;;  %7524 = vmatprep.mubr.bf16.mxu1 %v7140_v48 }
 0x881   : > { %v6795_v46 = vadd.f32 %v6794_v24, %v15222_v25  ;;  %v6796_v21 = vpop.f32.mrb[147].mxu0  ;;  %7525 = vmatmul.mubr.bf16.gmra.mrb[76].mxu1 %v7139_v47  ;;  %v7037_v6 = vmax.f32 %v6791_v56, 0.0 }
 0x882   : > { %v6797_v15 = vadd.f32 %v6796_v21, %v15228_v45  ;;  %v7038_v44 = vmax.f32 %v6793_v13, 0.0 }
 0x883   : > { %v7039_v27 = vmax.f32 %v6795_v46, 0.0 }
 0x884   : > { %v7040_v31 = vmax.f32 %v6797_v15, 0.0 }
 0x885   : > { %v7141_v40 = vpack.c.bf16 %v7039_v27, %v7037_v6 }
 0x886   : > { %v6800_v52 = vpop.f32.mrb[148].mxu0  ;;  %v7142_v41 = vpack.c.bf16 %v7040_v31, %v7038_v44 }
 0x887   : > { %v6801_v19 = vadd.f32 %v6800_v52, %v15222_v25  ;;  %v6802_v35 = vpop.f32.mrb[149].mxu0 }
 0x888   : > { %v6803_v42 = vadd.f32 %v6802_v35, %v15228_v45  ;;  %v6804_v1 = vpop.f32.mrb[150].mxu0  ;;  %7534 = vmatprep.mubr.bf16.mxu1 %v7142_v41 }
 0x889   : > { %v6805_v36 = vadd.f32 %v6804_v1, %v15222_v25  ;;  %v6806_v9 = vpop.f32.mrb[151].mxu0  ;;  %7535 = vmatmul.mubr.bf16.gmra.mrb[80].mxu1 %v7141_v40  ;;  %v7041_v2 = vmax.f32 %v6801_v19, 0.0 }
 0x88a   : > { %v6807_v38 = vadd.f32 %v6806_v9, %v15228_v45  ;;  %v7042_v22 = vmax.f32 %v6803_v42, 0.0 }
 0x88b   : > { %v7043_v39 = vmax.f32 %v6805_v36, 0.0 }
 0x88c   : > { %v7044_v28 = vmax.f32 %v6807_v38, 0.0 }
 0x88d   : > { %v7143_v12 = vpack.c.bf16 %v7043_v39, %v7041_v2 }
 0x88e   : > { %v6810_v11 = vpop.f32.mrb[152].mxu0  ;;  %v7144_v23 = vpack.c.bf16 %v7044_v28, %v7042_v22 }
 0x88f   : > { %v6811_v55 = vadd.f32 %v6810_v11, %v15222_v25  ;;  %v6812_v61 = vpop.f32.mrb[153].mxu0 }
 0x890   : > { %v6813_v53 = vadd.f32 %v6812_v61, %v15228_v45  ;;  %v6814_v0 = vpop.f32.mrb[154].mxu0  ;;  %7544 = vmatprep.mubr.bf16.mxu1 %v7144_v23 }
 0x891   : > { %v6815_v57 = vadd.f32 %v6814_v0, %v15222_v25  ;;  %v6816_v37 = vpop.f32.mrb[155].mxu0  ;;  %7545 = vmatmul.mubr.bf16.gmra.mrb[84].mxu1 %v7143_v12  ;;  %v7045_v29 = vmax.f32 %v6811_v55, 0.0 }
 0x892   : > { %v6817_v49 = vadd.f32 %v6816_v37, %v15228_v45  ;;  %v7046_v16 = vmax.f32 %v6813_v53, 0.0 }
 0x893   : > { %v7047_v34 = vmax.f32 %v6815_v57, 0.0 }
 0x894   : > { %v7048_v43 = vmax.f32 %v6817_v49, 0.0 }
 0x895   : > { %v7145_v7 = vpack.c.bf16 %v7047_v34, %v7045_v29 }
 0x896   : > { %v6820_v14 = vpop.f32.mrb[156].mxu0  ;;  %v7146_v50 = vpack.c.bf16 %v7048_v43, %v7046_v16 }
 0x897   : > { %v6821_v5 = vadd.f32 %v6820_v14, %v15222_v25  ;;  %v6822_v30 = vpop.f32.mrb[157].mxu0 }
 0x898   : > { %v6823_v54 = vadd.f32 %v6822_v30, %v15228_v45  ;;  %v6824_v3 = vpop.f32.mrb[158].mxu0  ;;  %7554 = vmatprep.mubr.bf16.mxu1 %v7146_v50 }
 0x899   : > { %v6825_v4 = vadd.f32 %v6824_v3, %v15222_v25  ;;  %v6826_v33 = vpop.f32.mrb[159].mxu0  ;;  %7555 = vmatmul.mubr.bf16.gmra.mrb[88].mxu1 %v7145_v7  ;;  %v7049_v8 = vmax.f32 %v6821_v5, 0.0 }
 0x89a   : > { %v6827_v51 = vadd.f32 %v6826_v33, %v15228_v45  ;;  %v7050_v59 = vmax.f32 %v6823_v54, 0.0 }
 0x89b   : > { %v7051_v63 = vmax.f32 %v6825_v4, 0.0 }
 0x89c   : > { %v7052_v58 = vmax.f32 %v6827_v51, 0.0 }
 0x89d   : > { %v7147_v17 = vpack.c.bf16 %v7051_v63, %v7049_v8 }
 0x89e   : > { %v6830_v10 = vpop.f32.mrb[160].mxu0  ;;  %v7148_v60 = vpack.c.bf16 %v7052_v58, %v7050_v59 }
 0x89f   : > { %v6831_v62 = vadd.f32 %v6830_v10, %v15222_v25  ;;  %v6832_v47 = vpop.f32.mrb[161].mxu0 }
 0x8a0   : > { %v6833_v18 = vadd.f32 %v6832_v47, %v15228_v45  ;;  %v6834_v48 = vpop.f32.mrb[162].mxu0  ;;  %7564 = vmatprep.mubr.bf16.mxu1 %v7148_v60 }
 0x8a1   : > { %v6835_v56 = vadd.f32 %v6834_v48, %v15222_v25  ;;  %v6836_v20 = vpop.f32.mrb[163].mxu0  ;;  %7565 = vmatmul.mubr.bf16.gmra.mrb[92].mxu1 %v7147_v17  ;;  %v7053_v24 = vmax.f32 %v6831_v62, 0.0 }
 0x8a2   : > { %v6837_v13 = vadd.f32 %v6836_v20, %v15228_v45  ;;  %v7054_v21 = vmax.f32 %v6833_v18, 0.0 }
 0x8a3   : > { %v7055_v46 = vmax.f32 %v6835_v56, 0.0 }
 0x8a4   : > { %v7056_v15 = vmax.f32 %v6837_v13, 0.0 }
 0x8a5   : > { %v7149_v6 = vpack.c.bf16 %v7055_v46, %v7053_v24 }
 0x8a6   : > { %v7150_v27 = vpack.c.bf16 %v7056_v15, %v7054_v21  ;;  %v6840_v44 = vpop.f32.mrb[164].mxu0 }
 0x8a7   : > { %v6841_v31 = vadd.f32 %v6840_v44, %v15222_v25  ;;  %v6842_v40 = vpop.f32.mrb[165].mxu0 }
 0x8a8   : > { %v6843_v52 = vadd.f32 %v6842_v40, %v15228_v45  ;;  %v6844_v41 = vpop.f32.mrb[166].mxu0  ;;  %7574 = vmatprep.mubr.bf16.mxu1 %v7150_v27 }
 0x8a9   : > { %v6845_v19 = vadd.f32 %v6844_v41, %v15222_v25  ;;  %v6846_v35 = vpop.f32.mrb[167].mxu0  ;;  %7575 = vmatmul.mubr.bf16.gmra.mrb[96].mxu1 %v7149_v6  ;;  %v7057_v1 = vmax.f32 %v6841_v31, 0.0 }
 0x8aa   : > { %v6847_v42 = vadd.f32 %v6846_v35, %v15228_v45  ;;  %v7058_v9 = vmax.f32 %v6843_v52, 0.0 }
 0x8ab   : > { %v7059_v36 = vmax.f32 %v6845_v19, 0.0 }
 0x8ac   : > { %v7060_v38 = vmax.f32 %v6847_v42, 0.0 }
 0x8ad   : > { %v7151_v2 = vpack.c.bf16 %v7059_v36, %v7057_v1 }
 0x8ae   : > { %v7152_v39 = vpack.c.bf16 %v7060_v38, %v7058_v9  ;;  %v6850_v22 = vpop.f32.mrb[168].mxu0 }
 0x8af   : > { %v6851_v28 = vadd.f32 %v6850_v22, %v15222_v25  ;;  %v6852_v12 = vpop.f32.mrb[169].mxu0 }
 0x8b0   : > { %v6853_v11 = vadd.f32 %v6852_v12, %v15228_v45  ;;  %v6854_v23 = vpop.f32.mrb[170].mxu0  ;;  %7584 = vmatprep.mubr.bf16.mxu1 %v7152_v39 }
 0x8b1   : > { %v6855_v55 = vadd.f32 %v6854_v23, %v15222_v25  ;;  %v6856_v61 = vpop.f32.mrb[171].mxu0  ;;  %7585 = vmatmul.mubr.bf16.gmra.mrb[100].mxu1 %v7151_v2  ;;  %v7061_v0 = vmax.f32 %v6851_v28, 0.0 }
 0x8b2   : > { %v6857_v53 = vadd.f32 %v6856_v61, %v15228_v45  ;;  %v7062_v37 = vmax.f32 %v6853_v11, 0.0 }
 0x8b3   : > { %v7063_v57 = vmax.f32 %v6855_v55, 0.0 }
 0x8b4   : > { %v7064_v49 = vmax.f32 %v6857_v53, 0.0 }
 0x8b5   : > { %v7153_v29 = vpack.c.bf16 %v7063_v57, %v7061_v0 }
 0x8b6   : > { %v7154_v34 = vpack.c.bf16 %v7064_v49, %v7062_v37  ;;  %v6860_v16 = vpop.f32.mrb[172].mxu0 }
 0x8b7   : > { %v6861_v43 = vadd.f32 %v6860_v16, %v15222_v25  ;;  %v6862_v7 = vpop.f32.mrb[173].mxu0 }
 0x8b8   : > { %v6863_v14 = vadd.f32 %v6862_v7, %v15228_v45  ;;  %v6864_v50 = vpop.f32.mrb[174].mxu0  ;;  %7594 = vmatprep.mubr.bf16.mxu1 %v7154_v34 }
 0x8b9   : > { %v6865_v5 = vadd.f32 %v6864_v50, %v15222_v25  ;;  %v6866_v30 = vpop.f32.mrb[175].mxu0  ;;  %7595 = vmatmul.mubr.bf16.gmra.mrb[104].mxu1 %v7153_v29  ;;  %v7065_v3 = vmax.f32 %v6861_v43, 0.0 }
 0x8ba   : > { %v6867_v54 = vadd.f32 %v6866_v30, %v15228_v45  ;;  %v7066_v33 = vmax.f32 %v6863_v14, 0.0 }
 0x8bb   : > { %v7067_v4 = vmax.f32 %v6865_v5, 0.0 }
 0x8bc   : > { %v7068_v51 = vmax.f32 %v6867_v54, 0.0 }
 0x8bd   : > { %v7155_v8 = vpack.c.bf16 %v7067_v4, %v7065_v3 }
 0x8be   : > { %v7156_v63 = vpack.c.bf16 %v7068_v51, %v7066_v33  ;;  %v6870_v59 = vpop.f32.mrb[176].mxu0 }
 0x8bf   : > { %v6871_v58 = vadd.f32 %v6870_v59, %v15222_v25  ;;  %v6872_v17 = vpop.f32.mrb[177].mxu0 }
 0x8c0   : > { %v6873_v10 = vadd.f32 %v6872_v17, %v15228_v45  ;;  %v6874_v60 = vpop.f32.mrb[178].mxu0  ;;  %7604 = vmatprep.mubr.bf16.mxu1 %v7156_v63 }
 0x8c1   : > { %v6875_v62 = vadd.f32 %v6874_v60, %v15222_v25  ;;  %v6876_v47 = vpop.f32.mrb[179].mxu0  ;;  %7605 = vmatmul.mubr.bf16.gmra.mrb[108].mxu1 %v7155_v8  ;;  %v7069_v48 = vmax.f32 %v6871_v58, 0.0 }
 0x8c2   : > { %v6877_v18 = vadd.f32 %v6876_v47, %v15228_v45  ;;  %v7070_v20 = vmax.f32 %v6873_v10, 0.0 }
 0x8c3   : > { %v7071_v56 = vmax.f32 %v6875_v62, 0.0 }
 0x8c4   : > { %v7072_v13 = vmax.f32 %v6877_v18, 0.0 }
 0x8c5   : > { %v7157_v24 = vpack.c.bf16 %v7071_v56, %v7069_v48 }
 0x8c6   : > { %v7158_v46 = vpack.c.bf16 %v7072_v13, %v7070_v20  ;;  %v6880_v21 = vpop.f32.mrb[180].mxu0 }
 0x8c7   : > { %v6881_v15 = vadd.f32 %v6880_v21, %v15222_v25  ;;  %v6882_v6 = vpop.f32.mrb[181].mxu0 }
 0x8c8   : > { %v6883_v27 = vadd.f32 %v6882_v6, %v15228_v45  ;;  %v6884_v44 = vpop.f32.mrb[182].mxu0  ;;  %7614 = vmatprep.mubr.bf16.mxu1 %v7158_v46 }
 0x8c9   : > { %v6885_v31 = vadd.f32 %v6884_v44, %v15222_v25  ;;  %v6886_v40 = vpop.f32.mrb[183].mxu0  ;;  %7615 = vmatmul.mubr.bf16.gmra.mrb[112].mxu1 %v7157_v24  ;;  %v7073_v41 = vmax.f32 %v6881_v15, 0.0 }
 0x8ca   : > { %v6887_v52 = vadd.f32 %v6886_v40, %v15228_v45  ;;  %v7074_v35 = vmax.f32 %v6883_v27, 0.0 }
 0x8cb   : > { %v7075_v19 = vmax.f32 %v6885_v31, 0.0 }
 0x8cc   : > { %v7076_v42 = vmax.f32 %v6887_v52, 0.0 }
 0x8cd   : > { %v7159_v1 = vpack.c.bf16 %v7075_v19, %v7073_v41 }
 0x8ce   : > { %v7160_v36 = vpack.c.bf16 %v7076_v42, %v7074_v35  ;;  %v6890_v9 = vpop.f32.mrb[184].mxu0 }
 0x8cf   : > { %v6891_v38 = vadd.f32 %v6890_v9, %v15222_v25  ;;  %v6892_v2 = vpop.f32.mrb[185].mxu0 }
 0x8d0   : > { %v6893_v39 = vadd.f32 %v6892_v2, %v15228_v45  ;;  %v6894_v22 = vpop.f32.mrb[186].mxu0  ;;  %7624 = vmatprep.mubr.bf16.mxu1 %v7160_v36 }
 0x8d1   : > { %v6895_v28 = vadd.f32 %v6894_v22, %v15222_v25  ;;  %v6896_v12 = vpop.f32.mrb[187].mxu0  ;;  %7625 = vmatmul.mubr.bf16.gmra.mrb[116].mxu1 %v7159_v1  ;;  %v7077_v23 = vmax.f32 %v6891_v38, 0.0 }
 0x8d2   : > { %v6897_v11 = vadd.f32 %v6896_v12, %v15228_v45  ;;  %v7078_v61 = vmax.f32 %v6893_v39, 0.0 }
 0x8d3   : > { %v7079_v55 = vmax.f32 %v6895_v28, 0.0 }
 0x8d4   : > { %v7080_v53 = vmax.f32 %v6897_v11, 0.0 }
 0x8d5   : > { %v7161_v0 = vpack.c.bf16 %v7079_v55, %v7077_v23 }
 0x8d6   : > { %v7162_v57 = vpack.c.bf16 %v7080_v53, %v7078_v61  ;;  %v6900_v37 = vpop.f32.mrb[188].mxu0 }
 0x8d7   : > { %v6901_v49 = vadd.f32 %v6900_v37, %v15222_v25  ;;  %v6902_v29 = vpop.f32.mrb[189].mxu0 }
 0x8d8   : > { %v6903_v34 = vadd.f32 %v6902_v29, %v15228_v45  ;;  %v6904_v16 = vpop.f32.mrb[190].mxu0  ;;  %7634 = vmatprep.mubr.bf16.mxu1 %v7162_v57 }
 0x8d9   : > { %v6905_v43 = vadd.f32 %v6904_v16, %v15222_v25  ;;  %v6906_v7 = vpop.f32.mrb[191].mxu0  ;;  %7635 = vmatmul.mubr.bf16.gmra.mrb[120].mxu1 %v7161_v0  ;;  %v7081_v50 = vmax.f32 %v6901_v49, 0.0 }
 0x8da   : > { %v6907_v14 = vadd.f32 %v6906_v7, %v15228_v45  ;;  %v7082_v30 = vmax.f32 %v6903_v34, 0.0 }
 0x8db   : > { %v7083_v5 = vmax.f32 %v6905_v43, 0.0 }
 0x8dc   : > { %v7084_v54 = vmax.f32 %v6907_v14, 0.0 }
 0x8dd   : > { %v7163_v3 = vpack.c.bf16 %v7083_v5, %v7081_v50  ;;  %v15405_v50 = vld [vmem:[%s16421_s4 + $0x10] ss:$0 sm:$0xff] }
 0x8de   : > { %v7164_v4 = vpack.c.bf16 %v7084_v54, %v7082_v30  ;;  %v6910_v33 = vpop.f32.mrb[192].mxu0  ;;  %v15410_v54 = vld [vmem:[%s16421_s4 + $0x18] ss:$0 sm:$0xff] }
 0x8df   : > { %v6911_v51 = vadd.f32 %v6910_v33, %v15222_v25  ;;  %v6912_v8 = vpop.f32.mrb[193].mxu0 }
 0x8e0   : > { %v6913_v63 = vadd.f32 %v6912_v8, %v15228_v45  ;;  %v6914_v59 = vpop.f32.mrb[194].mxu0  ;;  %7644 = vmatprep.mubr.bf16.mxu1 %v7164_v4 }
 0x8e1   : > { %v6915_v58 = vadd.f32 %v6914_v59, %v15222_v25  ;;  %v6916_v17 = vpop.f32.mrb[195].mxu0  ;;  %7645 = vmatmul.mubr.bf16.gmra.mrb[124].mxu1 %v7163_v3  ;;  %v7085_v60 = vmax.f32 %v6911_v51, 0.0 }
 0x8e2   : > { %v6917_v10 = vadd.f32 %v6916_v17, %v15228_v45  ;;  %v7086_v47 = vmax.f32 %v6913_v63, 0.0 }
 0x8e3   : > { %v7087_v62 = vmax.f32 %v6915_v58, 0.0 }
 0x8e4   : > { %v7088_v18 = vmax.f32 %v6917_v10, 0.0 }
 0x8e5   : > { %v7165_v48 = vpack.c.bf16 %v7087_v62, %v7085_v60 }
 0x8e6   : > { %v7166_v56 = vpack.c.bf16 %v7088_v18, %v7086_v47  ;;  %v6920_v20 = vpop.f32.mrb[196].mxu0 }
 0x8e7   : > { %v6921_v13 = vadd.f32 %v6920_v20, %v15222_v25  ;;  %v6922_v24 = vpop.f32.mrb[197].mxu0 }
 0x8e8   : > { %v6923_v46 = vadd.f32 %v6922_v24, %v15228_v45  ;;  %v6924_v21 = vpop.f32.mrb[198].mxu0  ;;  %7654 = vmatprep.mubr.bf16.mxu1 %v7166_v56 }
 0x8e9   : > { %v6925_v15 = vadd.f32 %v6924_v21, %v15222_v25  ;;  %v6926_v6 = vpop.f32.mrb[199].mxu0  ;;  %7655 = vmatmul.mubr.bf16.gmra.mrb[128].mxu1 %v7165_v48  ;;  %v7089_v44 = vmax.f32 %v6921_v13, 0.0 }
 0x8ea   : > { %v6927_v27 = vadd.f32 %v6926_v6, %v15228_v45  ;;  %v7090_v40 = vmax.f32 %v6923_v46, 0.0 }
 0x8eb   : > { %v7091_v31 = vmax.f32 %v6925_v15, 0.0 }
 0x8ec   : > { %v7092_v52 = vmax.f32 %v6927_v27, 0.0 }
 0x8ed   : > { %v7167_v41 = vpack.c.bf16 %v7091_v31, %v7089_v44 }
 0x8ee   : > { %v7168_v19 = vpack.c.bf16 %v7092_v52, %v7090_v40  ;;  %v6930_v35 = vpop.f32.mrb[200].mxu0 }
 0x8ef   : > { %v6931_v42 = vadd.f32 %v6930_v35, %v15222_v25  ;;  %v6932_v1 = vpop.f32.mrb[201].mxu0 }
 0x8f0   : > { %v6933_v36 = vadd.f32 %v6932_v1, %v15228_v45  ;;  %v6934_v9 = vpop.f32.mrb[202].mxu0  ;;  %7664 = vmatprep.mubr.bf16.mxu1 %v7168_v19 }
 0x8f1   : > { %v6935_v38 = vadd.f32 %v6934_v9, %v15222_v25  ;;  %v6936_v2 = vpop.f32.mrb[203].mxu0  ;;  %7665 = vmatmul.mubr.bf16.gmra.mrb[132].mxu1 %v7167_v41  ;;  %v7093_v22 = vmax.f32 %v6931_v42, 0.0 }
 0x8f2   : > { %v6937_v39 = vadd.f32 %v6936_v2, %v15228_v45  ;;  %v7094_v12 = vmax.f32 %v6933_v36, 0.0 }
 0x8f3   : > { %v7095_v28 = vmax.f32 %v6935_v38, 0.0 }
 0x8f4   : > { %v7096_v11 = vmax.f32 %v6937_v39, 0.0 }
 0x8f5   : > { %v7169_v23 = vpack.c.bf16 %v7095_v28, %v7093_v22 }
 0x8f6   : > { %v7170_v55 = vpack.c.bf16 %v7096_v11, %v7094_v12  ;;  %v6940_v61 = vpop.f32.mrb[204].mxu0 }
 0x8f7   : > { %v6941_v53 = vadd.f32 %v6940_v61, %v15222_v25  ;;  %v6942_v0 = vpop.f32.mrb[205].mxu0 }
 0x8f8   : > { %v6943_v57 = vadd.f32 %v6942_v0, %v15228_v45  ;;  %v6944_v37 = vpop.f32.mrb[206].mxu0  ;;  %7674 = vmatprep.mubr.bf16.mxu1 %v7170_v55 }
 0x8f9   : > { %v6945_v49 = vadd.f32 %v6944_v37, %v15222_v25  ;;  %v6946_v29 = vpop.f32.mrb[207].mxu0  ;;  %7675 = vmatmul.mubr.bf16.gmra.mrb[136].mxu1 %v7169_v23  ;;  %v7097_v16 = vmax.f32 %v6941_v53, 0.0 }
 0x8fa   : > { %v6947_v34 = vadd.f32 %v6946_v29, %v15228_v45  ;;  %v7098_v7 = vmax.f32 %v6943_v57, 0.0 }
 0x8fb   : > { %v7099_v43 = vmax.f32 %v6945_v49, 0.0 }
 0x8fc   : > { %v7100_v14 = vmax.f32 %v6947_v34, 0.0  ;;  %v7416_v5 = vpop.f32.mrb[32].mxu1 }
 0x8fd   : > { %v7171_v30 = vpack.c.bf16 %v7099_v43, %v7097_v16  ;;  %v7418_v3 = vpop.f32.mrb[33].mxu1  ;;  %v7417_v8 = vadd.f32 %v15405_v50, %v7416_v5 }
 0x8fe   : > { %v7172_v4 = vpack.c.bf16 %v7100_v14, %v7098_v7  ;;  %v6950_v33 = vpop.f32.mrb[208].mxu0  ;;  %v7420_v51 = vpop.f32.mrb[34].mxu1  ;;  %v7419_v10 = vadd.f32 %v15410_v54, %v7418_v3 }
 0x8ff   : > { %v6951_v63 = vadd.f32 %v6950_v33, %v15222_v25  ;;  %v7421_v59 = vadd.f32 %v15405_v50, %v7420_v51  ;;  %v6952_v58 = vpop.f32.mrb[209].mxu0  ;;  %v7422_v17 = vpop.f32.mrb[35].mxu1 }
 0x900   : > { %v6953_v60 = vadd.f32 %v6952_v58, %v15228_v45  ;;  %v7423_v62 = vadd.f32 %v15410_v54, %v7422_v17  ;;  %v6954_v47 = vpop.f32.mrb[210].mxu0  ;;  %7684 = vmatprep.mubr.bf16.mxu1 %v7172_v4 }
 0x901   : > { %v7735_v18 = vpack.c.bf16 %v7421_v59, %v7417_v8  ;;  %v6955_v48 = vadd.f32 %v6954_v47, %v15222_v25  ;;  %v6956_v56 = vpop.f32.mrb[211].mxu0  ;;  %7685 = vmatmul.mubr.bf16.gmra.mrb[140].mxu1 %v7171_v30  ;;  %v7101_v24 = vmax.f32 %v6951_v63, 0.0 }
 0x902   : > { %v7736_v20 = vpack.c.bf16 %v7423_v62, %v7419_v10  ;;  %v6957_v13 = vadd.f32 %v6956_v56, %v15228_v45  ;;  %v7102_v21 = vmax.f32 %v6953_v60, 0.0 }
 0x903   : > { %v7103_v46 = vmax.f32 %v6955_v48, 0.0 }
 0x904   : > { %v7104_v15 = vmax.f32 %v6957_v13, 0.0  ;;  %v7426_v6 = vpop.f32.mrb[36].mxu1  ;;  %8035 = vmatprep.mubr.bf16.mxu0 %v7736_v20 }
 0x905   : > { %v7173_v27 = vpack.c.bf16 %v7103_v46, %v7101_v24  ;;  %v7428_v44 = vpop.f32.mrb[37].mxu1  ;;  %8036 = vmatmul.mubr.bf16.vlgmr.msra.gmra.mrb[224].mxu0 %v7735_v18  ;;  %v7427_v41 = vadd.f32 %v15405_v50, %v7426_v6 }
 0x906   : > { %v7174_v31 = vpack.c.bf16 %v7104_v15, %v7102_v21  ;;  %v6960_v40 = vpop.f32.mrb[212].mxu0  ;;  %v7430_v52 = vpop.f32.mrb[38].mxu1  ;;  %v7429_v36 = vadd.f32 %v15410_v54, %v7428_v44 }
 0x907   : > { %v6961_v19 = vadd.f32 %v6960_v40, %v15222_v25  ;;  %v7431_v35 = vadd.f32 %v15405_v50, %v7430_v52  ;;  %v6962_v42 = vpop.f32.mrb[213].mxu0  ;;  %v7432_v1 = vpop.f32.mrb[39].mxu1 }
 0x908   : > { %v6963_v9 = vadd.f32 %v6962_v42, %v15228_v45  ;;  %v7433_v38 = vadd.f32 %v15410_v54, %v7432_v1  ;;  %v6964_v2 = vpop.f32.mrb[214].mxu0  ;;  %7694 = vmatprep.mubr.bf16.mxu1 %v7174_v31 }
 0x909   : > { %v7737_v39 = vpack.c.bf16 %v7431_v35, %v7427_v41  ;;  %v6965_v22 = vadd.f32 %v6964_v2, %v15222_v25  ;;  %v6966_v28 = vpop.f32.mrb[215].mxu0  ;;  %7695 = vmatmul.mubr.bf16.gmra.mrb[144].mxu1 %v7173_v27  ;;  %v7105_v23 = vmax.f32 %v6961_v19, 0.0 }
 0x90a   : > { %v7738_v12 = vpack.c.bf16 %v7433_v38, %v7429_v36  ;;  %v6967_v11 = vadd.f32 %v6966_v28, %v15228_v45  ;;  %v7106_v61 = vmax.f32 %v6963_v9, 0.0 }
 0x90b   : > { %v7107_v55 = vmax.f32 %v6965_v22, 0.0 }
 0x90c   : > { %v7108_v53 = vmax.f32 %v6967_v11, 0.0  ;;  %v7436_v0 = vpop.f32.mrb[40].mxu1  ;;  %8045 = vmatprep.mubr.bf16.mxu0 %v7738_v12  ;;  %v12492_v11 = vld [vmem:[%s15356_s23] sm:$0xff]  }
 0x90d   : > { %v7175_v57 = vpack.c.bf16 %v7107_v55, %v7105_v23  ;;  %v7438_v37 = vpop.f32.mrb[41].mxu1  ;;  %8046 = vmatmul.mubr.bf16.gmra.mrb[228].mxu0 %v7737_v39  ;;  %v7437_v16 = vadd.f32 %v15405_v50, %v7436_v0 }
 0x90e   : > { %v7176_v49 = vpack.c.bf16 %v7108_v53, %v7106_v61  ;;  %v6970_v29 = vpop.f32.mrb[216].mxu0  ;;  %v7440_v34 = vpop.f32.mrb[42].mxu1  ;;  %v7439_v30 = vadd.f32 %v15410_v54, %v7438_v37 }
 0x90f   : > { %v6971_v43 = vadd.f32 %v6970_v29, %v15222_v25  ;;  %v7441_v7 = vadd.f32 %v15405_v50, %v7440_v34  ;;  %v6972_v14 = vpop.f32.mrb[217].mxu0  ;;  %v7442_v5 = vpop.f32.mrb[43].mxu1  ;;  %v12494_v34 = vld [vmem:[%s15356_s23 + $0x10] sm:$0xff]  }
 0x910   : > { %v6973_v3 = vadd.f32 %v6972_v14, %v15228_v45  ;;  %v7443_v4 = vadd.f32 %v15410_v54, %v7442_v5  ;;  %v6974_v33 = vpop.f32.mrb[218].mxu0  ;;  %7704 = vmatprep.mubr.bf16.mxu1 %v7176_v49  ;;  %v12493_v49 = vld [vmem:[%s15356_s23 + $0x8] sm:$0xff]  }
 0x911   : > { %v7739_v51 = vpack.c.bf16 %v7441_v7, %v7437_v16  ;;  %v6975_v8 = vadd.f32 %v6974_v33, %v15222_v25  ;;  %v6976_v63 = vpop.f32.mrb[219].mxu0  ;;  %7705 = vmatmul.mubr.bf16.gmra.mrb[148].mxu1 %v7175_v57  ;;  %v7109_v17 = vmax.f32 %v6971_v43, 0.0 }
 0x912   : > { %v7740_v59 = vpack.c.bf16 %v7443_v4, %v7439_v30  ;;  %v6977_v58 = vadd.f32 %v6976_v63, %v15228_v45  ;;  %v7110_v60 = vmax.f32 %v6973_v3, 0.0  ;;  %v12496_v63 = vld [vmem:[%s15356_s23 + $0x20] sm:$0xff]  }
 0x913   : > { %v7111_v10 = vmax.f32 %v6975_v8, 0.0 }
 0x914   : > { %v7112_v62 = vmax.f32 %v6977_v58, 0.0  ;;  %v7446_v47 = vpop.f32.mrb[44].mxu1  ;;  %8055 = vmatprep.mubr.bf16.mxu0 %v7740_v59 }
 0x915   : > { %v7177_v18 = vpack.c.bf16 %v7111_v10, %v7109_v17  ;;  %v7448_v48 = vpop.f32.mrb[45].mxu1  ;;  %8056 = vmatmul.mubr.bf16.gmra.mrb[232].mxu0 %v7739_v51  ;;  %v7447_v24 = vadd.f32 %v15405_v50, %v7446_v47  ;;  %v12495_v51 = vld [vmem:[%s15356_s23 + $0x18] sm:$0xff]  }
 0x916   : > { %v7178_v56 = vpack.c.bf16 %v7112_v62, %v7110_v60  ;;  %v6980_v20 = vpop.f32.mrb[220].mxu0  ;;  %v7450_v13 = vpop.f32.mrb[46].mxu1  ;;  %v7449_v27 = vadd.f32 %v15410_v54, %v7448_v48 }
 0x917   : > { %v6981_v46 = vadd.f32 %v6980_v20, %v15222_v25  ;;  %v7451_v21 = vadd.f32 %v15405_v50, %v7450_v13  ;;  %v6982_v15 = vpop.f32.mrb[221].mxu0  ;;  %v7452_v6 = vpop.f32.mrb[47].mxu1  ;;  %v12498_v13 = vld [vmem:[%s15356_s23 + $0x30] sm:$0xff]  }
 0x918   : > { %v6983_v44 = vadd.f32 %v6982_v15, %v15228_v45  ;;  %v7453_v31 = vadd.f32 %v15410_v54, %v7452_v6  ;;  %v6984_v40 = vpop.f32.mrb[222].mxu0  ;;  %7714 = vmatprep.mubr.bf16.mxu1 %v7178_v56  ;;  %v12497_v56 = vld [vmem:[%s15356_s23 + $0x28] sm:$0xff]  }
 0x919   : > { %v7741_v52 = vpack.c.bf16 %v7451_v21, %v7447_v24  ;;  %v6985_v41 = vadd.f32 %v6984_v40, %v15222_v25  ;;  %v6986_v19 = vpop.f32.mrb[223].mxu0  ;;  %7715 = vmatmul.mubr.bf16.gmra.mrb[152].mxu1 %v7177_v18  ;;  %v7113_v1 = vmax.f32 %v6981_v46, 0.0 }
 0x91a   : > { %v7742_v35 = vpack.c.bf16 %v7453_v31, %v7449_v27  ;;  %v6987_v42 = vadd.f32 %v6986_v19, %v15228_v45  ;;  %v7114_v9 = vmax.f32 %v6983_v44, 0.0  ;;  %v12500_v19 = vld [vmem:[%s15356_s23 + $0x40] sm:$0xff]  }
 0x91b   : > { %v7115_v36 = vmax.f32 %v6985_v41, 0.0 }
 0x91c   : > { %v7116_v38 = vmax.f32 %v6987_v42, 0.0  ;;  %v7456_v2 = vpop.f32.mrb[48].mxu1  ;;  %8065 = vmatprep.mubr.bf16.mxu0 %v7742_v35 }
 0x91d   : > { %v7179_v39 = vpack.c.bf16 %v7115_v36, %v7113_v1  ;;  %v7458_v22 = vpop.f32.mrb[49].mxu1  ;;  %8066 = vmatmul.mubr.bf16.gmra.mrb[236].mxu0 %v7741_v52  ;;  %v7457_v25 = vadd.f32 %v15405_v50, %v7456_v2  ;;  %v12499_v52 = vld [vmem:[%s15356_s23 + $0x38] sm:$0xff]  }
 0x91e   : > { %v7180_v28 = vpack.c.bf16 %v7116_v38, %v7114_v9  ;;  %v7460_v12 = vpop.f32.mrb[50].mxu1  ;;  %v7459_v45 = vadd.f32 %v15410_v54, %v7458_v22 }
 0x91f   : > { %v7461_v23 = vadd.f32 %v15405_v50, %v7460_v12  ;;  %v7462_v55 = vpop.f32.mrb[51].mxu1 }
 0x920   : > { %v7463_v61 = vadd.f32 %v15410_v54, %v7462_v55  ;;  %7724 = vmatprep.mubr.bf16.mxu1 %v7180_v28  ;;  %v12501_v28 = vld [vmem:[%s15356_s23 + $0x48] sm:$0xff]  }
 0x921   : > { %v7743_v53 = vpack.c.bf16 %v7461_v23, %v7457_v25  ;;  %7725 = vmatmul.mubr.bf16.gmra.mrb[156].mxu1 %v7179_v39 }
 0x922   : > { %v7744_v0 = vpack.c.bf16 %v7463_v61, %v7459_v45  ;;  %11633 = vmatprep.mubr.msk.bf16.mxu1 %vm8524_vm1, %v12492_v11  ;;  %v12502_v11 = vld [vmem:[%s15356_s23 + $0x50] sm:$0xff]  }
 0x924   : > { %v7466_v57 = vpop.f32.mrb[52].mxu1  ;;  %8075 = vmatprep.mubr.bf16.mxu0 %v7744_v0 }
 0x925   : > { %v7468_v37 = vpop.f32.mrb[53].mxu1  ;;  %8076 = vmatmul.mubr.bf16.gmra.mrb[240].mxu0 %v7743_v53  ;;  %v7467_v16 = vadd.f32 %v15405_v50, %v7466_v57 }
 0x926   : > { %v7470_v29 = vpop.f32.mrb[54].mxu1  ;;  %v7469_v14 = vadd.f32 %v15410_v54, %v7468_v37 }
 0x927   : > { %v7471_v43 = vadd.f32 %v15405_v50, %v7470_v29  ;;  %v7472_v7 = vpop.f32.mrb[55].mxu1 }
 0x928   : > { %v7473_v5 = vadd.f32 %v15410_v54, %v7472_v7 }
 0x929   : > { %v7745_v30 = vpack.c.bf16 %v7471_v43, %v7467_v16  ;;  %11634 = vmatmul.mubr.msk.bf16.vlgmr.msra.gmra.mrb[160].mxu1 %vm8524_vm1, %v12493_v49  ;;  %v12503_v49 = vld [vmem:[%s15356_s23 + $0x58] sm:$0xff]  }
 0x92a   : > { %v7746_v3 = vpack.c.bf16 %v7473_v5, %v7469_v14  ;;  %11637 = vmatprep.mubr.msk.bf16.mxu1 %vm8524_vm1, %v12494_v34  ;;  %v12504_v34 = vld [vmem:[%s15356_s23 + $0x60] sm:$0xff]  }
 0x92c   : > { %v7476_v4 = vpop.f32.mrb[56].mxu1  ;;  %8085 = vmatprep.mubr.bf16.mxu0 %v7746_v3 }
 0x92d   : > { %v7478_v33 = vpop.f32.mrb[57].mxu1  ;;  %8086 = vmatmul.mubr.bf16.gmra.mrb[244].mxu0 %v7745_v30  ;;  %v7477_v59 = vadd.f32 %v15405_v50, %v7476_v4 }
 0x92e   : > { %v7480_v8 = vpop.f32.mrb[58].mxu1  ;;  %v7479_v10 = vadd.f32 %v15410_v54, %v7478_v33 }
 0x92f   : > { %v7481_v58 = vadd.f32 %v15405_v50, %v7480_v8  ;;  %v7482_v17 = vpop.f32.mrb[59].mxu1 }
 0x930   : > { %v7483_v60 = vadd.f32 %v15410_v54, %v7482_v17 }
 0x931   : > { %v7747_v62 = vpack.c.bf16 %v7481_v58, %v7477_v59  ;;  %11638 = vmatmul.mubr.msk.bf16.gmra.mrb[164].mxu1 %vm8524_vm1, %v12495_v51  ;;  %v12505_v51 = vld [vmem:[%s15356_s23 + $0x68] sm:$0xff]  }
 0x932   : > { %v7748_v47 = vpack.c.bf16 %v7483_v60, %v7479_v10  ;;  %11641 = vmatprep.mubr.msk.bf16.mxu1 %vm8524_vm1, %v12496_v63  ;;  %v12506_v63 = vld [vmem:[%s15356_s23 + $0x70] sm:$0xff]  }
 0x934   : > { %v7486_v18 = vpop.f32.mrb[60].mxu1  ;;  %8095 = vmatprep.mubr.bf16.mxu0 %v7748_v47 }
 0x935   : > { %v7488_v48 = vpop.f32.mrb[61].mxu1  ;;  %8096 = vmatmul.mubr.bf16.gmra.mrb[248].mxu0 %v7747_v62  ;;  %v7487_v24 = vadd.f32 %v15405_v50, %v7486_v18 }
 0x936   : > { %v7490_v20 = vpop.f32.mrb[62].mxu1  ;;  %v7489_v15 = vadd.f32 %v15410_v54, %v7488_v48 }
 0x937   : > { %v7491_v46 = vadd.f32 %v15405_v50, %v7490_v20  ;;  %v7492_v21 = vpop.f32.mrb[63].mxu1 }
 0x938   : > { %v7493_v6 = vadd.f32 %v15410_v54, %v7492_v21 }
 0x939   : > { %v7749_v27 = vpack.c.bf16 %v7491_v46, %v7487_v24  ;;  %11642 = vmatmul.mubr.msk.bf16.gmra.mrb[168].mxu1 %vm8524_vm1, %v12497_v56  ;;  %v12507_v56 = vld [vmem:[%s15356_s23 + $0x78] sm:$0xff]  }
 0x93a   : > { %v7750_v44 = vpack.c.bf16 %v7493_v6, %v7489_v15  ;;  %11645 = vmatprep.mubr.msk.bf16.mxu1 %vm8524_vm1, %v12498_v13  ;;  %v12508_v13 = vld [vmem:[%s15356_s23 + $0x80] sm:$0xff]  }
 0x93c   : > { %v7496_v31 = vpop.f32.mrb[64].mxu1  ;;  %8105 = vmatprep.mubr.bf16.mxu0 %v7750_v44 }
 0x93d   : > { %v7498_v40 = vpop.f32.mrb[65].mxu1  ;;  %8106 = vmatmul.mubr.bf16.gmra.mrb[252].mxu0 %v7749_v27  ;;  %v7497_v35 = vadd.f32 %v15405_v50, %v7496_v31  ;;  %v12520_v31 = vld [vmem:[%s16425_s8] sm:$0xff]  }
 0x93e   : > { %v7500_v41 = vpop.f32.mrb[66].mxu1  ;;  %v7499_v36 = vadd.f32 %v15410_v54, %v7498_v40  ;;  %11697 = vmatprep.subr.bf16.mxu1 %v12520_v31 }
 0x93f   : > { %v7501_v42 = vadd.f32 %v15405_v50, %v7500_v41  ;;  %v7502_v1 = vpop.f32.mrb[67].mxu1  ;;  %v12509_v41 = vld [vmem:[%s15356_s23 + $0x88] sm:$0xff]   ;;  %11698 = vmatpush3.bf16.msra.mxu1 %v12520_v31  ;;  %v12518_v31 = vld [vmem:[%s15356_s23 + $0xd0] sm:$0xff]  }
 0x940   : > { %v7503_v9 = vadd.f32 %v15410_v54, %v7502_v1 }
 0x941   : > { %v7751_v38 = vpack.c.bf16 %v7501_v42, %v7497_v35  ;;  %11646 = vmatmul.mubr.msk.bf16.gmra.mrb[172].mxu1 %vm8524_vm1, %v12499_v52  ;;  %v12510_v35 = vld [vmem:[%s15356_s23 + $0x90] sm:$0xff]  }
 0x942   : > { %v7752_v2 = vpack.c.bf16 %v7503_v9, %v7499_v36  ;;  %11649 = vmatprep.mubr.msk.bf16.mxu1 %vm8524_vm1, %v12500_v19 }
 0x944   : > { %v7506_v39 = vpop.f32.mrb[68].mxu1  ;;  %8115 = vmatprep.mubr.bf16.mxu0 %v7752_v2 }
 0x945   : > { %v7508_v22 = vpop.f32.mrb[69].mxu1  ;;  %8116 = vmatmul.mubr.bf16.gmra.mrb[0].mxu0 %v7751_v38  ;;  %v7507_v25 = vadd.f32 %v15405_v50, %v7506_v39  ;;  %v12523_v39 = vld [vmem:[%s16425_s8 + $0x8] sm:$0xff]  }
 0x946   : > { %v7510_v12 = vpop.f32.mrb[70].mxu1  ;;  %v7509_v45 = vadd.f32 %v15410_v54, %v7508_v22  ;;  %11699 = vmatprep.subr.bf16.mxu1 %v12523_v39 }
 0x947   : > { %v7511_v23 = vadd.f32 %v15405_v50, %v7510_v12  ;;  %v7512_v55 = vpop.f32.mrb[71].mxu1  ;;  %11700 = vmatpush3.bf16.msra.mxu1 %v12523_v39  ;;  %v12521_v39 = vld [vmem:[%s15356_s23 + $0xe0] sm:$0xff]  }
 0x948   : > { %v7513_v61 = vadd.f32 %v15410_v54, %v7512_v55  ;;  %v12512_v55 = vld [vmem:[%s15356_s23 + $0xa0] sm:$0xff]  }
 0x949   : > { %v7753_v53 = vpack.c.bf16 %v7511_v23, %v7507_v25  ;;  %11650 = vmatmul.mubr.msk.bf16.gmra.mrb[176].mxu1 %vm8524_vm1, %v12501_v28  ;;  %v12524_v25 = vld [vmem:[%s16425_s8 + $0x10] sm:$0xff]  }
 0x94a   : > { %v7754_v0 = vpack.c.bf16 %v7513_v61, %v7509_v45  ;;  %11653 = vmatprep.mubr.msk.bf16.mxu1 %vm8524_vm1, %v12502_v11  ;;  %v12511_v11 = vld [vmem:[%s15356_s23 + $0x98] sm:$0xff]   ;;  %11701 = vmatprep.subr.bf16.mxu1 %v12524_v25 }
 0x94b   : > { %11702 = vmatpush3.bf16.msra.mxu1 %v12524_v25 }
 0x94c   : > { %v7516_v57 = vpop.f32.mrb[72].mxu1  ;;  %8125 = vmatprep.mubr.bf16.mxu0 %v7754_v0 }
 0x94d   : > { %v7518_v37 = vpop.f32.mrb[73].mxu1  ;;  %8126 = vmatmul.mubr.bf16.gmra.mrb[4].mxu0 %v7753_v53  ;;  %v7517_v16 = vadd.f32 %v15405_v50, %v7516_v57 }
 0x94e   : > { %v7520_v29 = vpop.f32.mrb[74].mxu1  ;;  %v7519_v14 = vadd.f32 %v15410_v54, %v7518_v37 }
 0x94f   : > { %v7521_v43 = vadd.f32 %v15405_v50, %v7520_v29  ;;  %v7522_v7 = vpop.f32.mrb[75].mxu1 }
 0x950   : > { %v7523_v5 = vadd.f32 %v15410_v54, %v7522_v7  ;;  %v12528_v7 = vld [vmem:[%s16425_s8 + $0x20] sm:$0xff]  }
 0x951   : > { %v7755_v30 = vpack.c.bf16 %v7521_v43, %v7517_v16  ;;  %11654 = vmatmul.mubr.msk.bf16.gmra.mrb[180].mxu1 %vm8524_vm1, %v12503_v49  ;;  %v12525_v49 = vld [vmem:[%s16425_s8 + $0x18] sm:$0xff]   ;;  %v12513_v43 = vld [vmem:[%s15356_s23 + $0xa8] sm:$0xff]  }
 0x952   : > { %v7756_v3 = vpack.c.bf16 %v7523_v5, %v7519_v14  ;;  %11657 = vmatprep.mubr.msk.bf16.mxu1 %vm8524_vm1, %v12504_v34  ;;  %11703 = vmatprep.subr.bf16.mxu1 %v12525_v49  ;;  %v12514_v5 = vld [vmem:[%s15356_s23 + $0xb0] sm:$0xff]  }
 0x953   : > { %11704 = vmatpush3.bf16.msra.mxu1 %v12525_v49 }
 0x954   : > { %v7526_v4 = vpop.f32.mrb[76].mxu1  ;;  %8135 = vmatprep.mubr.bf16.mxu0 %v7756_v3  ;;  %11705 = vmatprep.subr.bf16.mxu1 %v12528_v7 }
 0x955   : > { %v7528_v33 = vpop.f32.mrb[77].mxu1  ;;  %8136 = vmatmul.mubr.bf16.gmra.mrb[8].mxu0 %v7755_v30  ;;  %v7527_v59 = vadd.f32 %v15405_v50, %v7526_v4 }
 0x956   : > { %v7530_v8 = vpop.f32.mrb[78].mxu1  ;;  %v7529_v10 = vadd.f32 %v15410_v54, %v7528_v33 }
 0x957   : > { %v7531_v58 = vadd.f32 %v15405_v50, %v7530_v8  ;;  %v7532_v17 = vpop.f32.mrb[79].mxu1  ;;  %11706 = vmatpush3.bf16.msra.mxu1 %v12528_v7 }
 0x958   : > { %v7533_v60 = vadd.f32 %v15410_v54, %v7532_v17 }
 0x959   : > { %v7757_v62 = vpack.c.bf16 %v7531_v58, %v7527_v59  ;;  %11658 = vmatmul.mubr.msk.bf16.gmra.mrb[184].mxu1 %vm8524_vm1, %v12505_v51 }
 0x95a   : > { %v7758_v47 = vpack.c.bf16 %v7533_v60, %v7529_v10  ;;  %11661 = vmatprep.mubr.msk.bf16.mxu1 %vm8524_vm1, %v12506_v63  ;;  %v12529_v63 = vld [vmem:[%s16425_s8 + $0x28] sm:$0xff]   ;;  %v12515_v10 = vld [vmem:[%s15356_s23 + $0xb8] sm:$0xff]   ;;  %v12530_v60 = vld [vmem:[%s16425_s8 + $0x30] sm:$0xff]  }
 0x95b   : > { %11707 = vmatprep.subr.bf16.mxu1 %v12529_v63 }
 0x95c   : > { %v7536_v18 = vpop.f32.mrb[80].mxu1  ;;  %8145 = vmatprep.mubr.bf16.mxu0 %v7758_v47  ;;  %11708 = vmatpush3.bf16.msra.mxu1 %v12529_v63  ;;  %v12516_v47 = vld [vmem:[%s15356_s23 + $0xc0] sm:$0xff]  }
 0x95d   : > { %v7538_v48 = vpop.f32.mrb[81].mxu1  ;;  %8146 = vmatmul.mubr.bf16.gmra.mrb[12].mxu0 %v7757_v62  ;;  %v7537_v24 = vadd.f32 %v15405_v50, %v7536_v18  ;;  %11709 = vmatprep.subr.bf16.mxu1 %v12530_v60 }
 0x95e   : > { %v7540_v20 = vpop.f32.mrb[82].mxu1  ;;  %v7539_v15 = vadd.f32 %v15410_v54, %v7538_v48 }
 0x95f   : > { %v7541_v46 = vadd.f32 %v15405_v50, %v7540_v20  ;;  %v7542_v21 = vpop.f32.mrb[83].mxu1 }
 0x960   : > { %v7543_v6 = vadd.f32 %v15410_v54, %v7542_v21  ;;  %11710 = vmatpush3.bf16.msra.mxu1 %v12530_v60 }
 0x961   : > { %v7759_v27 = vpack.c.bf16 %v7541_v46, %v7537_v24  ;;  %11662 = vmatmul.mubr.msk.bf16.gmra.mrb[188].mxu1 %vm8524_vm1, %v12507_v56  ;;  %v12531_v46 = vld [vmem:[%s16425_s8 + $0x38] sm:$0xff]  }
 0x962   : > { %v7760_v44 = vpack.c.bf16 %v7543_v6, %v7539_v15  ;;  %11665 = vmatprep.mubr.msk.bf16.mxu1 %vm8524_vm1, %v12508_v13  ;;  %11711 = vmatprep.subr.bf16.mxu1 %v12531_v46 }
 0x964   : > { %v7546_v40 = vpop.f32.mrb[84].mxu1  ;;  %8155 = vmatprep.mubr.bf16.mxu0 %v7760_v44  ;;  %11712 = vmatpush3.bf16.msra.mxu1 %v12531_v46 }
 0x965   : > { %v7548_v52 = vpop.f32.mrb[85].mxu1  ;;  %8156 = vmatmul.mubr.bf16.gmra.mrb[16].mxu0 %v7759_v27  ;;  %v7547_v42 = vadd.f32 %v15405_v50, %v7546_v40  ;;  %v12517_v27 = vld [vmem:[%s15356_s23 + $0xc8] sm:$0xff]  }
 0x966   : > { %v7550_v19 = vpop.f32.mrb[86].mxu1  ;;  %v7549_v9 = vadd.f32 %v15410_v54, %v7548_v52 }
 0x967   : > { %v7551_v1 = vadd.f32 %v15405_v50, %v7550_v19  ;;  %v7552_v36 = vpop.f32.mrb[87].mxu1 }
 0x968   : > { %v7553_v38 = vadd.f32 %v15410_v54, %v7552_v36 }
 0x969   : > { %v7761_v2 = vpack.c.bf16 %v7551_v1, %v7547_v42  ;;  %11666 = vmatmul.mubr.msk.bf16.gmra.mrb[192].mxu1 %vm8524_vm1, %v12509_v41 }
 0x96a   : > { %v7762_v22 = vpack.c.bf16 %v7553_v38, %v7549_v9  ;;  %11669 = vmatprep.mubr.msk.bf16.mxu1 %vm8524_vm1, %v12510_v35  ;;  %v12519_v38 = vld [vmem:[%s15356_s23 + $0xd8] sm:$0xff]  }
 0x96c   : > { %v7556_v28 = vpop.f32.mrb[88].mxu1  ;;  %8165 = vmatprep.mubr.bf16.mxu0 %v7762_v22 }
 0x96d   : > { %v7558_v12 = vpop.f32.mrb[89].mxu1  ;;  %8166 = vmatmul.mubr.bf16.gmra.mrb[20].mxu0 %v7761_v2  ;;  %v7557_v45 = vadd.f32 %v15405_v50, %v7556_v28 }
 0x96e   : > { %v7560_v23 = vpop.f32.mrb[90].mxu1  ;;  %v7559_v0 = vadd.f32 %v15410_v54, %v7558_v12 }
 0x96f   : > { %v7561_v61 = vadd.f32 %v15405_v50, %v7560_v23  ;;  %v7562_v53 = vpop.f32.mrb[91].mxu1 }
 0x970   : > { %v7563_v57 = vadd.f32 %v15410_v54, %v7562_v53  ;;  %v12522_v53 = vld [vmem:[%s15356_s23 + $0xe8] sm:$0xff]  }
 0x971   : > { %v7763_v37 = vpack.c.bf16 %v7561_v61, %v7557_v45  ;;  %11670 = vmatmul.mubr.msk.bf16.gmra.mrb[196].mxu1 %vm8524_vm1, %v12511_v11 }
 0x972   : > { %v7764_v29 = vpack.c.bf16 %v7563_v57, %v7559_v0  ;;  %11673 = vmatprep.mubr.msk.bf16.mxu1 %vm8524_vm1, %v12512_v55  ;;  %v12526_v57 = vld [vmem:[%s15356_s23 + $0xf0] sm:$0xff]  }
 0x974   : > { %v7566_v34 = vpop.f32.mrb[92].mxu1  ;;  %8175 = vmatprep.mubr.bf16.mxu0 %v7764_v29 }
 0x975   : > { %v7568_v16 = vpop.f32.mrb[93].mxu1  ;;  %8176 = vmatmul.mubr.bf16.gmra.mrb[24].mxu0 %v7763_v37  ;;  %v7567_v30 = vadd.f32 %v15405_v50, %v7566_v34 }
 0x976   : > { %v7570_v14 = vpop.f32.mrb[94].mxu1  ;;  %v7569_v33 = vadd.f32 %v15410_v54, %v7568_v16 }
 0x977   : > { %v7571_v3 = vadd.f32 %v15405_v50, %v7570_v14  ;;  %v7572_v4 = vpop.f32.mrb[95].mxu1 }
 0x978   : > { %v7573_v51 = vadd.f32 %v15410_v54, %v7572_v4 }
 0x979   : > { %v7765_v8 = vpack.c.bf16 %v7571_v3, %v7567_v30  ;;  %11674 = vmatmul.mubr.msk.bf16.gmra.mrb[200].mxu1 %vm8524_vm1, %v12513_v43  ;;  %v12527_v30 = vld [vmem:[%s15356_s23 + $0xf8] sm:$0xff]  }
 0x97a   : > { %v7766_v59 = vpack.c.bf16 %v7573_v51, %v7569_v33  ;;  %11677 = vmatprep.mubr.msk.bf16.mxu1 %vm8524_vm1, %v12514_v5 }
 0x97c   : > { %v7576_v58 = vpop.f32.mrb[96].mxu1  ;;  %8185 = vmatprep.mubr.bf16.mxu0 %v7766_v59 }
 0x97d   : > { %v7578_v17 = vpop.f32.mrb[97].mxu1  ;;  %8186 = vmatmul.mubr.bf16.gmra.mrb[28].mxu0 %v7765_v8  ;;  %v7577_v18 = vadd.f32 %v15405_v50, %v7576_v58 }
 0x97e   : > { %v7580_v62 = vpop.f32.mrb[98].mxu1  ;;  %v7579_v20 = vadd.f32 %v15410_v54, %v7578_v17 }
 0x97f   : > { %v7581_v48 = vadd.f32 %v15405_v50, %v7580_v62  ;;  %v7582_v56 = vpop.f32.mrb[99].mxu1 }
 0x980   : > { %v7583_v13 = vadd.f32 %v15410_v54, %v7582_v56 }
 0x981   : > { %v7767_v24 = vpack.c.bf16 %v7581_v48, %v7577_v18  ;;  %11678 = vmatmul.mubr.msk.bf16.gmra.mrb[204].mxu1 %vm8524_vm1, %v12515_v10 }
 0x982   : > { %v7768_v21 = vpack.c.bf16 %v7583_v13, %v7579_v20  ;;  %11681 = vmatprep.mubr.msk.bf16.mxu1 %vm8524_vm1, %v12516_v47 }
 0x984   : > { %v7586_v15 = vpop.f32.mrb[100].mxu1  ;;  %8195 = vmatprep.mubr.bf16.mxu0 %v7768_v21 }
 0x985   : > { %v7588_v6 = vpop.f32.mrb[101].mxu1  ;;  %8196 = vmatmul.mubr.bf16.gmra.mrb[32].mxu0 %v7767_v24  ;;  %v7587_v40 = vadd.f32 %v15405_v50, %v7586_v15 }
 0x986   : > { %v7590_v44 = vpop.f32.mrb[102].mxu1  ;;  %v7589_v19 = vadd.f32 %v15410_v54, %v7588_v6 }
 0x987   : > { %v7591_v52 = vadd.f32 %v15405_v50, %v7590_v44  ;;  %v7592_v41 = vpop.f32.mrb[103].mxu1 }
 0x988   : > { %v7593_v35 = vadd.f32 %v15410_v54, %v7592_v41 }
 0x989   : > { %v7769_v42 = vpack.c.bf16 %v7591_v52, %v7587_v40  ;;  %11682 = vmatmul.mubr.msk.bf16.gmra.mrb[208].mxu1 %vm8524_vm1, %v12517_v27 }
 0x98a   : > { %v7770_v1 = vpack.c.bf16 %v7593_v35, %v7589_v19  ;;  %11685 = vmatprep.mubr.msk.bf16.mxu1 %vm8524_vm1, %v12518_v31 }
 0x98c   : > { %v7596_v36 = vpop.f32.mrb[104].mxu1  ;;  %8205 = vmatprep.mubr.bf16.mxu0 %v7770_v1 }
 0x98d   : > { %v7598_v9 = vpop.f32.mrb[105].mxu1  ;;  %8206 = vmatmul.mubr.bf16.gmra.mrb[36].mxu0 %v7769_v42  ;;  %v7597_v22 = vadd.f32 %v15405_v50, %v7596_v36 }
 0x98e   : > { %v7600_v2 = vpop.f32.mrb[106].mxu1  ;;  %v7599_v11 = vadd.f32 %v15410_v54, %v7598_v9 }
 0x98f   : > { %v7601_v28 = vadd.f32 %v15405_v50, %v7600_v2  ;;  %v7602_v12 = vpop.f32.mrb[107].mxu1 }
 0x990   : > { %v7603_v25 = vadd.f32 %v15410_v54, %v7602_v12 }
 0x991   : > { %v7771_v23 = vpack.c.bf16 %v7601_v28, %v7597_v22  ;;  %11686 = vmatmul.mubr.msk.bf16.gmra.mrb[212].mxu1 %vm8524_vm1, %v12519_v38 }
 0x992   : > { %v7772_v55 = vpack.c.bf16 %v7603_v25, %v7599_v11  ;;  %11689 = vmatprep.mubr.msk.bf16.mxu1 %vm8524_vm1, %v12521_v39 }
 0x994   : > { %v7606_v45 = vpop.f32.mrb[108].mxu1  ;;  %8215 = vmatprep.mubr.bf16.mxu0 %v7772_v55 }
 0x995   : > { %v7608_v61 = vpop.f32.mrb[109].mxu1  ;;  %8216 = vmatmul.mubr.bf16.gmra.mrb[40].mxu0 %v7771_v23  ;;  %v7607_v37 = vadd.f32 %v15405_v50, %v7606_v45 }
 0x996   : > { %v7610_v0 = vpop.f32.mrb[110].mxu1  ;;  %v7609_v34 = vadd.f32 %v15410_v54, %v7608_v61 }
 0x997   : > { %v7611_v49 = vadd.f32 %v15405_v50, %v7610_v0  ;;  %v7612_v29 = vpop.f32.mrb[111].mxu1 }
 0x998   : > { %v7613_v16 = vadd.f32 %v15410_v54, %v7612_v29 }
 0x999   : > { %v7773_v43 = vpack.c.bf16 %v7611_v49, %v7607_v37  ;;  %11690 = vmatmul.mubr.msk.bf16.gmra.mrb[216].mxu1 %vm8524_vm1, %v12522_v53  ;;  %v12532_v37 = vld [vmem:[%s16427_s10] sm:$0xff]  }
 0x99a   : > { %v7774_v7 = vpack.c.bf16 %v7613_v16, %v7609_v34  ;;  %11693 = vmatprep.mubr.msk.bf16.mxu1 %vm8524_vm1, %v12526_v57  ;;  %11777 = vmatprep.subr.bf16.mxu0 %v12532_v37 }
 0x99b   : > { %11778 = vmatpush3.bf16.msra.mxu0 %v12532_v37 }
 0x99c   : > { %v7616_v14 = vpop.f32.mrb[112].mxu1  ;;  %8225 = vmatprep.mubr.bf16.mxu0 %v7774_v7 }
 0x99d   : > { %v7618_v5 = vpop.f32.mrb[113].mxu1  ;;  %8226 = vmatmul.mubr.bf16.gmra.mrb[44].mxu0 %v7773_v43  ;;  %v7617_v4 = vadd.f32 %v15405_v50, %v7616_v14 }
 0x99e   : > { %v7620_v3 = vpop.f32.mrb[114].mxu1  ;;  %v7619_v8 = vadd.f32 %v15410_v54, %v7618_v5 }
 0x99f   : > { %v7621_v33 = vadd.f32 %v15405_v50, %v7620_v3  ;;  %v7622_v51 = vpop.f32.mrb[115].mxu1 }
 0x9a0   : > { %v7623_v63 = vadd.f32 %v15410_v54, %v7622_v51 }
 0x9a1   : > { %v7775_v59 = vpack.c.bf16 %v7621_v33, %v7617_v4  ;;  %11694 = vmatmul.mubr.msk.bf16.gmra.mrb[220].mxu1 %vm8524_vm1, %v12527_v30 }
 0x9a2   : > { %v7776_v58 = vpack.c.bf16 %v7623_v63, %v7619_v8 }
 0x9a4   : > { %v7626_v17 = vpop.f32.mrb[116].mxu1  ;;  %8235 = vmatprep.mubr.bf16.mxu0 %v7776_v58 }
 0x9a5   : > { %v7628_v10 = vpop.f32.mrb[117].mxu1  ;;  %8236 = vmatmul.mubr.bf16.gmra.mrb[48].mxu0 %v7775_v59  ;;  %v7627_v62 = vadd.f32 %v15405_v50, %v7626_v17 }
 0x9a6   : > { %v7630_v60 = vpop.f32.mrb[118].mxu1  ;;  %v7629_v48 = vadd.f32 %v15410_v54, %v7628_v10  ;;  %v15630_v10 = vld [vmem:[%s16423_s6] sm:$0x3] }
 0x9a7   : > { %v7631_v47 = vadd.f32 %v15405_v50, %v7630_v60  ;;  %v7632_v18 = vpop.f32.mrb[119].mxu1 }
 0x9a8   : > { %v7633_v56 = vadd.f32 %v15410_v54, %v7632_v18  ;;  %v15634_v18 = vrot.slane %v15630_v10, %v13487_v32 }
 0x9a9   : > { %v7777_v20 = vpack.c.bf16 %v7631_v47, %v7627_v62 }
 0x9aa   : > { %v7778_v13 = vpack.c.bf16 %v7633_v56, %v7629_v48 }
 0x9ac   : > { %v7636_v24 = vpop.f32.mrb[120].mxu1  ;;  %8245 = vmatprep.mubr.bf16.mxu0 %v7778_v13 }
 0x9ad   : > { %v7638_v46 = vpop.f32.mrb[121].mxu1  ;;  %8246 = vmatmul.mubr.bf16.gmra.mrb[52].mxu0 %v7777_v20  ;;  %v7637_v15 = vadd.f32 %v15405_v50, %v7636_v24 }
 0x9ae   : > { %v7640_v21 = vpop.f32.mrb[122].mxu1  ;;  %v7639_v44 = vadd.f32 %v15410_v54, %v7638_v46 }
 0x9af   : > { %v7641_v6 = vadd.f32 %v15405_v50, %v7640_v21  ;;  %v7642_v27 = vpop.f32.mrb[123].mxu1 }
 0x9b0   : > { %v7643_v31 = vadd.f32 %v15410_v54, %v7642_v27 }
 0x9b1   : > { %v7779_v40 = vpack.c.bf16 %v7641_v6, %v7637_v15 }
 0x9b2   : > { %v7780_v52 = vpack.c.bf16 %v7643_v31, %v7639_v44 }
 0x9b4   : > { %v7646_v41 = vpop.f32.mrb[124].mxu1  ;;  %8255 = vmatprep.mubr.bf16.mxu0 %v7780_v52 }
 0x9b5   : > { %v7648_v19 = vpop.f32.mrb[125].mxu1  ;;  %8256 = vmatmul.mubr.bf16.gmra.mrb[56].mxu0 %v7779_v40  ;;  %v7647_v42 = vadd.f32 %v15405_v50, %v7646_v41 }
 0x9b6   : > { %v7650_v35 = vpop.f32.mrb[126].mxu1  ;;  %v7649_v9 = vadd.f32 %v15410_v54, %v7648_v19 }
 0x9b7   : > { %v7651_v1 = vadd.f32 %v15405_v50, %v7650_v35  ;;  %v7652_v36 = vpop.f32.mrb[127].mxu1  ;;  %v15651_v35 = vld [vmem:[%s16421_s4 + $0x10] ss:$0 sm:$0xff] }
 0x9b8   : > { %v7653_v38 = vadd.f32 %v15410_v54, %v7652_v36 }
 0x9b9   : > { %v7781_v2 = vpack.c.bf16 %v7651_v1, %v7647_v42 }
 0x9ba   : > { %v7782_v39 = vpack.c.bf16 %v7653_v38, %v7649_v9  ;;  %v15658_v9 = vld [vmem:[%s16421_s4 + $0x18] ss:$0 sm:$0xff] }
 0x9bc   : > { %v7656_v22 = vpop.f32.mrb[128].mxu1  ;;  %8265 = vmatprep.mubr.bf16.mxu0 %v7782_v39 }
 0x9bd   : > { %v7658_v28 = vpop.f32.mrb[129].mxu1  ;;  %8266 = vmatmul.mubr.bf16.gmra.mrb[60].mxu0 %v7781_v2  ;;  %v7657_v11 = vadd.f32 %v15405_v50, %v7656_v22 }
 0x9be   : > { %v7660_v12 = vpop.f32.mrb[130].mxu1  ;;  %v7659_v55 = vadd.f32 %v15410_v54, %v7658_v28 }
 0x9bf   : > { %v7661_v25 = vadd.f32 %v15405_v50, %v7660_v12  ;;  %v7662_v23 = vpop.f32.mrb[131].mxu1 }
 0x9c0   : > { %v7663_v45 = vadd.f32 %v15410_v54, %v7662_v23  ;;  %v12533_v23 = vld [vmem:[%s16427_s10 + $0x8] sm:$0xff]  }
 0x9c1   : > { %v7783_v61 = vpack.c.bf16 %v7661_v25, %v7657_v11  ;;  %11779 = vmatprep.subr.bf16.mxu0 %v12533_v23 }
 0x9c2   : > { %v7784_v53 = vpack.c.bf16 %v7663_v45, %v7659_v55  ;;  %11780 = vmatpush3.bf16.msra.mxu0 %v12533_v23 }
 0x9c4   : > { %v7666_v0 = vpop.f32.mrb[132].mxu1  ;;  %8275 = vmatprep.mubr.bf16.mxu0 %v7784_v53 }
 0x9c5   : > { %v7668_v57 = vpop.f32.mrb[133].mxu1  ;;  %8276 = vmatmul.mubr.bf16.gmra.mrb[64].mxu0 %v7783_v61  ;;  %v7667_v29 = vadd.f32 %v15405_v50, %v7666_v0 }
 0x9c6   : > { %v7670_v49 = vpop.f32.mrb[134].mxu1  ;;  %v7669_v43 = vadd.f32 %v15410_v54, %v7668_v57 }
 0x9c7   : > { %v7671_v34 = vadd.f32 %v15405_v50, %v7670_v49  ;;  %v7672_v16 = vpop.f32.mrb[135].mxu1 }
 0x9c8   : > { %v7673_v7 = vadd.f32 %v15410_v54, %v7672_v16 }
 0x9c9   : > { %v7785_v14 = vpack.c.bf16 %v7671_v34, %v7667_v29 }
 0x9ca   : > { %v7786_v5 = vpack.c.bf16 %v7673_v7, %v7669_v43 }
 0x9cc   : > { %v7676_v30 = vpop.f32.mrb[136].mxu1  ;;  %8285 = vmatprep.mubr.bf16.mxu0 %v7786_v5 }
 0x9cd   : > { %v7678_v3 = vpop.f32.mrb[137].mxu1  ;;  %8286 = vmatmul.mubr.bf16.gmra.mrb[68].mxu0 %v7785_v14  ;;  %v7677_v33 = vadd.f32 %v15405_v50, %v7676_v30 }
 0x9ce   : > { %v7680_v4 = vpop.f32.mrb[138].mxu1  ;;  %v7679_v63 = vadd.f32 %v15410_v54, %v7678_v3 }
 0x9cf   : > { %v7681_v51 = vadd.f32 %v15405_v50, %v7680_v4  ;;  %v7682_v8 = vpop.f32.mrb[139].mxu1 }
 0x9d0   : > { %v7683_v59 = vadd.f32 %v15410_v54, %v7682_v8 }
 0x9d1   : > { %v7787_v58 = vpack.c.bf16 %v7681_v51, %v7677_v33 }
 0x9d2   : > { %v7788_v17 = vpack.c.bf16 %v7683_v59, %v7679_v63 }
 0x9d4   : > { %v7686_v60 = vpop.f32.mrb[140].mxu1  ;;  %8295 = vmatprep.mubr.bf16.mxu0 %v7788_v17 }
 0x9d5   : > { %v7688_v62 = vpop.f32.mrb[141].mxu1  ;;  %8296 = vmatmul.mubr.bf16.gmra.mrb[72].mxu0 %v7787_v58  ;;  %v7687_v48 = vadd.f32 %v15405_v50, %v7686_v60 }
 0x9d6   : > { %v7690_v47 = vpop.f32.mrb[142].mxu1  ;;  %v7689_v13 = vadd.f32 %v15410_v54, %v7688_v62 }
 0x9d7   : > { %v7691_v56 = vadd.f32 %v15405_v50, %v7690_v47  ;;  %v7692_v20 = vpop.f32.mrb[143].mxu1 }
 0x9d8   : > { %v7693_v24 = vadd.f32 %v15410_v54, %v7692_v20  ;;  %v15640_v46 = vpop.f32.mrb[224].mxu0 }
 0x9d9   : > { %v7789_v21 = vpack.c.bf16 %v7691_v56, %v7687_v48  ;;  %v8039_v15 = vpop.f32.mrb[225].mxu0 }
 0x9da   : > { %v7790_v6 = vpack.c.bf16 %v7693_v24, %v7689_v13  ;;  %v8040_v27 = vadd.f32 %v8039_v15, %v15634_v18  ;;  %v15643_v44 = vpop.f32.mrb[226].mxu0 }
 0x9db   : > { %v8043_v32 = vpop.f32.mrb[227].mxu0 }
 0x9dc   : > { %v7696_v31 = vpop.f32.mrb[144].mxu1  ;;  %8305 = vmatprep.mubr.bf16.mxu0 %v7790_v6  ;;  %10399 = vrot.lane.b32.xlu0 %v8040_v27, %s12854_s13  ;;  %v8044_v52 = vadd.f32 %v8043_v32, %v15634_v18  ;;  %v15697_v32 = vrot.slane %v15630_v10, %v13199_v26 }
 0x9dd   : > { %v7698_v40 = vpop.f32.mrb[145].mxu1  ;;  %8306 = vmatmul.mubr.bf16.gmra.mrb[76].mxu0 %v7789_v21  ;;  %v7697_v19 = vadd.f32 %v15405_v50, %v7696_v31 }
 0x9de   : > { %v7700_v41 = vpop.f32.mrb[146].mxu1  ;;  %v7699_v36 = vadd.f32 %v15410_v54, %v7698_v40  ;;  %v8038_v26 = vadd.f32 %v15640_v46, %v15697_v32 }
 0x9df   : > { %v7701_v42 = vadd.f32 %v15651_v35, %v7700_v41  ;;  %v7702_v1 = vpop.f32.mrb[147].mxu1 }
 0x9e0   : > { %v7703_v38 = vadd.f32 %v15658_v9, %v7702_v1  ;;  %v15661_v2 = vpop.f32.mrb[228].mxu0  ;;  %10401 = vrot.lane.b32.xlu0 %v8044_v52, %s12854_s13 }
 0x9e1   : > { %v7791_v50 = vpack.c.bf16 %v7701_v42, %v7697_v19  ;;  %v8049_v39 = vpop.f32.mrb[229].mxu0 }
 0x9e2   : > { %v7792_v22 = vpack.c.bf16 %v7703_v38, %v7699_v36  ;;  %v8050_v28 = vadd.f32 %v8049_v39, %v15634_v18  ;;  %v15665_v12 = vpop.f32.mrb[230].mxu0 }
 0x9e3   : > { %v8053_v11 = vpop.f32.mrb[231].mxu0 }
 0x9e4   : > { %v7706_v54 = vpop.f32.mrb[148].mxu1  ;;  %8315 = vmatprep.mubr.bf16.mxu0 %v7792_v22  ;;  %10403 = vrot.lane.b32.xlu1 %v8050_v28, %s12854_s13  ;;  %v8054_v55 = vadd.f32 %v8053_v11, %v15634_v18  ;;  %v8042_v28 = vadd.f32 %v15643_v44, %v15697_v32 }
 0x9e5   : > { %v7708_v25 = vpop.f32.mrb[149].mxu1  ;;  %8316 = vmatmul.mubr.bf16.gmra.mrb[80].mxu0 %v7791_v50  ;;  %v7707_v61 = vadd.f32 %v15651_v35, %v7706_v54  ;;  %v8052_v50 = vadd.f32 %v15665_v12, %v15697_v32 }
 0x9e6   : > { %v7710_v45 = vpop.f32.mrb[150].mxu1  ;;  %v7709_v57 = vadd.f32 %v15658_v9, %v7708_v25 }
 0x9e7   : > { %v7711_v53 = vadd.f32 %v15651_v35, %v7710_v45  ;;  %v7712_v0 = vpop.f32.mrb[151].mxu1 }
 0x9e8   : > { %v7713_v37 = vadd.f32 %v15658_v9, %v7712_v0  ;;  %v15676_v49 = vpop.f32.mrb[232].mxu0  ;;  %10405 = vrot.lane.b32.xlu1 %v8054_v55, %s12854_s13 }
 0x9e9   : > { %v7793_v29 = vpack.c.bf16 %v7711_v53, %v7707_v61  ;;  %v8059_v34 = vpop.f32.mrb[233].mxu0 }
 0x9ea   : > { %v7794_v16 = vpack.c.bf16 %v7713_v37, %v7709_v57  ;;  %v8060_v43 = vadd.f32 %v8059_v34, %v15634_v18  ;;  %v15680_v7 = vpop.f32.mrb[234].mxu0  ;;  %v8058_v34 = vadd.f32 %v15676_v49, %v15697_v32 }
 0x9eb   : > { %v8063_v14 = vpop.f32.mrb[235].mxu0 }
 0x9ec   : > { %v8064_v5 = vadd.f32 %v8063_v14, %v15634_v18  ;;  %v7716_v30 = vpop.f32.mrb[152].mxu1  ;;  %8325 = vmatprep.mubr.bf16.mxu0 %v7794_v16  ;;  %10407 = vrot.lane.b32.xlu0 %v8060_v43, %s12854_s13 }
 0x9ed   : > { %v7718_v3 = vpop.f32.mrb[153].mxu1  ;;  %8326 = vmatmul.mubr.bf16.gmra.mrb[84].mxu0 %v7793_v29  ;;  %v7717_v33 = vadd.f32 %v15651_v35, %v7716_v30 }
 0x9ee   : > { %v7720_v4 = vpop.f32.mrb[154].mxu1  ;;  %10409 = vrot.lane.b32.xlu1 %v8064_v5, %s12854_s13  ;;  %v7719_v63 = vadd.f32 %v15658_v9, %v7718_v3 }
 0x9ef   : > { %v7721_v51 = vadd.f32 %v15651_v35, %v7720_v4  ;;  %v7722_v8 = vpop.f32.mrb[155].mxu1  ;;  %v12534_v4 = vld [vmem:[%s16427_s10 + $0x10] sm:$0xff]  }
 0x9f0   : > { %v7723_v59 = vadd.f32 %v15658_v9, %v7722_v8  ;;  %v8067_v58 = vpop.f32.mrb[236].mxu0  ;;  %11781 = vmatprep.subr.bf16.mxu0 %v12534_v4 }
 0x9f1   : > { %v7795_v17 = vpack.c.bf16 %v7721_v51, %v7717_v33  ;;  %v8069_v60 = vpop.f32.mrb[237].mxu0  ;;  %v8068_v37 = vadd.f32 %v8067_v58, %v15697_v32  ;;  %v8062_v33 = vadd.f32 %v15680_v7, %v15697_v32  ;;  %11782 = vmatpush3.bf16.msra.mxu0 %v12534_v4 }
 0x9f2   : > { %v7796_v62 = vpack.c.bf16 %v7723_v59, %v7719_v63  ;;  %v8070_v47 = vadd.f32 %v8069_v60, %v15634_v18  ;;  %v8071_v48 = vpop.f32.mrb[238].mxu0 }
 0x9f3   : > { %v8073_v56 = vpop.f32.mrb[239].mxu0  ;;  %v8072_v5 = vadd.f32 %v8071_v48, %v15697_v32 }
 0x9f4   : > { %v8074_v20 = vadd.f32 %v8073_v56, %v15634_v18  ;;  %8335 = vmatprep.mubr.bf16.mxu0 %v7796_v62  ;;  %10411 = vrot.lane.b32.xlu0 %v8070_v47, %s12854_s13  ;;  %v7726_v13 = vpop.f32.mrb[156].mxu1 }
 0x9f5   : > { %v7728_v24 = vpop.f32.mrb[157].mxu1  ;;  %8336 = vmatmul.mubr.bf16.gmra.mrb[88].mxu0 %v7795_v17  ;;  %v7727_v15 = vadd.f32 %v15651_v35, %v7726_v13 }
 0x9f6   : > { %10413 = vrot.lane.b32.xlu1 %v8074_v20, %s12854_s13  ;;  %v7730_v21 = vpop.f32.mrb[158].mxu1  ;;  %v7729_v31 = vadd.f32 %v15658_v9, %v7728_v24 }
 0x9f7   : > { %v7731_v6 = vadd.f32 %v15651_v35, %v7730_v21  ;;  %v7732_v27 = vpop.f32.mrb[159].mxu1  ;;  %v8048_v35 = vadd.f32 %v15661_v2, %v15697_v32 }
 0x9f8   : > { %v7733_v40 = vadd.f32 %v15658_v9, %v7732_v27  ;;  %v15701_v52 = vpop.f32.mrb[240].mxu0 }
 0x9f9   : > { %v7797_v41 = vpack.c.bf16 %v7731_v6, %v7727_v15  ;;  %v8079_v19 = vpop.f32.mrb[241].mxu0  ;;  %v8078_v21 = vadd.f32 %v15701_v52, %v15697_v32 }
 0x9fa   : > { %v7798_v42 = vpack.c.bf16 %v7733_v40, %v7729_v31  ;;  %v8080_v1 = vadd.f32 %v8079_v19, %v15634_v18  ;;  %v15704_v36 = vpop.f32.mrb[242].mxu0 }
 0x9fb   : > { %v8083_v38 = vpop.f32.mrb[243].mxu0  ;;  %v8082_v19 = vadd.f32 %v15704_v36, %v15697_v32 }
 0x9fc   : > { %v8084_v10 = vadd.f32 %v8083_v38, %v15634_v18  ;;  %10415 = vrot.lane.b32.xlu0 %v8080_v1, %s12854_s13  ;;  %8345 = vmatprep.mubr.bf16.mxu0 %v7798_v42  ;;  %v11635_v9 = vpop.f32.mrb[160].mxu1 }
 0x9fd   : > { %v8912_v39 = vadd.f32 %v11635_v9, %v8048_v35  ;;  %8346 = vmatmul.mubr.bf16.gmra.mrb[92].mxu0 %v7797_v41  ;;  %v8655_v22 = vpop.f32.mrb[161].mxu1 }
 0x9fe   : > { %v8910_v2 = vadd.f32 %v8655_v22, %v8038_v26  ;;  %10417 = vrot.lane.b32.xlu1 %v8084_v10, %s12854_s13  ;;  %v11636_v11 = vpop.f32.mrb[162].mxu1 }
 0x9ff   : > { %v8913_v46 = vadd.f32 %v11636_v11, %v8052_v50  ;;  %v8658_v54 = vpop.f32.mrb[163].mxu1  ;;  %v8976_v55 = vmax.f32 %v8912_v39, 0.0 }
 0xa00   : > { %v8911_v25 = vadd.f32 %v8658_v54, %v8042_v28  ;;  %v8087_v23 = vpop.f32.mrb[244].mxu0  ;;  %v8974_v53 = vmax.f32 %v8910_v2, 0.0 }
 0xa01   : > { %v8977_v45 = vmax.f32 %v8913_v46, 0.0  ;;  %v8089_v61 = vpop.f32.mrb[245].mxu0  ;;  %v8088_v20 = vadd.f32 %v8087_v23, %v15697_v32 }
 0xa02   : > { %v8975_v0 = vmax.f32 %v8911_v25, 0.0  ;;  %v8090_v12 = vadd.f32 %v8089_v61, %v15634_v18  ;;  %v8091_v57 = vpop.f32.mrb[246].mxu0 }
 0xa03   : > { %v9039_v29 = vpack.c.bf16 %v8977_v45, %v8976_v55  ;;  %v8093_v44 = vpop.f32.mrb[247].mxu0  ;;  %v8092_v31 = vadd.f32 %v8091_v57, %v15697_v32 }
 0xa04   : > { %v9038_v16 = vpack.c.bf16 %v8975_v0, %v8974_v53  ;;  %v8094_v43 = vadd.f32 %v8093_v44, %v15634_v18  ;;  %10419 = vrot.lane.b32.xlu0 %v8090_v12, %s12854_s13  ;;  %v11639_v14 = vpop.f32.mrb[164].mxu1 }
 0xa05   : > { %v8916_v30 = vadd.f32 %v11639_v14, %v8068_v37  ;;  %v8671_v3 = vpop.f32.mrb[165].mxu1 }
 0xa06   : > { %v8914_v51 = vadd.f32 %v8671_v3, %v8058_v34  ;;  %10421 = vrot.lane.b32.xlu1 %v8094_v43, %s12854_s13  ;;  %v11640_v49 = vpop.f32.mrb[166].mxu1  ;;  %11713 = vmatprep.mubr.bf16.mxu1 %v9038_v16 }
 0xa07   : > { %v8917_v8 = vadd.f32 %v11640_v49, %v8072_v5  ;;  %v8674_v63 = vpop.f32.mrb[167].mxu1  ;;  %11714 = vmatmul.mubr.bf16.vlgmr.msra.gmra.mrb[224].mxu1 %v9039_v29  ;;  %v8980_v17 = vmax.f32 %v8916_v30, 0.0 }
 0xa08   : > { %v8915_v59 = vadd.f32 %v8674_v63, %v8062_v33  ;;  %v8097_v58 = vpop.f32.mrb[248].mxu0  ;;  %v8978_v47 = vmax.f32 %v8914_v51, 0.0 }
 0xa09   : > { %v8981_v60 = vmax.f32 %v8917_v8, 0.0  ;;  %v8099_v62 = vpop.f32.mrb[249].mxu0  ;;  %v8098_v54 = vadd.f32 %v8097_v58, %v15697_v32 }
 0xa0a   : > { %v8979_v48 = vmax.f32 %v8915_v59, 0.0  ;;  %v8100_v56 = vadd.f32 %v8099_v62, %v15634_v18  ;;  %v8101_v7 = vpop.f32.mrb[250].mxu0 }
 0xa0b   : > { %v9041_v13 = vpack.c.bf16 %v8981_v60, %v8980_v17  ;;  %v8103_v24 = vpop.f32.mrb[251].mxu0  ;;  %v8102_v0 = vadd.f32 %v8101_v7, %v15697_v32 }
 0xa0c   : > { %v9040_v15 = vpack.c.bf16 %v8979_v48, %v8978_v47  ;;  %v8104_v6 = vadd.f32 %v8103_v24, %v15634_v18  ;;  %10423 = vrot.lane.b32.xlu0 %v8100_v56, %s12854_s13  ;;  %v11643_v27 = vpop.f32.mrb[168].mxu1 }
 0xa0d   : > { %v8920_v40 = vadd.f32 %v11643_v27, %v8088_v20  ;;  %v8687_v41 = vpop.f32.mrb[169].mxu1 }
 0xa0e   : > { %v8918_v42 = vadd.f32 %v8687_v41, %v8078_v21  ;;  %10425 = vrot.lane.b32.xlu1 %v8104_v6, %s12854_s13  ;;  %v11644_v1 = vpop.f32.mrb[170].mxu1  ;;  %11717 = vmatprep.mubr.bf16.mxu1 %v9040_v15 }
 0xa0f   : > { %v8921_v35 = vadd.f32 %v11644_v1, %v8092_v31  ;;  %v8690_v52 = vpop.f32.mrb[171].mxu1  ;;  %11718 = vmatmul.mubr.bf16.gmra.mrb[228].mxu1 %v9041_v13  ;;  %v8984_v10 = vmax.f32 %v8920_v40, 0.0 }
 0xa10   : > { %v8919_v38 = vadd.f32 %v8690_v52, %v8082_v19  ;;  %v8107_v26 = vpop.f32.mrb[252].mxu0  ;;  %v8982_v39 = vmax.f32 %v8918_v42, 0.0 }
 0xa11   : > { %v8985_v9 = vmax.f32 %v8921_v35, 0.0  ;;  %v8109_v50 = vpop.f32.mrb[253].mxu0  ;;  %v8108_v36 = vadd.f32 %v8107_v26, %v15697_v32  ;;  %v12535_v35 = vld [vmem:[%s16427_s10 + $0x18] sm:$0xff]  }
 0xa12   : > { %v8983_v22 = vmax.f32 %v8919_v38, 0.0  ;;  %v8110_v28 = vadd.f32 %v8109_v50, %v15634_v18  ;;  %v8111_v2 = vpop.f32.mrb[254].mxu0  ;;  %11783 = vmatprep.subr.bf16.mxu0 %v12535_v35 }
 0xa13   : > { %v9043_v11 = vpack.c.bf16 %v8985_v9, %v8984_v10  ;;  %v8113_v46 = vpop.f32.mrb[255].mxu0  ;;  %v8112_v45 = vadd.f32 %v8111_v2, %v15697_v32  ;;  %11784 = vmatpush3.bf16.msra.mxu0 %v12535_v35 }
 0xa14   : > { %v9042_v25 = vpack.c.bf16 %v8983_v22, %v8982_v39  ;;  %v8114_v23 = vadd.f32 %v8113_v46, %v15634_v18  ;;  %10427 = vrot.lane.b32.xlu0 %v8110_v28, %s12854_s13  ;;  %v11647_v55 = vpop.f32.mrb[172].mxu1 }
 0xa15   : > { %v8924_v61 = vadd.f32 %v11647_v55, %v8108_v36  ;;  %v8703_v53 = vpop.f32.mrb[173].mxu1 }
 0xa16   : > { %v8922_v12 = vadd.f32 %v8703_v53, %v8098_v54  ;;  %10429 = vrot.lane.b32.xlu1 %v8114_v23, %s12854_s13  ;;  %v11648_v57 = vpop.f32.mrb[174].mxu1  ;;  %11721 = vmatprep.mubr.bf16.mxu1 %v9042_v25 }
 0xa17   : > { %v8925_v37 = vadd.f32 %v11648_v57, %v8112_v45  ;;  %v8706_v29 = vpop.f32.mrb[175].mxu1  ;;  %11722 = vmatmul.mubr.bf16.gmra.mrb[232].mxu1 %v9043_v11  ;;  %v8988_v16 = vmax.f32 %v8924_v61, 0.0 }
 0xa18   : > { %v8923_v44 = vadd.f32 %v8706_v29, %v8102_v0  ;;  %v8117_v34 = vpop.f32.mrb[0].mxu0  ;;  %v8986_v5 = vmax.f32 %v8922_v12, 0.0 }
 0xa19   : > { %v8989_v43 = vmax.f32 %v8925_v37, 0.0  ;;  %v8119_v14 = vpop.f32.mrb[1].mxu0  ;;  %v8118_v8 = vadd.f32 %v8117_v34, %v15697_v32 }
 0xa1a   : > { %v8987_v30 = vmax.f32 %v8923_v44, 0.0  ;;  %v8120_v3 = vadd.f32 %v8119_v14, %v15634_v18  ;;  %v8121_v4 = vpop.f32.mrb[2].mxu0 }
 0xa1b   : > { %v9045_v33 = vpack.c.bf16 %v8989_v43, %v8988_v16  ;;  %v8123_v51 = vpop.f32.mrb[3].mxu0  ;;  %v8122_v17 = vadd.f32 %v8121_v4, %v15697_v32 }
 0xa1c   : > { %v9044_v49 = vpack.c.bf16 %v8987_v30, %v8986_v5  ;;  %v8124_v63 = vadd.f32 %v8123_v51, %v15634_v18  ;;  %10431 = vrot.lane.b32.xlu0 %v8120_v3, %s12854_s13  ;;  %v11651_v59 = vpop.f32.mrb[176].mxu1 }
 0xa1d   : > { %v8719_v58 = vpop.f32.mrb[177].mxu1 }
 0xa1e   : > { %v8926_v60 = vadd.f32 %v8719_v58, %v8118_v8  ;;  %10433 = vrot.lane.b32.xlu1 %v8124_v63, %s12854_s13  ;;  %v11652_v62 = vpop.f32.mrb[178].mxu1  ;;  %11725 = vmatprep.mubr.bf16.mxu1 %v9044_v49 }
 0xa1f   : > { %v8722_v47 = vpop.f32.mrb[179].mxu1  ;;  %11726 = vmatmul.mubr.bf16.gmra.mrb[236].mxu1 %v9045_v33 }
 0xa20   : > { %v8927_v48 = vadd.f32 %v8722_v47, %v8122_v17  ;;  %v8127_v56 = vpop.f32.mrb[4].mxu0  ;;  %v8990_v13 = vmax.f32 %v8926_v60, 0.0 }
 0xa21   : > { %v8128_v7 = vadd.f32 %v8127_v56, %v15697_v32  ;;  %v8129_v20 = vpop.f32.mrb[5].mxu0 }
 0xa22   : > { %v8991_v24 = vmax.f32 %v8927_v48, 0.0  ;;  %v8130_v21 = vadd.f32 %v8129_v20, %v15634_v18  ;;  %v8131_v15 = vpop.f32.mrb[6].mxu0 }
 0xa23   : > { %v8928_v6 = vadd.f32 %v11651_v59, %v8128_v7  ;;  %v8132_v27 = vadd.f32 %v8131_v15, %v15697_v32  ;;  %v8133_v31 = vpop.f32.mrb[7].mxu0 }
 0xa24   : > { %v9046_v40 = vpack.c.bf16 %v8991_v24, %v8990_v13  ;;  %v8134_v41 = vadd.f32 %v8133_v31, %v15634_v18  ;;  %10435 = vrot.lane.b32.xlu0 %v8130_v21, %s12854_s13  ;;  %v11655_v19 = vpop.f32.mrb[180].mxu1 }
 0xa25   : > { %v8929_v42 = vadd.f32 %v11652_v62, %v8132_v27  ;;  %v8735_v1 = vpop.f32.mrb[181].mxu1  ;;  %v8992_v38 = vmax.f32 %v8928_v6, 0.0 }
 0xa26   : > { %10437 = vrot.lane.b32.xlu1 %v8134_v41, %s12854_s13  ;;  %11729 = vmatprep.mubr.bf16.mxu1 %v9046_v40  ;;  %v11656_v52 = vpop.f32.mrb[182].mxu1 }
 0xa27   : > { %v8993_v26 = vmax.f32 %v8929_v42, 0.0  ;;  %v8738_v10 = vpop.f32.mrb[183].mxu1 }
 0xa28   : > { %v8137_v9 = vpop.f32.mrb[8].mxu0 }
 0xa29   : > { %v9047_v50 = vpack.c.bf16 %v8993_v26, %v8992_v38  ;;  %v8138_v39 = vadd.f32 %v8137_v9, %v15697_v32  ;;  %v8139_v22 = vpop.f32.mrb[9].mxu0 }
 0xa2a   : > { %v8140_v28 = vadd.f32 %v8139_v22, %v15634_v18  ;;  %v8141_v2 = vpop.f32.mrb[10].mxu0 }
 0xa2b   : > { %v8142_v11 = vadd.f32 %v8141_v2, %v15697_v32  ;;  %v8930_v36 = vadd.f32 %v8735_v1, %v8138_v39  ;;  %v8143_v46 = vpop.f32.mrb[11].mxu0  ;;  %11730 = vmatmul.mubr.bf16.gmra.mrb[240].mxu1 %v9047_v50  ;;  %v12536_v39 = vld [vmem:[%s16427_s10 + $0x20] sm:$0xff]  }
 0xa2c   : > { %v8144_v54 = vadd.f32 %v8143_v46, %v15634_v18  ;;  %10439 = vrot.lane.b32.xlu0 %v8140_v28, %s12854_s13  ;;  %v11659_v25 = vpop.f32.mrb[184].mxu1  ;;  %11785 = vmatprep.subr.bf16.mxu0 %v12536_v39 }
 0xa2d   : > { %v8931_v23 = vadd.f32 %v8738_v10, %v8142_v11  ;;  %v8751_v55 = vpop.f32.mrb[185].mxu1  ;;  %v8994_v61 = vmax.f32 %v8930_v36, 0.0  ;;  %11786 = vmatpush3.bf16.msra.mxu0 %v12536_v39 }
 0xa2e   : > { %10441 = vrot.lane.b32.xlu1 %v8144_v54, %s12854_s13  ;;  %v11660_v45 = vpop.f32.mrb[186].mxu1 }
 0xa2f   : > { %v8995_v53 = vmax.f32 %v8931_v23, 0.0  ;;  %v8754_v0 = vpop.f32.mrb[187].mxu1 }
 0xa30   : > { %v8147_v12 = vpop.f32.mrb[12].mxu0 }
 0xa31   : > { %v9048_v57 = vpack.c.bf16 %v8995_v53, %v8994_v61  ;;  %v8148_v37 = vadd.f32 %v8147_v12, %v15697_v32  ;;  %v8149_v29 = vpop.f32.mrb[13].mxu0 }
 0xa32   : > { %v8150_v44 = vadd.f32 %v8149_v29, %v15634_v18  ;;  %v8151_v34 = vpop.f32.mrb[14].mxu0 }
 0xa33   : > { %v8932_v16 = vadd.f32 %v11655_v19, %v8148_v37  ;;  %v8152_v43 = vadd.f32 %v8151_v34, %v15697_v32  ;;  %v8153_v14 = vpop.f32.mrb[15].mxu0  ;;  %11733 = vmatprep.mubr.bf16.mxu1 %v9048_v57 }
 0xa34   : > { %v8154_v5 = vadd.f32 %v8153_v14, %v15634_v18  ;;  %10443 = vrot.lane.b32.xlu0 %v8150_v44, %s12854_s13  ;;  %v15774_v30 = vpop.f32.mrb[188].mxu1 }
 0xa35   : > { %v8933_v3 = vadd.f32 %v11656_v52, %v8152_v43  ;;  %v8767_v4 = vpop.f32.mrb[189].mxu1  ;;  %v8996_v51 = vmax.f32 %v8932_v16, 0.0 }
 0xa36   : > { %10445 = vrot.lane.b32.xlu1 %v8154_v5, %s12854_s13  ;;  %v15777_v33 = vpop.f32.mrb[190].mxu1 }
 0xa37   : > { %v8997_v49 = vmax.f32 %v8933_v3, 0.0  ;;  %v8770_v8 = vpop.f32.mrb[191].mxu1 }
 0xa38   : > { %v8157_v63 = vpop.f32.mrb[16].mxu0 }
 0xa39   : > { %v9049_v59 = vpack.c.bf16 %v8997_v49, %v8996_v51  ;;  %v8158_v58 = vadd.f32 %v8157_v63, %v15697_v32  ;;  %v8159_v17 = vpop.f32.mrb[17].mxu0 }
 0xa3a   : > { %v8160_v60 = vadd.f32 %v8159_v17, %v15634_v18  ;;  %v8161_v62 = vpop.f32.mrb[18].mxu0 }
 0xa3b   : > { %v8162_v47 = vadd.f32 %v8161_v62, %v15697_v32  ;;  %v8934_v48 = vadd.f32 %v8751_v55, %v8158_v58  ;;  %v8163_v56 = vpop.f32.mrb[19].mxu0  ;;  %11734 = vmatmul.mubr.bf16.gmra.mrb[244].mxu1 %v9049_v59 }
 0xa3c   : > { %v8164_v7 = vadd.f32 %v8163_v56, %v15634_v18  ;;  %10447 = vrot.lane.b32.xlu0 %v8160_v60, %s12854_s13  ;;  %v15784_v20 = vpop.f32.mrb[192].mxu1  ;;  %v12537_v56 = vld [vmem:[%s16427_s10 + $0x28] sm:$0xff]  }
 0xa3d   : > { %v8935_v13 = vadd.f32 %v8754_v0, %v8162_v47  ;;  %v15786_v24 = vpop.f32.mrb[193].mxu1  ;;  %v8998_v15 = vmax.f32 %v8934_v48, 0.0  ;;  %11787 = vmatprep.subr.bf16.mxu0 %v12537_v56 }
 0xa3e   : > { %10449 = vrot.lane.b32.xlu1 %v8164_v7, %s12854_s13  ;;  %v15789_v21 = vpop.f32.mrb[194].mxu1  ;;  %11788 = vmatpush3.bf16.msra.mxu0 %v12537_v56 }
 0xa3f   : > { %v8999_v6 = vmax.f32 %v8935_v13, 0.0  ;;  %v15791_v27 = vpop.f32.mrb[195].mxu1 }
 0xa40   : > { %v8167_v31 = vpop.f32.mrb[20].mxu0 }
 0xa41   : > { %v9050_v40 = vpack.c.bf16 %v8999_v6, %v8998_v15  ;;  %v8168_v41 = vadd.f32 %v8167_v31, %v15697_v32  ;;  %v8169_v19 = vpop.f32.mrb[21].mxu0 }
 0xa42   : > { %v8170_v42 = vadd.f32 %v8169_v19, %v15634_v18  ;;  %v8171_v1 = vpop.f32.mrb[22].mxu0 }
 0xa43   : > { %v8936_v35 = vadd.f32 %v11659_v25, %v8168_v41  ;;  %v8172_v52 = vadd.f32 %v8171_v1, %v15697_v32  ;;  %v8173_v38 = vpop.f32.mrb[23].mxu0  ;;  %11737 = vmatprep.mubr.bf16.mxu1 %v9050_v40 }
 0xa44   : > { %v8174_v26 = vadd.f32 %v8173_v38, %v15634_v18  ;;  %10451 = vrot.lane.b32.xlu0 %v8170_v42, %s12854_s13  ;;  %v15798_v10 = vpop.f32.mrb[196].mxu1  ;;  %v12538_v42 = vld [vmem:[%s16427_s10 + $0x30] sm:$0xff]  }
 0xa45   : > { %v8937_v9 = vadd.f32 %v11660_v45, %v8172_v52  ;;  %v15800_v50 = vpop.f32.mrb[197].mxu1  ;;  %v9000_v28 = vmax.f32 %v8936_v35, 0.0  ;;  %11789 = vmatprep.subr.bf16.mxu0 %v12538_v42 }
 0xa46   : > { %10453 = vrot.lane.b32.xlu1 %v8174_v26, %s12854_s13  ;;  %v15806_v22 = vpop.f32.mrb[198].mxu1  ;;  %11790 = vmatpush3.bf16.msra.mxu0 %v12538_v42 }
 0xa47   : > { %v9001_v2 = vmax.f32 %v8937_v9, 0.0  ;;  %v15808_v11 = vpop.f32.mrb[199].mxu1 }
 0xa48   : > { %v8177_v36 = vpop.f32.mrb[24].mxu0 }
 0xa49   : > { %v9051_v46 = vpack.c.bf16 %v9001_v2, %v9000_v28  ;;  %v8178_v54 = vadd.f32 %v8177_v36, %v15697_v32  ;;  %v8179_v25 = vpop.f32.mrb[25].mxu0  ;;  %v12539_v28 = vld [vmem:[%s16427_s10 + $0x38] sm:$0xff]  }
 0xa4a   : > { %v8180_v23 = vadd.f32 %v8179_v25, %v15634_v18  ;;  %v8181_v55 = vpop.f32.mrb[26].mxu0  ;;  %11791 = vmatprep.subr.bf16.mxu0 %v12539_v28 }
 0xa4b   : > { %v8182_v45 = vadd.f32 %v8181_v55, %v15697_v32  ;;  %v8938_v61 = vadd.f32 %v8767_v4, %v8178_v54  ;;  %v8183_v53 = vpop.f32.mrb[27].mxu0  ;;  %11738 = vmatmul.mubr.bf16.gmra.mrb[248].mxu1 %v9051_v46  ;;  %11792 = vmatpush3.bf16.msra.mxu0 %v12539_v28 }
 0xa4c   : > { %v8184_v0 = vadd.f32 %v8183_v53, %v15634_v18  ;;  %10455 = vrot.lane.b32.xlu0 %v8180_v23, %s12854_s13  ;;  %v15815_v12 = vpop.f32.mrb[200].mxu1 }
 0xa4d   : > { %v8939_v57 = vadd.f32 %v8770_v8, %v8182_v45  ;;  %v15817_v37 = vpop.f32.mrb[201].mxu1  ;;  %v9002_v44 = vmax.f32 %v8938_v61, 0.0 }
 0xa4e   : > { %10457 = vrot.lane.b32.xlu1 %v8184_v0, %s12854_s13  ;;  %v15820_v29 = vpop.f32.mrb[202].mxu1 }
 0xa4f   : > { %v9003_v34 = vmax.f32 %v8939_v57, 0.0  ;;  %v15822_v16 = vpop.f32.mrb[203].mxu1 }
 0xa50   : > { %v8187_v43 = vpop.f32.mrb[28].mxu0 }
 0xa51   : > { %v9052_v14 = vpack.c.bf16 %v9003_v34, %v9002_v44  ;;  %v8188_v5 = vadd.f32 %v8187_v43, %v15697_v32  ;;  %v8189_v3 = vpop.f32.mrb[29].mxu0 }
 0xa52   : > { %v8190_v4 = vadd.f32 %v8189_v3, %v15634_v18  ;;  %v8191_v51 = vpop.f32.mrb[30].mxu0 }
 0xa53   : > { %v8940_v49 = vadd.f32 %v15774_v30, %v8188_v5  ;;  %v8192_v8 = vadd.f32 %v8191_v51, %v15697_v32  ;;  %v8193_v63 = vpop.f32.mrb[31].mxu0  ;;  %11741 = vmatprep.mubr.bf16.mxu1 %v9052_v14 }
 0xa54   : > { %v8194_v59 = vadd.f32 %v8193_v63, %v15634_v18  ;;  %10459 = vrot.lane.b32.xlu0 %v8190_v4, %s12854_s13  ;;  %v15830_v58 = vpop.f32.mrb[204].mxu1 }
 0xa55   : > { %v8941_v17 = vadd.f32 %v15777_v33, %v8192_v8  ;;  %v15833_v60 = vpop.f32.mrb[205].mxu1  ;;  %v9004_v47 = vmax.f32 %v8940_v49, 0.0 }
 0xa56   : > { %10461 = vrot.lane.b32.xlu1 %v8194_v59, %s12854_s13  ;;  %v15836_v62 = vpop.f32.mrb[206].mxu1 }
 0xa57   : > { %v9005_v30 = vmax.f32 %v8941_v17, 0.0  ;;  %v15838_v48 = vpop.f32.mrb[207].mxu1 }
 0xa58   : > { %v8197_v7 = vpop.f32.mrb[32].mxu0 }
 0xa59   : > { %v9053_v13 = vpack.c.bf16 %v9005_v30, %v9004_v47  ;;  %v8198_v15 = vadd.f32 %v8197_v7, %v15697_v32  ;;  %v8199_v6 = vpop.f32.mrb[33].mxu0 }
 0xa5a   : > { %v8200_v33 = vadd.f32 %v8199_v6, %v15634_v18  ;;  %v8201_v31 = vpop.f32.mrb[34].mxu0 }
 0xa5b   : > { %v8202_v40 = vadd.f32 %v8201_v31, %v15697_v32  ;;  %v8942_v41 = vadd.f32 %v15786_v24, %v8198_v15  ;;  %v8203_v19 = vpop.f32.mrb[35].mxu0  ;;  %11742 = vmatmul.mubr.bf16.gmra.mrb[252].mxu1 %v9053_v13 }
 0xa5c   : > { %v8204_v1 = vadd.f32 %v8203_v19, %v15634_v18  ;;  %10463 = vrot.lane.b32.xlu0 %v8200_v33, %s12854_s13  ;;  %v15852_v35 = vpop.f32.mrb[208].mxu1 }
 0xa5d   : > { %v8943_v52 = vadd.f32 %v15791_v27, %v8202_v40  ;;  %v15855_v38 = vpop.f32.mrb[209].mxu1  ;;  %v9006_v26 = vmax.f32 %v8942_v41, 0.0 }
 0xa5e   : > { %10465 = vrot.lane.b32.xlu1 %v8204_v1, %s12854_s13  ;;  %v15858_v24 = vpop.f32.mrb[210].mxu1 }
 0xa5f   : > { %v9007_v9 = vmax.f32 %v8943_v52, 0.0  ;;  %v15860_v39 = vpop.f32.mrb[211].mxu1 }
 0xa60   : > { %v8207_v2 = vpop.f32.mrb[36].mxu0 }
 0xa61   : > { %v9054_v36 = vpack.c.bf16 %v9007_v9, %v9006_v26  ;;  %v8208_v27 = vadd.f32 %v8207_v2, %v15697_v32  ;;  %v8209_v46 = vpop.f32.mrb[37].mxu0 }
 0xa62   : > { %v8210_v54 = vadd.f32 %v8209_v46, %v15634_v18  ;;  %v8211_v25 = vpop.f32.mrb[38].mxu0 }
 0xa63   : > { %v8944_v23 = vadd.f32 %v15784_v20, %v8208_v27  ;;  %v8212_v55 = vadd.f32 %v8211_v25, %v15697_v32  ;;  %v8213_v45 = vpop.f32.mrb[39].mxu0  ;;  %11745 = vmatprep.mubr.bf16.mxu1 %v9054_v36 }
 0xa64   : > { %v8214_v61 = vadd.f32 %v8213_v45, %v15634_v18  ;;  %10467 = vrot.lane.b32.xlu0 %v8210_v54, %s12854_s13  ;;  %v15871_v53 = vpop.f32.mrb[212].mxu1 }
 0xa65   : > { %v8945_v0 = vadd.f32 %v15789_v21, %v8212_v55  ;;  %v15874_v57 = vpop.f32.mrb[213].mxu1  ;;  %v9008_v34 = vmax.f32 %v8944_v23, 0.0 }
 0xa66   : > { %10469 = vrot.lane.b32.xlu1 %v8214_v61, %s12854_s13  ;;  %v15877_v44 = vpop.f32.mrb[214].mxu1 }
 0xa67   : > { %v9009_v20 = vmax.f32 %v8945_v0, 0.0  ;;  %v15879_v43 = vpop.f32.mrb[215].mxu1 }
 0xa68   : > { %v8217_v14 = vpop.f32.mrb[40].mxu0 }
 0xa69   : > { %v9055_v5 = vpack.c.bf16 %v9009_v20, %v9008_v34  ;;  %v8218_v3 = vadd.f32 %v8217_v14, %v15697_v32  ;;  %v8219_v4 = vpop.f32.mrb[41].mxu0 }
 0xa6a   : > { %v8220_v51 = vadd.f32 %v8219_v4, %v15634_v18  ;;  %v8221_v49 = vpop.f32.mrb[42].mxu0 }
 0xa6b   : > { %v8222_v21 = vadd.f32 %v8221_v49, %v15697_v32  ;;  %v8946_v8 = vadd.f32 %v15800_v50, %v8218_v3  ;;  %v8223_v63 = vpop.f32.mrb[43].mxu0  ;;  %11746 = vmatmul.mubr.bf16.gmra.mrb[0].mxu1 %v9055_v5 }
 0xa6c   : > { %v8224_v59 = vadd.f32 %v8223_v63, %v15634_v18  ;;  %10471 = vrot.lane.b32.xlu0 %v8220_v51, %s12854_s13  ;;  %v15887_v17 = vpop.f32.mrb[216].mxu1 }
 0xa6d   : > { %v8947_v47 = vadd.f32 %v15808_v11, %v8222_v21  ;;  %v15890_v30 = vpop.f32.mrb[217].mxu1  ;;  %v9010_v7 = vmax.f32 %v8946_v8, 0.0 }
 0xa6e   : > { %10473 = vrot.lane.b32.xlu1 %v8224_v59, %s12854_s13  ;;  %v15893_v56 = vpop.f32.mrb[218].mxu1 }
 0xa6f   : > { %v9011_v13 = vmax.f32 %v8947_v47, 0.0  ;;  %v15895_v15 = vpop.f32.mrb[219].mxu1 }
 0xa70   : > { %v8227_v50 = vpop.f32.mrb[44].mxu0 }
 0xa71   : > { %v9056_v6 = vpack.c.bf16 %v9011_v13, %v9010_v7  ;;  %v8228_v33 = vadd.f32 %v8227_v50, %v15697_v32  ;;  %v8229_v31 = vpop.f32.mrb[45].mxu0 }
 0xa72   : > { %v8230_v40 = vadd.f32 %v8229_v31, %v15634_v18  ;;  %v8231_v41 = vpop.f32.mrb[46].mxu0 }
 0xa73   : > { %v8948_v11 = vadd.f32 %v15798_v10, %v8228_v33  ;;  %v8232_v19 = vadd.f32 %v8231_v41, %v15697_v32  ;;  %v8233_v42 = vpop.f32.mrb[47].mxu0  ;;  %11749 = vmatprep.mubr.bf16.mxu1 %v9056_v6 }
 0xa74   : > { %v8234_v1 = vadd.f32 %v8233_v42, %v15634_v18  ;;  %10475 = vrot.lane.b32.xlu0 %v8230_v40, %s12854_s13  ;;  %v15903_v52 = vpop.f32.mrb[220].mxu1 }
 0xa75   : > { %v8949_v26 = vadd.f32 %v15806_v22, %v8232_v19  ;;  %v15906_v9 = vpop.f32.mrb[221].mxu1  ;;  %v9012_v2 = vmax.f32 %v8948_v11, 0.0 }
 0xa76   : > { %10477 = vrot.lane.b32.xlu1 %v8234_v1, %s12854_s13  ;;  %v15909_v28 = vpop.f32.mrb[222].mxu1 }
 0xa77   : > { %v9013_v10 = vmax.f32 %v8949_v26, 0.0  ;;  %v15911_v36 = vpop.f32.mrb[223].mxu1 }
 0xa78   : > { %v8237_v27 = vpop.f32.mrb[48].mxu0 }
 0xa79   : > { %v9057_v46 = vpack.c.bf16 %v9013_v10, %v9012_v2  ;;  %v8238_v54 = vadd.f32 %v8237_v27, %v15697_v32  ;;  %v8239_v25 = vpop.f32.mrb[49].mxu0 }
 0xa7a   : > { %v8240_v23 = vadd.f32 %v8239_v25, %v15634_v18  ;;  %v8241_v55 = vpop.f32.mrb[50].mxu0 }
 0xa7b   : > { %v8242_v22 = vadd.f32 %v8241_v55, %v15697_v32  ;;  %v8950_v45 = vadd.f32 %v15817_v37, %v8238_v54  ;;  %v8243_v61 = vpop.f32.mrb[51].mxu0  ;;  %11750 = vmatmul.mubr.bf16.gmra.mrb[4].mxu1 %v9057_v46 }
 0xa7c   : > { %v8244_v0 = vadd.f32 %v8243_v61, %v15634_v18  ;;  %10479 = vrot.lane.b32.xlu0 %v8240_v23, %s12854_s13 }
 0xa7d   : > { %v8951_v34 = vadd.f32 %v15822_v16, %v8242_v22  ;;  %v9014_v20 = vmax.f32 %v8950_v45, 0.0 }
 0xa7e   : > { %10481 = vrot.lane.b32.xlu1 %v8244_v0, %s12854_s13 }
 0xa7f   : > { %v9015_v14 = vmax.f32 %v8951_v34, 0.0 }
 0xa80   : > { %v8247_v5 = vpop.f32.mrb[52].mxu0 }
 0xa81   : > { %v9058_v3 = vpack.c.bf16 %v9015_v14, %v9014_v20  ;;  %v8248_v4 = vadd.f32 %v8247_v5, %v15697_v32  ;;  %v8249_v51 = vpop.f32.mrb[53].mxu0 }
 0xa82   : > { %v8250_v49 = vadd.f32 %v8249_v51, %v15634_v18  ;;  %v8251_v37 = vpop.f32.mrb[54].mxu0 }
 0xa83   : > { %v8952_v21 = vadd.f32 %v15815_v12, %v8248_v4  ;;  %v8252_v8 = vadd.f32 %v8251_v37, %v15697_v32  ;;  %v8253_v63 = vpop.f32.mrb[55].mxu0  ;;  %11753 = vmatprep.mubr.bf16.mxu1 %v9058_v3 }
 0xa84   : > { %v8254_v16 = vadd.f32 %v8253_v63, %v15634_v18  ;;  %10483 = vrot.lane.b32.xlu0 %v8250_v49, %s12854_s13 }
 0xa85   : > { %v8953_v59 = vadd.f32 %v15820_v29, %v8252_v8  ;;  %v9016_v47 = vmax.f32 %v8952_v21, 0.0 }
 0xa86   : > { %10485 = vrot.lane.b32.xlu1 %v8254_v16, %s12854_s13 }
 0xa87   : > { %v9017_v7 = vmax.f32 %v8953_v59, 0.0 }
 0xa88   : > { %v8257_v13 = vpop.f32.mrb[56].mxu0 }
 0xa89   : > { %v9059_v50 = vpack.c.bf16 %v9017_v7, %v9016_v47  ;;  %v8258_v6 = vadd.f32 %v8257_v13, %v15697_v32  ;;  %v8259_v33 = vpop.f32.mrb[57].mxu0 }
 0xa8a   : > { %v8260_v12 = vadd.f32 %v8259_v33, %v15634_v18  ;;  %v8261_v31 = vpop.f32.mrb[58].mxu0 }
 0xa8b   : > { %v8262_v40 = vadd.f32 %v8261_v31, %v15697_v32  ;;  %v8954_v41 = vadd.f32 %v15833_v60, %v8258_v6  ;;  %v8263_v11 = vpop.f32.mrb[59].mxu0  ;;  %11754 = vmatmul.mubr.bf16.gmra.mrb[8].mxu1 %v9059_v50 }
 0xa8c   : > { %v8264_v29 = vadd.f32 %v8263_v11, %v15634_v18  ;;  %10487 = vrot.lane.b32.xlu0 %v8260_v12, %s12854_s13 }
 0xa8d   : > { %v8955_v19 = vadd.f32 %v15838_v48, %v8262_v40  ;;  %v9018_v42 = vmax.f32 %v8954_v41, 0.0 }
 0xa8e   : > { %10489 = vrot.lane.b32.xlu1 %v8264_v29, %s12854_s13 }
 0xa8f   : > { %v9019_v1 = vmax.f32 %v8955_v19, 0.0 }
 0xa90   : > { %v8267_v26 = vpop.f32.mrb[60].mxu0 }
 0xa91   : > { %v9060_v2 = vpack.c.bf16 %v9019_v1, %v9018_v42  ;;  %v8268_v10 = vadd.f32 %v8267_v26, %v15697_v32  ;;  %v8269_v27 = vpop.f32.mrb[61].mxu0 }
 0xa92   : > { %v8270_v46 = vadd.f32 %v8269_v27, %v15634_v18  ;;  %v8271_v60 = vpop.f32.mrb[62].mxu0 }
 0xa93   : > { %v8956_v54 = vadd.f32 %v15830_v58, %v8268_v10  ;;  %v8272_v25 = vadd.f32 %v8271_v60, %v15697_v32  ;;  %v8273_v23 = vpop.f32.mrb[63].mxu0  ;;  %11757 = vmatprep.mubr.bf16.mxu1 %v9060_v2 }
 0xa94   : > { %v8274_v48 = vadd.f32 %v8273_v23, %v15634_v18  ;;  %10491 = vrot.lane.b32.xlu0 %v8270_v46, %s12854_s13 }
 0xa95   : > { %v8957_v55 = vadd.f32 %v15836_v62, %v8272_v25  ;;  %v9020_v22 = vmax.f32 %v8956_v54, 0.0 }
 0xa96   : > { %10493 = vrot.lane.b32.xlu1 %v8274_v48, %s12854_s13 }
 0xa97   : > { %v9021_v45 = vmax.f32 %v8957_v55, 0.0 }
 0xa98   : > { %v8277_v61 = vpop.f32.mrb[64].mxu0 }
 0xa99   : > { %v9061_v0 = vpack.c.bf16 %v9021_v45, %v9020_v22  ;;  %v8278_v34 = vadd.f32 %v8277_v61, %v15697_v32  ;;  %v8279_v20 = vpop.f32.mrb[65].mxu0 }
 0xa9a   : > { %v8280_v58 = vadd.f32 %v8279_v20, %v15634_v18  ;;  %v8281_v14 = vpop.f32.mrb[66].mxu0 }
 0xa9b   : > { %v8282_v5 = vadd.f32 %v8281_v14, %v15697_v32  ;;  %v8958_v3 = vadd.f32 %v15855_v38, %v8278_v34  ;;  %v8283_v4 = vpop.f32.mrb[67].mxu0  ;;  %11758 = vmatmul.mubr.bf16.gmra.mrb[12].mxu1 %v9061_v0 }
 0xa9c   : > { %v8284_v62 = vadd.f32 %v8283_v4, %v15634_v18  ;;  %10495 = vrot.lane.b32.xlu0 %v8280_v58, %s12854_s13 }
 0xa9d   : > { %v8959_v51 = vadd.f32 %v15860_v39, %v8282_v5  ;;  %v9022_v49 = vmax.f32 %v8958_v3, 0.0 }
 0xa9e   : > { %10497 = vrot.lane.b32.xlu1 %v8284_v62, %s12854_s13 }
 0xa9f   : > { %v9023_v37 = vmax.f32 %v8959_v51, 0.0 }
 0xaa0   : > { %v8287_v21 = vpop.f32.mrb[68].mxu0 }
 0xaa1   : > { %v9062_v8 = vpack.c.bf16 %v9023_v37, %v9022_v49  ;;  %v8288_v63 = vadd.f32 %v8287_v21, %v15697_v32  ;;  %v8289_v16 = vpop.f32.mrb[69].mxu0 }
 0xaa2   : > { %v8290_v59 = vadd.f32 %v8289_v16, %v15634_v18  ;;  %v8291_v38 = vpop.f32.mrb[70].mxu0 }
 0xaa3   : > { %v8960_v47 = vadd.f32 %v15852_v35, %v8288_v63  ;;  %v8292_v7 = vadd.f32 %v8291_v38, %v15697_v32  ;;  %v8293_v13 = vpop.f32.mrb[71].mxu0  ;;  %11761 = vmatprep.mubr.bf16.mxu1 %v9062_v8 }
 0xaa4   : > { %v8294_v39 = vadd.f32 %v8293_v13, %v15634_v18  ;;  %10499 = vrot.lane.b32.xlu0 %v8290_v59, %s12854_s13 }
 0xaa5   : > { %v8961_v50 = vadd.f32 %v15858_v24, %v8292_v7  ;;  %v9024_v6 = vmax.f32 %v8960_v47, 0.0 }
 0xaa6   : > { %10501 = vrot.lane.b32.xlu1 %v8294_v39, %s12854_s13 }
 0xaa7   : > { %v9025_v33 = vmax.f32 %v8961_v50, 0.0 }
 0xaa8   : > { %v8297_v12 = vpop.f32.mrb[72].mxu0 }
 0xaa9   : > { %v9063_v31 = vpack.c.bf16 %v9025_v33, %v9024_v6  ;;  %v8298_v40 = vadd.f32 %v8297_v12, %v15697_v32  ;;  %v8299_v41 = vpop.f32.mrb[73].mxu0 }
 0xaaa   : > { %v8300_v35 = vadd.f32 %v8299_v41, %v15634_v18  ;;  %v8301_v11 = vpop.f32.mrb[74].mxu0 }
 0xaab   : > { %v8302_v29 = vadd.f32 %v8301_v11, %v15697_v32  ;;  %v8962_v19 = vadd.f32 %v15874_v57, %v8298_v40  ;;  %v8303_v42 = vpop.f32.mrb[75].mxu0  ;;  %11762 = vmatmul.mubr.bf16.gmra.mrb[16].mxu1 %v9063_v31 }
 0xaac   : > { %v8304_v24 = vadd.f32 %v8303_v42, %v15634_v18  ;;  %10503 = vrot.lane.b32.xlu0 %v8300_v35, %s12854_s13 }
 0xaad   : > { %v8963_v1 = vadd.f32 %v15879_v43, %v8302_v29  ;;  %v9026_v26 = vmax.f32 %v8962_v19, 0.0 }
 0xaae   : > { %10505 = vrot.lane.b32.xlu1 %v8304_v24, %s12854_s13 }
 0xaaf   : > { %v9027_v2 = vmax.f32 %v8963_v1, 0.0 }
 0xab0   : > { %v8307_v10 = vpop.f32.mrb[76].mxu0 }
 0xab1   : > { %v9064_v27 = vpack.c.bf16 %v9027_v2, %v9026_v26  ;;  %v8308_v46 = vadd.f32 %v8307_v10, %v15697_v32  ;;  %v8309_v60 = vpop.f32.mrb[77].mxu0 }
 0xab2   : > { %v8310_v54 = vadd.f32 %v8309_v60, %v15634_v18  ;;  %v8311_v57 = vpop.f32.mrb[78].mxu0 }
 0xab3   : > { %v8964_v25 = vadd.f32 %v15871_v53, %v8308_v46  ;;  %v8312_v23 = vadd.f32 %v8311_v57, %v15697_v32  ;;  %v8313_v48 = vpop.f32.mrb[79].mxu0  ;;  %11765 = vmatprep.mubr.bf16.mxu1 %v9064_v27  ;;  %v16012_v57 = vld [vmem:[%s16426_s9] ss:$0 sm:$0xff] }
 0xab4   : > { %v8314_v43 = vadd.f32 %v8313_v48, %v15634_v18  ;;  %10507 = vrot.lane.b32.xlu0 %v8310_v54, %s12854_s13 }
 0xab5   : > { %v8965_v55 = vadd.f32 %v15877_v44, %v8312_v23  ;;  %v9028_v22 = vmax.f32 %v8964_v25, 0.0 }
 0xab6   : > { %10509 = vrot.lane.b32.xlu1 %v8314_v43, %s12854_s13 }
 0xab7   : > { %v9029_v45 = vmax.f32 %v8965_v55, 0.0 }
 0xab8   : > { %v8317_v61 = vpop.f32.mrb[80].mxu0 }
 0xab9   : > { %v9065_v0 = vpack.c.bf16 %v9029_v45, %v9028_v22  ;;  %v8318_v34 = vadd.f32 %v8317_v61, %v15697_v32  ;;  %v8319_v20 = vpop.f32.mrb[81].mxu0 }
 0xaba   : > { %v8320_v53 = vadd.f32 %v8319_v20, %v15634_v18  ;;  %v8321_v58 = vpop.f32.mrb[82].mxu0 }
 0xabb   : > { %v8322_v14 = vadd.f32 %v8321_v58, %v15697_v32  ;;  %v8966_v5 = vadd.f32 %v15890_v30, %v8318_v34  ;;  %v8323_v3 = vpop.f32.mrb[83].mxu0  ;;  %11766 = vmatmul.mubr.bf16.gmra.mrb[20].mxu1 %v9065_v0 }
 0xabc   : > { %v8324_v44 = vadd.f32 %v8323_v3, %v15634_v18  ;;  %10511 = vrot.lane.b32.xlu0 %v8320_v53, %s12854_s13 }
 0xabd   : > { %v8967_v4 = vadd.f32 %v15895_v15, %v8322_v14  ;;  %v9030_v62 = vmax.f32 %v8966_v5, 0.0 }
 0xabe   : > { %10513 = vrot.lane.b32.xlu1 %v8324_v44, %s12854_s13 }
 0xabf   : > { %v9031_v51 = vmax.f32 %v8967_v4, 0.0 }
 0xac0   : > { %v8327_v49 = vpop.f32.mrb[84].mxu0 }
 0xac1   : > { %v9066_v37 = vpack.c.bf16 %v9031_v51, %v9030_v62  ;;  %v8328_v21 = vadd.f32 %v8327_v49, %v15697_v32  ;;  %v8329_v8 = vpop.f32.mrb[85].mxu0 }
 0xac2   : > { %v8330_v63 = vadd.f32 %v8329_v8, %v15634_v18  ;;  %v8331_v30 = vpop.f32.mrb[86].mxu0 }
 0xac3   : > { %v8968_v16 = vadd.f32 %v15887_v17, %v8328_v21  ;;  %v8332_v59 = vadd.f32 %v8331_v30, %v15697_v32  ;;  %v8333_v38 = vpop.f32.mrb[87].mxu0  ;;  %11769 = vmatprep.mubr.bf16.mxu1 %v9066_v37 }
 0xac4   : > { %v8334_v15 = vadd.f32 %v8333_v38, %v15634_v18  ;;  %10515 = vrot.lane.b32.xlu0 %v8330_v63, %s12854_s13 }
 0xac5   : > { %v8969_v47 = vadd.f32 %v15893_v56, %v8332_v59  ;;  %v9032_v7 = vmax.f32 %v8968_v16, 0.0 }
 0xac6   : > { %10517 = vrot.lane.b32.xlu1 %v8334_v15, %s12854_s13 }
 0xac7   : > { %v9033_v13 = vmax.f32 %v8969_v47, 0.0 }
 0xac8   : > { %v8337_v39 = vpop.f32.mrb[88].mxu0 }
 0xac9   : > { %v9067_v50 = vpack.c.bf16 %v9033_v13, %v9032_v7  ;;  %v8338_v6 = vadd.f32 %v8337_v39, %v15697_v32  ;;  %v8339_v33 = vpop.f32.mrb[89].mxu0 }
 0xaca   : > { %v8340_v17 = vadd.f32 %v8339_v33, %v15634_v18  ;;  %v8341_v12 = vpop.f32.mrb[90].mxu0 }
 0xacb   : > { %v8342_v31 = vadd.f32 %v8341_v12, %v15697_v32  ;;  %v8970_v40 = vadd.f32 %v15906_v9, %v8338_v6  ;;  %v8343_v41 = vpop.f32.mrb[91].mxu0  ;;  %11770 = vmatmul.mubr.bf16.gmra.mrb[24].mxu1 %v9067_v50 }
 0xacc   : > { %v8344_v56 = vadd.f32 %v8343_v41, %v15634_v18  ;;  %10519 = vrot.lane.b32.xlu0 %v8340_v17, %s12854_s13 }
 0xacd   : > { %v8971_v35 = vadd.f32 %v15911_v36, %v8342_v31  ;;  %v9034_v11 = vmax.f32 %v8970_v40, 0.0 }
 0xace   : > { %10521 = vrot.lane.b32.xlu1 %v8344_v56, %s12854_s13 }
 0xacf   : > { %v9035_v29 = vmax.f32 %v8971_v35, 0.0 }
 0xad0   : > { %v8347_v19 = vpop.f32.mrb[92].mxu0 }
 0xad1   : > { %v9068_v42 = vpack.c.bf16 %v9035_v29, %v9034_v11  ;;  %v8348_v24 = vadd.f32 %v8347_v19, %v15697_v32  ;;  %v8349_v1 = vpop.f32.mrb[93].mxu0 }
 0xad2   : > { %v8350_v26 = vadd.f32 %v8349_v1, %v15634_v18  ;;  %v8351_v9 = vpop.f32.mrb[94].mxu0 }
 0xad3   : > { %v8972_v2 = vadd.f32 %v15903_v52, %v8348_v24  ;;  %v8352_v10 = vadd.f32 %v8351_v9, %v15697_v32  ;;  %v8353_v27 = vpop.f32.mrb[95].mxu0  ;;  %11773 = vmatprep.mubr.bf16.mxu1 %v9068_v42 }
 0xad4   : > { %v8354_v36 = vadd.f32 %v8353_v27, %v15634_v18  ;;  %10523 = vrot.lane.b32.xlu0 %v8350_v26, %s12854_s13 }
 0xad5   : > { %v8973_v46 = vadd.f32 %v15909_v28, %v8352_v10  ;;  %v9036_v60 = vmax.f32 %v8972_v2, 0.0 }
 0xad6   : > { %10525 = vrot.lane.b32.xlu1 %v8354_v36, %s12854_s13 }
 0xad7   : > { %v9037_v54 = vmax.f32 %v8973_v46, 0.0 }
 0xad9   : > { %v9069_v52 = vpack.c.bf16 %v9037_v54, %v9036_v60 }
 0xada   : > { %v11715_v25 = vpop.f32.mrb[224].mxu1 }
 0xadb   : > { %v9184_v32 = vadd.f32 %v11715_v25, %v16012_v57  ;;  %v9175_v23 = vpop.f32.mrb[225].mxu1  ;;  %11774 = vmatmul.mubr.bf16.gmra.mrb[28].mxu1 %v9069_v52 }
 0xadc   : > { %v9176_v18 = vadd.f32 %v16012_v57, %v9175_v23  ;;  %v11716_v48 = vpop.f32.mrb[226].mxu1 }
 0xadd   : > { %v9187_v28 = vadd.f32 %v11716_v48, %v16012_v57  ;;  %v9178_v43 = vpop.f32.mrb[227].mxu1  ;;  %v9432_v22 = vmax.f32 %v9184_v32, 0.0 }
 0xade   : > { %v9179_v55 = vadd.f32 %v16012_v57, %v9178_v43  ;;  %v9430_v61 = vmax.f32 %v9176_v18, 0.0 }
 0xadf   : > { %v9433_v45 = vmax.f32 %v9187_v28, 0.0 }
 0xae0   : > { %v9431_v0 = vmax.f32 %v9179_v55, 0.0 }
 0xae1   : > { %v9495_v34 = vpack.c.bf16 %v9433_v45, %v9432_v22 }
 0xae2   : > { %v9494_v20 = vpack.c.bf16 %v9431_v0, %v9430_v61  ;;  %v11719_v53 = vpop.f32.mrb[228].mxu1 }
 0xae3   : > { %v9200_v58 = vadd.f32 %v11719_v53, %v16012_v57  ;;  %v9191_v14 = vpop.f32.mrb[229].mxu1 }
 0xae4   : > { %v9192_v5 = vadd.f32 %v16012_v57, %v9191_v14  ;;  %v11720_v3 = vpop.f32.mrb[230].mxu1  ;;  %11793 = vmatprep.mubr.bf16.mxu0 %v9494_v20 }
 0xae5   : > { %v9203_v44 = vadd.f32 %v11720_v3, %v16012_v57  ;;  %v9194_v4 = vpop.f32.mrb[231].mxu1  ;;  %11794 = vmatmul.mubr.bf16.vlgmr.msra.gmra.mrb[96].mxu0 %v9495_v34  ;;  %v9436_v51 = vmax.f32 %v9200_v58, 0.0 }
 0xae6   : > { %v9195_v62 = vadd.f32 %v16012_v57, %v9194_v4  ;;  %v9434_v37 = vmax.f32 %v9192_v5, 0.0 }
 0xae7   : > { %v9437_v49 = vmax.f32 %v9203_v44, 0.0 }
 0xae8   : > { %v9435_v21 = vmax.f32 %v9195_v62, 0.0 }
 0xae9   : > { %v9497_v8 = vpack.c.bf16 %v9437_v49, %v9436_v51 }
 0xaea   : > { %v9496_v63 = vpack.c.bf16 %v9435_v21, %v9434_v37  ;;  %v11723_v30 = vpop.f32.mrb[232].mxu1 }
 0xaeb   : > { %v9216_v16 = vadd.f32 %v11723_v30, %v16012_v57  ;;  %v9207_v59 = vpop.f32.mrb[233].mxu1 }
 0xaec   : > { %v9208_v38 = vadd.f32 %v16012_v57, %v9207_v59  ;;  %v11724_v15 = vpop.f32.mrb[234].mxu1  ;;  %11797 = vmatprep.mubr.bf16.mxu0 %v9496_v63 }
 0xaed   : > { %v9219_v47 = vadd.f32 %v11724_v15, %v16012_v57  ;;  %v9210_v7 = vpop.f32.mrb[235].mxu1  ;;  %11798 = vmatmul.mubr.bf16.gmra.mrb[100].mxu0 %v9497_v8  ;;  %v9440_v39 = vmax.f32 %v9216_v16, 0.0 }
 0xaee   : > { %v9211_v13 = vadd.f32 %v16012_v57, %v9210_v7  ;;  %v9438_v6 = vmax.f32 %v9208_v38, 0.0 }
 0xaef   : > { %v9441_v50 = vmax.f32 %v9219_v47, 0.0 }
 0xaf0   : > { %v9439_v33 = vmax.f32 %v9211_v13, 0.0 }
 0xaf1   : > { %v9499_v17 = vpack.c.bf16 %v9441_v50, %v9440_v39 }
 0xaf2   : > { %v9498_v12 = vpack.c.bf16 %v9439_v33, %v9438_v6  ;;  %v11727_v31 = vpop.f32.mrb[236].mxu1 }
 0xaf3   : > { %v9232_v40 = vadd.f32 %v11727_v31, %v16012_v57  ;;  %v9223_v41 = vpop.f32.mrb[237].mxu1 }
 0xaf4   : > { %v9224_v56 = vadd.f32 %v16012_v57, %v9223_v41  ;;  %v11728_v35 = vpop.f32.mrb[238].mxu1  ;;  %11801 = vmatprep.mubr.bf16.mxu0 %v9498_v12 }
 0xaf5   : > { %v9235_v11 = vadd.f32 %v11728_v35, %v16012_v57  ;;  %v9226_v29 = vpop.f32.mrb[239].mxu1  ;;  %11802 = vmatmul.mubr.bf16.gmra.mrb[104].mxu0 %v9499_v17  ;;  %v9444_v42 = vmax.f32 %v9232_v40, 0.0 }
 0xaf6   : > { %v9227_v19 = vadd.f32 %v16012_v57, %v9226_v29  ;;  %v9442_v1 = vmax.f32 %v9224_v56, 0.0 }
 0xaf7   : > { %v9445_v24 = vmax.f32 %v9235_v11, 0.0 }
 0xaf8   : > { %v9443_v26 = vmax.f32 %v9227_v19, 0.0 }
 0xaf9   : > { %v9501_v9 = vpack.c.bf16 %v9445_v24, %v9444_v42 }
 0xafa   : > { %v9500_v2 = vpack.c.bf16 %v9443_v26, %v9442_v1 }
 0xafc   : > { %11805 = vmatprep.mubr.bf16.mxu0 %v9500_v2 }
 0xafd   : > { %11806 = vmatmul.mubr.bf16.gmra.mrb[108].mxu0 %v9501_v9 }
 0xafe   : > { %v11731_v10 = vpop.f32.mrb[240].mxu1 }
 0xaff   : > { %v9248_v27 = vadd.f32 %v11731_v10, %v16012_v57  ;;  %v9239_v36 = vpop.f32.mrb[241].mxu1 }
 0xb00   : > { %v9240_v46 = vadd.f32 %v16012_v57, %v9239_v36  ;;  %v11732_v60 = vpop.f32.mrb[242].mxu1 }
 0xb01   : > { %v9251_v54 = vadd.f32 %v11732_v60, %v16012_v57  ;;  %v9242_v52 = vpop.f32.mrb[243].mxu1  ;;  %v9448_v32 = vmax.f32 %v9248_v27, 0.0 }
 0xb02   : > { %v9243_v25 = vadd.f32 %v16012_v57, %v9242_v52  ;;  %v9446_v18 = vmax.f32 %v9240_v46, 0.0 }
 0xb03   : > { %v9449_v23 = vmax.f32 %v9251_v54, 0.0 }
 0xb04   : > { %v9447_v48 = vmax.f32 %v9243_v25, 0.0 }
 0xb05   : > { %v9503_v28 = vpack.c.bf16 %v9449_v23, %v9448_v32 }
 0xb06   : > { %v9502_v43 = vpack.c.bf16 %v9447_v48, %v9446_v18 }
 0xb08   : > { %11809 = vmatprep.mubr.bf16.mxu0 %v9502_v43 }
 0xb09   : > { %11810 = vmatmul.mubr.bf16.gmra.mrb[112].mxu0 %v9503_v28 }
 0xb0e   : > { %v11735_v55 = vpop.f32.mrb[244].mxu1 }
 0xb0f   : > { %v9264_v22 = vadd.f32 %v11735_v55, %v16012_v57  ;;  %v9255_v45 = vpop.f32.mrb[245].mxu1 }
 0xb10   : > { %v9256_v61 = vadd.f32 %v16012_v57, %v9255_v45  ;;  %v11736_v0 = vpop.f32.mrb[246].mxu1 }
 0xb11   : > { %v9267_v34 = vadd.f32 %v11736_v0, %v16012_v57  ;;  %v9258_v20 = vpop.f32.mrb[247].mxu1  ;;  %v9452_v58 = vmax.f32 %v9264_v22, 0.0 }
 0xb12   : > { %v9259_v53 = vadd.f32 %v16012_v57, %v9258_v20  ;;  %v9450_v5 = vmax.f32 %v9256_v61, 0.0 }
 0xb13   : > { %v9453_v14 = vmax.f32 %v9267_v34, 0.0 }
 0xb14   : > { %v9451_v3 = vmax.f32 %v9259_v53, 0.0 }
 0xb15   : > { %v9505_v44 = vpack.c.bf16 %v9453_v14, %v9452_v58 }
 0xb16   : > { %v9504_v4 = vpack.c.bf16 %v9451_v3, %v9450_v5 }
 0xb18   : > { %11813 = vmatprep.mubr.bf16.mxu0 %v9504_v4 }
 0xb19   : > { %11814 = vmatmul.mubr.bf16.gmra.mrb[116].mxu0 %v9505_v44 }
 0xb1e   : > { %v11739_v62 = vpop.f32.mrb[248].mxu1 }
 0xb1f   : > { %v9280_v51 = vadd.f32 %v11739_v62, %v16012_v57  ;;  %v9271_v49 = vpop.f32.mrb[249].mxu1 }
 0xb20   : > { %v9272_v37 = vadd.f32 %v16012_v57, %v9271_v49  ;;  %v11740_v21 = vpop.f32.mrb[250].mxu1 }
 0xb21   : > { %v9283_v8 = vadd.f32 %v11740_v21, %v16012_v57  ;;  %v9274_v63 = vpop.f32.mrb[251].mxu1  ;;  %v9456_v16 = vmax.f32 %v9280_v51, 0.0 }
 0xb22   : > { %v9275_v30 = vadd.f32 %v16012_v57, %v9274_v63  ;;  %v9454_v38 = vmax.f32 %v9272_v37, 0.0 }
 0xb23   : > { %v9457_v59 = vmax.f32 %v9283_v8, 0.0 }
 0xb24   : > { %v9455_v15 = vmax.f32 %v9275_v30, 0.0 }
 0xb25   : > { %v9507_v47 = vpack.c.bf16 %v9457_v59, %v9456_v16 }
 0xb26   : > { %v9506_v7 = vpack.c.bf16 %v9455_v15, %v9454_v38 }
 0xb28   : > { %11817 = vmatprep.mubr.bf16.mxu0 %v9506_v7 }
 0xb29   : > { %11818 = vmatmul.mubr.bf16.gmra.mrb[120].mxu0 %v9507_v47 }
 0xb2e   : > { %v11743_v13 = vpop.f32.mrb[252].mxu1 }
 0xb2f   : > { %v9296_v39 = vadd.f32 %v11743_v13, %v16012_v57  ;;  %v9287_v50 = vpop.f32.mrb[253].mxu1 }
 0xb30   : > { %v9288_v6 = vadd.f32 %v16012_v57, %v9287_v50  ;;  %v11744_v33 = vpop.f32.mrb[254].mxu1 }
 0xb31   : > { %v9299_v17 = vadd.f32 %v11744_v33, %v16012_v57  ;;  %v9290_v12 = vpop.f32.mrb[255].mxu1  ;;  %v9460_v40 = vmax.f32 %v9296_v39, 0.0 }
 0xb32   : > { %v9291_v31 = vadd.f32 %v16012_v57, %v9290_v12  ;;  %v9458_v56 = vmax.f32 %v9288_v6, 0.0 }
 0xb33   : > { %v9461_v41 = vmax.f32 %v9299_v17, 0.0 }
 0xb34   : > { %v9459_v35 = vmax.f32 %v9291_v31, 0.0 }
 0xb35   : > { %v9509_v11 = vpack.c.bf16 %v9461_v41, %v9460_v40 }
 0xb36   : > { %v9508_v29 = vpack.c.bf16 %v9459_v35, %v9458_v56 }
 0xb38   : > { %11821 = vmatprep.mubr.bf16.mxu0 %v9508_v29 }
 0xb39   : > { %11822 = vmatmul.mubr.bf16.gmra.mrb[124].mxu0 %v9509_v11 }
 0xb3e   : > { %v11747_v19 = vpop.f32.mrb[0].mxu1 }
 0xb3f   : > { %v9312_v42 = vadd.f32 %v11747_v19, %v16012_v57  ;;  %v9303_v24 = vpop.f32.mrb[1].mxu1 }
 0xb40   : > { %v9304_v1 = vadd.f32 %v16012_v57, %v9303_v24  ;;  %v11748_v26 = vpop.f32.mrb[2].mxu1 }
 0xb41   : > { %v9315_v9 = vadd.f32 %v11748_v26, %v16012_v57  ;;  %v9306_v2 = vpop.f32.mrb[3].mxu1  ;;  %v9464_v27 = vmax.f32 %v9312_v42, 0.0 }
 0xb42   : > { %v9307_v10 = vadd.f32 %v16012_v57, %v9306_v2  ;;  %v9462_v46 = vmax.f32 %v9304_v1, 0.0 }
 0xb43   : > { %v9465_v36 = vmax.f32 %v9315_v9, 0.0 }
 0xb44   : > { %v9463_v60 = vmax.f32 %v9307_v10, 0.0 }
 0xb45   : > { %v9511_v54 = vpack.c.bf16 %v9465_v36, %v9464_v27 }
 0xb46   : > { %v9510_v52 = vpack.c.bf16 %v9463_v60, %v9462_v46 }
 0xb48   : > { %11825 = vmatprep.mubr.bf16.mxu0 %v9510_v52 }
 0xb49   : > { %11826 = vmatmul.mubr.bf16.gmra.mrb[128].mxu0 %v9511_v54 }
 0xb4e   : > { %v11751_v25 = vpop.f32.mrb[4].mxu1 }
 0xb4f   : > { %v9328_v32 = vadd.f32 %v11751_v25, %v16012_v57  ;;  %v9319_v23 = vpop.f32.mrb[5].mxu1 }
 0xb50   : > { %v9320_v18 = vadd.f32 %v16012_v57, %v9319_v23  ;;  %v11752_v48 = vpop.f32.mrb[6].mxu1 }
 0xb51   : > { %v9331_v28 = vadd.f32 %v11752_v48, %v16012_v57  ;;  %v9322_v43 = vpop.f32.mrb[7].mxu1  ;;  %v9468_v22 = vmax.f32 %v9328_v32, 0.0 }
 0xb52   : > { %v9323_v55 = vadd.f32 %v16012_v57, %v9322_v43  ;;  %v9466_v61 = vmax.f32 %v9320_v18, 0.0 }
 0xb53   : > { %v9469_v45 = vmax.f32 %v9331_v28, 0.0 }
 0xb54   : > { %v9467_v0 = vmax.f32 %v9323_v55, 0.0 }
 0xb55   : > { %v9513_v34 = vpack.c.bf16 %v9469_v45, %v9468_v22 }
 0xb56   : > { %v9512_v20 = vpack.c.bf16 %v9467_v0, %v9466_v61 }
 0xb58   : > { %11829 = vmatprep.mubr.bf16.mxu0 %v9512_v20 }
 0xb59   : > { %11830 = vmatmul.mubr.bf16.gmra.mrb[132].mxu0 %v9513_v34 }
 0xb5e   : > { %v11755_v53 = vpop.f32.mrb[8].mxu1 }
 0xb5f   : > { %v9344_v58 = vadd.f32 %v11755_v53, %v16012_v57  ;;  %v9335_v14 = vpop.f32.mrb[9].mxu1 }
 0xb60   : > { %v9336_v5 = vadd.f32 %v16012_v57, %v9335_v14  ;;  %v11756_v3 = vpop.f32.mrb[10].mxu1 }
 0xb61   : > { %v9347_v44 = vadd.f32 %v11756_v3, %v16012_v57  ;;  %v9338_v4 = vpop.f32.mrb[11].mxu1  ;;  %v9472_v51 = vmax.f32 %v9344_v58, 0.0 }
 0xb62   : > { %v9339_v62 = vadd.f32 %v16012_v57, %v9338_v4  ;;  %v9470_v37 = vmax.f32 %v9336_v5, 0.0 }
 0xb63   : > { %v9473_v49 = vmax.f32 %v9347_v44, 0.0 }
 0xb64   : > { %v9471_v21 = vmax.f32 %v9339_v62, 0.0 }
 0xb65   : > { %v9515_v8 = vpack.c.bf16 %v9473_v49, %v9472_v51 }
 0xb66   : > { %v9514_v63 = vpack.c.bf16 %v9471_v21, %v9470_v37 }
 0xb68   : > { %11833 = vmatprep.mubr.bf16.mxu0 %v9514_v63 }
 0xb69   : > { %11834 = vmatmul.mubr.bf16.gmra.mrb[136].mxu0 %v9515_v8 }
 0xb6e   : > { %v11759_v30 = vpop.f32.mrb[12].mxu1 }
 0xb6f   : > { %v9360_v16 = vadd.f32 %v11759_v30, %v16012_v57  ;;  %v9351_v59 = vpop.f32.mrb[13].mxu1 }
 0xb70   : > { %v9352_v38 = vadd.f32 %v16012_v57, %v9351_v59  ;;  %v11760_v15 = vpop.f32.mrb[14].mxu1 }
 0xb71   : > { %v9363_v47 = vadd.f32 %v11760_v15, %v16012_v57  ;;  %v9354_v7 = vpop.f32.mrb[15].mxu1  ;;  %v9476_v39 = vmax.f32 %v9360_v16, 0.0 }
 0xb72   : > { %v9355_v13 = vadd.f32 %v16012_v57, %v9354_v7  ;;  %v9474_v6 = vmax.f32 %v9352_v38, 0.0 }
 0xb73   : > { %v9477_v50 = vmax.f32 %v9363_v47, 0.0 }
 0xb74   : > { %v9475_v33 = vmax.f32 %v9355_v13, 0.0  ;;  %v16081_v13 = vld [vmem:[%s16428_s11] ss:$0 sm:$0xff] }
 0xb75   : > { %v9517_v17 = vpack.c.bf16 %v9477_v50, %v9476_v39 }
 0xb76   : > { %v9516_v12 = vpack.c.bf16 %v9475_v33, %v9474_v6 }
 0xb78   : > { %11837 = vmatprep.mubr.bf16.mxu0 %v9516_v12 }
 0xb79   : > { %11838 = vmatmul.mubr.bf16.gmra.mrb[140].mxu0 %v9517_v17 }
 0xb7e   : > { %v11763_v31 = vpop.f32.mrb[16].mxu1 }
 0xb7f   : > { %v9376_v40 = vadd.f32 %v11763_v31, %v16012_v57  ;;  %v9367_v41 = vpop.f32.mrb[17].mxu1 }
 0xb80   : > { %v9368_v56 = vadd.f32 %v16012_v57, %v9367_v41  ;;  %v11764_v35 = vpop.f32.mrb[18].mxu1 }
 0xb81   : > { %v9379_v11 = vadd.f32 %v11764_v35, %v16012_v57  ;;  %v9370_v29 = vpop.f32.mrb[19].mxu1  ;;  %v9480_v42 = vmax.f32 %v9376_v40, 0.0 }
 0xb82   : > { %v9371_v19 = vadd.f32 %v16012_v57, %v9370_v29  ;;  %v9478_v1 = vmax.f32 %v9368_v56, 0.0 }
 0xb83   : > { %v9481_v24 = vmax.f32 %v9379_v11, 0.0 }
 0xb84   : > { %v9479_v26 = vmax.f32 %v9371_v19, 0.0 }
 0xb85   : > { %v9519_v9 = vpack.c.bf16 %v9481_v24, %v9480_v42 }
 0xb86   : > { %v9518_v2 = vpack.c.bf16 %v9479_v26, %v9478_v1 }
 0xb88   : > { %11841 = vmatprep.mubr.bf16.mxu0 %v9518_v2 }
 0xb89   : > { %11842 = vmatmul.mubr.bf16.gmra.mrb[144].mxu0 %v9519_v9 }
 0xb8e   : > { %v11767_v10 = vpop.f32.mrb[20].mxu1 }
 0xb8f   : > { %v9392_v27 = vadd.f32 %v11767_v10, %v16012_v57  ;;  %v9383_v36 = vpop.f32.mrb[21].mxu1 }
 0xb90   : > { %v9384_v46 = vadd.f32 %v16012_v57, %v9383_v36  ;;  %v11768_v60 = vpop.f32.mrb[22].mxu1 }
 0xb91   : > { %v9395_v54 = vadd.f32 %v11768_v60, %v16012_v57  ;;  %v9386_v52 = vpop.f32.mrb[23].mxu1  ;;  %v9484_v32 = vmax.f32 %v9392_v27, 0.0 }
 0xb92   : > { %v9387_v25 = vadd.f32 %v16012_v57, %v9386_v52  ;;  %v9482_v18 = vmax.f32 %v9384_v46, 0.0 }
 0xb93   : > { %v9485_v23 = vmax.f32 %v9395_v54, 0.0 }
 0xb94   : > { %v9483_v48 = vmax.f32 %v9387_v25, 0.0 }
 0xb95   : > { %v9521_v28 = vpack.c.bf16 %v9485_v23, %v9484_v32 }
 0xb96   : > { %v9520_v43 = vpack.c.bf16 %v9483_v48, %v9482_v18 }
 0xb98   : > { %11845 = vmatprep.mubr.bf16.mxu0 %v9520_v43 }
 0xb99   : > { %11846 = vmatmul.mubr.bf16.gmra.mrb[148].mxu0 %v9521_v28 }
 0xb9e   : > { %v11771_v55 = vpop.f32.mrb[24].mxu1 }
 0xb9f   : > { %v9408_v22 = vadd.f32 %v11771_v55, %v16012_v57  ;;  %v9399_v45 = vpop.f32.mrb[25].mxu1 }
 0xba0   : > { %v9400_v61 = vadd.f32 %v16012_v57, %v9399_v45  ;;  %v11772_v0 = vpop.f32.mrb[26].mxu1 }
 0xba1   : > { %v9411_v34 = vadd.f32 %v11772_v0, %v16012_v57  ;;  %v9402_v20 = vpop.f32.mrb[27].mxu1  ;;  %v9488_v58 = vmax.f32 %v9408_v22, 0.0 }
 0xba2   : > { %v9403_v53 = vadd.f32 %v16012_v57, %v9402_v20  ;;  %v9486_v5 = vmax.f32 %v9400_v61, 0.0 }
 0xba3   : > { %v9489_v14 = vmax.f32 %v9411_v34, 0.0 }
 0xba4   : > { %v9487_v3 = vmax.f32 %v9403_v53, 0.0 }
 0xba5   : > { %v9523_v44 = vpack.c.bf16 %v9489_v14, %v9488_v58 }
 0xba6   : > { %v9522_v4 = vpack.c.bf16 %v9487_v3, %v9486_v5  ;;  %v10400_v5 = vpop.permute.xlu0 %10399 }
 0xba8   : > { %11849 = vmatprep.mubr.bf16.mxu0 %v9522_v4 }
 0xba9   : > { %11850 = vmatmul.mubr.bf16.gmra.mrb[152].mxu0 %v9523_v44 }
 0xbae   : > { %v11775_v62 = vpop.f32.mrb[28].mxu1 }
 0xbaf   : > { %v9424_v51 = vadd.f32 %v11775_v62, %v16012_v57  ;;  %v9415_v49 = vpop.f32.mrb[29].mxu1 }
 0xbb0   : > { %v9416_v37 = vadd.f32 %v16012_v57, %v9415_v49  ;;  %v11776_v21 = vpop.f32.mrb[30].mxu1 }
 0xbb1   : > { %v9427_v8 = vadd.f32 %v11776_v21, %v16012_v57  ;;  %v9418_v63 = vpop.f32.mrb[31].mxu1  ;;  %v9492_v16 = vmax.f32 %v9424_v51, 0.0  ;;  %v10404_v51 = vpop.permute.xlu1 %10403 }
 0xbb2   : > { %v9419_v30 = vadd.f32 %v16012_v57, %v9418_v63  ;;  %v9490_v38 = vmax.f32 %v9416_v37, 0.0 }
 0xbb3   : > { %v9493_v59 = vmax.f32 %v9427_v8, 0.0 }
 0xbb4   : > { %v9491_v15 = vmax.f32 %v9419_v30, 0.0 }
 0xbb5   : > { %v9525_v47 = vpack.c.bf16 %v9493_v59, %v9492_v16 }
 0xbb6   : > { %v9524_v7 = vpack.c.bf16 %v9491_v15, %v9490_v38 }
 0xbb8   : > { %v11795_v39 = vpop.f32.mrb[96].mxu0  ;;  %11853 = vmatprep.mubr.bf16.mxu0 %v9524_v7 }
 0xbb9   : > { %v9640_v50 = vadd.f32 %v11795_v39, %v16081_v13  ;;  %v9631_v6 = vpop.f32.mrb[97].mxu0  ;;  %11854 = vmatmul.mubr.bf16.gmra.mrb[156].mxu0 %v9525_v47 }
 0xbba   : > { %v9632_v33 = vadd.f32 %v16081_v13, %v9631_v6  ;;  %v11796_v57 = vpop.f32.mrb[98].mxu0 }
 0xbbb   : > { %v11454_v17 = vmul.f32 -1.442695, %v9640_v50  ;;  %v9643_v12 = vadd.f32 %v11796_v57, %v16081_v13  ;;  %v9634_v31 = vpop.f32.mrb[99].mxu0 }
 0xbbc   : > { %v11452_v40 = vmul.f32 -1.442695, %v9632_v33  ;;  %v9635_v41 = vadd.f32 %v16081_v13, %v9634_v31  ;;  %v10402_v33 = vpop.permute.xlu0 %10401 }
 0xbbd   : > { %12540 = vpow2.f32 %v11454_v17  ;;  %v11455_v56 = vmul.f32 -1.442695, %v9643_v12 }
 0xbbe   : > { %12542 = vpow2.f32 %v11452_v40  ;;  %v11453_v35 = vmul.f32 -1.442695, %v9635_v41  ;;  %v10406_v40 = vpop.permute.xlu1 %10405 }
 0xbbf   : > { %12544 = vpow2.f32 %v11455_v56 }
 0xbc0   : > { %12546 = vpow2.f32 %v11453_v35  ;;  %v11799_v11 = vpop.f32.mrb[100].mxu0  ;;  %v10408_v35 = vpop.permute.xlu0 %10407 }
 0xbc1   : > { %v9656_v29 = vadd.f32 %v11799_v11, %v16081_v13  ;;  %v9647_v19 = vpop.f32.mrb[101].mxu0 }
 0xbc2   : > { %v9648_v42 = vadd.f32 %v16081_v13, %v9647_v19  ;;  %v11800_v24 = vpop.f32.mrb[102].mxu0 }
 0xbc3   : > { %v11458_v1 = vmul.f32 -1.442695, %v9656_v29  ;;  %v9659_v26 = vadd.f32 %v11800_v24, %v16081_v13  ;;  %v9650_v9 = vpop.f32.mrb[103].mxu0  ;;  %v10410_v24 = vpop.permute.xlu1 %10409 }
 0xbc4   : > { %v11456_v2 = vmul.f32 -1.442695, %v9648_v42  ;;  %v9651_v10 = vadd.f32 %v16081_v13, %v9650_v9 }
 0xbc5   : > { %12548 = vpow2.f32 %v11458_v1  ;;  %v11459_v27 = vmul.f32 -1.442695, %v9659_v26 }
 0xbc6   : > { %12550 = vpow2.f32 %v11456_v2  ;;  %v11457_v36 = vmul.f32 -1.442695, %v9651_v10 }
 0xbc7   : > { %v12541_v46 = vpop.eup %12540  ;;  %12552 = vpow2.f32 %v11459_v27  ;;  %v10412_v27 = vpop.permute.xlu0 %10411 }
 0xbc8   : > { %v12543_v60 = vpop.eup %12542  ;;  %v10080_v54 = vadd.f32 1.0, %v12541_v46  ;;  %12554 = vpow2.f32 %v11457_v36  ;;  %v11803_v52 = vpop.f32.mrb[104].mxu0 }
 0xbc9   : > { %v12545_v25 = vpop.eup %12544  ;;  %v10078_v32 = vadd.f32 1.0, %v12543_v60  ;;  %v9672_v23 = vadd.f32 %v11803_v52, %v16081_v13  ;;  %v9663_v18 = vpop.f32.mrb[105].mxu0 }
 0xbca   : > { %v12547_v48 = vpop.eup %12546  ;;  %12556 = vrcp.f32 %v10080_v54  ;;  %v10081_v28 = vadd.f32 1.0, %v12545_v25  ;;  %v9664_v43 = vadd.f32 %v16081_v13, %v9663_v18  ;;  %v11804_v55 = vpop.f32.mrb[106].mxu0 }
 0xbcb   : > { %12558 = vrcp.f32 %v10078_v32  ;;  %v10079_v22 = vadd.f32 1.0, %v12547_v48  ;;  %v11462_v45 = vmul.f32 -1.442695, %v9672_v23  ;;  %v9675_v61 = vadd.f32 %v11804_v55, %v16081_v13  ;;  %v9666_v0 = vpop.f32.mrb[107].mxu0  ;;  %v10414_v32 = vpop.permute.xlu1 %10413 }
 0xbcc   : > { %12560 = vrcp.f32 %v10081_v28  ;;  %v11460_v34 = vmul.f32 -1.442695, %v9664_v43  ;;  %v9667_v20 = vadd.f32 %v16081_v13, %v9666_v0  ;;  %v10416_v0 = vpop.permute.xlu0 %10415 }
 0xbcd   : > { %12562 = vrcp.f32 %v10079_v22  ;;  %v11463_v53 = vmul.f32 -1.442695, %v9675_v61 }
 0xbce   : > { %12564 = vpow2.f32 %v11462_v45  ;;  %v11461_v58 = vmul.f32 -1.442695, %v9667_v20 }
 0xbcf   : > { %v12549_v14 = vpop.eup %12548  ;;  %12566 = vpow2.f32 %v11460_v34 }
 0xbd0   : > { %v12551_v3 = vpop.eup %12550  ;;  %v10084_v44 = vadd.f32 1.0, %v12549_v14  ;;  %12568 = vpow2.f32 %v11463_v53  ;;  %v11807_v4 = vpop.f32.mrb[108].mxu0 }
 0xbd1   : > { %v12553_v62 = vpop.eup %12552  ;;  %v10082_v49 = vadd.f32 1.0, %v12551_v3  ;;  %12570 = vpow2.f32 %v11461_v58  ;;  %v9688_v37 = vadd.f32 %v11807_v4, %v16081_v13  ;;  %v9679_v21 = vpop.f32.mrb[109].mxu0 }
 0xbd2   : > { %v12555_v8 = vpop.eup %12554  ;;  %12572 = vrcp.f32 %v10084_v44  ;;  %v10085_v63 = vadd.f32 1.0, %v12553_v62  ;;  %v9680_v30 = vadd.f32 %v16081_v13, %v9679_v21  ;;  %v11808_v16 = vpop.f32.mrb[110].mxu0 }
 0xbd3   : > { %12574 = vrcp.f32 %v10082_v49  ;;  %v10083_v59 = vadd.f32 1.0, %v12555_v8  ;;  %v11466_v38 = vmul.f32 -1.442695, %v9688_v37  ;;  %v9691_v15 = vadd.f32 %v11808_v16, %v16081_v13  ;;  %v9682_v47 = vpop.f32.mrb[111].mxu0  ;;  %v10418_v14 = vpop.permute.xlu1 %10417 }
 0xbd4   : > { %v12557_v7 = vpop.eup %12556  ;;  %12576 = vrcp.f32 %v10085_v63  ;;  %v11464_v39 = vmul.f32 -1.442695, %v9680_v30  ;;  %v9683_v50 = vadd.f32 %v16081_v13, %v9682_v47  ;;  %v10420_v62 = vpop.permute.xlu0 %10419 }
 0xbd5   : > { %v12559_v6 = vpop.eup %12558  ;;  %10273 = vst.msk [vmem:[%s16100_s27 + $0x10] sm:$0xff] %vm10270_vm2, %v12557_v7  ;;  %12578 = vrcp.f32 %v10083_v59  ;;  %v11467_v57 = vmul.f32 -1.442695, %v9691_v15 }
 0xbd6   : > { %v12561_v17 = vpop.eup %12560  ;;  %10594 = vst.msk [vmem:[%s16100_s27 + $0x10] sm:$0xff] %vm10591_vm3, %v10404_v51  ;;  %12580 = vpow2.f32 %v11466_v38  ;;  %v11465_v12 = vmul.f32 -1.442695, %v9683_v50 }
 0xbd7   : > { %10271 = vst.msk [vmem:[%s16100_s27] sm:$0xff] %vm10270_vm2, %v12559_v6  ;;  %v12563_v31 = vpop.eup %12562  ;;  %10274 = vst.msk [vmem:[%s16100_s27 + $0x18] sm:$0xff] %vm10270_vm2, %v12561_v17  ;;  %12582 = vpow2.f32 %v11464_v39  ;;  %v10422_v37 = vpop.permute.xlu1 %10421 }
 0xbd8   : > { %10592 = vst.msk [vmem:[%s16100_s27] sm:$0xff] %vm10591_vm3, %v10400_v5  ;;  %v12565_v41 = vpop.eup %12564  ;;  %10595 = vst.msk [vmem:[%s16100_s27 + $0x18] sm:$0xff] %vm10591_vm3, %v10406_v40  ;;  %12584 = vpow2.f32 %v11467_v57  ;;  %v10424_v21 = vpop.permute.xlu0 %10423 }
 0xbd9   : > { %10272 = vst.msk [vmem:[%s16100_s27 + $0x8] sm:$0xff] %vm10270_vm2, %v12563_v31  ;;  %v12567_v56 = vpop.eup %12566  ;;  %v10088_v11 = vadd.f32 1.0, %v12565_v41  ;;  %12586 = vpow2.f32 %v11465_v12 }
 0xbda   : > { %10593 = vst.msk [vmem:[%s16100_s27 + $0x8] sm:$0xff] %vm10591_vm3, %v10402_v33  ;;  %v12569_v29 = vpop.eup %12568  ;;  %v10086_v19 = vadd.f32 1.0, %v12567_v56 }
 0xbdb   : > { %v12571_v42 = vpop.eup %12570  ;;  %12588 = vrcp.f32 %v10088_v11  ;;  %v10089_v1 = vadd.f32 1.0, %v12569_v29  ;;  %v10426_v30 = vpop.permute.xlu1 %10425 }
 0xbdc   : > { %v12573_v26 = vpop.eup %12572  ;;  %12590 = vrcp.f32 %v10086_v19  ;;  %v10087_v9 = vadd.f32 1.0, %v12571_v42  ;;  %v11811_v2 = vpop.f32.mrb[112].mxu0 }
 0xbdd   : > { %v12575_v10 = vpop.eup %12574  ;;  %10277 = vst.msk [vmem:[%s16100_s27 + $0x30] sm:$0xff] %vm10270_vm2, %v12573_v26  ;;  %12592 = vrcp.f32 %v10089_v1  ;;  %v9704_v36 = vadd.f32 %v11811_v2, %v16081_v13  ;;  %v9695_v46 = vpop.f32.mrb[113].mxu0 }
 0xbde   : > { %v12577_v60 = vpop.eup %12576  ;;  %10598 = vst.msk [vmem:[%s16100_s27 + $0x30] sm:$0xff] %vm10591_vm3, %v10412_v27  ;;  %12594 = vrcp.f32 %v10087_v9  ;;  %v9696_v54 = vadd.f32 %v16081_v13, %v9695_v46  ;;  %v11812_v52 = vpop.f32.mrb[114].mxu0 }
 0xbdf   : > { %10275 = vst.msk [vmem:[%s16100_s27 + $0x20] sm:$0xff] %vm10270_vm2, %v12575_v10  ;;  %v12579_v25 = vpop.eup %12578  ;;  %10278 = vst.msk [vmem:[%s16100_s27 + $0x38] sm:$0xff] %vm10270_vm2, %v12577_v60  ;;  %v11470_v23 = vmul.f32 -1.442695, %v9704_v36  ;;  %v9707_v18 = vadd.f32 %v11812_v52, %v16081_v13  ;;  %v9698_v48 = vpop.f32.mrb[115].mxu0 }
 0xbe0   : > { %10596 = vst.msk [vmem:[%s16100_s27 + $0x20] sm:$0xff] %vm10591_vm3, %v10408_v35  ;;  %v12581_v28 = vpop.eup %12580  ;;  %10599 = vst.msk [vmem:[%s16100_s27 + $0x38] sm:$0xff] %vm10591_vm3, %v10414_v32  ;;  %v11468_v43 = vmul.f32 -1.442695, %v9696_v54  ;;  %v9699_v55 = vadd.f32 %v16081_v13, %v9698_v48  ;;  %v10428_v50 = vpop.permute.xlu0 %10427 }
 0xbe1   : > { %10276 = vst.msk [vmem:[%s16100_s27 + $0x28] sm:$0xff] %vm10270_vm2, %v12579_v25  ;;  %v12583_v22 = vpop.eup %12582  ;;  %v10092_v45 = vadd.f32 1.0, %v12581_v28  ;;  %12596 = vpow2.f32 %v11470_v23  ;;  %v11471_v58 = vmul.f32 -1.442695, %v9707_v18  ;;  %v10430_v41 = vpop.permute.xlu1 %10429 }
 0xbe2   : > { %10597 = vst.msk [vmem:[%s16100_s27 + $0x28] sm:$0xff] %vm10591_vm3, %v10410_v24  ;;  %v12585_v61 = vpop.eup %12584  ;;  %v10090_v34 = vadd.f32 1.0, %v12583_v22  ;;  %12598 = vpow2.f32 %v11468_v43  ;;  %v11469_v3 = vmul.f32 -1.442695, %v9699_v55 }
 0xbe3   : > { %v12587_v20 = vpop.eup %12586  ;;  %12600 = vrcp.f32 %v10092_v45  ;;  %v10093_v53 = vadd.f32 1.0, %v12585_v61 }
 0xbe4   : > { %12602 = vrcp.f32 %v10090_v34  ;;  %v10091_v5 = vadd.f32 1.0, %v12587_v20  ;;  %v10432_v26 = vpop.permute.xlu0 %10431 }
 0xbe5   : > { %v12589_v44 = vpop.eup %12588  ;;  %12604 = vrcp.f32 %v10093_v53  ;;  %v10434_v36 = vpop.permute.xlu1 %10433 }
 0xbe6   : > { %v12591_v4 = vpop.eup %12590  ;;  %10281 = vst.msk [vmem:[%s16100_s27 + $0x50] sm:$0xff] %vm10270_vm2, %v12589_v44  ;;  %12606 = vrcp.f32 %v10091_v5 }
 0xbe7   : > { %v12593_v51 = vpop.eup %12592  ;;  %10602 = vst.msk [vmem:[%s16100_s27 + $0x50] sm:$0xff] %vm10591_vm3, %v10420_v62  ;;  %12608 = vpow2.f32 %v11471_v58 }
 0xbe8   : > { %10279 = vst.msk [vmem:[%s16100_s27 + $0x40] sm:$0xff] %vm10270_vm2, %v12591_v4  ;;  %v12595_v49 = vpop.eup %12594  ;;  %10282 = vst.msk [vmem:[%s16100_s27 + $0x58] sm:$0xff] %vm10270_vm2, %v12593_v51  ;;  %12610 = vpow2.f32 %v11469_v3  ;;  %v10436_v10 = vpop.permute.xlu0 %10435 }
 0xbe9   : > { %10600 = vst.msk [vmem:[%s16100_s27 + $0x40] sm:$0xff] %vm10591_vm3, %v10416_v0  ;;  %10603 = vst.msk [vmem:[%s16100_s27 + $0x58] sm:$0xff] %vm10591_vm3, %v10422_v37  ;;  %v10438_v22 = vpop.permute.xlu1 %10437 }
 0xbea   : > { %10280 = vst.msk [vmem:[%s16100_s27 + $0x48] sm:$0xff] %vm10270_vm2, %v12595_v49 }
 0xbeb   : > { %10601 = vst.msk [vmem:[%s16100_s27 + $0x48] sm:$0xff] %vm10591_vm3, %v10418_v14  ;;  %v12597_v8 = vpop.eup %12596 }
 0xbec   : > { %v12599_v63 = vpop.eup %12598  ;;  %v10096_v16 = vadd.f32 1.0, %v12597_v8  ;;  %v11815_v59 = vpop.f32.mrb[116].mxu0 }
 0xbed   : > { %v12601_v38 = vpop.eup %12600  ;;  %v10094_v15 = vadd.f32 1.0, %v12599_v63  ;;  %v9720_v47 = vadd.f32 %v11815_v59, %v16081_v13  ;;  %v9711_v7 = vpop.f32.mrb[117].mxu0 }
 0xbee   : > { %v12603_v39 = vpop.eup %12602  ;;  %10285 = vst.msk [vmem:[%s16100_s27 + $0x70] sm:$0xff] %vm10270_vm2, %v12601_v38  ;;  %12612 = vrcp.f32 %v10096_v16  ;;  %v9712_v6 = vadd.f32 %v16081_v13, %v9711_v7  ;;  %v11816_v33 = vpop.f32.mrb[118].mxu0 }
 0xbef   : > { %v12605_v57 = vpop.eup %12604  ;;  %10606 = vst.msk [vmem:[%s16100_s27 + $0x70] sm:$0xff] %vm10591_vm3, %v10428_v50  ;;  %12614 = vrcp.f32 %v10094_v15  ;;  %v11474_v17 = vmul.f32 -1.442695, %v9720_v47  ;;  %v9723_v12 = vadd.f32 %v11816_v33, %v16081_v13  ;;  %v9714_v31 = vpop.f32.mrb[119].mxu0 }
 0xbf0   : > { %10283 = vst.msk [vmem:[%s16100_s27 + $0x60] sm:$0xff] %vm10270_vm2, %v12603_v39  ;;  %v12607_v40 = vpop.eup %12606  ;;  %10286 = vst.msk [vmem:[%s16100_s27 + $0x78] sm:$0xff] %vm10270_vm2, %v12605_v57  ;;  %v11472_v56 = vmul.f32 -1.442695, %v9712_v6  ;;  %v9715_v35 = vadd.f32 %v16081_v13, %v9714_v31  ;;  %v10440_v3 = vpop.permute.xlu0 %10439 }
 0xbf1   : > { %10604 = vst.msk [vmem:[%s16100_s27 + $0x60] sm:$0xff] %vm10591_vm3, %v10424_v21  ;;  %v12609_v11 = vpop.eup %12608  ;;  %10607 = vst.msk [vmem:[%s16100_s27 + $0x78] sm:$0xff] %vm10591_vm3, %v10430_v41  ;;  %12616 = vpow2.f32 %v11474_v17  ;;  %v11475_v29 = vmul.f32 -1.442695, %v9723_v12  ;;  %v10442_v44 = vpop.permute.xlu1 %10441 }
 0xbf2   : > { %10284 = vst.msk [vmem:[%s16100_s27 + $0x68] sm:$0xff] %vm10270_vm2, %v12607_v40  ;;  %v12611_v19 = vpop.eup %12610  ;;  %v10097_v42 = vadd.f32 1.0, %v12609_v11  ;;  %12618 = vpow2.f32 %v11472_v56  ;;  %v11473_v24 = vmul.f32 -1.442695, %v9715_v35 }
 0xbf3   : > { %10605 = vst.msk [vmem:[%s16100_s27 + $0x68] sm:$0xff] %vm10591_vm3, %v10426_v30  ;;  %v10095_v1 = vadd.f32 1.0, %v12611_v19  ;;  %12620 = vpow2.f32 %v11475_v29 }
 0xbf4   : > { %12622 = vrcp.f32 %v10097_v42  ;;  %v10444_v51 = vpop.permute.xlu0 %10443 }
 0xbf5   : > { %12624 = vrcp.f32 %v10095_v1  ;;  %v10446_v21 = vpop.permute.xlu1 %10445 }
 0xbf6   : > { %12626 = vpow2.f32 %v11473_v24 }
 0xbf8   : > { %v12613_v9 = vpop.eup %12612  ;;  %v10448_v35 = vpop.permute.xlu0 %10447 }
 0xbf9   : > { %v12615_v2 = vpop.eup %12614  ;;  %10289 = vst.msk [vmem:[%s16100_s27 + $0x90] sm:$0xff] %vm10270_vm2, %v12613_v9  ;;  %v10450_v29 = vpop.permute.xlu1 %10449 }
 0xbfa   : > { %10610 = vst.msk [vmem:[%s16100_s27 + $0x90] sm:$0xff] %vm10591_vm3, %v10436_v10 }
 0xbfb   : > { %10287 = vst.msk [vmem:[%s16100_s27 + $0x80] sm:$0xff] %vm10270_vm2, %v12615_v2  ;;  %v12617_v27 = vpop.eup %12616 }
 0xbfc   : > { %10608 = vst.msk [vmem:[%s16100_s27 + $0x80] sm:$0xff] %vm10591_vm3, %v10432_v26  ;;  %v12619_v46 = vpop.eup %12618  ;;  %v10100_v60 = vadd.f32 1.0, %v12617_v27  ;;  %v11819_v54 = vpop.f32.mrb[120].mxu0 }
 0xbfd   : > { %v12621_v52 = vpop.eup %12620  ;;  %v10098_v25 = vadd.f32 1.0, %v12619_v46  ;;  %v9736_v32 = vadd.f32 %v11819_v54, %v16081_v13  ;;  %v9727_v23 = vpop.f32.mrb[121].mxu0 }
 0xbfe   : > { %v12623_v18 = vpop.eup %12622  ;;  %12628 = vrcp.f32 %v10100_v60  ;;  %v10101_v48 = vadd.f32 1.0, %v12621_v52  ;;  %v9728_v28 = vadd.f32 %v16081_v13, %v9727_v23  ;;  %v11820_v43 = vpop.f32.mrb[122].mxu0 }
 0xbff   : > { %v12625_v55 = vpop.eup %12624  ;;  %10290 = vst.msk [vmem:[%s16100_s27 + $0x98] sm:$0xff] %vm10270_vm2, %v12623_v18  ;;  %12630 = vrcp.f32 %v10098_v25  ;;  %v11478_v45 = vmul.f32 -1.442695, %v9736_v32  ;;  %v9739_v61 = vadd.f32 %v11820_v43, %v16081_v13  ;;  %v9730_v0 = vpop.f32.mrb[123].mxu0 }
 0xc00   : > { %v12627_v34 = vpop.eup %12626  ;;  %10611 = vst.msk [vmem:[%s16100_s27 + $0x98] sm:$0xff] %vm10591_vm3, %v10438_v22  ;;  %12632 = vrcp.f32 %v10101_v48  ;;  %v11476_v20 = vmul.f32 -1.442695, %v9728_v28  ;;  %v9731_v53 = vadd.f32 %v16081_v13, %v9730_v0  ;;  %v10452_v42 = vpop.permute.xlu0 %10451 }
 0xc01   : > { %10288 = vst.msk [vmem:[%s16100_s27 + $0x88] sm:$0xff] %vm10270_vm2, %v12625_v55  ;;  %v10099_v58 = vadd.f32 1.0, %v12627_v34  ;;  %12634 = vpow2.f32 %v11478_v45  ;;  %v11479_v14 = vmul.f32 -1.442695, %v9739_v61  ;;  %v10454_v26 = vpop.permute.xlu1 %10453 }
 0xc02   : > { %10609 = vst.msk [vmem:[%s16100_s27 + $0x88] sm:$0xff] %vm10591_vm3, %v10434_v36  ;;  %12636 = vpow2.f32 %v11476_v20  ;;  %v11477_v5 = vmul.f32 -1.442695, %v9731_v53 }
 0xc03   : > { %12638 = vrcp.f32 %v10099_v58 }
 0xc04   : > { %12640 = vpow2.f32 %v11479_v14  ;;  %v10456_v0 = vpop.permute.xlu0 %10455 }
 0xc05   : > { %12642 = vpow2.f32 %v11477_v5  ;;  %v10458_v34 = vpop.permute.xlu1 %10457 }
 0xc08   : > { %v12629_v4 = vpop.eup %12628  ;;  %v10460_v58 = vpop.permute.xlu0 %10459 }
 0xc09   : > { %v12631_v62 = vpop.eup %12630  ;;  %10293 = vst.msk [vmem:[%s16100_s27 + $0xb0] sm:$0xff] %vm10270_vm2, %v12629_v4 }
 0xc0a   : > { %v12633_v49 = vpop.eup %12632  ;;  %10614 = vst.msk [vmem:[%s16100_s27 + $0xb0] sm:$0xff] %vm10591_vm3, %v10444_v51 }
 0xc0b   : > { %10291 = vst.msk [vmem:[%s16100_s27 + $0xa0] sm:$0xff] %vm10270_vm2, %v12631_v62  ;;  %v12635_v37 = vpop.eup %12634  ;;  %10294 = vst.msk [vmem:[%s16100_s27 + $0xb8] sm:$0xff] %vm10270_vm2, %v12633_v49 }
 0xc0c   : > { %10612 = vst.msk [vmem:[%s16100_s27 + $0xa0] sm:$0xff] %vm10591_vm3, %v10440_v3  ;;  %v12637_v8 = vpop.eup %12636  ;;  %10615 = vst.msk [vmem:[%s16100_s27 + $0xb8] sm:$0xff] %vm10591_vm3, %v10446_v21  ;;  %v10104_v63 = vadd.f32 1.0, %v12635_v37  ;;  %v11823_v30 = vpop.f32.mrb[124].mxu0 }
 0xc0d   : > { %v12639_v16 = vpop.eup %12638  ;;  %v10102_v59 = vadd.f32 1.0, %v12637_v8  ;;  %v9752_v38 = vadd.f32 %v11823_v30, %v16081_v13  ;;  %v9743_v15 = vpop.f32.mrb[125].mxu0 }
 0xc0e   : > { %v12641_v47 = vpop.eup %12640  ;;  %10292 = vst.msk [vmem:[%s16100_s27 + $0xa8] sm:$0xff] %vm10270_vm2, %v12639_v16  ;;  %12644 = vrcp.f32 %v10104_v63  ;;  %v9744_v7 = vadd.f32 %v16081_v13, %v9743_v15  ;;  %v11824_v39 = vpop.f32.mrb[126].mxu0 }
 0xc0f   : > { %v12643_v50 = vpop.eup %12642  ;;  %10613 = vst.msk [vmem:[%s16100_s27 + $0xa8] sm:$0xff] %vm10591_vm3, %v10442_v44  ;;  %12646 = vrcp.f32 %v10102_v59  ;;  %v10105_v6 = vadd.f32 1.0, %v12641_v47  ;;  %v11482_v33 = vmul.f32 -1.442695, %v9752_v38  ;;  %v9755_v57 = vadd.f32 %v11824_v39, %v16081_v13  ;;  %v9746_v17 = vpop.f32.mrb[127].mxu0 }
 0xc10   : > { %v10103_v12 = vadd.f32 1.0, %v12643_v50  ;;  %v11480_v31 = vmul.f32 -1.442695, %v9744_v7  ;;  %v9747_v40 = vadd.f32 %v16081_v13, %v9746_v17  ;;  %v10462_v44 = vpop.permute.xlu1 %10461 }
 0xc11   : > { %12648 = vrcp.f32 %v10105_v6  ;;  %v11483_v41 = vmul.f32 -1.442695, %v9755_v57  ;;  %v10464_v57 = vpop.permute.xlu0 %10463 }
 0xc12   : > { %12650 = vrcp.f32 %v10103_v12  ;;  %v11481_v56 = vmul.f32 -1.442695, %v9747_v40 }
 0xc13   : > { %12652 = vpow2.f32 %v11482_v33 }
 0xc14   : > { %12654 = vpow2.f32 %v11480_v31  ;;  %v10466_v17 = vpop.permute.xlu1 %10465 }
 0xc15   : > { %12656 = vpow2.f32 %v11483_v41  ;;  %v10468_v40 = vpop.permute.xlu0 %10467 }
 0xc16   : > { %12658 = vpow2.f32 %v11481_v56 }
 0xc18   : > { %v12645_v11 = vpop.eup %12644 }
 0xc19   : > { %v12647_v19 = vpop.eup %12646  ;;  %10297 = vst.msk [vmem:[%s16100_s27 + $0xd0] sm:$0xff] %vm10270_vm2, %v12645_v11 }
 0xc1a   : > { %10618 = vst.msk [vmem:[%s16100_s27 + $0xd0] sm:$0xff] %vm10591_vm3, %v10452_v42 }
 0xc1b   : > { %10295 = vst.msk [vmem:[%s16100_s27 + $0xc0] sm:$0xff] %vm10270_vm2, %v12647_v19  ;;  %v12649_v24 = vpop.eup %12648  ;;  %v10470_v19 = vpop.permute.xlu1 %10469 }
 0xc1c   : > { %10616 = vst.msk [vmem:[%s16100_s27 + $0xc0] sm:$0xff] %vm10591_vm3, %v10448_v35  ;;  %v12651_v1 = vpop.eup %12650  ;;  %v11827_v9 = vpop.f32.mrb[128].mxu0 }
 0xc1d   : > { %10298 = vst.msk [vmem:[%s16100_s27 + $0xd8] sm:$0xff] %vm10270_vm2, %v12649_v24  ;;  %v12653_v2 = vpop.eup %12652  ;;  %10296 = vst.msk [vmem:[%s16100_s27 + $0xc8] sm:$0xff] %vm10270_vm2, %v12651_v1  ;;  %v9768_v10 = vadd.f32 %v11827_v9, %v16081_v13  ;;  %v9759_v27 = vpop.f32.mrb[129].mxu0 }
 0xc1e   : > { %10619 = vst.msk [vmem:[%s16100_s27 + $0xd8] sm:$0xff] %vm10591_vm3, %v10454_v26  ;;  %v12655_v36 = vpop.eup %12654  ;;  %10617 = vst.msk [vmem:[%s16100_s27 + $0xc8] sm:$0xff] %vm10591_vm3, %v10450_v29  ;;  %v10108_v46 = vadd.f32 1.0, %v12653_v2  ;;  %v9760_v60 = vadd.f32 %v16081_v13, %v9759_v27  ;;  %v11828_v54 = vpop.f32.mrb[130].mxu0 }
 0xc1f   : > { %v12657_v52 = vpop.eup %12656  ;;  %v10106_v25 = vadd.f32 1.0, %v12655_v36  ;;  %v9771_v32 = vadd.f32 %v11828_v54, %v16081_v13  ;;  %v9762_v23 = vpop.f32.mrb[131].mxu0  ;;  %v11486_v28 = vmul.f32 -1.442695, %v9768_v10 }
 0xc20   : > { %v12659_v18 = vpop.eup %12658  ;;  %12660 = vrcp.f32 %v10108_v46  ;;  %v10109_v48 = vadd.f32 1.0, %v12657_v52  ;;  %v9763_v43 = vadd.f32 %v16081_v13, %v9762_v23  ;;  %v11484_v22 = vmul.f32 -1.442695, %v9760_v60 }
 0xc21   : > { %12662 = vrcp.f32 %v10106_v25  ;;  %v10107_v55 = vadd.f32 1.0, %v12659_v18  ;;  %v11487_v45 = vmul.f32 -1.442695, %v9771_v32 }
 0xc22   : > { %12664 = vrcp.f32 %v10109_v48  ;;  %v11485_v61 = vmul.f32 -1.442695, %v9763_v43  ;;  %v10472_v48 = vpop.permute.xlu0 %10471  ;;  %v10474_v43 = vpop.permute.xlu1 %10473 }
 0xc23   : > { %12666 = vrcp.f32 %v10107_v55 }
 0xc24   : > { %12668 = vpow2.f32 %v11486_v28 }
 0xc25   : > { %12670 = vpow2.f32 %v11484_v22 }
 0xc26   : > { %12672 = vpow2.f32 %v11487_v45 }
 0xc27   : > { %12674 = vpow2.f32 %v11485_v61 }
 0xc2a   : > { %v12661_v20 = vpop.eup %12660 }
 0xc2b   : > { %v12663_v53 = vpop.eup %12662  ;;  %10301 = vst.msk [vmem:[%s16100_s27 + $0xf0] sm:$0xff] %vm10270_vm2, %v12661_v20 }
 0xc2c   : > { %v12665_v14 = vpop.eup %12664  ;;  %10622 = vst.msk [vmem:[%s16100_s27 + $0xf0] sm:$0xff] %vm10591_vm3, %v10460_v58  ;;  %v11831_v5 = vpop.f32.mrb[132].mxu0 }
 0xc2d   : > { %10299 = vst.msk [vmem:[%s16100_s27 + $0xe0] sm:$0xff] %vm10270_vm2, %v12663_v53  ;;  %v12667_v3 = vpop.eup %12666  ;;  %10302 = vst.msk [vmem:[%s16100_s27 + $0xf8] sm:$0xff] %vm10270_vm2, %v12665_v14  ;;  %v9784_v4 = vadd.f32 %v11831_v5, %v16081_v13  ;;  %v9775_v62 = vpop.f32.mrb[133].mxu0 }
 0xc2e   : > { %10620 = vst.msk [vmem:[%s16100_s27 + $0xe0] sm:$0xff] %vm10591_vm3, %v10456_v0  ;;  %v12669_v51 = vpop.eup %12668  ;;  %10623 = vst.msk [vmem:[%s16100_s27 + $0xf8] sm:$0xff] %vm10591_vm3, %v10462_v44  ;;  %v9776_v49 = vadd.f32 %v16081_v13, %v9775_v62  ;;  %v11832_v37 = vpop.f32.mrb[134].mxu0 }
 0xc2f   : > { %10300 = vst.msk [vmem:[%s16100_s27 + $0xe8] sm:$0xff] %vm10270_vm2, %v12667_v3  ;;  %v12671_v21 = vpop.eup %12670  ;;  %v10112_v8 = vadd.f32 1.0, %v12669_v51  ;;  %v9787_v63 = vadd.f32 %v11832_v37, %v16081_v13  ;;  %v9778_v30 = vpop.f32.mrb[135].mxu0  ;;  %v11490_v7 = vmul.f32 -1.442695, %v9784_v4 }
 0xc30   : > { %10621 = vst.msk [vmem:[%s16100_s27 + $0xe8] sm:$0xff] %vm10591_vm3, %v10458_v34  ;;  %v12673_v16 = vpop.eup %12672  ;;  %v10110_v59 = vadd.f32 1.0, %v12671_v21  ;;  %v9779_v38 = vadd.f32 %v16081_v13, %v9778_v30  ;;  %v11488_v50 = vmul.f32 -1.442695, %v9776_v49  ;;  %v10476_v0 = vpop.permute.xlu0 %10475 }
 0xc31   : > { %v12675_v15 = vpop.eup %12674  ;;  %12676 = vrcp.f32 %v10112_v8  ;;  %v10113_v47 = vadd.f32 1.0, %v12673_v16  ;;  %v11491_v6 = vmul.f32 -1.442695, %v9787_v63  ;;  %v10478_v3 = vpop.permute.xlu1 %10477 }
 0xc32   : > { %12678 = vrcp.f32 %v10110_v59  ;;  %v10111_v39 = vadd.f32 1.0, %v12675_v15  ;;  %v11489_v33 = vmul.f32 -1.442695, %v9779_v38 }
 0xc33   : > { %12680 = vrcp.f32 %v10113_v47 }
 0xc34   : > { %12682 = vrcp.f32 %v10111_v39  ;;  %v10480_v15 = vpop.permute.xlu0 %10479 }
 0xc35   : > { %12684 = vpow2.f32 %v11490_v7 }
 0xc36   : > { %12686 = vpow2.f32 %v11488_v50  ;;  %v10482_v50 = vpop.permute.xlu1 %10481 }
 0xc37   : > { %12688 = vpow2.f32 %v11491_v6 }
 0xc38   : > { %12690 = vpow2.f32 %v11489_v33  ;;  %v10484_v7 = vpop.permute.xlu0 %10483 }
 0xc3b   : > { %v12677_v12 = vpop.eup %12676 }
 0xc3c   : > { %v12679_v31 = vpop.eup %12678  ;;  %10305 = vst.msk [vmem:[%s16100_s27 + $0x110] sm:$0xff] %vm10270_vm2, %v12677_v12  ;;  %v11835_v41 = vpop.f32.mrb[136].mxu0 }
 0xc3d   : > { %v12681_v56 = vpop.eup %12680  ;;  %10626 = vst.msk [vmem:[%s16100_s27 + $0x110] sm:$0xff] %vm10591_vm3, %v10468_v40  ;;  %v9800_v35 = vadd.f32 %v11835_v41, %v16081_v13  ;;  %v9791_v11 = vpop.f32.mrb[137].mxu0 }
 0xc3e   : > { %10303 = vst.msk [vmem:[%s16100_s27 + $0x100] sm:$0xff] %vm10270_vm2, %v12679_v31  ;;  %v12683_v29 = vpop.eup %12682  ;;  %10306 = vst.msk [vmem:[%s16100_s27 + $0x118] sm:$0xff] %vm10270_vm2, %v12681_v56  ;;  %v9792_v42 = vadd.f32 %v16081_v13, %v9791_v11  ;;  %v11836_v24 = vpop.f32.mrb[138].mxu0 }
 0xc3f   : > { %10624 = vst.msk [vmem:[%s16100_s27 + $0x100] sm:$0xff] %vm10591_vm3, %v10464_v57  ;;  %v12685_v1 = vpop.eup %12684  ;;  %10627 = vst.msk [vmem:[%s16100_s27 + $0x118] sm:$0xff] %vm10591_vm3, %v10470_v19  ;;  %v11494_v26 = vmul.f32 -1.442695, %v9800_v35  ;;  %v9803_v9 = vadd.f32 %v11836_v24, %v16081_v13  ;;  %v9794_v2 = vpop.f32.mrb[139].mxu0 }
 0xc40   : > { %10304 = vst.msk [vmem:[%s16100_s27 + $0x108] sm:$0xff] %vm10270_vm2, %v12683_v29  ;;  %v12687_v10 = vpop.eup %12686  ;;  %v10116_v27 = vadd.f32 1.0, %v12685_v1  ;;  %v9795_v36 = vadd.f32 %v16081_v13, %v9794_v2  ;;  %v11492_v25 = vmul.f32 -1.442695, %v9792_v42  ;;  %v10486_v29 = vpop.permute.xlu1 %10485  ;;  %v16312_v42 = vld [vmem:[%s16428_s11] ss:$0 sm:$0xff] }
 0xc41   : > { %10625 = vst.msk [vmem:[%s16100_s27 + $0x108] sm:$0xff] %vm10591_vm3, %v10466_v17  ;;  %v12689_v46 = vpop.eup %12688  ;;  %v10114_v60 = vadd.f32 1.0, %v12687_v10  ;;  %12692 = vpow2.f32 %v11494_v26  ;;  %v11495_v23 = vmul.f32 -1.442695, %v9803_v9 }
 0xc42   : > { %v12691_v54 = vpop.eup %12690  ;;  %12694 = vrcp.f32 %v10116_v27  ;;  %v10117_v52 = vadd.f32 1.0, %v12689_v46  ;;  %v11493_v18 = vmul.f32 -1.442695, %v9795_v36 }
 0xc43   : > { %12696 = vrcp.f32 %v10114_v60  ;;  %v10115_v32 = vadd.f32 1.0, %v12691_v54  ;;  %v10488_v60 = vpop.permute.xlu0 %10487 }
 0xc44   : > { %12698 = vrcp.f32 %v10117_v52 }
 0xc45   : > { %12700 = vrcp.f32 %v10115_v32  ;;  %v10490_v32 = vpop.permute.xlu1 %10489 }
 0xc46   : > { %12702 = vpow2.f32 %v11492_v25 }
 0xc47   : > { %12704 = vpow2.f32 %v11495_v23  ;;  %v10492_v25 = vpop.permute.xlu0 %10491 }
 0xc48   : > { %12706 = vpow2.f32 %v11493_v18 }
 0xc4b   : > { %v12693_v28 = vpop.eup %12692 }
 0xc4c   : > { %v12695_v55 = vpop.eup %12694  ;;  %v10120_v22 = vadd.f32 1.0, %v12693_v28  ;;  %v11839_v45 = vpop.f32.mrb[140].mxu0 }
 0xc4d   : > { %v12697_v61 = vpop.eup %12696  ;;  %10309 = vst.msk [vmem:[%s16100_s27 + $0x130] sm:$0xff] %vm10270_vm2, %v12695_v55  ;;  %v9816_v34 = vadd.f32 %v11839_v45, %v16081_v13  ;;  %v9807_v20 = vpop.f32.mrb[141].mxu0 }
 0xc4e   : > { %v12699_v53 = vpop.eup %12698  ;;  %10630 = vst.msk [vmem:[%s16100_s27 + $0x130] sm:$0xff] %vm10591_vm3, %v10476_v0  ;;  %12708 = vrcp.f32 %v10120_v22  ;;  %v9808_v58 = vadd.f32 %v16081_v13, %v9807_v20  ;;  %v11840_v14 = vpop.f32.mrb[142].mxu0 }
 0xc4f   : > { %10307 = vst.msk [vmem:[%s16100_s27 + $0x120] sm:$0xff] %vm10270_vm2, %v12697_v61  ;;  %v12701_v5 = vpop.eup %12700  ;;  %10310 = vst.msk [vmem:[%s16100_s27 + $0x138] sm:$0xff] %vm10270_vm2, %v12699_v53  ;;  %v11498_v44 = vmul.f32 -1.442695, %v9816_v34  ;;  %v9819_v4 = vadd.f32 %v11840_v14, %v16081_v13  ;;  %v9810_v62 = vpop.f32.mrb[143].mxu0 }
 0xc50   : > { %10628 = vst.msk [vmem:[%s16100_s27 + $0x120] sm:$0xff] %vm10591_vm3, %v10472_v48  ;;  %v12703_v51 = vpop.eup %12702  ;;  %10631 = vst.msk [vmem:[%s16100_s27 + $0x138] sm:$0xff] %vm10591_vm3, %v10478_v3  ;;  %v11496_v49 = vmul.f32 -1.442695, %v9808_v58  ;;  %v9811_v37 = vadd.f32 %v16081_v13, %v9810_v62  ;;  %v10494_v0 = vpop.permute.xlu1 %10493 }
 0xc51   : > { %10308 = vst.msk [vmem:[%s16100_s27 + $0x128] sm:$0xff] %vm10270_vm2, %v12701_v5  ;;  %v12705_v21 = vpop.eup %12704  ;;  %v10118_v8 = vadd.f32 1.0, %v12703_v51  ;;  %12710 = vpow2.f32 %v11498_v44  ;;  %v11499_v16 = vmul.f32 -1.442695, %v9819_v4 }
 0xc52   : > { %10629 = vst.msk [vmem:[%s16100_s27 + $0x128] sm:$0xff] %vm10591_vm3, %v10474_v43  ;;  %v12707_v63 = vpop.eup %12706  ;;  %v10121_v30 = vadd.f32 1.0, %v12705_v21  ;;  %12712 = vpow2.f32 %v11496_v49  ;;  %v11497_v38 = vmul.f32 -1.442695, %v9811_v37  ;;  %v10496_v21 = vpop.permute.xlu0 %10495 }
 0xc53   : > { %12714 = vrcp.f32 %v10118_v8  ;;  %v10119_v59 = vadd.f32 1.0, %v12707_v63 }
 0xc54   : > { %12716 = vrcp.f32 %v10121_v30  ;;  %v10498_v30 = vpop.permute.xlu1 %10497 }
 0xc55   : > { %12718 = vrcp.f32 %v10119_v59 }
 0xc56   : > { %12720 = vpow2.f32 %v11499_v16  ;;  %v10500_v16 = vpop.permute.xlu0 %10499 }
 0xc57   : > { %12722 = vpow2.f32 %v11497_v38 }
 0xc58   : > { %v12709_v47 = vpop.eup %12708 }
 0xc59   : > { %10313 = vst.msk [vmem:[%s16100_s27 + $0x150] sm:$0xff] %vm10270_vm2, %v12709_v47 }
 0xc5a   : > { %10634 = vst.msk [vmem:[%s16100_s27 + $0x150] sm:$0xff] %vm10591_vm3, %v10484_v7 }
 0xc5b   : > { %v12711_v39 = vpop.eup %12710 }
 0xc5c   : > { %v12713_v6 = vpop.eup %12712  ;;  %v10124_v33 = vadd.f32 1.0, %v12711_v39  ;;  %v11843_v57 = vpop.f32.mrb[144].mxu0 }
 0xc5d   : > { %v12715_v17 = vpop.eup %12714  ;;  %v10122_v12 = vadd.f32 1.0, %v12713_v6  ;;  %v9832_v31 = vadd.f32 %v11843_v57, %v16081_v13  ;;  %v9823_v40 = vpop.f32.mrb[145].mxu0 }
 0xc5e   : > { %v12717_v41 = vpop.eup %12716  ;;  %10311 = vst.msk [vmem:[%s16100_s27 + $0x140] sm:$0xff] %vm10270_vm2, %v12715_v17  ;;  %12724 = vrcp.f32 %v10124_v33  ;;  %v9824_v56 = vadd.f32 %v16081_v13, %v9823_v40  ;;  %v11844_v35 = vpop.f32.mrb[146].mxu0 }
 0xc5f   : > { %v12719_v11 = vpop.eup %12718  ;;  %10632 = vst.msk [vmem:[%s16100_s27 + $0x140] sm:$0xff] %vm10591_vm3, %v10480_v15  ;;  %12726 = vrcp.f32 %v10122_v12  ;;  %v11502_v19 = vmul.f32 -1.442695, %v9832_v31  ;;  %v9835_v24 = vadd.f32 %v16312_v42, %v11844_v35  ;;  %v9826_v1 = vpop.f32.mrb[147].mxu0 }
 0xc60   : > { %10314 = vst.msk [vmem:[%s16100_s27 + $0x158] sm:$0xff] %vm10270_vm2, %v12717_v41  ;;  %v12721_v26 = vpop.eup %12720  ;;  %10312 = vst.msk [vmem:[%s16100_s27 + $0x148] sm:$0xff] %vm10270_vm2, %v12719_v11  ;;  %v11500_v13 = vmul.f32 -1.442695, %v9824_v56  ;;  %v9827_v9 = vadd.f32 %v16312_v42, %v9826_v1  ;;  %v10502_v39 = vpop.permute.xlu1 %10501 }
 0xc61   : > { %10635 = vst.msk [vmem:[%s16100_s27 + $0x158] sm:$0xff] %vm10591_vm3, %v10486_v29  ;;  %v12723_v2 = vpop.eup %12722  ;;  %10633 = vst.msk [vmem:[%s16100_s27 + $0x148] sm:$0xff] %vm10591_vm3, %v10482_v50  ;;  %v10125_v10 = vadd.f32 1.0, %v12721_v26  ;;  %12728 = vpow2.f32 %v11502_v19  ;;  %v11503_v27 = vmul.f32 -1.442695, %v9835_v24 }
 0xc62   : > { %v10123_v36 = vadd.f32 1.0, %v12723_v2  ;;  %12730 = vpow2.f32 %v11500_v13  ;;  %v11501_v46 = vmul.f32 -1.442695, %v9827_v9  ;;  %v10504_v13 = vpop.permute.xlu0 %10503 }
 0xc63   : > { %12732 = vrcp.f32 %v10125_v10 }
 0xc64   : > { %12734 = vrcp.f32 %v10123_v36  ;;  %v10506_v2 = vpop.permute.xlu1 %10505 }
 0xc65   : > { %12736 = vpow2.f32 %v11503_v27 }
 0xc66   : > { %12738 = vpow2.f32 %v11501_v46  ;;  %v10508_v10 = vpop.permute.xlu0 %10507 }
 0xc68   : > { %v12725_v54 = vpop.eup %12724 }
 0xc69   : > { %v12727_v52 = vpop.eup %12726  ;;  %10317 = vst.msk [vmem:[%s16100_s27 + $0x170] sm:$0xff] %vm10270_vm2, %v12725_v54  ;;  %v10510_v54 = vpop.permute.xlu1 %10509 }
 0xc6a   : > { %10638 = vst.msk [vmem:[%s16100_s27 + $0x170] sm:$0xff] %vm10591_vm3, %v10492_v25 }
 0xc6b   : > { %10315 = vst.msk [vmem:[%s16100_s27 + $0x160] sm:$0xff] %vm10270_vm2, %v12727_v52  ;;  %v12729_v23 = vpop.eup %12728 }
 0xc6c   : > { %10636 = vst.msk [vmem:[%s16100_s27 + $0x160] sm:$0xff] %vm10591_vm3, %v10488_v60  ;;  %v12731_v18 = vpop.eup %12730  ;;  %v10128_v48 = vadd.f32 1.0, %v12729_v23  ;;  %v11847_v28 = vpop.f32.mrb[148].mxu0 }
 0xc6d   : > { %v12733_v43 = vpop.eup %12732  ;;  %v10126_v55 = vadd.f32 1.0, %v12731_v18  ;;  %v9848_v22 = vadd.f32 %v16312_v42, %v11847_v28  ;;  %v9839_v45 = vpop.f32.mrb[149].mxu0 }
 0xc6e   : > { %v12735_v61 = vpop.eup %12734  ;;  %10318 = vst.msk [vmem:[%s16100_s27 + $0x178] sm:$0xff] %vm10270_vm2, %v12733_v43  ;;  %12740 = vrcp.f32 %v10128_v48  ;;  %v9840_v34 = vadd.f32 %v16312_v42, %v9839_v45  ;;  %v11848_v20 = vpop.f32.mrb[150].mxu0 }
 0xc6f   : > { %v12737_v53 = vpop.eup %12736  ;;  %10639 = vst.msk [vmem:[%s16100_s27 + $0x178] sm:$0xff] %vm10591_vm3, %v10494_v0  ;;  %12742 = vrcp.f32 %v10126_v55  ;;  %v11506_v58 = vmul.f32 -1.442695, %v9848_v22  ;;  %v9851_v14 = vadd.f32 %v16312_v42, %v11848_v20  ;;  %v9842_v5 = vpop.f32.mrb[151].mxu0 }
 0xc70   : > { %10316 = vst.msk [vmem:[%s16100_s27 + $0x168] sm:$0xff] %vm10270_vm2, %v12735_v61  ;;  %v12739_v3 = vpop.eup %12738  ;;  %v10129_v44 = vadd.f32 1.0, %v12737_v53  ;;  %v11504_v4 = vmul.f32 -1.442695, %v9840_v34  ;;  %v9843_v62 = vadd.f32 %v16312_v42, %v9842_v5 }
 0xc71   : > { %10637 = vst.msk [vmem:[%s16100_s27 + $0x168] sm:$0xff] %vm10591_vm3, %v10490_v32  ;;  %v10127_v51 = vadd.f32 1.0, %v12739_v3  ;;  %12744 = vpow2.f32 %v11506_v58  ;;  %v11507_v49 = vmul.f32 -1.442695, %v9851_v14  ;;  %v10514_v3 = vpop.permute.xlu1 %10513 }
 0xc72   : > { %12746 = vrcp.f32 %v10129_v44  ;;  %v11505_v37 = vmul.f32 -1.442695, %v9843_v62 }
 0xc73   : > { %12748 = vrcp.f32 %v10127_v51 }
 0xc74   : > { %12750 = vpow2.f32 %v11504_v4 }
 0xc75   : > { %12752 = vpow2.f32 %v11507_v49 }
 0xc76   : > { %12754 = vpow2.f32 %v11505_v37  ;;  %v10518_v37 = vpop.permute.xlu1 %10517 }
 0xc78   : > { %v12741_v8 = vpop.eup %12740 }
 0xc79   : > { %v12743_v63 = vpop.eup %12742  ;;  %10321 = vst.msk [vmem:[%s16100_s27 + $0x190] sm:$0xff] %vm10270_vm2, %v12741_v8 }
 0xc7a   : > { %10642 = vst.msk [vmem:[%s16100_s27 + $0x190] sm:$0xff] %vm10591_vm3, %v10500_v16 }
 0xc7b   : > { %10319 = vst.msk [vmem:[%s16100_s27 + $0x180] sm:$0xff] %vm10270_vm2, %v12743_v63  ;;  %v12745_v59 = vpop.eup %12744 }
 0xc7c   : > { %10640 = vst.msk [vmem:[%s16100_s27 + $0x180] sm:$0xff] %vm10591_vm3, %v10496_v21  ;;  %v12747_v38 = vpop.eup %12746  ;;  %v10132_v15 = vadd.f32 1.0, %v12745_v59  ;;  %v11851_v47 = vpop.f32.mrb[152].mxu0 }
 0xc7d   : > { %v12749_v7 = vpop.eup %12748  ;;  %10322 = vst.msk [vmem:[%s16100_s27 + $0x198] sm:$0xff] %vm10270_vm2, %v12747_v38  ;;  %v9864_v50 = vadd.f32 %v16312_v42, %v11851_v47  ;;  %v9855_v6 = vpop.f32.mrb[153].mxu0 }
 0xc7e   : > { %v12751_v33 = vpop.eup %12750  ;;  %10643 = vst.msk [vmem:[%s16100_s27 + $0x198] sm:$0xff] %vm10591_vm3, %v10502_v39  ;;  %12756 = vrcp.f32 %v10132_v15  ;;  %v9856_v57 = vadd.f32 %v16312_v42, %v9855_v6  ;;  %v11852_v17 = vpop.f32.mrb[154].mxu0 }
 0xc7f   : > { %10320 = vst.msk [vmem:[%s16100_s27 + $0x188] sm:$0xff] %vm10270_vm2, %v12749_v7  ;;  %v12753_v12 = vpop.eup %12752  ;;  %v10130_v31 = vadd.f32 1.0, %v12751_v33  ;;  %v9867_v40 = vadd.f32 %v16312_v42, %v11852_v17  ;;  %v9858_v41 = vpop.f32.mrb[155].mxu0  ;;  %v11510_v11 = vmul.f32 -1.442695, %v9864_v50 }
 0xc80   : > { %10641 = vst.msk [vmem:[%s16100_s27 + $0x188] sm:$0xff] %vm10591_vm3, %v10498_v30  ;;  %v12755_v56 = vpop.eup %12754  ;;  %v10133_v35 = vadd.f32 1.0, %v12753_v12  ;;  %v9859_v29 = vadd.f32 %v16312_v42, %v9858_v41  ;;  %v11508_v24 = vmul.f32 -1.442695, %v9856_v57  ;;  %v10522_v7 = vpop.permute.xlu1 %10521 }
 0xc81   : > { %12758 = vrcp.f32 %v10130_v31  ;;  %v10131_v19 = vadd.f32 1.0, %v12755_v56  ;;  %v11511_v1 = vmul.f32 -1.442695, %v9867_v40 }
 0xc82   : > { %12760 = vrcp.f32 %v10133_v35  ;;  %v11509_v26 = vmul.f32 -1.442695, %v9859_v29 }
 0xc83   : > { %12762 = vrcp.f32 %v10131_v19 }
 0xc84   : > { %12764 = vpow2.f32 %v11510_v11  ;;  %v10526_v17 = vpop.permute.xlu1 %10525 }
 0xc85   : > { %12766 = vpow2.f32 %v11508_v24 }
 0xc86   : > { %12768 = vpow2.f32 %v11511_v1 }
 0xc87   : > { %12770 = vpow2.f32 %v11509_v26 }
 0xc88   : > { %v12757_v9 = vpop.eup %12756 }
 0xc89   : > { %10325 = vst.msk [vmem:[%s16100_s27 + $0x1b0] sm:$0xff] %vm10270_vm2, %v12757_v9 }
 0xc8a   : > { %10646 = vst.msk [vmem:[%s16100_s27 + $0x1b0] sm:$0xff] %vm10591_vm3, %v10508_v10 }
 0xc8b   : > { %v12759_v27 = vpop.eup %12758 }
 0xc8c   : > { %v12761_v36 = vpop.eup %12760  ;;  %10323 = vst.msk [vmem:[%s16100_s27 + $0x1a0] sm:$0xff] %vm10270_vm2, %v12759_v27  ;;  %v11855_v46 = vpop.f32.mrb[156].mxu0 }
 0xc8d   : > { %v12763_v60 = vpop.eup %12762  ;;  %10644 = vst.msk [vmem:[%s16100_s27 + $0x1a0] sm:$0xff] %vm10591_vm3, %v10504_v13  ;;  %v9880_v52 = vadd.f32 %v16312_v42, %v11855_v46  ;;  %v9871_v25 = vpop.f32.mrb[157].mxu0 }
 0xc8e   : > { %10326 = vst.msk [vmem:[%s16100_s27 + $0x1b8] sm:$0xff] %vm10270_vm2, %v12761_v36  ;;  %v12765_v32 = vpop.eup %12764  ;;  %10324 = vst.msk [vmem:[%s16100_s27 + $0x1a8] sm:$0xff] %vm10270_vm2, %v12763_v60  ;;  %v9872_v23 = vadd.f32 %v16312_v42, %v9871_v25  ;;  %v11856_v18 = vpop.f32.mrb[158].mxu0 }
 0xc8f   : > { %10647 = vst.msk [vmem:[%s16100_s27 + $0x1b8] sm:$0xff] %vm10591_vm3, %v10510_v54  ;;  %v12767_v48 = vpop.eup %12766  ;;  %10645 = vst.msk [vmem:[%s16100_s27 + $0x1a8] sm:$0xff] %vm10591_vm3, %v10506_v2  ;;  %v10136_v28 = vadd.f32 1.0, %v12765_v32  ;;  %v9883_v43 = vadd.f32 %v16312_v42, %v11856_v18  ;;  %v9874_v55 = vpop.f32.mrb[159].mxu0  ;;  %v11514_v20 = vmul.f32 -1.442695, %v9880_v52 }
 0xc90   : > { %v12769_v22 = vpop.eup %12768  ;;  %v10134_v45 = vadd.f32 1.0, %v12767_v48  ;;  %v9875_v61 = vadd.f32 %v16312_v42, %v9874_v55  ;;  %v11512_v58 = vmul.f32 -1.442695, %v9872_v23  ;;  %v10512_v42 = vpop.permute.xlu0 %10511 }
 0xc91   : > { %v12771_v0 = vpop.eup %12770  ;;  %12772 = vrcp.f32 %v10136_v28  ;;  %v10137_v34 = vadd.f32 1.0, %v12769_v22  ;;  %v11515_v14 = vmul.f32 -1.442695, %v9883_v43 }
 0xc92   : > { %12774 = vrcp.f32 %v10134_v45  ;;  %v10135_v53 = vadd.f32 1.0, %v12771_v0  ;;  %v11513_v5 = vmul.f32 -1.442695, %v9875_v61 }
 0xc93   : > { %12776 = vrcp.f32 %v10137_v34 }
 0xc94   : > { %12778 = vrcp.f32 %v10135_v53  ;;  %v10516_v62 = vpop.permute.xlu0 %10515 }
 0xc95   : > { %12780 = vpow2.f32 %v11514_v20 }
 0xc96   : > { %12782 = vpow2.f32 %v11512_v58 }
 0xc97   : > { %12784 = vpow2.f32 %v11515_v14 }
 0xc98   : > { %12786 = vpow2.f32 %v11513_v5  ;;  %v10520_v47 = vpop.permute.xlu0 %10519 }
 0xc9b   : > { %v12773_v44 = vpop.eup %12772 }
 0xc9c   : > { %v12775_v4 = vpop.eup %12774  ;;  %10329 = vst.msk [vmem:[%s16100_s27 + $0x1d0] sm:$0xff] %vm10270_vm2, %v12773_v44  ;;  %v10524_v6 = vpop.permute.xlu0 %10523 }
 0xc9d   : > { %v12777_v51 = vpop.eup %12776  ;;  %10650 = vst.msk [vmem:[%s16100_s27 + $0x1d0] sm:$0xff] %vm10591_vm3, %v10516_v62 }
 0xc9e   : > { %10327 = vst.msk [vmem:[%s16100_s27 + $0x1c0] sm:$0xff] %vm10270_vm2, %v12775_v4  ;;  %v12779_v49 = vpop.eup %12778  ;;  %10330 = vst.msk [vmem:[%s16100_s27 + $0x1d8] sm:$0xff] %vm10270_vm2, %v12777_v51 }
 0xc9f   : > { %10648 = vst.msk [vmem:[%s16100_s27 + $0x1c0] sm:$0xff] %vm10591_vm3, %v10512_v42  ;;  %v12781_v21 = vpop.eup %12780  ;;  %10651 = vst.msk [vmem:[%s16100_s27 + $0x1d8] sm:$0xff] %vm10591_vm3, %v10518_v37 }
 0xca0   : > { %10328 = vst.msk [vmem:[%s16100_s27 + $0x1c8] sm:$0xff] %vm10270_vm2, %v12779_v49  ;;  %v12783_v8 = vpop.eup %12782  ;;  %v10140_v63 = vadd.f32 1.0, %v12781_v21 }
 0xca1   : > { %10649 = vst.msk [vmem:[%s16100_s27 + $0x1c8] sm:$0xff] %vm10591_vm3, %v10514_v3  ;;  %v12785_v30 = vpop.eup %12784  ;;  %v10138_v16 = vadd.f32 1.0, %v12783_v8 }
 0xca2   : > { %v12787_v59 = vpop.eup %12786  ;;  %12788 = vrcp.f32 %v10140_v63  ;;  %v10141_v38 = vadd.f32 1.0, %v12785_v30 }
 0xca3   : > { %12790 = vrcp.f32 %v10138_v16  ;;  %v10139_v15 = vadd.f32 1.0, %v12787_v59 }
 0xca4   : > { %12792 = vrcp.f32 %v10141_v38 }
 0xca5   : > { %12794 = vrcp.f32 %v10139_v15 }
 0xcac   : > { %v12789_v39 = vpop.eup %12788 }
 0xcad   : > { %v12791_v50 = vpop.eup %12790  ;;  %10333 = vst.msk [vmem:[%s16100_s27 + $0x1f0] sm:$0xff] %vm10270_vm2, %v12789_v39 }
 0xcae   : > { %v12793_v33 = vpop.eup %12792  ;;  %10654 = vst.msk [vmem:[%s16100_s27 + $0x1f0] sm:$0xff] %vm10591_vm3, %v10524_v6 }
 0xcaf   : > { %10331 = vst.msk [vmem:[%s16100_s27 + $0x1e0] sm:$0xff] %vm10270_vm2, %v12791_v50  ;;  %v12795_v57 = vpop.eup %12794  ;;  %10334 = vst.msk [vmem:[%s16100_s27 + $0x1f8] sm:$0xff] %vm10270_vm2, %v12793_v33 }
 0xcb0   : > { %10652 = vst.msk [vmem:[%s16100_s27 + $0x1e0] sm:$0xff] %vm10591_vm3, %v10520_v47  ;;  %10655 = vst.msk [vmem:[%s16100_s27 + $0x1f8] sm:$0xff] %vm10591_vm3, %v10526_v17 }
 0xcb1   : > { %10332 = vst.msk [vmem:[%s16100_s27 + $0x1e8] sm:$0xff] %vm10270_vm2, %v12795_v57 }
 0xcb2   : > { %10653 = vst.msk [vmem:[%s16100_s27 + $0x1e8] sm:$0xff] %vm10591_vm3, %v10522_v7 }
 0xcb3 PF: > { %s22_s21 = sadd.s32 1, %s12851_s21  }
 0xcb4   : > { %p19_p4 = scmp.ge.s32.totalorder %s22_s21, 4  }
 0xcb6   :  { %21 = sbr.rel (!%p19_p4) target bundleno = 1 (0x1), region = 109 }

</bundles_post_ra>
